<compile_context>
chip_gen: v6e
topology: v6e:2x2x1
jax: 0.10.0
libtpu: 0.0.40
codegen_flags: <defaults>
</compile_context>

<pallas_src>
import jax
import jax.numpy as jnp
import numpy as np
from jax.experimental import pallas as pl
from jax.experimental.pallas import tpu as pltpu

_K = 5            # Conv1d kernel size (all layers)
_L_UP = 256       # F.interpolate target length
_BN_EPS = 1e-5

_CONV_CHANNELS = [(1, 32), (32, 32), (32, 64), (64, 64), (64, 128),
                  (128, 128), (128, 256), (256, 256), (256, 512), (512, 512)]
_LINEARS = [(2048, 128), (128, 32), (32, 1)]

# Activation scratch (shape, dtype). a1-a6 are the large (C,L) im2col sources -> bf16.
# a0 stays f32 so conv1's sublane concat stays on aligned 8-row f32 tiles; a7-a9 are
# tiny (L,C) buffers kept f32 so the fused conv_lc im2col never slices packed bf16 rows
# at odd sublane offsets.
_ACT_SCRATCH = [
    ((8, 256),  jnp.float32),    # a0 : interpolated signal, C_in padded 1 -> 8   (C, L)
    ((32, 252), jnp.bfloat16),   # a1 : bn(relu(conv1))                            (C, L)
    ((32, 248), jnp.bfloat16),   # a2 : relu(conv2)                                (C, L)
    ((64, 122), jnp.bfloat16),   # a3 : maxpool(relu(conv3))                       (C, L)
    ((64, 118), jnp.bfloat16),   # a4 : relu(conv4)                                (C, L)
    ((128, 57), jnp.bfloat16),   # a5 : maxpool(relu(conv5))                       (C, L)
    ((128, 53), jnp.bfloat16),   # a6 : relu(conv6)                                (C, L)
    ((24, 256), jnp.float32),    # a7 : maxpool(relu(conv7))                       (L, C)
    ((20, 256), jnp.float32),    # a8 : relu(conv8)                                (L, C)
    ((8, 512),  jnp.float32),    # a9 : maxpool(relu(conv9))                       (L, C)
]


# --------------------------------------------------------------------------------------
# Fused Pallas kernel
# --------------------------------------------------------------------------------------
def _cnn1d_fused_kernel(
        # ---- inputs -------------------------------------------------------------
        nf_ref,                       # (1, 1) f32, SMEM : norm_factor
        sig_ref,                      # (8, L_in) f32    : raw signal in row 0
        interp_ref,                   # (L_in, 256) f32  : linear-interp matrix
        bns_ref, bnh_ref,             # (32, 1) f32      : folded eval-mode BatchNorm
        w1, b1, w2, b2, w3, b3, w4, b4, w5, b5,
        w6, b6, w7, b7,               # conv1-7 : w (C_out, K*C_in) bf16, b (C_out,1) f32
        b8, b9, b10,                  # conv8-10 biases (1, C_out) f32 (small -> VMEM)
        w8_hbm, w9_hbm, w10_hbm,      # conv8-10 weights (K*C_in, C_out) bf16, in HBM
        l1w_hbm,                      # linear1 weight (2048, 128) bf16, in HBM
        p3e, p3o, p5e, p5o,           # maxpool 0/1 selection matrices, bf16
        p7e, p7o, p9e, p9o,
        l1b, l2w, l2b, l3w, l3b,      # MLP head (pre-arranged at init, bf16 weights)
        # ---- outputs ------------------------------------------------------------
        o_ref,                        # (1, 1) f32
        # ---- VMEM scratch ---------------------------------------------------------
        a0, a1, a2, a3, a4, a5, a6, a7, a8, a9,
        w8_v, w9_v, w10_v, l1w_v,     # DMA landing buffers for the tail weights
        dma_sem):                     # (4,) DMA semaphores
    f32, bf16 = jnp.float32, jnp.bfloat16

    # Kick off the tail-layer weight DMAs immediately so they overlap conv1-7 compute
    # instead of serializing in front of the first matmul (no grid => no auto-pipeline).
    cp_w8 = pltpu.make_async_copy(w8_hbm, w8_v, dma_sem.at[0])
    cp_w9 = pltpu.make_async_copy(w9_hbm, w9_v, dma_sem.at[1])
    cp_w10 = pltpu.make_async_copy(w10_hbm, w10_v, dma_sem.at[2])
    cp_l1w = pltpu.make_async_copy(l1w_hbm, l1w_v, dma_sem.at[3])
    cp_w8.start(); cp_w9.start(); cp_w10.start(); cp_l1w.start()

    def conv_cl(a_ref, w_ref, b_ref):
        """(C_in, L_in) -> (C_out, L_in-4) f32: one deep im2col matmul + bias + ReLU."""
        l_out = a_ref.shape[1] - _K + 1
        # im2col: rows [k*C_in:(k+1)*C_in] = x shifted by tap k (sublane-aligned concat)
        xim = jnp.concatenate([a_ref[:, k:k + l_out] for k in range(_K)], axis=0)
        y = jnp.dot(w_ref[...], xim.astype(bf16), preferred_element_type=f32)
        return jnp.maximum(y + b_ref[...], 0.0)

    def conv_lc(a_ref, w_ref, b_ref):
        """(L_in, C_in) -> (L_in-4, C_out) f32: the K shifted slices are lane-concatenated
        into (l_out, K*C_in) so the whole layer is ONE deep matmul (no serial per-tap
        accumulation chain)."""
        l_out = a_ref.shape[0] - _K + 1
        xim = jnp.concatenate([a_ref[k:k + l_out, :] for k in range(_K)], axis=1)
        y = jnp.dot(xim.astype(bf16), w_ref[...], preferred_element_type=f32)
        return jnp.maximum(y + b_ref[...], 0.0)

    def pool_cl(x, se, so):
        """MaxPool1d(2) over the lane (L) axis of a (C, L) bf16 value via precomputed
        bf16 0/1 selection matmuls on the otherwise idle MXU."""
        return jnp.maximum(jnp.dot(x, se[...], preferred_element_type=f32),
                           jnp.dot(x, so[...], preferred_element_type=f32))

    def pool_lc_t(x, se, so):
        """MaxPool1d(2) of a (C, L) bf16 value fused with the (C,L)->(L//2,C) layout
        switch: pooled[j, c] = max(x[c, 2j], x[c, 2j+1])   (A @ B^T on the MXU)."""
        nt = (((1,), (1,)), ((), ()))
        return jnp.maximum(
            jax.lax.dot_general(se[...], x, nt, preferred_element_type=f32),
            jax.lax.dot_general(so[...], x, nt, preferred_element_type=f32))

    def pool_lc(x, se, so):
        """MaxPool1d(2) over the sublane (L) axis of an (L, C) bf16 value."""
        return jnp.maximum(jnp.dot(se[...], x, preferred_element_type=f32),
                           jnp.dot(so[...], x, preferred_element_type=f32))

    # F.interpolate(..., 256, 'linear', align_corners=False) as a matmul; rows 1..7 of
    # sig are zero so a0 rows 1..7 (padded input channels for conv1) stay zero.
    a0[...] = jnp.dot(sig_ref[...], interp_ref[...], preferred_element_type=f32)

    # eval-mode BatchNorm1d is a per-channel affine applied AFTER ReLU (bn(relu(conv1))).
    a1[...] = (conv_cl(a0, w1, b1) * bns_ref[...] + bnh_ref[...]).astype(bf16)
    a2[...] = conv_cl(a1, w2, b2).astype(bf16)                                # (32, 248)
    a3[...] = pool_cl(conv_cl(a2, w3, b3).astype(bf16), p3e, p3o).astype(bf16)  # (64,122)
    a4[...] = conv_cl(a3, w4, b4).astype(bf16)                                # (64, 118)
    a5[...] = pool_cl(conv_cl(a4, w5, b5).astype(bf16), p5e, p5o).astype(bf16)  # (128,57)
    a6[...] = conv_cl(a5, w6, b6).astype(bf16)                                # (128, 53)
    # conv7 + (dropout = id) + maxpool; the pool also switches to the lane-dense (L, C)
    # layout used by conv8-10.
    a7[...] = pool_lc_t(conv_cl(a6, w7, b7).astype(bf16), p7e, p7o)           # (24, 256)

    cp_w8.wait()
    a8[...] = conv_lc(a7, w8_v, b8)                                           # (20, 256)
    cp_w9.wait()
    a9[...] = pool_lc(conv_lc(a8, w9_v, b9).astype(bf16), p9e, p9o)           # (8, 512)
    cp_w10.wait()
    h10 = conv_lc(a9, w10_v, b10)                                             # (4, 512)

    # MLP head: flatten conv10's (L=4, C=512) output lane-wise into (1, 2048) (matching
    # the regrouped linear1 weight) so linear1 is ONE matmul instead of 4 dependent ones.
    flat = jnp.concatenate([h10[l:l + 1, :] for l in range(4)], axis=1).astype(bf16)
    cp_l1w.wait()
    z = jnp.dot(flat, l1w_v[...], preferred_element_type=f32) + l1b[...]
    z = jnp.dot(z.astype(bf16), l2w[...], preferred_element_type=f32) + l2b[...]
    z = jnp.dot(z.astype(bf16), l3w[...], preferred_element_type=f32) + l3b[...]
    o_ref[...] = z * nf_ref[0, 0]                  # .view(1) * norm_factor


# --------------------------------------------------------------------------------------
# One-time parameter preparation (hoisted out of the forward pass)
# --------------------------------------------------------------------------------------
def init_params(key):
    """PyTorch-layout parameters (Conv1d: (C_out, C_in, K); Linear: (out, in)), f32."""
    params = {}
    for i, (cin, cout) in enumerate(_CONV_CHANNELS, start=1):
        key, kw, kb = jax.random.split(key, 3)
        bound = (cin * _K) ** -0.5
        params[f"conv{i}_w"] = jax.random.uniform(kw, (cout, cin, _K), jnp.float32, -bound, bound)
        params[f"conv{i}_b"] = jax.random.uniform(kb, (cout,), jnp.float32, -bound, bound)
    for i, (fin, fout) in enumerate(_LINEARS, start=1):
        key, kw, kb = jax.random.split(key, 3)
        bound = fin ** -0.5
        params[f"linear{i}_w"] = jax.random.uniform(kw, (fout, fin), jnp.float32, -bound, bound)
        params[f"linear{i}_b"] = jax.random.uniform(kb, (fout,), jnp.float32, -bound, bound)
    # BatchNorm1d(32), eval mode (running stats / affine)
    params["bn_gamma"] = jnp.ones((32,), jnp.float32)
    params["bn_beta"] = jnp.zeros((32,), jnp.float32)
    params["bn_mean"] = jnp.zeros((32,), jnp.float32)
    params["bn_var"] = jnp.ones((32,), jnp.float32)
    return params


def _pool_masks(l):
    """Even/odd 0/1 selection matrices of shape (l, l//2) for MaxPool1d(2)."""
    lp = l // 2
    cols = np.arange(lp)
    me = np.zeros((l, lp), np.float32)
    mo = np.zeros((l, lp), np.float32)
    me[2 * cols, cols] = 1.0
    mo[2 * cols + 1, cols] = 1.0
    return me, mo


def prepare_params(p):
    """Kernel-ready weights, computed once: im2col regrouping, layout transposes,
    BN folding, pool-mask construction and the bf16 cast all happen here."""
    out = {}
    # conv1: pad C_in 1 -> 8 so the im2col contraction dim is sublane-aligned.
    w1 = jnp.zeros((32, 8, _K), jnp.float32).at[:, :1, :].set(p["conv1_w"])
    conv_ws = [w1] + [p[f"conv{i}_w"] for i in range(2, 11)]
    for i, w in enumerate(conv_ws, start=1):
        co, ci, k = w.shape
        if i <= 7:   # (C, L) layers: weight (C_out, K*C_in), bias (C_out, 1)
            out[f"cw{i}"] = jnp.transpose(w, (0, 2, 1)).reshape(co, k * ci).astype(jnp.bfloat16)
            out[f"cb{i}"] = p[f"conv{i}_b"].reshape(co, 1).astype(jnp.float32)
        else:        # (L, C) layers: weight (K*C_in, C_out), bias (1, C_out)
            out[f"cw{i}"] = jnp.transpose(w, (2, 1, 0)).reshape(k * ci, co).astype(jnp.bfloat16)
            out[f"cb{i}"] = p[f"conv{i}_b"].reshape(1, co).astype(jnp.float32)
    # eval-mode BatchNorm1d folded to a per-channel affine applied after ReLU(conv1).
    scale = p["bn_gamma"] / jnp.sqrt(p["bn_var"] + _BN_EPS)
    out["bn_scale"] = scale.reshape(32, 1).astype(jnp.float32)
    out["bn_shift"] = (p["bn_beta"] - p["bn_mean"] * scale).reshape(32, 1).astype(jnp.float32)
    # linear1: regroup (out, C*L) -> rows ordered (l*512 + c) so a lane-concat flatten of
    # the (L=4, C=512) conv10 activation hits one (1,2048)x(2048,128) matmul.
    out["l1w"] = jnp.transpose(p["linear1_w"].reshape(128, 512, 4),
                               (2, 1, 0)).reshape(2048, 128).astype(jnp.bfloat16)
    out["l1b"] = p["linear1_b"].reshape(1, 128).astype(jnp.float32)
    out["l2w"] = p["linear2_w"].T.astype(jnp.bfloat16)
    out["l2b"] = p["linear2_b"].reshape(1, 32).astype(jnp.float32)
    out["l3w"] = p["linear3_w"].T.astype(jnp.bfloat16)
    out["l3b"] = p["linear3_b"].reshape(1, 1).astype(jnp.float32)
    # MaxPool1d(2) selection matrices, bf16. p3/p5: (L, L//2) for (C,L)@M; p7/p9:
    # (L//2, L) for the (L,C)-producing pools.
    for name, l, transposed in [("p3", 244, False), ("p5", 114, False),
                                ("p7", 49, True), ("p9", 16, True)]:
        me, mo = _pool_masks(l)
        if transposed:
            me, mo = me.T, mo.T
        out[f"{name}e"] = jnp.asarray(me, jnp.bfloat16)
        out[f"{name}o"] = jnp.asarray(mo, jnp.bfloat16)
    return out


def _interp_matrix(l_in, l_out):
    """(l_in, l_out) matrix M with sig @ M == F.interpolate(sig, l_out, mode='linear',
    align_corners=False).  Built once at trace time with numpy (static shapes)."""
    scale = l_in / l_out
    src = (np.arange(l_out, dtype=np.float64) + 0.5) * scale - 0.5
    src = np.clip(src, 0.0, l_in - 1.0)
    lo = np.floor(src).astype(np.int64)
    hi = np.minimum(lo + 1, l_in - 1)
    w = (src - lo).astype(np.float32)
    m = np.zeros((l_in, l_out), np.float32)
    cols = np.arange(l_out)
    m[lo, cols] += (1.0 - w)
    m[hi, cols] += w
    return m


# --------------------------------------------------------------------------------------
# Forward pass: one fused pallas_call, jitted
# --------------------------------------------------------------------------------------
def _forward(prepped, x, norm_factor):
    l_in = x.shape[-1]
    sig = x[1].astype(jnp.float32)                                    # torch: x[1]
    sig8 = jnp.zeros((8, l_in), jnp.float32).at[0].set(sig)           # padded C_in rows
    interp_m = jnp.asarray(_interp_matrix(l_in, _L_UP))               # trace-time const
    nf = jnp.asarray(norm_factor, jnp.float32).reshape(1, 1)

    vmem = pl.BlockSpec(memory_space=pltpu.MemorySpace.VMEM)
    smem = pl.BlockSpec(memory_space=pltpu.MemorySpace.SMEM)
    hbm = pl.BlockSpec(memory_space=pl.ANY)        # stays in HBM; DMA'd inside kernel

    args, specs = [], []

    def add(a, s=vmem):
        args.append(a)
        specs.append(s)

    add(nf, smem)
    add(sig8); add(interp_m)
    add(prepped["bn_scale"]); add(prepped["bn_shift"])
    for i in range(1, 8):
        add(prepped[f"cw{i}"]); add(prepped[f"cb{i}"])
    add(prepped["cb8"]); add(prepped["cb9"]); add(prepped["cb10"])
    add(prepped["cw8"], hbm); add(prepped["cw9"], hbm); add(prepped["cw10"], hbm)
    add(prepped["l1w"], hbm)
    for n in ("p3e", "p3o", "p5e", "p5o", "p7e", "p7o", "p9e", "p9o"):
        add(prepped[n])
    add(prepped["l1b"]); add(prepped["l2w"]); add(prepped["l2b"])
    add(prepped["l3w"]); add(prepped["l3b"])

    scratch = [pltpu.VMEM(s, d) for s, d in _ACT_SCRATCH]
    scratch += [pltpu.VMEM((_K * 256, 256), jnp.bfloat16),   # w8 landing buffer
                pltpu.VMEM((_K * 256, 512), jnp.bfloat16),   # w9
                pltpu.VMEM((_K * 512, 512), jnp.bfloat16),   # w10
                pltpu.VMEM((2048, 128), jnp.bfloat16),       # l1w
                pltpu.SemaphoreType.DMA((4,))]

    out = pl.pallas_call(
        _cnn1d_fused_kernel,
        out_shape=jax.ShapeDtypeStruct((1, 1), jnp.float32),
        in_specs=specs,
        out_specs=pl.BlockSpec(memory_space=pltpu.MemorySpace.VMEM),
        scratch_shapes=scratch,
        compiler_params=pltpu.CompilerParams(
            vmem_limit_bytes=20 * 1024 * 1024),   # ~7 MB actually used; fits v7x's 64 MiB
    )(*args)
    return out.reshape(1)


cnn1d_forward = jax.jit(_forward)


# --------------------------------------------------------------------------------------
# Pure-JAX f32 reference of the PyTorch module (eval mode) for a tolerance check
# --------------------------------------------------------------------------------------
def _reference_forward(p, x, norm_factor):
    sig = x[1].astype(jnp.float32)
    a = sig[None, :] @ jnp.asarray(_interp_matrix(sig.shape[0], _L_UP))   # (1, 256)

    def conv(a, i):
        w, b = p[f"conv{i}_w"], p[f"conv{i}_b"]
        lo = a.shape[1] - _K + 1
        cols = jnp.stack([a[:, k:k + lo] for k in range(_K)], axis=1)     # (Cin, K, lo)
        return jnp.einsum("oik,iks->os", w, cols) + b[:, None]

    relu = lambda v: jnp.maximum(v, 0.0)

    def pool(v):
        lo = (v.shape[1] // 2) * 2
        return jnp.maximum(v[:, 0:lo:2], v[:, 1:lo:2])

    a = relu(conv(a, 1))
    s = p["bn_gamma"] / jnp.sqrt(p["bn_var"] + _BN_EPS)
    a = a * s[:, None] + (p["bn_beta"] - p["bn_mean"] * s)[:, None]
    a = relu(conv(a, 2))
    a = pool(relu(conv(a, 3)))
    a = relu(conv(a, 4))
    a = pool(relu(conv(a, 5)))
    a = relu(conv(a, 6))
    a = pool(relu(conv(a, 7)))              # dropout = identity (eval)
    a = relu(conv(a, 8))
    a = pool(relu(conv(a, 9)))
    a = relu(conv(a, 10))
    z = a.reshape(1, -1)                    # torch Flatten of (1, C, L): channel-major
    z = z @ p["linear1_w"].T + p["linear1_b"]
    z = z @ p["linear2_w"].T + p["linear2_b"]
    z = z @ p["linear3_w"].T + p["linear3_b"]
    return z.reshape(1) * norm_factor


# --------------------------------------------------------------------------------------
if __name__ == "__main__":
    key = jax.random.PRNGKey(0)
    pkey, xkey, bkey = jax.random.split(key, 3)

    params = init_params(pkey)
    # Non-trivial eval-mode BN running stats so the folded affine is actually exercised.
    k1, k2, k3, k4 = jax.random.split(bkey, 4)
    params["bn_gamma"] = 1.0 + 0.2 * jax.random.normal(k1, (32,), jnp.float32)
    params["bn_beta"] = 0.1 * jax.random.normal(k2, (32,), jnp.float32)
    params["bn_mean"] = 0.1 * jax.random.normal(k3, (32,), jnp.float32)
    params["bn_var"] = 1.0 + 0.2 * jax.random.uniform(k4, (32,), jnp.float32)

    prepped = prepare_params(params)          # one-time weight prep (not per forward)
    norm_factor = 2.5
    x = jax.random.normal(xkey, (2, 16), jnp.float32)   # module uses x[1], upsamples to 256

    out = jax.block_until_ready(cnn1d_forward(prepped, x, norm_factor))
    assert out.shape == (1,), out.shape
    assert bool(jnp.all(jnp.isfinite(out)))

    ref = jax.block_until_ready(_reference_forward(params, x, norm_factor))
    err = float(jnp.abs(out - ref)[0])
    tol = 1e-2 + 5e-2 * float(jnp.abs(ref)[0])   # loose: bf16 weights/activations
    assert err <= tol, (float(out[0]), float(ref[0]), err, tol)

    print("KERNEL_OK")
</pallas_src>

<mosaic_0001>
module attributes {stable_mosaic.version = 11 : i64} {
  func.func @_cnn1d_fused_kernel(%arg0: memref<1x1xf32, #tpu.memory_space<smem>>, %arg1: memref<8x16xf32, #tpu.memory_space<vmem>>, %arg2: memref<16x256xf32, #tpu.memory_space<vmem>>, %arg3: memref<32x1xf32, #tpu.memory_space<vmem>>, %arg4: memref<32x1xf32, #tpu.memory_space<vmem>>, %arg5: memref<32x40xbf16, #tpu.memory_space<vmem>>, %arg6: memref<32x1xf32, #tpu.memory_space<vmem>>, %arg7: memref<32x160xbf16, #tpu.memory_space<vmem>>, %arg8: memref<32x1xf32, #tpu.memory_space<vmem>>, %arg9: memref<64x160xbf16, #tpu.memory_space<vmem>>, %arg10: memref<64x1xf32, #tpu.memory_space<vmem>>, %arg11: memref<64x320xbf16, #tpu.memory_space<vmem>>, %arg12: memref<64x1xf32, #tpu.memory_space<vmem>>, %arg13: memref<128x320xbf16, #tpu.memory_space<vmem>>, %arg14: memref<128x1xf32, #tpu.memory_space<vmem>>, %arg15: memref<128x640xbf16, #tpu.memory_space<vmem>>, %arg16: memref<128x1xf32, #tpu.memory_space<vmem>>, %arg17: memref<256x640xbf16, #tpu.memory_space<vmem>>, %arg18: memref<256x1xf32, #tpu.memory_space<vmem>>, %arg19: memref<1x256xf32, #tpu.memory_space<vmem>>, %arg20: memref<1x512xf32, #tpu.memory_space<vmem>>, %arg21: memref<1x512xf32, #tpu.memory_space<vmem>>, %arg22: memref<1280x256xbf16, #tpu.memory_space<any>>, %arg23: memref<1280x512xbf16, #tpu.memory_space<any>>, %arg24: memref<2560x512xbf16, #tpu.memory_space<any>>, %arg25: memref<2048x128xbf16, #tpu.memory_space<any>>, %arg26: memref<244x122xbf16, #tpu.memory_space<vmem>>, %arg27: memref<244x122xbf16, #tpu.memory_space<vmem>>, %arg28: memref<114x57xbf16, #tpu.memory_space<vmem>>, %arg29: memref<114x57xbf16, #tpu.memory_space<vmem>>, %arg30: memref<24x49xbf16, #tpu.memory_space<vmem>>, %arg31: memref<24x49xbf16, #tpu.memory_space<vmem>>, %arg32: memref<8x16xbf16, #tpu.memory_space<vmem>>, %arg33: memref<8x16xbf16, #tpu.memory_space<vmem>>, %arg34: memref<1x128xf32, #tpu.memory_space<vmem>>, %arg35: memref<128x32xbf16, #tpu.memory_space<vmem>>, %arg36: memref<1x32xf32, #tpu.memory_space<vmem>>, %arg37: memref<32x1xbf16, #tpu.memory_space<vmem>>, %arg38: memref<1x1xf32, #tpu.memory_space<vmem>>, %arg39: memref<1x1xf32, #tpu.memory_space<vmem>>, %arg40: memref<8x256xf32, #tpu.memory_space<vmem>>, %arg41: memref<32x252xbf16, #tpu.memory_space<vmem>>, %arg42: memref<32x248xbf16, #tpu.memory_space<vmem>>, %arg43: memref<64x122xbf16, #tpu.memory_space<vmem>>, %arg44: memref<64x118xbf16, #tpu.memory_space<vmem>>, %arg45: memref<128x57xbf16, #tpu.memory_space<vmem>>, %arg46: memref<128x53xbf16, #tpu.memory_space<vmem>>, %arg47: memref<24x256xf32, #tpu.memory_space<vmem>>, %arg48: memref<20x256xf32, #tpu.memory_space<vmem>>, %arg49: memref<8x512xf32, #tpu.memory_space<vmem>>, %arg50: memref<1280x256xbf16, #tpu.memory_space<vmem>>, %arg51: memref<1280x512xbf16, #tpu.memory_space<vmem>>, %arg52: memref<2560x512xbf16, #tpu.memory_space<vmem>>, %arg53: memref<2048x128xbf16, #tpu.memory_space<vmem>>, %arg54: memref<4x!tpu.dma_semaphore, #tpu.memory_space<semaphore_mem>>) attributes {dimension_semantics = [], scalar_prefetch = 0 : i64, scratch_operands = 15 : i64, tpu.core_type = #tpu.core_type<tc>} {
    %c0_i32 = arith.constant 0 : i32
    %0 = tpu.memref_slice %arg54[%c0_i32] : memref<4x!tpu.dma_semaphore, #tpu.memory_space<semaphore_mem>> -> memref<1x!tpu.dma_semaphore, #tpu.memory_space<semaphore_mem>>
    %1 = tpu.memref_squeeze %0 : memref<1x!tpu.dma_semaphore, #tpu.memory_space<semaphore_mem>> -> memref<!tpu.dma_semaphore, #tpu.memory_space<semaphore_mem>>
    tpu.enqueue_dma source(%arg22 : memref<1280x256xbf16, #tpu.memory_space<any>>) target(%arg50 : memref<1280x256xbf16, #tpu.memory_space<vmem>>) target_semaphore(%1 : memref<!tpu.dma_semaphore, #tpu.memory_space<semaphore_mem>>)
    %c1_i32 = arith.constant 1 : i32
    %2 = tpu.memref_slice %arg54[%c1_i32] : memref<4x!tpu.dma_semaphore, #tpu.memory_space<semaphore_mem>> -> memref<1x!tpu.dma_semaphore, #tpu.memory_space<semaphore_mem>>
    %3 = tpu.memref_squeeze %2 : memref<1x!tpu.dma_semaphore, #tpu.memory_space<semaphore_mem>> -> memref<!tpu.dma_semaphore, #tpu.memory_space<semaphore_mem>>
    tpu.enqueue_dma source(%arg23 : memref<1280x512xbf16, #tpu.memory_space<any>>) target(%arg51 : memref<1280x512xbf16, #tpu.memory_space<vmem>>) target_semaphore(%3 : memref<!tpu.dma_semaphore, #tpu.memory_space<semaphore_mem>>)
    %c2_i32 = arith.constant 2 : i32
    %4 = tpu.memref_slice %arg54[%c2_i32] : memref<4x!tpu.dma_semaphore, #tpu.memory_space<semaphore_mem>> -> memref<1x!tpu.dma_semaphore, #tpu.memory_space<semaphore_mem>>
    %5 = tpu.memref_squeeze %4 : memref<1x!tpu.dma_semaphore, #tpu.memory_space<semaphore_mem>> -> memref<!tpu.dma_semaphore, #tpu.memory_space<semaphore_mem>>
    tpu.enqueue_dma source(%arg24 : memref<2560x512xbf16, #tpu.memory_space<any>>) target(%arg52 : memref<2560x512xbf16, #tpu.memory_space<vmem>>) target_semaphore(%5 : memref<!tpu.dma_semaphore, #tpu.memory_space<semaphore_mem>>)
    %c3_i32 = arith.constant 3 : i32
    %6 = tpu.memref_slice %arg54[%c3_i32] : memref<4x!tpu.dma_semaphore, #tpu.memory_space<semaphore_mem>> -> memref<1x!tpu.dma_semaphore, #tpu.memory_space<semaphore_mem>>
    %7 = tpu.memref_squeeze %6 : memref<1x!tpu.dma_semaphore, #tpu.memory_space<semaphore_mem>> -> memref<!tpu.dma_semaphore, #tpu.memory_space<semaphore_mem>>
    tpu.enqueue_dma source(%arg25 : memref<2048x128xbf16, #tpu.memory_space<any>>) target(%arg53 : memref<2048x128xbf16, #tpu.memory_space<vmem>>) target_semaphore(%7 : memref<!tpu.dma_semaphore, #tpu.memory_space<semaphore_mem>>)
    %c0 = arith.constant 0 : index
    %c0_0 = arith.constant 0 : index
    %8 = vector.load %arg1[%c0, %c0_0] : memref<8x16xf32, #tpu.memory_space<vmem>>, vector<8x16xf32>
    %c0_1 = arith.constant 0 : index
    %c0_2 = arith.constant 0 : index
    %9 = vector.load %arg2[%c0_1, %c0_2] : memref<16x256xf32, #tpu.memory_space<vmem>>, vector<16x256xf32>
    %cst = arith.constant dense<0.000000e+00> : vector<8x256xf32>
    %10 = tpu.matmul %8, %9, %cst {dimension_numbers = #tpu.dot_dimension_numbers<[1], [0], [0], [1], [0, 0, 1, 1], [], []>} : vector<8x16xf32>, vector<16x256xf32>, vector<8x256xf32> -> vector<8x256xf32>
    %c0_3 = arith.constant 0 : index
    %c0_4 = arith.constant 0 : index
    %11 = vector.load %arg40[%c0_3, %c0_4] : memref<8x256xf32, #tpu.memory_space<vmem>>, vector<8x256xf32>
    tpu.vector_store %arg40[%c0_3, %c0_4], %10 {strides = array<i32>} : memref<8x256xf32, #tpu.memory_space<vmem>>, vector<8x256xf32>,
    %c0_5 = arith.constant 0 : index
    %c0_6 = arith.constant 0 : index
    %12 = vector.load %arg40[%c0_5, %c0_6] : memref<8x256xf32, #tpu.memory_space<vmem>>, vector<8x252xf32>
    %c0_7 = arith.constant 0 : index
    %c1 = arith.constant 1 : index
    %13 = vector.load %arg40[%c0_7, %c1] : memref<8x256xf32, #tpu.memory_space<vmem>>, vector<8x252xf32>
    %c0_8 = arith.constant 0 : index
    %c2 = arith.constant 2 : index
    %14 = vector.load %arg40[%c0_8, %c2] : memref<8x256xf32, #tpu.memory_space<vmem>>, vector<8x252xf32>
    %c0_9 = arith.constant 0 : index
    %c3 = arith.constant 3 : index
    %15 = vector.load %arg40[%c0_9, %c3] : memref<8x256xf32, #tpu.memory_space<vmem>>, vector<8x252xf32>
    %c0_10 = arith.constant 0 : index
    %c4 = arith.constant 4 : index
    %16 = vector.load %arg40[%c0_10, %c4] : memref<8x256xf32, #tpu.memory_space<vmem>>, vector<8x252xf32>
    %17 = tpu.concatenate %12, %13, %14, %15, %16 in 0 : vector<8x252xf32>, vector<8x252xf32>, vector<8x252xf32>, vector<8x252xf32>, vector<8x252xf32> -> vector<40x252xf32>
    %c0_11 = arith.constant 0 : index
    %c0_12 = arith.constant 0 : index
    %18 = vector.load %arg5[%c0_11, %c0_12] : memref<32x40xbf16, #tpu.memory_space<vmem>>, vector<32x40xbf16>
    %19 = arith.truncf %17 : vector<40x252xf32> to vector<40x252xbf16>
    %cst_13 = arith.constant dense<0.000000e+00> : vector<32x252xf32>
    %20 = tpu.matmul %18, %19, %cst_13 {dimension_numbers = #tpu.dot_dimension_numbers<[1], [0], [0], [1], [0, 0, 1, 1], [], []>} : vector<32x40xbf16>, vector<40x252xbf16>, vector<32x252xf32> -> vector<32x252xf32>
    %c0_14 = arith.constant 0 : index
    %c0_15 = arith.constant 0 : index
    %21 = vector.load %arg6[%c0_14, %c0_15] : memref<32x1xf32, #tpu.memory_space<vmem>>, vector<32x1xf32>
    %22 = vector.broadcast %21 : vector<32x1xf32> to vector<32x252xf32>
    %23 = arith.addf %20, %22 : vector<32x252xf32>
    %cst_16 = arith.constant 0.000000e+00 : f32
    %24 = vector.broadcast %cst_16 : f32 to vector<32x252xf32>
    %25 = arith.maximumf %23, %24 : vector<32x252xf32>
    %c0_17 = arith.constant 0 : index
    %c0_18 = arith.constant 0 : index
    %26 = vector.load %arg3[%c0_17, %c0_18] : memref<32x1xf32, #tpu.memory_space<vmem>>, vector<32x1xf32>
    %27 = vector.broadcast %26 : vector<32x1xf32> to vector<32x252xf32>
    %28 = arith.mulf %25, %27 : vector<32x252xf32>
    %c0_19 = arith.constant 0 : index
    %c0_20 = arith.constant 0 : index
    %29 = vector.load %arg4[%c0_19, %c0_20] : memref<32x1xf32, #tpu.memory_space<vmem>>, vector<32x1xf32>
    %30 = vector.broadcast %29 : vector<32x1xf32> to vector<32x252xf32>
    %31 = arith.addf %28, %30 : vector<32x252xf32>
    %32 = arith.truncf %31 : vector<32x252xf32> to vector<32x252xbf16>
    %c0_21 = arith.constant 0 : index
    %c0_22 = arith.constant 0 : index
    %33 = vector.load %arg41[%c0_21, %c0_22] : memref<32x252xbf16, #tpu.memory_space<vmem>>, vector<32x252xbf16>
    tpu.vector_store %arg41[%c0_21, %c0_22], %32 {strides = array<i32>} : memref<32x252xbf16, #tpu.memory_space<vmem>>, vector<32x252xbf16>,
    %c0_23 = arith.constant 0 : index
    %c0_24 = arith.constant 0 : index
    %34 = vector.load %arg41[%c0_23, %c0_24] : memref<32x252xbf16, #tpu.memory_space<vmem>>, vector<32x248xbf16>
    %c0_25 = arith.constant 0 : index
    %c1_26 = arith.constant 1 : index
    %35 = vector.load %arg41[%c0_25, %c1_26] : memref<32x252xbf16, #tpu.memory_space<vmem>>, vector<32x248xbf16>
    %c0_27 = arith.constant 0 : index
    %c2_28 = arith.constant 2 : index
    %36 = vector.load %arg41[%c0_27, %c2_28] : memref<32x252xbf16, #tpu.memory_space<vmem>>, vector<32x248xbf16>
    %c0_29 = arith.constant 0 : index
    %c3_30 = arith.constant 3 : index
    %37 = vector.load %arg41[%c0_29, %c3_30] : memref<32x252xbf16, #tpu.memory_space<vmem>>, vector<32x248xbf16>
    %c0_31 = arith.constant 0 : index
    %c4_32 = arith.constant 4 : index
    %38 = vector.load %arg41[%c0_31, %c4_32] : memref<32x252xbf16, #tpu.memory_space<vmem>>, vector<32x248xbf16>
    %39 = tpu.concatenate %34, %35, %36, %37, %38 in 0 : vector<32x248xbf16>, vector<32x248xbf16>, vector<32x248xbf16>, vector<32x248xbf16>, vector<32x248xbf16> -> vector<160x248xbf16>
    %c0_33 = arith.constant 0 : index
    %c0_34 = arith.constant 0 : index
    %40 = vector.load %arg7[%c0_33, %c0_34] : memref<32x160xbf16, #tpu.memory_space<vmem>>, vector<32x160xbf16>
    %cst_35 = arith.constant dense<0.000000e+00> : vector<32x248xf32>
    %41 = tpu.matmul %40, %39, %cst_35 {dimension_numbers = #tpu.dot_dimension_numbers<[1], [0], [0], [1], [0, 0, 1, 1], [], []>} : vector<32x160xbf16>, vector<160x248xbf16>, vector<32x248xf32> -> vector<32x248xf32>
    %c0_36 = arith.constant 0 : index
    %c0_37 = arith.constant 0 : index
    %42 = vector.load %arg8[%c0_36, %c0_37] : memref<32x1xf32, #tpu.memory_space<vmem>>, vector<32x1xf32>
    %43 = vector.broadcast %42 : vector<32x1xf32> to vector<32x248xf32>
    %44 = arith.addf %41, %43 : vector<32x248xf32>
    %cst_38 = arith.constant 0.000000e+00 : f32
    %45 = vector.broadcast %cst_38 : f32 to vector<32x248xf32>
    %46 = arith.maximumf %44, %45 : vector<32x248xf32>
    %47 = arith.truncf %46 : vector<32x248xf32> to vector<32x248xbf16>
    %c0_39 = arith.constant 0 : index
    %c0_40 = arith.constant 0 : index
    %48 = vector.load %arg42[%c0_39, %c0_40] : memref<32x248xbf16, #tpu.memory_space<vmem>>, vector<32x248xbf16>
    tpu.vector_store %arg42[%c0_39, %c0_40], %47 {strides = array<i32>} : memref<32x248xbf16, #tpu.memory_space<vmem>>, vector<32x248xbf16>,
    %c0_41 = arith.constant 0 : index
    %c0_42 = arith.constant 0 : index
    %49 = vector.load %arg42[%c0_41, %c0_42] : memref<32x248xbf16, #tpu.memory_space<vmem>>, vector<32x244xbf16>
    %c0_43 = arith.constant 0 : index
    %c1_44 = arith.constant 1 : index
    %50 = vector.load %arg42[%c0_43, %c1_44] : memref<32x248xbf16, #tpu.memory_space<vmem>>, vector<32x244xbf16>
    %c0_45 = arith.constant 0 : index
    %c2_46 = arith.constant 2 : index
    %51 = vector.load %arg42[%c0_45, %c2_46] : memref<32x248xbf16, #tpu.memory_space<vmem>>, vector<32x244xbf16>
    %c0_47 = arith.constant 0 : index
    %c3_48 = arith.constant 3 : index
    %52 = vector.load %arg42[%c0_47, %c3_48] : memref<32x248xbf16, #tpu.memory_space<vmem>>, vector<32x244xbf16>
    %c0_49 = arith.constant 0 : index
    %c4_50 = arith.constant 4 : index
    %53 = vector.load %arg42[%c0_49, %c4_50] : memref<32x248xbf16, #tpu.memory_space<vmem>>, vector<32x244xbf16>
    %54 = tpu.concatenate %49, %50, %51, %52, %53 in 0 : vector<32x244xbf16>, vector<32x244xbf16>, vector<32x244xbf16>, vector<32x244xbf16>, vector<32x244xbf16> -> vector<160x244xbf16>
    %c0_51 = arith.constant 0 : index
    %c0_52 = arith.constant 0 : index
    %55 = vector.load %arg9[%c0_51, %c0_52] : memref<64x160xbf16, #tpu.memory_space<vmem>>, vector<64x160xbf16>
    %cst_53 = arith.constant dense<0.000000e+00> : vector<64x244xf32>
    %56 = tpu.matmul %55, %54, %cst_53 {dimension_numbers = #tpu.dot_dimension_numbers<[1], [0], [0], [1], [0, 0, 1, 1], [], []>} : vector<64x160xbf16>, vector<160x244xbf16>, vector<64x244xf32> -> vector<64x244xf32>
    %c0_54 = arith.constant 0 : index
    %c0_55 = arith.constant 0 : index
    %57 = vector.load %arg10[%c0_54, %c0_55] : memref<64x1xf32, #tpu.memory_space<vmem>>, vector<64x1xf32>
    %58 = vector.broadcast %57 : vector<64x1xf32> to vector<64x244xf32>
    %59 = arith.addf %56, %58 : vector<64x244xf32>
    %cst_56 = arith.constant 0.000000e+00 : f32
    %60 = vector.broadcast %cst_56 : f32 to vector<64x244xf32>
    %61 = arith.maximumf %59, %60 : vector<64x244xf32>
    %62 = arith.truncf %61 : vector<64x244xf32> to vector<64x244xbf16>
    %c0_57 = arith.constant 0 : index
    %c0_58 = arith.constant 0 : index
    %63 = vector.load %arg26[%c0_57, %c0_58] : memref<244x122xbf16, #tpu.memory_space<vmem>>, vector<244x122xbf16>
    %cst_59 = arith.constant dense<0.000000e+00> : vector<64x122xf32>
    %64 = tpu.matmul %62, %63, %cst_59 {dimension_numbers = #tpu.dot_dimension_numbers<[1], [0], [0], [1], [0, 0, 1, 1], [], []>} : vector<64x244xbf16>, vector<244x122xbf16>, vector<64x122xf32> -> vector<64x122xf32>
    %c0_60 = arith.constant 0 : index
    %c0_61 = arith.constant 0 : index
    %65 = vector.load %arg27[%c0_60, %c0_61] : memref<244x122xbf16, #tpu.memory_space<vmem>>, vector<244x122xbf16>
    %cst_62 = arith.constant dense<0.000000e+00> : vector<64x122xf32>
    %66 = tpu.matmul %62, %65, %cst_62 {dimension_numbers = #tpu.dot_dimension_numbers<[1], [0], [0], [1], [0, 0, 1, 1], [], []>} : vector<64x244xbf16>, vector<244x122xbf16>, vector<64x122xf32> -> vector<64x122xf32>
    %67 = arith.maximumf %64, %66 : vector<64x122xf32>
    %68 = arith.truncf %67 : vector<64x122xf32> to vector<64x122xbf16>
    %c0_63 = arith.constant 0 : index
    %c0_64 = arith.constant 0 : index
    %69 = vector.load %arg43[%c0_63, %c0_64] : memref<64x122xbf16, #tpu.memory_space<vmem>>, vector<64x122xbf16>
    tpu.vector_store %arg43[%c0_63, %c0_64], %68 {strides = array<i32>} : memref<64x122xbf16, #tpu.memory_space<vmem>>, vector<64x122xbf16>,
    %c0_65 = arith.constant 0 : index
    %c0_66 = arith.constant 0 : index
    %70 = vector.load %arg43[%c0_65, %c0_66] : memref<64x122xbf16, #tpu.memory_space<vmem>>, vector<64x118xbf16>
    %c0_67 = arith.constant 0 : index
    %c1_68 = arith.constant 1 : index
    %71 = vector.load %arg43[%c0_67, %c1_68] : memref<64x122xbf16, #tpu.memory_space<vmem>>, vector<64x118xbf16>
    %c0_69 = arith.constant 0 : index
    %c2_70 = arith.constant 2 : index
    %72 = vector.load %arg43[%c0_69, %c2_70] : memref<64x122xbf16, #tpu.memory_space<vmem>>, vector<64x118xbf16>
    %c0_71 = arith.constant 0 : index
    %c3_72 = arith.constant 3 : index
    %73 = vector.load %arg43[%c0_71, %c3_72] : memref<64x122xbf16, #tpu.memory_space<vmem>>, vector<64x118xbf16>
    %c0_73 = arith.constant 0 : index
    %c4_74 = arith.constant 4 : index
    %74 = vector.load %arg43[%c0_73, %c4_74] : memref<64x122xbf16, #tpu.memory_space<vmem>>, vector<64x118xbf16>
    %75 = tpu.concatenate %70, %71, %72, %73, %74 in 0 : vector<64x118xbf16>, vector<64x118xbf16>, vector<64x118xbf16>, vector<64x118xbf16>, vector<64x118xbf16> -> vector<320x118xbf16>
    %c0_75 = arith.constant 0 : index
    %c0_76 = arith.constant 0 : index
    %76 = vector.load %arg11[%c0_75, %c0_76] : memref<64x320xbf16, #tpu.memory_space<vmem>>, vector<64x320xbf16>
    %cst_77 = arith.constant dense<0.000000e+00> : vector<64x118xf32>
    %77 = tpu.matmul %76, %75, %cst_77 {dimension_numbers = #tpu.dot_dimension_numbers<[1], [0], [0], [1], [0, 0, 1, 1], [], []>} : vector<64x320xbf16>, vector<320x118xbf16>, vector<64x118xf32> -> vector<64x118xf32>
    %c0_78 = arith.constant 0 : index
    %c0_79 = arith.constant 0 : index
    %78 = vector.load %arg12[%c0_78, %c0_79] : memref<64x1xf32, #tpu.memory_space<vmem>>, vector<64x1xf32>
    %79 = vector.broadcast %78 : vector<64x1xf32> to vector<64x118xf32>
    %80 = arith.addf %77, %79 : vector<64x118xf32>
    %cst_80 = arith.constant 0.000000e+00 : f32
    %81 = vector.broadcast %cst_80 : f32 to vector<64x118xf32>
    %82 = arith.maximumf %80, %81 : vector<64x118xf32>
    %83 = arith.truncf %82 : vector<64x118xf32> to vector<64x118xbf16>
    %c0_81 = arith.constant 0 : index
    %c0_82 = arith.constant 0 : index
    %84 = vector.load %arg44[%c0_81, %c0_82] : memref<64x118xbf16, #tpu.memory_space<vmem>>, vector<64x118xbf16>
    tpu.vector_store %arg44[%c0_81, %c0_82], %83 {strides = array<i32>} : memref<64x118xbf16, #tpu.memory_space<vmem>>, vector<64x118xbf16>,
    %c0_83 = arith.constant 0 : index
    %c0_84 = arith.constant 0 : index
    %85 = vector.load %arg44[%c0_83, %c0_84] : memref<64x118xbf16, #tpu.memory_space<vmem>>, vector<64x114xbf16>
    %c0_85 = arith.constant 0 : index
    %c1_86 = arith.constant 1 : index
    %86 = vector.load %arg44[%c0_85, %c1_86] : memref<64x118xbf16, #tpu.memory_space<vmem>>, vector<64x114xbf16>
    %c0_87 = arith.constant 0 : index
    %c2_88 = arith.constant 2 : index
    %87 = vector.load %arg44[%c0_87, %c2_88] : memref<64x118xbf16, #tpu.memory_space<vmem>>, vector<64x114xbf16>
    %c0_89 = arith.constant 0 : index
    %c3_90 = arith.constant 3 : index
    %88 = vector.load %arg44[%c0_89, %c3_90] : memref<64x118xbf16, #tpu.memory_space<vmem>>, vector<64x114xbf16>
    %c0_91 = arith.constant 0 : index
    %c4_92 = arith.constant 4 : index
    %89 = vector.load %arg44[%c0_91, %c4_92] : memref<64x118xbf16, #tpu.memory_space<vmem>>, vector<64x114xbf16>
    %90 = tpu.concatenate %85, %86, %87, %88, %89 in 0 : vector<64x114xbf16>, vector<64x114xbf16>, vector<64x114xbf16>, vector<64x114xbf16>, vector<64x114xbf16> -> vector<320x114xbf16>
    %c0_93 = arith.constant 0 : index
    %c0_94 = arith.constant 0 : index
    %91 = vector.load %arg13[%c0_93, %c0_94] : memref<128x320xbf16, #tpu.memory_space<vmem>>, vector<128x320xbf16>
    %cst_95 = arith.constant dense<0.000000e+00> : vector<128x114xf32>
    %92 = tpu.matmul %91, %90, %cst_95 {dimension_numbers = #tpu.dot_dimension_numbers<[1], [0], [0], [1], [0, 0, 1, 1], [], []>} : vector<128x320xbf16>, vector<320x114xbf16>, vector<128x114xf32> -> vector<128x114xf32>
    %c0_96 = arith.constant 0 : index
    %c0_97 = arith.constant 0 : index
    %93 = vector.load %arg14[%c0_96, %c0_97] : memref<128x1xf32, #tpu.memory_space<vmem>>, vector<128x1xf32>
    %94 = vector.broadcast %93 : vector<128x1xf32> to vector<128x114xf32>
    %95 = arith.addf %92, %94 : vector<128x114xf32>
    %cst_98 = arith.constant 0.000000e+00 : f32
    %96 = vector.broadcast %cst_98 : f32 to vector<128x114xf32>
    %97 = arith.maximumf %95, %96 : vector<128x114xf32>
    %98 = arith.truncf %97 : vector<128x114xf32> to vector<128x114xbf16>
    %c0_99 = arith.constant 0 : index
    %c0_100 = arith.constant 0 : index
    %99 = vector.load %arg28[%c0_99, %c0_100] : memref<114x57xbf16, #tpu.memory_space<vmem>>, vector<114x57xbf16>
    %cst_101 = arith.constant dense<0.000000e+00> : vector<128x57xf32>
    %100 = tpu.matmul %98, %99, %cst_101 {dimension_numbers = #tpu.dot_dimension_numbers<[1], [0], [0], [1], [0, 0, 1, 1], [], []>} : vector<128x114xbf16>, vector<114x57xbf16>, vector<128x57xf32> -> vector<128x57xf32>
    %c0_102 = arith.constant 0 : index
    %c0_103 = arith.constant 0 : index
    %101 = vector.load %arg29[%c0_102, %c0_103] : memref<114x57xbf16, #tpu.memory_space<vmem>>, vector<114x57xbf16>
    %cst_104 = arith.constant dense<0.000000e+00> : vector<128x57xf32>
    %102 = tpu.matmul %98, %101, %cst_104 {dimension_numbers = #tpu.dot_dimension_numbers<[1], [0], [0], [1], [0, 0, 1, 1], [], []>} : vector<128x114xbf16>, vector<114x57xbf16>, vector<128x57xf32> -> vector<128x57xf32>
    %103 = arith.maximumf %100, %102 : vector<128x57xf32>
    %104 = arith.truncf %103 : vector<128x57xf32> to vector<128x57xbf16>
    %c0_105 = arith.constant 0 : index
    %c0_106 = arith.constant 0 : index
    %105 = vector.load %arg45[%c0_105, %c0_106] : memref<128x57xbf16, #tpu.memory_space<vmem>>, vector<128x57xbf16>
    tpu.vector_store %arg45[%c0_105, %c0_106], %104 {strides = array<i32>} : memref<128x57xbf16, #tpu.memory_space<vmem>>, vector<128x57xbf16>,
    %c0_107 = arith.constant 0 : index
    %c0_108 = arith.constant 0 : index
    %106 = vector.load %arg45[%c0_107, %c0_108] : memref<128x57xbf16, #tpu.memory_space<vmem>>, vector<128x53xbf16>
    %c0_109 = arith.constant 0 : index
    %c1_110 = arith.constant 1 : index
    %107 = vector.load %arg45[%c0_109, %c1_110] : memref<128x57xbf16, #tpu.memory_space<vmem>>, vector<128x53xbf16>
    %c0_111 = arith.constant 0 : index
    %c2_112 = arith.constant 2 : index
    %108 = vector.load %arg45[%c0_111, %c2_112] : memref<128x57xbf16, #tpu.memory_space<vmem>>, vector<128x53xbf16>
    %c0_113 = arith.constant 0 : index
    %c3_114 = arith.constant 3 : index
    %109 = vector.load %arg45[%c0_113, %c3_114] : memref<128x57xbf16, #tpu.memory_space<vmem>>, vector<128x53xbf16>
    %c0_115 = arith.constant 0 : index
    %c4_116 = arith.constant 4 : index
    %110 = vector.load %arg45[%c0_115, %c4_116] : memref<128x57xbf16, #tpu.memory_space<vmem>>, vector<128x53xbf16>
    %111 = tpu.concatenate %106, %107, %108, %109, %110 in 0 : vector<128x53xbf16>, vector<128x53xbf16>, vector<128x53xbf16>, vector<128x53xbf16>, vector<128x53xbf16> -> vector<640x53xbf16>
    %c0_117 = arith.constant 0 : index
    %c0_118 = arith.constant 0 : index
    %112 = vector.load %arg15[%c0_117, %c0_118] : memref<128x640xbf16, #tpu.memory_space<vmem>>, vector<128x640xbf16>
    %cst_119 = arith.constant dense<0.000000e+00> : vector<128x53xf32>
    %113 = tpu.matmul %112, %111, %cst_119 {dimension_numbers = #tpu.dot_dimension_numbers<[1], [0], [0], [1], [0, 0, 1, 1], [], []>} : vector<128x640xbf16>, vector<640x53xbf16>, vector<128x53xf32> -> vector<128x53xf32>
    %c0_120 = arith.constant 0 : index
    %c0_121 = arith.constant 0 : index
    %114 = vector.load %arg16[%c0_120, %c0_121] : memref<128x1xf32, #tpu.memory_space<vmem>>, vector<128x1xf32>
    %115 = vector.broadcast %114 : vector<128x1xf32> to vector<128x53xf32>
    %116 = arith.addf %113, %115 : vector<128x53xf32>
    %cst_122 = arith.constant 0.000000e+00 : f32
    %117 = vector.broadcast %cst_122 : f32 to vector<128x53xf32>
    %118 = arith.maximumf %116, %117 : vector<128x53xf32>
    %119 = arith.truncf %118 : vector<128x53xf32> to vector<128x53xbf16>
    %c0_123 = arith.constant 0 : index
    %c0_124 = arith.constant 0 : index
    %120 = vector.load %arg46[%c0_123, %c0_124] : memref<128x53xbf16, #tpu.memory_space<vmem>>, vector<128x53xbf16>
    tpu.vector_store %arg46[%c0_123, %c0_124], %119 {strides = array<i32>} : memref<128x53xbf16, #tpu.memory_space<vmem>>, vector<128x53xbf16>,
    %c0_125 = arith.constant 0 : index
    %c0_126 = arith.constant 0 : index
    %121 = vector.load %arg46[%c0_125, %c0_126] : memref<128x53xbf16, #tpu.memory_space<vmem>>, vector<128x49xbf16>
    %c0_127 = arith.constant 0 : index
    %c1_128 = arith.constant 1 : index
    %122 = vector.load %arg46[%c0_127, %c1_128] : memref<128x53xbf16, #tpu.memory_space<vmem>>, vector<128x49xbf16>
    %c0_129 = arith.constant 0 : index
    %c2_130 = arith.constant 2 : index
    %123 = vector.load %arg46[%c0_129, %c2_130] : memref<128x53xbf16, #tpu.memory_space<vmem>>, vector<128x49xbf16>
    %c0_131 = arith.constant 0 : index
    %c3_132 = arith.constant 3 : index
    %124 = vector.load %arg46[%c0_131, %c3_132] : memref<128x53xbf16, #tpu.memory_space<vmem>>, vector<128x49xbf16>
    %c0_133 = arith.constant 0 : index
    %c4_134 = arith.constant 4 : index
    %125 = vector.load %arg46[%c0_133, %c4_134] : memref<128x53xbf16, #tpu.memory_space<vmem>>, vector<128x49xbf16>
    %126 = tpu.concatenate %121, %122, %123, %124, %125 in 0 : vector<128x49xbf16>, vector<128x49xbf16>, vector<128x49xbf16>, vector<128x49xbf16>, vector<128x49xbf16> -> vector<640x49xbf16>
    %c0_135 = arith.constant 0 : index
    %c0_136 = arith.constant 0 : index
    %127 = vector.load %arg17[%c0_135, %c0_136] : memref<256x640xbf16, #tpu.memory_space<vmem>>, vector<256x640xbf16>
    %cst_137 = arith.constant dense<0.000000e+00> : vector<256x49xf32>
    %128 = tpu.matmul %127, %126, %cst_137 {dimension_numbers = #tpu.dot_dimension_numbers<[1], [0], [0], [1], [0, 0, 1, 1], [], []>} : vector<256x640xbf16>, vector<640x49xbf16>, vector<256x49xf32> -> vector<256x49xf32>
    %c0_138 = arith.constant 0 : index
    %c0_139 = arith.constant 0 : index
    %129 = vector.load %arg18[%c0_138, %c0_139] : memref<256x1xf32, #tpu.memory_space<vmem>>, vector<256x1xf32>
    %130 = vector.broadcast %129 : vector<256x1xf32> to vector<256x49xf32>
    %131 = arith.addf %128, %130 : vector<256x49xf32>
    %cst_140 = arith.constant 0.000000e+00 : f32
    %132 = vector.broadcast %cst_140 : f32 to vector<256x49xf32>
    %133 = arith.maximumf %131, %132 : vector<256x49xf32>
    %134 = arith.truncf %133 : vector<256x49xf32> to vector<256x49xbf16>
    %c0_141 = arith.constant 0 : index
    %c0_142 = arith.constant 0 : index
    %135 = vector.load %arg30[%c0_141, %c0_142] : memref<24x49xbf16, #tpu.memory_space<vmem>>, vector<24x49xbf16>
    %cst_143 = arith.constant dense<0.000000e+00> : vector<24x256xf32>
    %136 = tpu.matmul %135, %134, %cst_143 {dimension_numbers = #tpu.dot_dimension_numbers<[1], [1], [0], [0], [0, 0, 1, 0], [], []>} : vector<24x49xbf16>, vector<256x49xbf16>, vector<24x256xf32> -> vector<24x256xf32>
    %c0_144 = arith.constant 0 : index
    %c0_145 = arith.constant 0 : index
    %137 = vector.load %arg31[%c0_144, %c0_145] : memref<24x49xbf16, #tpu.memory_space<vmem>>, vector<24x49xbf16>
    %cst_146 = arith.constant dense<0.000000e+00> : vector<24x256xf32>
    %138 = tpu.matmul %137, %134, %cst_146 {dimension_numbers = #tpu.dot_dimension_numbers<[1], [1], [0], [0], [0, 0, 1, 0], [], []>} : vector<24x49xbf16>, vector<256x49xbf16>, vector<24x256xf32> -> vector<24x256xf32>
    %139 = arith.maximumf %136, %138 : vector<24x256xf32>
    %c0_147 = arith.constant 0 : index
    %c0_148 = arith.constant 0 : index
    %140 = vector.load %arg47[%c0_147, %c0_148] : memref<24x256xf32, #tpu.memory_space<vmem>>, vector<24x256xf32>
    tpu.vector_store %arg47[%c0_147, %c0_148], %139 {strides = array<i32>} : memref<24x256xf32, #tpu.memory_space<vmem>>, vector<24x256xf32>,
    %c0_i32_149 = arith.constant 0 : i32
    %141 = tpu.memref_slice %arg54[%c0_i32_149] : memref<4x!tpu.dma_semaphore, #tpu.memory_space<semaphore_mem>> -> memref<1x!tpu.dma_semaphore, #tpu.memory_space<semaphore_mem>>
    %142 = tpu.memref_squeeze %141 : memref<1x!tpu.dma_semaphore, #tpu.memory_space<semaphore_mem>> -> memref<!tpu.dma_semaphore, #tpu.memory_space<semaphore_mem>>
    tpu.wait_dma2 semaphore(%142 : memref<!tpu.dma_semaphore, #tpu.memory_space<semaphore_mem>>) src(%arg22 : memref<1280x256xbf16, #tpu.memory_space<any>>) dst(%arg50 : memref<1280x256xbf16, #tpu.memory_space<vmem>>)
    %c0_150 = arith.constant 0 : index
    %c0_151 = arith.constant 0 : index
    %143 = vector.load %arg47[%c0_150, %c0_151] : memref<24x256xf32, #tpu.memory_space<vmem>>, vector<20x256xf32>
    %c1_152 = arith.constant 1 : index
    %c0_153 = arith.constant 0 : index
    %144 = vector.load %arg47[%c1_152, %c0_153] : memref<24x256xf32, #tpu.memory_space<vmem>>, vector<20x256xf32>
    %c2_154 = arith.constant 2 : index
    %c0_155 = arith.constant 0 : index
    %145 = vector.load %arg47[%c2_154, %c0_155] : memref<24x256xf32, #tpu.memory_space<vmem>>, vector<20x256xf32>
    %c3_156 = arith.constant 3 : index
    %c0_157 = arith.constant 0 : index
    %146 = vector.load %arg47[%c3_156, %c0_157] : memref<24x256xf32, #tpu.memory_space<vmem>>, vector<20x256xf32>
    %c4_158 = arith.constant 4 : index
    %c0_159 = arith.constant 0 : index
    %147 = vector.load %arg47[%c4_158, %c0_159] : memref<24x256xf32, #tpu.memory_space<vmem>>, vector<20x256xf32>
    %148 = tpu.concatenate %143, %144, %145, %146, %147 in 1 : vector<20x256xf32>, vector<20x256xf32>, vector<20x256xf32>, vector<20x256xf32>, vector<20x256xf32> -> vector<20x1280xf32>
    %149 = arith.truncf %148 : vector<20x1280xf32> to vector<20x1280xbf16>
    %c0_160 = arith.constant 0 : index
    %c0_161 = arith.constant 0 : index
    %150 = vector.load %arg50[%c0_160, %c0_161] : memref<1280x256xbf16, #tpu.memory_space<vmem>>, vector<1280x256xbf16>
    %cst_162 = arith.constant dense<0.000000e+00> : vector<20x256xf32>
    %151 = tpu.matmul %149, %150, %cst_162 {dimension_numbers = #tpu.dot_dimension_numbers<[1], [0], [0], [1], [0, 0, 1, 1], [], []>} : vector<20x1280xbf16>, vector<1280x256xbf16>, vector<20x256xf32> -> vector<20x256xf32>
    %c0_163 = arith.constant 0 : index
    %c0_164 = arith.constant 0 : index
    %152 = vector.load %arg19[%c0_163, %c0_164] : memref<1x256xf32, #tpu.memory_space<vmem>>, vector<1x256xf32>
    %153 = vector.broadcast %152 : vector<1x256xf32> to vector<20x256xf32>
    %154 = arith.addf %151, %153 : vector<20x256xf32>
    %cst_165 = arith.constant 0.000000e+00 : f32
    %155 = vector.broadcast %cst_165 : f32 to vector<20x256xf32>
    %156 = arith.maximumf %154, %155 : vector<20x256xf32>
    %c0_166 = arith.constant 0 : index
    %c0_167 = arith.constant 0 : index
    %157 = vector.load %arg48[%c0_166, %c0_167] : memref<20x256xf32, #tpu.memory_space<vmem>>, vector<20x256xf32>
    tpu.vector_store %arg48[%c0_166, %c0_167], %156 {strides = array<i32>} : memref<20x256xf32, #tpu.memory_space<vmem>>, vector<20x256xf32>,
    %c1_i32_168 = arith.constant 1 : i32
    %158 = tpu.memref_slice %arg54[%c1_i32_168] : memref<4x!tpu.dma_semaphore, #tpu.memory_space<semaphore_mem>> -> memref<1x!tpu.dma_semaphore, #tpu.memory_space<semaphore_mem>>
    %159 = tpu.memref_squeeze %158 : memref<1x!tpu.dma_semaphore, #tpu.memory_space<semaphore_mem>> -> memref<!tpu.dma_semaphore, #tpu.memory_space<semaphore_mem>>
    tpu.wait_dma2 semaphore(%159 : memref<!tpu.dma_semaphore, #tpu.memory_space<semaphore_mem>>) src(%arg23 : memref<1280x512xbf16, #tpu.memory_space<any>>) dst(%arg51 : memref<1280x512xbf16, #tpu.memory_space<vmem>>)
    %c0_169 = arith.constant 0 : index
    %c0_170 = arith.constant 0 : index
    %160 = vector.load %arg48[%c0_169, %c0_170] : memref<20x256xf32, #tpu.memory_space<vmem>>, vector<16x256xf32>
    %c1_171 = arith.constant 1 : index
    %c0_172 = arith.constant 0 : index
    %161 = vector.load %arg48[%c1_171, %c0_172] : memref<20x256xf32, #tpu.memory_space<vmem>>, vector<16x256xf32>
    %c2_173 = arith.constant 2 : index
    %c0_174 = arith.constant 0 : index
    %162 = vector.load %arg48[%c2_173, %c0_174] : memref<20x256xf32, #tpu.memory_space<vmem>>, vector<16x256xf32>
    %c3_175 = arith.constant 3 : index
    %c0_176 = arith.constant 0 : index
    %163 = vector.load %arg48[%c3_175, %c0_176] : memref<20x256xf32, #tpu.memory_space<vmem>>, vector<16x256xf32>
    %c4_177 = arith.constant 4 : index
    %c0_178 = arith.constant 0 : index
    %164 = vector.load %arg48[%c4_177, %c0_178] : memref<20x256xf32, #tpu.memory_space<vmem>>, vector<16x256xf32>
    %165 = tpu.concatenate %160, %161, %162, %163, %164 in 1 : vector<16x256xf32>, vector<16x256xf32>, vector<16x256xf32>, vector<16x256xf32>, vector<16x256xf32> -> vector<16x1280xf32>
    %166 = arith.truncf %165 : vector<16x1280xf32> to vector<16x1280xbf16>
    %c0_179 = arith.constant 0 : index
    %c0_180 = arith.constant 0 : index
    %167 = vector.load %arg51[%c0_179, %c0_180] : memref<1280x512xbf16, #tpu.memory_space<vmem>>, vector<1280x512xbf16>
    %cst_181 = arith.constant dense<0.000000e+00> : vector<16x512xf32>
    %168 = tpu.matmul %166, %167, %cst_181 {dimension_numbers = #tpu.dot_dimension_numbers<[1], [0], [0], [1], [0, 0, 1, 1], [], []>} : vector<16x1280xbf16>, vector<1280x512xbf16>, vector<16x512xf32> -> vector<16x512xf32>
    %c0_182 = arith.constant 0 : index
    %c0_183 = arith.constant 0 : index
    %169 = vector.load %arg20[%c0_182, %c0_183] : memref<1x512xf32, #tpu.memory_space<vmem>>, vector<1x512xf32>
    %170 = vector.broadcast %169 : vector<1x512xf32> to vector<16x512xf32>
    %171 = arith.addf %168, %170 : vector<16x512xf32>
    %cst_184 = arith.constant 0.000000e+00 : f32
    %172 = vector.broadcast %cst_184 : f32 to vector<16x512xf32>
    %173 = arith.maximumf %171, %172 : vector<16x512xf32>
    %174 = arith.truncf %173 : vector<16x512xf32> to vector<16x512xbf16>
    %c0_185 = arith.constant 0 : index
    %c0_186 = arith.constant 0 : index
    %175 = vector.load %arg32[%c0_185, %c0_186] : memref<8x16xbf16, #tpu.memory_space<vmem>>, vector<8x16xbf16>
    %cst_187 = arith.constant dense<0.000000e+00> : vector<8x512xf32>
    %176 = tpu.matmul %175, %174, %cst_187 {dimension_numbers = #tpu.dot_dimension_numbers<[1], [0], [0], [1], [0, 0, 1, 1], [], []>} : vector<8x16xbf16>, vector<16x512xbf16>, vector<8x512xf32> -> vector<8x512xf32>
    %c0_188 = arith.constant 0 : index
    %c0_189 = arith.constant 0 : index
    %177 = vector.load %arg33[%c0_188, %c0_189] : memref<8x16xbf16, #tpu.memory_space<vmem>>, vector<8x16xbf16>
    %cst_190 = arith.constant dense<0.000000e+00> : vector<8x512xf32>
    %178 = tpu.matmul %177, %174, %cst_190 {dimension_numbers = #tpu.dot_dimension_numbers<[1], [0], [0], [1], [0, 0, 1, 1], [], []>} : vector<8x16xbf16>, vector<16x512xbf16>, vector<8x512xf32> -> vector<8x512xf32>
    %179 = arith.maximumf %176, %178 : vector<8x512xf32>
    %c0_191 = arith.constant 0 : index
    %c0_192 = arith.constant 0 : index
    %180 = vector.load %arg49[%c0_191, %c0_192] : memref<8x512xf32, #tpu.memory_space<vmem>>, vector<8x512xf32>
    tpu.vector_store %arg49[%c0_191, %c0_192], %179 {strides = array<i32>} : memref<8x512xf32, #tpu.memory_space<vmem>>, vector<8x512xf32>,
    %c2_i32_193 = arith.constant 2 : i32
    %181 = tpu.memref_slice %arg54[%c2_i32_193] : memref<4x!tpu.dma_semaphore, #tpu.memory_space<semaphore_mem>> -> memref<1x!tpu.dma_semaphore, #tpu.memory_space<semaphore_mem>>
    %182 = tpu.memref_squeeze %181 : memref<1x!tpu.dma_semaphore, #tpu.memory_space<semaphore_mem>> -> memref<!tpu.dma_semaphore, #tpu.memory_space<semaphore_mem>>
    tpu.wait_dma2 semaphore(%182 : memref<!tpu.dma_semaphore, #tpu.memory_space<semaphore_mem>>) src(%arg24 : memref<2560x512xbf16, #tpu.memory_space<any>>) dst(%arg52 : memref<2560x512xbf16, #tpu.memory_space<vmem>>)
    %c0_194 = arith.constant 0 : index
    %c0_195 = arith.constant 0 : index
    %183 = vector.load %arg49[%c0_194, %c0_195] : memref<8x512xf32, #tpu.memory_space<vmem>>, vector<4x512xf32>
    %c1_196 = arith.constant 1 : index
    %c0_197 = arith.constant 0 : index
    %184 = vector.load %arg49[%c1_196, %c0_197] : memref<8x512xf32, #tpu.memory_space<vmem>>, vector<4x512xf32>
    %c2_198 = arith.constant 2 : index
    %c0_199 = arith.constant 0 : index
    %185 = vector.load %arg49[%c2_198, %c0_199] : memref<8x512xf32, #tpu.memory_space<vmem>>, vector<4x512xf32>
    %c3_200 = arith.constant 3 : index
    %c0_201 = arith.constant 0 : index
    %186 = vector.load %arg49[%c3_200, %c0_201] : memref<8x512xf32, #tpu.memory_space<vmem>>, vector<4x512xf32>
    %c4_202 = arith.constant 4 : index
    %c0_203 = arith.constant 0 : index
    %187 = vector.load %arg49[%c4_202, %c0_203] : memref<8x512xf32, #tpu.memory_space<vmem>>, vector<4x512xf32>
    %188 = tpu.concatenate %183, %184, %185, %186, %187 in 1 : vector<4x512xf32>, vector<4x512xf32>, vector<4x512xf32>, vector<4x512xf32>, vector<4x512xf32> -> vector<4x2560xf32>
    %189 = arith.truncf %188 : vector<4x2560xf32> to vector<4x2560xbf16>
    %c0_204 = arith.constant 0 : index
    %c0_205 = arith.constant 0 : index
    %190 = vector.load %arg52[%c0_204, %c0_205] : memref<2560x512xbf16, #tpu.memory_space<vmem>>, vector<2560x512xbf16>
    %cst_206 = arith.constant dense<0.000000e+00> : vector<4x512xf32>
    %191 = tpu.matmul %189, %190, %cst_206 {dimension_numbers = #tpu.dot_dimension_numbers<[1], [0], [0], [1], [0, 0, 1, 1], [], []>} : vector<4x2560xbf16>, vector<2560x512xbf16>, vector<4x512xf32> -> vector<4x512xf32>
    %c0_207 = arith.constant 0 : index
    %c0_208 = arith.constant 0 : index
    %192 = vector.load %arg21[%c0_207, %c0_208] : memref<1x512xf32, #tpu.memory_space<vmem>>, vector<1x512xf32>
    %193 = vector.broadcast %192 : vector<1x512xf32> to vector<4x512xf32>
    %194 = arith.addf %191, %193 : vector<4x512xf32>
    %cst_209 = arith.constant 0.000000e+00 : f32
    %195 = vector.broadcast %cst_209 : f32 to vector<4x512xf32>
    %196 = arith.maximumf %194, %195 : vector<4x512xf32>
    %197 = vector.extract_strided_slice %196 {offsets = [0, 0], sizes = [1, 512], strides = [1, 1]} : vector<4x512xf32> to vector<1x512xf32>
    %198 = vector.extract_strided_slice %196 {offsets = [1, 0], sizes = [1, 512], strides = [1, 1]} : vector<4x512xf32> to vector<1x512xf32>
    %199 = vector.extract_strided_slice %196 {offsets = [2, 0], sizes = [1, 512], strides = [1, 1]} : vector<4x512xf32> to vector<1x512xf32>
    %200 = vector.extract_strided_slice %196 {offsets = [3, 0], sizes = [1, 512], strides = [1, 1]} : vector<4x512xf32> to vector<1x512xf32>
    %201 = tpu.concatenate %197, %198, %199, %200 in 1 : vector<1x512xf32>, vector<1x512xf32>, vector<1x512xf32>, vector<1x512xf32> -> vector<1x2048xf32>
    %202 = arith.truncf %201 : vector<1x2048xf32> to vector<1x2048xbf16>
    %c3_i32_210 = arith.constant 3 : i32
    %203 = tpu.memref_slice %arg54[%c3_i32_210] : memref<4x!tpu.dma_semaphore, #tpu.memory_space<semaphore_mem>> -> memref<1x!tpu.dma_semaphore, #tpu.memory_space<semaphore_mem>>
    %204 = tpu.memref_squeeze %203 : memref<1x!tpu.dma_semaphore, #tpu.memory_space<semaphore_mem>> -> memref<!tpu.dma_semaphore, #tpu.memory_space<semaphore_mem>>
    tpu.wait_dma2 semaphore(%204 : memref<!tpu.dma_semaphore, #tpu.memory_space<semaphore_mem>>) src(%arg25 : memref<2048x128xbf16, #tpu.memory_space<any>>) dst(%arg53 : memref<2048x128xbf16, #tpu.memory_space<vmem>>)
    %c0_211 = arith.constant 0 : index
    %c0_212 = arith.constant 0 : index
    %205 = vector.load %arg53[%c0_211, %c0_212] : memref<2048x128xbf16, #tpu.memory_space<vmem>>, vector<2048x128xbf16>
    %cst_213 = arith.constant dense<0.000000e+00> : vector<1x128xf32>
    %206 = tpu.matmul %202, %205, %cst_213 {dimension_numbers = #tpu.dot_dimension_numbers<[1], [0], [0], [1], [0, 0, 1, 1], [], []>} : vector<1x2048xbf16>, vector<2048x128xbf16>, vector<1x128xf32> -> vector<1x128xf32>
    %c0_214 = arith.constant 0 : index
    %c0_215 = arith.constant 0 : index
    %207 = vector.load %arg34[%c0_214, %c0_215] : memref<1x128xf32, #tpu.memory_space<vmem>>, vector<1x128xf32>
    %208 = arith.addf %206, %207 : vector<1x128xf32>
    %209 = arith.truncf %208 : vector<1x128xf32> to vector<1x128xbf16>
    %c0_216 = arith.constant 0 : index
    %c0_217 = arith.constant 0 : index
    %210 = vector.load %arg35[%c0_216, %c0_217] : memref<128x32xbf16, #tpu.memory_space<vmem>>, vector<128x32xbf16>
    %cst_218 = arith.constant dense<0.000000e+00> : vector<1x32xf32>
    %211 = tpu.matmul %209, %210, %cst_218 {dimension_numbers = #tpu.dot_dimension_numbers<[1], [0], [0], [1], [0, 0, 1, 1], [], []>} : vector<1x128xbf16>, vector<128x32xbf16>, vector<1x32xf32> -> vector<1x32xf32>
    %c0_219 = arith.constant 0 : index
    %c0_220 = arith.constant 0 : index
    %212 = vector.load %arg36[%c0_219, %c0_220] : memref<1x32xf32, #tpu.memory_space<vmem>>, vector<1x32xf32>
    %213 = arith.addf %211, %212 : vector<1x32xf32>
    %214 = arith.truncf %213 : vector<1x32xf32> to vector<1x32xbf16>
    %c0_221 = arith.constant 0 : index
    %c0_222 = arith.constant 0 : index
    %215 = vector.load %arg37[%c0_221, %c0_222] : memref<32x1xbf16, #tpu.memory_space<vmem>>, vector<32x1xbf16>
    %cst_223 = arith.constant dense<0.000000e+00> : vector<1x1xf32>
    %216 = tpu.matmul %214, %215, %cst_223 {dimension_numbers = #tpu.dot_dimension_numbers<[1], [0], [0], [1], [0, 0, 1, 1], [], []>} : vector<1x32xbf16>, vector<32x1xbf16>, vector<1x1xf32> -> vector<1x1xf32>
    %c0_224 = arith.constant 0 : index
    %c0_225 = arith.constant 0 : index
    %217 = vector.load %arg38[%c0_224, %c0_225] : memref<1x1xf32, #tpu.memory_space<vmem>>, vector<1x1xf32>
    %218 = arith.addf %216, %217 : vector<1x1xf32>
    %c0_226 = arith.constant 0 : index
    %c0_227 = arith.constant 0 : index
    %219 = memref.load %arg0[%c0_226, %c0_227] : memref<1x1xf32, #tpu.memory_space<smem>>
    %220 = vector.broadcast %219 : f32 to vector<1x1xf32>
    %221 = arith.mulf %218, %220 : vector<1x1xf32>
    %c0_228 = arith.constant 0 : index
    %c0_229 = arith.constant 0 : index
    %222 = vector.load %arg39[%c0_228, %c0_229] : memref<1x1xf32, #tpu.memory_space<vmem>>, vector<1x1xf32>
    tpu.vector_store %arg39[%c0_228, %c0_229], %221 {strides = array<i32>} : memref<1x1xf32, #tpu.memory_space<vmem>>, vector<1x1xf32>,
    return
  }
}

</mosaic_0001>

<bundles_post_ra>
// kernel: _forward.1
= control target key start
LH: loop header
LB: loop body
LE: loop exit
PB: predicated region body
PF: predicated region fallthrough
CT: control target
= control target key end

     0   :  { %s21603_s6 = smov 1   ;;  %s21604_s10 = smov 2   ;;  %s23387_s0 = inlined_call_operand.smem [shape: u32[40], index: -1, kind: input, shape index: {}] }
   0x1   :  { %s21690_s5 = sld [smem:[%s23387_s0]]   ;;  %s21605_s14 = smov 3  }
   0x2   :  { %s21695_s9 = sld [smem:[%s23387_s0 + %s21603_s6]]   ;;  %s21606_s18 = smov 4  }
   0x3   :  { %s21700_s13 = sld [smem:[%s23387_s0 + %s21604_s10]]   ;;  %s21607_s22 = smov 5  }
   0x4   :  { %s21705_s17 = sld [smem:[%s23387_s0 + %s21605_s14]]   ;;  %s21608_s26 = smov 6  }
   0x5   :  { %s21710_s21 = sld [smem:[%s23387_s0 + %s21606_s18]]   ;;  %s21609_s30 = smov 7  }
   0x6   :  { %s21715_s25 = sld [smem:[%s23387_s0 + %s21607_s22]]   ;;  %s21610_s4 = smov 8  }
   0x7   :  { %23407 = sst [smem:[#allocation74_spill]] %s21690_s5  ;;  %s21611_s10 = smov 9  }
   0x8   :  { %23408 = sst [smem:[#allocation75_spill]] %s21695_s9  ;;  %s21612_s15 = smov 10  }
   0x9   :  { %s21720_s29 = sld [smem:[%s23387_s0 + %s21608_s26]]   ;;  %s21613_s20 = smov 11  }
   0xa   :  { %23409 = sst [smem:[#allocation76_spill]] %s21705_s17  ;;  %s21614_s26 = smov 12  }
   0xb   :  { %23410 = sst [smem:[#allocation77_spill]] %s21710_s21  ;;  %s21615_s1 = smov 13  }
   0xc   :  { %s21725_s3 = sld [smem:[%s23387_s0 + %s21609_s30]]   ;;  %s21616_s7 = smov 14  }
   0xd   :  { %s21730_s8 = sld [smem:[%s23387_s0 + %s21610_s4]]   ;;  %s21618_s22 = smov 16  }
   0xe   :  { %s21735_s14 = sld [smem:[%s23387_s0 + %s21611_s10]]   ;;  %s21619_s28 = smov 17  }
   0xf   :  { %23411 = sst [smem:[#allocation78_spill]] %s21720_s29  ;;  %s21641_s16 = smov 39  }
  0x10   :  { %s21740_s19 = sld [smem:[%s23387_s0 + %s21612_s15]]   ;;  %s21617_s15 = smov 15  }
  0x11   :  { %s21745_s24 = sld [smem:[%s23387_s0 + %s21613_s20]]  }
  0x12   :  { %s21750_s30 = sld [smem:[%s23387_s0 + %s21614_s26]]  }
  0x13   :  { %23412 = sst [smem:[#allocation79_spill]] %s21730_s8 }
  0x14   :  { %s21755_s6 = sld [smem:[%s23387_s0 + %s21615_s1]]  }
  0x15   :  { %s21760_s12 = sld [smem:[%s23387_s0 + %s21616_s7]]   ;;  %s21620_s7 = smov 18  }
  0x16   :  { %23413 = sst [smem:[#allocation80_spill]] %s21740_s19 }
  0x17   :  { %s21765_s20 = sld [smem:[%s23387_s0 + %s21617_s15]]   ;;  %s21621_s15 = smov 19  }
  0x18   :  { %23414 = sst [smem:[#allocation81_spill]] %s21750_s30 }
  0x19   :  { %s21770_s27 = sld [smem:[%s23387_s0 + %s21618_s22]]   ;;  %s21622_s22 = smov 20  }
  0x1a   :  { %23415 = sst [smem:[#allocation82_spill]] %s21755_s6 }
  0x1b   :  { %23416 = sst [smem:[#allocation83_spill]] %s21760_s12 }
  0x1c   :  { %s21775_s4 = sld [smem:[%s23387_s0 + %s21619_s28]]   ;;  %s21623_s28 = smov 21  }
  0x1d   :  { %s21780_s5 = sld [smem:[%s23387_s0 + %s21620_s7]]   ;;  %s21624_s7 = smov 22  }
  0x1e   :  { %s21785_s12 = sld [smem:[%s23387_s0 + %s21621_s15]]   ;;  %s21625_s15 = smov 23  }
  0x1f   :  { %23417 = sst [smem:[#allocation84_spill]] %s21770_s27 }
  0x20   :  { %s21790_s27 = sld [smem:[%s23387_s0 + %s21622_s22]]   ;;  %s21626_s22 = smov 24  }
  0x21   :  { %s21795_s6 = sld [smem:[%s23387_s0 + %s21623_s28]]   ;;  %s21627_s28 = smov 25  }
  0x22   :  { %s21805_s30 = sld [smem:[%s23387_s0 + %s21625_s15]]   ;;  %s21629_s15 = smov 27  }
  0x23   :  { %23418 = sst [smem:[#allocation85_spill]] %s21780_s5 }
  0x24   :  { %s21800_s5 = sld [smem:[%s23387_s0 + %s21624_s7]]   ;;  %s21628_s7 = smov 26  }
  0x25   :  { %s21810_s19 = sld [smem:[%s23387_s0 + %s21626_s22]]   ;;  %s21630_s22 = smov 28  }
  0x26   :  { %s21815_s8 = sld [smem:[%s23387_s0 + %s21627_s28]]   ;;  %s21631_s28 = smov 29  }
  0x28   :  { %23420 = sst [smem:[#allocation87_spill]] %s21805_s30 }
  0x29   :  { %s21825_s30 = sld [smem:[%s23387_s0 + %s21629_s15]]   ;;  %s21633_s15 = smov 31  }
  0x2a   :  { %23419 = sst [smem:[#allocation86_spill]] %s21800_s5 }
  0x2b   :  { %23421 = sst [smem:[#allocation88_spill]] %s21810_s19 }
  0x2c   :  { %23422 = sst [smem:[#allocation89_spill]] %s21815_s8 }
  0x2d   :  { %s21820_s5 = sld [smem:[%s23387_s0 + %s21628_s7]]   ;;  %s21632_s7 = smov 30  }
  0x2e   :  { %s21830_s19 = sld [smem:[%s23387_s0 + %s21630_s22]]   ;;  %s21634_s22 = smov 32  }
  0x2f   :  { %s21835_s8 = sld [smem:[%s23387_s0 + %s21631_s28]]   ;;  %s21635_s28 = smov 33  }
  0x30   :  { %s21840_s21 = sld [smem:[%s23387_s0 + %s21632_s7]]   ;;  %s21636_s7 = smov 34  }
  0x31   :  { %s21845_s17 = sld [smem:[%s23387_s0 + %s21633_s15]]   ;;  %s21637_s15 = smov 35  }
  0x32   :  { %s21860_s29 = sld [smem:[%s23387_s0 + %s21636_s7]]   ;;  %s21640_s7 = smov 38  }
  0x33   :  { %s21865_s9 = sld [smem:[%s23387_s0 + %s21637_s15]]  }
  0x34   :  { %23423 = sst [smem:[#allocation90_spill]] %s21830_s19 }
  0x35   :  { %23424 = sst [smem:[#allocation91_spill]] %s21835_s8 }
  0x36   :  { %23425 = sst [smem:[#allocation92_spill]] %s21840_s21 }
  0x37   :  { %s21850_s19 = sld [smem:[%s23387_s0 + %s21634_s22]]   ;;  %s21638_s22 = smov 36  }
  0x38   :  { %s21855_s8 = sld [smem:[%s23387_s0 + %s21635_s28]]   ;;  %s21639_s28 = smov 37  }
  0x39   :  { %23427 = sst [smem:[#allocation94_spill]] %s21860_s29 }
  0x3a   :  { %23428 = sst [smem:[#allocation95_spill]] %s21865_s9 }
  0x3b   :  { %s21875_s21 = sld [smem:[%s23387_s0 + %s21639_s28]]  }
  0x3c   :  { %s16096_s29 = sld [smem:[%s23387_s0 + %s21640_s7]]  }
  0x3d   :  { %23426 = sst [smem:[#allocation93_spill]] %s21850_s19 }
  0x3e   :  { %s21870_s19 = sld [smem:[%s23387_s0 + %s21638_s22]]  }
  0x3f   :  { %s21883_s9 = sld [smem:[%s23387_s0 + %s21641_s16]]  }
  0x42   :  { %v85_v0 = vstv %s16096_s29 }
  0x43   :  { %86 = vst [vmem:[#allocation18] sm:$0x1] %v85_v0 }
  0x44   :  { %87 = vsyncpa [#allocation20], 0 }
  0x45   :  { %88 = vsyncpa [#allocation23], 0 }
  0x46   :  { %89 = vsyncpa [#allocation26], 0 }
  0x47   :  { %90 = vsyncpa [#allocation29], 0 }
  0x48   :  { %91 = vsyncpa [#allocation32], 0 }
  0x49   :  { %92 = vsyncpa [#allocation35], 0 }
  0x4a   :  { %93 = vsyncpa [#allocation38], 0 }
  0x4b   :  { %94 = vsyncpa [#allocation41], 0 }
  0x4c   :  { %95 = vsyncpa [#allocation44], 0 }
  0x4d   :  { %96 = vsyncpa [#allocation47], 0 }
  0x4e   :  { %97 = vsyncpa [#allocation21], 0  ;;  %s21642_s22 = smov [#allocation22]  }
  0x4f   :  { %s123_s23 = sshll.u32 %s21642_s22, 4  ;;  %s124_s23 = int_to_ptr.vmem [resolvable:$true] %s123_s23 }
  0x50   :  { %s21121_s26 = scalar_lea.vmem %s124_s23, 256  ;;  %p21126_p1 = scmp.lt.s32.totalorder %s124_s23, %s124_s23 }
  0x51   :  { %p21122_p0 = scmp.ne.s32.totalorder %s124_s23, %s21121_s26  ;;  %p21127_p2 = scmp.lt.s32.totalorder %s21121_s26, %s21121_s26 }
  0x53   :  { %p21128_p3 = por %p21127_p2, %p21126_p1 }
  0x55   :  { %p21129_p4 = pnand %p21128_p3, %p21122_p0 }
  0x57   :  { %21132 = shalt.err (!%p21129_p4)
}
  0x58   :  { %s21643_s0 = smov 64   ;;  %s21644_s29 = smov 4  }
  0x59   :  { %129 = dma.hbm_to_vmem [thread:$0]  %s21715_s25, 256, %s124_s23, [#allocation23], %s21643_s0, %s21643_s0, %s21644_s29  }
  0x5a   :  { %s21645_s28 = smov [#allocation25]   ;;  %s21646_s2 = smov [#allocation28]  }
  0x5b   :  { %s151_s1 = sshll.u32 %s21645_s28, 4  ;;  %s183_s7 = sshll.u32 %s21646_s2, 4  ;;  %s152_s1 = int_to_ptr.vmem [resolvable:$true] %s151_s1  ;;  %s184_s7 = int_to_ptr.vmem [resolvable:$true] %s183_s7 }
  0x5c   :  { %s21141_s10 = scalar_lea.vmem %s152_s1, 1024  ;;  %p21146_p6 = scmp.lt.s32.totalorder %s152_s1, %s152_s1 }
  0x5d   :  { %p21142_p5 = scmp.ne.s32.totalorder %s152_s1, %s21141_s10  ;;  %p21147_p7 = scmp.lt.s32.totalorder %s21141_s10, %s21141_s10 }
  0x5f   :  { %p21148_p8 = por %p21147_p7, %p21146_p6 }
  0x61   :  { %p21149_p9 = pnand %p21148_p8, %p21142_p5 }
  0x63   :  { %21152 = shalt.err (!%p21149_p9)
}
  0x64   :  { %s21647_s11 = smov 128   ;;  %s21648_s16 = smov 8  }
  0x65   :  { %157 = dma.hbm_to_vmem [thread:$0]  %s21735_s14, 1024, %s152_s1, [#allocation26], %s21647_s11, %s21647_s11, %s21648_s16  }
  0x66   :  { %s21161_s25 = scalar_lea.vmem %s184_s7, 5120  ;;  %p21166_p11 = scmp.lt.s32.totalorder %s184_s7, %s184_s7 }
  0x67   :  { %p21162_p10 = scmp.ne.s32.totalorder %s184_s7, %s21161_s25  ;;  %p21167_p12 = scmp.lt.s32.totalorder %s21161_s25, %s21161_s25 }
  0x69   :  { %p21168_p13 = por %p21167_p12, %p21166_p11 }
  0x6b   :  { %p21169_p0 = pnand %p21168_p13, %p21162_p10 }
  0x6d   :  { %21172 = shalt.err (!%p21169_p0)
}
  0x6e   :  { %s21649_s15 = smov 320   ;;  %s21650_s18 = smov 20  }
  0x6f   :  { %189 = dma.hbm_to_vmem [thread:$0]  %s21765_s20, 5120, %s184_s7, [#allocation29], %s21649_s15, %s21649_s15, %s21650_s18  }
  0x70   :  { %s21651_s22 = smov [#allocation31]   ;;  %s21652_s26 = smov [#allocation34]  }
  0x71   :  { %s212_s23 = sshll.u32 %s21651_s22, 4  ;;  %s232_s14 = sshll.u32 %s21652_s26, 4  ;;  %s213_s23 = int_to_ptr.vmem [resolvable:$true] %s212_s23  ;;  %s233_s14 = int_to_ptr.vmem [resolvable:$true] %s232_s14 }
  0x72   :  { %s21181_s28 = scalar_lea.vmem %s213_s23, 32  ;;  %p21186_p2 = scmp.lt.s32.totalorder %s213_s23, %s213_s23 }
  0x73   :  { %p21182_p1 = scmp.ne.s32.totalorder %s213_s23, %s21181_s28  ;;  %p21187_p3 = scmp.lt.s32.totalorder %s21181_s28, %s21181_s28 }
  0x75   :  { %p21188_p4 = por %p21187_p3, %p21186_p2 }
  0x77   :  { %p21189_p5 = pnand %p21188_p4, %p21182_p1 }
  0x79   :  { %21192 = shalt.err (!%p21189_p5)
}
  0x7a   :  { %215 = dma.hbm_to_vmem [thread:$0]  %s21785_s12, 32, %s213_s23, [#allocation32]  }
  0x7b   :  { %s21201_s1 = scalar_lea.vmem %s233_s14, 64  ;;  %p21206_p7 = scmp.lt.s32.totalorder %s233_s14, %s233_s14 }
  0x7c   :  { %p21202_p6 = scmp.ne.s32.totalorder %s233_s14, %s21201_s1  ;;  %p21207_p8 = scmp.lt.s32.totalorder %s21201_s1, %s21201_s1 }
  0x7e   :  { %p21208_p9 = por %p21207_p8, %p21206_p7 }
  0x80   :  { %p21209_p10 = pnand %p21208_p9, %p21202_p6 }
  0x82   :  { %21212 = shalt.err (!%p21209_p10)
}
  0x83   :  { %235 = dma.hbm_to_vmem [thread:$0]  %s21795_s6, 64, %s233_s14, [#allocation35]  }
  0x84   :  { %s21653_s20 = smov [#allocation37]   ;;  %s21654_s7 = smov [#allocation40]  }
  0x85   :  { %s253_s2 = sshll.u32 %s21653_s20, 4  ;;  %s281_s10 = sshll.u32 %s21654_s7, 4  ;;  %s254_s2 = int_to_ptr.vmem [resolvable:$true] %s253_s2  ;;  %s282_s10 = int_to_ptr.vmem [resolvable:$true] %s281_s10 }
  0x86   :  { %s21221_s25 = scalar_lea.vmem %s254_s2, 1984  ;;  %p21226_p12 = scmp.lt.s32.totalorder %s254_s2, %s254_s2 }
  0x87   :  { %p21222_p11 = scmp.ne.s32.totalorder %s254_s2, %s21221_s25  ;;  %p21227_p13 = scmp.lt.s32.totalorder %s21221_s25, %s21221_s25 }
  0x89   :  { %p21228_p0 = por %p21227_p13, %p21226_p12 }
  0x8b   :  { %p21229_p1 = pnand %p21228_p0, %p21222_p11 }
  0x8d   :  { %21232 = shalt.err (!%p21229_p1)
}
  0x8e   :  { %259 = dma.hbm_to_vmem [thread:$0]  %s21825_s30, 1984, %s254_s2, [#allocation38], %s21643_s0, %s21643_s0, %s21644_s29  }
  0x8f   :  { %s21241_s12 = scalar_lea.vmem %s282_s10, 192  ;;  %p21246_p3 = scmp.lt.s32.totalorder %s282_s10, %s282_s10 }
  0x90   :  { %p21242_p2 = scmp.ne.s32.totalorder %s282_s10, %s21241_s12  ;;  %p21247_p4 = scmp.lt.s32.totalorder %s21241_s12, %s21241_s12 }
  0x92   :  { %p21248_p5 = por %p21247_p4, %p21246_p3 }
  0x94   :  { %p21249_p6 = pnand %p21248_p5, %p21242_p2 }
  0x96   :  { %21252 = shalt.err (!%p21249_p6)
}
  0x97   :  { %287 = dma.hbm_to_vmem [thread:$0]  %s21845_s17, 192, %s282_s10, [#allocation41], %s21643_s0, %s21643_s0, %s21644_s29  }
  0x98   :  { %s21655_s6 = smov [#allocation43]   ;;  %s21656_s23 = smov [#allocation19]  }
  0x99   :  { %s304_s22 = sshll.u32 %s21655_s6, 4  ;;  %s107_s26 = sshll.u32 %s21656_s23, 4  ;;  %s305_s22 = int_to_ptr.vmem [resolvable:$true] %s304_s22  ;;  %s108_s26 = int_to_ptr.vmem [resolvable:$true] %s107_s26 }
  0x9a   :  { %s21261_s14 = scalar_lea.vmem %s305_s22, 64  ;;  %p21266_p8 = scmp.lt.s32.totalorder %s305_s22, %s305_s22 }
  0x9b   :  { %p21262_p7 = scmp.ne.s32.totalorder %s305_s22, %s21261_s14  ;;  %p21267_p9 = scmp.lt.s32.totalorder %s21261_s14, %s21261_s14 }
  0x9d   :  { %p21268_p10 = por %p21267_p9, %p21266_p8 }
  0x9f   :  { %p21269_p11 = pnand %p21268_p10, %p21262_p7 }
  0xa1   :  { %21272 = shalt.err (!%p21269_p11)
}
  0xa2   :  { %307 = dma.hbm_to_vmem [thread:$0]  %s21855_s8, 64, %s305_s22, [#allocation44]  }
  0xa3   :  { %s21281_s30 = scalar_lea.vmem %s108_s26, 512  ;;  %p21286_p13 = scmp.lt.s32.totalorder %s108_s26, %s108_s26 }
  0xa4   :  { %p21282_p12 = scmp.ne.s32.totalorder %s108_s26, %s21281_s30  ;;  %p21287_p0 = scmp.lt.s32.totalorder %s21281_s30, %s21281_s30 }
  0xa6   :  { %p21288_p1 = por %p21287_p0, %p21286_p13 }
  0xa8   :  { %p21289_p2 = pnand %p21288_p1, %p21282_p12 }
  0xaa   :  { %21292 = shalt.err (!%p21289_p2)
}
  0xab   :  { %s21657_s17 = smov 256   ;;  %s21658_s28 = smov 16  }
  0xac   :  { %113 = dma.hbm_to_vmem [thread:$0]  %s21700_s13, 512, %s108_s26, [#allocation20], %s21657_s17, %s21657_s17, %s21658_s28  }
  0xad   :  { %s21659_s1 = smov [#allocation24]   ;;  %s21660_s2 = smov [#allocation27]  }
  0xae   :  { %s137_s20 = sshll.u32 %s21659_s1, 4  ;;  %s165_s7 = sshll.u32 %s21660_s2, 4  ;;  %s138_s20 = int_to_ptr.vmem [resolvable:$true] %s137_s20  ;;  %s166_s7 = int_to_ptr.vmem [resolvable:$true] %s165_s7 }
  0xaf   :  { %s21301_s10 = scalar_lea.vmem %s138_s20, 512  ;;  %p21306_p4 = scmp.lt.s32.totalorder %s138_s20, %s138_s20 }
  0xb0   :  { %p21302_p3 = scmp.ne.s32.totalorder %s138_s20, %s21301_s10  ;;  %p21307_p5 = scmp.lt.s32.totalorder %s21301_s10, %s21301_s10 }
  0xb2   :  { %p21308_p6 = por %p21307_p5, %p21306_p4 }
  0xb4   :  { %p21309_p7 = pnand %p21308_p6, %p21302_p3 }
  0xb6   :  { %21312 = shalt.err (!%p21309_p7)
}
  0xb7   :  { %143 = dma.hbm_to_vmem [thread:$0]  %s21725_s3, 512, %s138_s20, [#allocation23], %s21647_s11, %s21647_s11, %s21648_s16  }
  0xb8   :  { %s21321_s8 = scalar_lea.vmem %s166_s7, 1536  ;;  %p21326_p9 = scmp.lt.s32.totalorder %s166_s7, %s166_s7 }
  0xb9   :  { %p21322_p8 = scmp.ne.s32.totalorder %s166_s7, %s21321_s8  ;;  %p21327_p10 = scmp.lt.s32.totalorder %s21321_s8, %s21321_s8 }
  0xbb   :  { %p21328_p11 = por %p21327_p10, %p21326_p9 }
  0xbd   :  { %p21329_p12 = pnand %p21328_p11, %p21322_p8 }
  0xbf   :  { %21332 = shalt.err (!%p21329_p12)
}
  0xc0   :  { %s21661_s13 = smov 192   ;;  %s21662_s25 = smov 12  }
  0xc1   :  { %171 = dma.hbm_to_vmem [thread:$0]  %s21745_s24, 1536, %s166_s7, [#allocation26], %s21661_s13, %s21661_s13, %s21662_s25  }
  0xc2   :  { %s21663_s12 = smov [#allocation30]   ;;  %s21664_s22 = smov [#allocation33]  }
  0xc3   :  { %s197_s6 = sshll.u32 %s21663_s12, 4  ;;  %s222_s23 = sshll.u32 %s21664_s22, 4  ;;  %s198_s6 = int_to_ptr.vmem [resolvable:$true] %s197_s6  ;;  %s223_s23 = int_to_ptr.vmem [resolvable:$true] %s222_s23 }
  0xc4   :  { %s21341_s26 = scalar_lea.vmem %s198_s6, 10240  ;;  %p21346_p0 = scmp.lt.s32.totalorder %s198_s6, %s198_s6 }
  0xc5   :  { %p21342_p13 = scmp.ne.s32.totalorder %s198_s6, %s21341_s26  ;;  %p21347_p1 = scmp.lt.s32.totalorder %s21341_s26, %s21341_s26 }
  0xc7   :  { %p21348_p2 = por %p21347_p1, %p21346_p0 }
  0xc9   :  { %p21349_p3 = pnand %p21348_p2, %p21342_p13 }
  0xcb   :  { %21352 = shalt.err (!%p21349_p3)
}
  0xcc   :  { %203 = dma.hbm_to_vmem [thread:$0]  %s21775_s4, 10240, %s198_s6, [#allocation29], %s21649_s15, %s21649_s15, %s21650_s18  }
  0xcd   :  { %s21361_s3 = scalar_lea.vmem %s223_s23, 64  ;;  %p21366_p5 = scmp.lt.s32.totalorder %s223_s23, %s223_s23 }
  0xce   :  { %p21362_p4 = scmp.ne.s32.totalorder %s223_s23, %s21361_s3  ;;  %p21367_p6 = scmp.lt.s32.totalorder %s21361_s3, %s21361_s3 }
  0xd0   :  { %p21368_p7 = por %p21367_p6, %p21366_p5 }
  0xd2   :  { %p21369_p8 = pnand %p21368_p7, %p21362_p4 }
  0xd4   :  { %21372 = shalt.err (!%p21369_p8)
}
  0xd5   :  { %225 = dma.hbm_to_vmem [thread:$0]  %s21790_s27, 64, %s223_s23, [#allocation32]  }
  0xd6   :  { %s21665_s24 = smov [#allocation36]   ;;  %s21666_s16 = smov [#allocation39]  }
  0xd7   :  { %s241_s11 = sshll.u32 %s21665_s24, 4  ;;  %s269_s14 = sshll.u32 %s21666_s16, 4  ;;  %s242_s11 = int_to_ptr.vmem [resolvable:$true] %s241_s11  ;;  %s270_s14 = int_to_ptr.vmem [resolvable:$true] %s269_s14 }
  0xd8   :  { %s21381_s30 = scalar_lea.vmem %s242_s11, 1984  ;;  %p21386_p10 = scmp.lt.s32.totalorder %s242_s11, %s242_s11 }
  0xd9   :  { %p21382_p9 = scmp.ne.s32.totalorder %s242_s11, %s21381_s30  ;;  %p21387_p11 = scmp.lt.s32.totalorder %s21381_s30, %s21381_s30 }
  0xdb   :  { %p21388_p12 = por %p21387_p11, %p21386_p10 }
  0xdd   :  { %p21389_p13 = pnand %p21388_p12, %p21382_p9 }
  0xdf   :  { %21392 = shalt.err (!%p21389_p13)
}
  0xe0   :  { %247 = dma.hbm_to_vmem [thread:$0]  %s21820_s5, 1984, %s242_s11, [#allocation35], %s21643_s0, %s21643_s0, %s21644_s29  }
  0xe1   :  { %s21401_s4 = scalar_lea.vmem %s270_s14, 192  ;;  %p21406_p1 = scmp.lt.s32.totalorder %s270_s14, %s270_s14 }
  0xe2   :  { %p21402_p0 = scmp.ne.s32.totalorder %s270_s14, %s21401_s4  ;;  %p21407_p2 = scmp.lt.s32.totalorder %s21401_s4, %s21401_s4 }
  0xe4   :  { %p21408_p3 = por %p21407_p2, %p21406_p1 }
  0xe6   :  { %p21409_p4 = pnand %p21408_p3, %p21402_p0 }
  0xe8   :  { %21412 = shalt.err (!%p21409_p4)
}
  0xe9   :  { %s23429_s27 = sld [smem:[#allocation92_spill]]  ;;  %s21667_s15 = smov [#allocation42]  }
  0xea   :  { %s294_s18 = sshll.u32 %s21667_s15, 4  ;;  %s21668_s17 = smov [#allocation45]   ;;  %s295_s18 = int_to_ptr.vmem [resolvable:$true] %s294_s18 }
  0xeb   :  { %s314_s28 = sshll.u32 %s21668_s17, 4  ;;  %s21421_s1 = scalar_lea.vmem %s295_s18, 64  ;;  %s315_s28 = int_to_ptr.vmem [resolvable:$true] %s314_s28 }
  0xec   :  { %p21422_p5 = scmp.ne.s32.totalorder %s295_s18, %s21421_s1  ;;  %p21426_p6 = scmp.lt.s32.totalorder %s295_s18, %s295_s18 }
  0xed   :  { %p21427_p7 = scmp.lt.s32.totalorder %s21421_s1, %s21421_s1 }
  0xef   :  { %275 = dma.hbm_to_vmem [thread:$0]  %s23429_s27, 192, %s270_s14, [#allocation38], %s21643_s0, %s21643_s0, %s21644_s29  }
  0xf0   :  { %p21428_p8 = por %p21427_p7, %p21426_p6 }
  0xf2   :  { %p21429_p9 = pnand %p21428_p8, %p21422_p5 }
  0xf4   :  { %21432 = shalt.err (!%p21429_p9)
}
  0xf5   :  { %s23430_s5 = sld [smem:[#allocation93_spill]]  ;;  %s21441_s20 = scalar_lea.vmem %s315_s28, 16 }
  0xf6   :  { %p21442_p10 = scmp.ne.s32.totalorder %s315_s28, %s21441_s20  ;;  %s21445_s2 = scalar_lea.vmem %s315_s28, 32 }
  0xf7   :  { %p21446_p11 = scmp.lt.s32.totalorder %s315_s28, %s315_s28  ;;  %p21447_p12 = scmp.lt.s32.totalorder %s21445_s2, %s21441_s20 }
  0xf9   :  { %p21448_p13 = por %p21447_p12, %p21446_p11 }
  0xfb   :  { %297 = dma.hbm_to_vmem [thread:$0]  %s23430_s5, 64, %s295_s18, [#allocation41]  }
  0xfc   :  { %p21449_p0 = pnand %p21448_p13, %p21442_p10 }
  0xfe   :  { %21452 = shalt.err (!%p21449_p0)
}
  0xff   :  { %s23431_s0 = sld [smem:[#allocation94_spill]]  ;;  %s21669_s29 = smov [#allocation46]  }
 0x100   :  { %s326_s7 = sshll.u32 %s21669_s29, 4  ;;  %s327_s7 = int_to_ptr.vmem [resolvable:$true] %s326_s7 }
 0x101   :  { %s21461_s10 = scalar_lea.vmem %s327_s7, 16  ;;  %s21465_s8 = scalar_lea.vmem %s327_s7, 32 }
 0x102   :  { %p21462_p1 = scmp.ne.s32.totalorder %s327_s7, %s21461_s10  ;;  %p21466_p2 = scmp.lt.s32.totalorder %s327_s7, %s327_s7 }
 0x103   :  { %p21467_p3 = scmp.lt.s32.totalorder %s21465_s8, %s21461_s10 }
 0x105   :  { %317 = dma.hbm_to_vmem [thread:$0]  %s23431_s0, 16, %s315_s28, [#allocation44]  }
 0x106   :  { %p21468_p4 = por %p21467_p3, %p21466_p2 }
 0x108   :  { %p21469_p5 = pnand %p21468_p4, %p21462_p1 }
 0x10a   :  { %21472 = shalt.err (!%p21469_p5)
}
 0x10b   :  { %329 = dma.hbm_to_vmem [thread:$0]  %s21870_s19, 16, %s327_s7, [#allocation47]  }
 0x10c   :  { %21573 = dma.done.wait [#allocation20], 512  }
 0x10d   :  { %21574 = vsyncadd [#allocation20], 4294966784 }
 0x10e   :  { %21575 = dma.done.wait [#allocation23], 768  }
 0x10f   :  { %21576 = vsyncadd [#allocation23], 4294966528 }
 0x110   :  { %21577 = dma.done.wait [#allocation26], 2560  }
 0x111   :  { %21578 = vsyncadd [#allocation26], 4294964736 }
 0x112   :  { %21579 = dma.done.wait [#allocation29], 15360  }
 0x113   :  { %21580 = vsyncadd [#allocation29], 4294951936 }
 0x114   :  { %21581 = dma.done.wait [#allocation32], 96  }
 0x115   :  { %21582 = vsyncadd [#allocation32], 4294967200 }
 0x116   :  { %21583 = dma.done.wait [#allocation35], 2048  }
 0x117   :  { %21584 = vsyncadd [#allocation35], 4294965248 }
 0x118   :  { %21585 = dma.done.wait [#allocation38], 2176  }
 0x119   :  { %21586 = vsyncadd [#allocation38], 4294965120 }
 0x11a   :  { %21587 = dma.done.wait [#allocation41], 256  }
 0x11b   :  { %21588 = vsyncadd [#allocation41], 4294967040 }
 0x11c   :  { %21589 = dma.done.wait [#allocation44], 80  }
 0x11d   :  { %21590 = vsyncadd [#allocation44], 4294967216 }
 0x11e   :  { %21591 = dma.done.wait [#allocation47], 16  }
 0x11f   :  { %21592 = vsyncadd [#allocation47], 4294967280  ;;  %s23432_s19 = sld [smem:[#allocation75_spill]]  ;;  %v23401_v1 = vmov 0.0   ;;  %v440_v2 = vld [vmem:[#allocation19 + $0x18] sm:$0xff]  ;;  %v439_v3 = vld [vmem:[#allocation19 + $0x10] sm:$0xff] }
 0x120   :  { %509 = vmatprep.mubr.f32.mxu0 %v23401_v1  ;;  %v438_v4 = vld [vmem:[#allocation19 + $0x8] sm:$0xff]  ;;  %473 = vmatprep.subr.mxu0 %v440_v2  ;;  %v437_v5 = vld [vmem:[#allocation19] sm:$0xff]  ;;  %vm441_vm0 = vcmask 130048   ;;  %s23433_s13 = sld [smem:[#allocation78_spill]]  ;;  %s21671_s25 = smov 125   ;;  %v23403_v10 = vmov 0  }
 0x121   :  { %474 = vmatpush1.msra.mxu0 %v439_v3  ;;  %s21672_s12 = smov 124   ;;  %s23434_s6 = sld [smem:[#allocation76_spill]]  ;;  %644 = vmatprep.mubr.bf16.mxu1 %v23403_v10  ;;  %vm550_vm1 = vcmask 1014784   ;;  %vm605_vm2 = vcmask 1043456   ;;  %vm534_vm3 = vcmask 1031168   ;;  %vm542_vm4 = vcmask 1022976  }
 0x122   :  { %475 = vmatprep.subr.mxu0 %v438_v4  ;;  %18969 = vset.pattern.permute.xlu1 %v23403_v10  ;;  %s21674_s22 = smov 127   ;;  %s23435_s23 = sld [smem:[#allocation77_spill]]  ;;  %vm526_vm5 = vcmask 1039360   ;;  %v18970_v46 = vld [vmem:[#allocation22] sm:$0xff]   ;;  %vm598_vm6 = vcmask 326656   ;;  %v18971_v47 = vld [vmem:[#allocation22 + $0x8] sm:$0xff]  }
 0x123   :  { %476 = vmatpush1.msra.mxu0 %v437_v5  ;;  %18968 = vset.pattern.permute.xlu0 %v23403_v10  ;;  %s21675_s26 = smov 126   ;;  %vm761_vm7 = vcmask 1014788   ;;  %s23438_s3 = sld [smem:[#allocation79_spill]]  ;;  %vm897_vm9 = vcmask 261120   ;;  %vm989_vm10 = vcmask 982020   ;;  %vm1413_vm12 = vcmask 1041408  }
 0x124   :  { %vm21968_vm8 = vmor %vm761_vm7, %vm605_vm2  ;;  %s23441_s24 = sld [smem:[#allocation80_spill]]  ;;  %vm1400_vm13 = vcmask 949248   ;;  %vm1714_vm14 = vcmask 994304   ;;  %vm1927_vm15 = vcmask 523264   ;;  %vm5438_vm7 = vcmask 400384   ;;  %s21676_s18 = smov [#allocation12]  }
 0x125   :  { %v436_v6 = vld [vmem:[%s23432_s19] sm:$0xff]  ;;  %vm22011_vm11 = vmor %vm989_vm10, %vm605_vm2  ;;  %s23442_s11 = sld [smem:[#allocation81_spill]]  ;;  %s396_s17 = sshll.u32 %s21676_s18, 4  ;;  %s397_s17 = int_to_ptr.vmem [resolvable:$true] %s396_s17 }
 0x126   :  { %16098 = vmatmul.mubr.msk.f32.vlgmr.msra.gmra.mxu0 %vm441_vm0, %v436_v6  ;;  %v567_v11 = vld [vmem:[%s23433_s13 + $0x18] sm:$0xff]  ;;  %v566_v12 = vld [vmem:[%s23433_s13 + $0x10] sm:$0xff]  ;;  %v564_v13 = vld [vmem:[%s23433_s13] sm:$0xff]  ;;  %s23443_s16 = sld [smem:[#allocation82_spill]]  ;;  %s21677_s28 = smov [#allocation13]  }
 0x127   :  { %v565_v14 = vld [vmem:[%s23433_s13 + $0x8] sm:$0xff]  ;;  %v675_v15 = vld [vmem:[%s23434_s6 + $0x10] sm:$0xff]  ;;  %v676_v16 = vld [vmem:[%s23434_s6 + $0x18] sm:$0xff]  ;;  %s23444_s14 = sld [smem:[#allocation83_spill]]  ;;  %s408_s1 = sshll.u32 %s21677_s28, 4  ;;  %s409_s1 = int_to_ptr.vmem [resolvable:$true] %s408_s1 }
 0x128   :  { %v707_v17 = vld [vmem:[%s23435_s23 + $0x10] sm:$0xff]  ;;  %v708_v18 = vld [vmem:[%s23435_s23 + $0x18] sm:$0xff]  ;;  %v673_v19 = vld [vmem:[%s23434_s6] sm:$0xff]  ;;  %s23445_s30 = sld [smem:[#allocation90_spill]]  ;;  %s21481_s5 = scalar_lea.vmem %s397_s17, 20480 }
 0x129   :  { %v674_v20 = vld [vmem:[%s23434_s6 + $0x8] sm:$0xff]  ;;  %v705_v21 = vld [vmem:[%s23435_s23] sm:$0xff]  ;;  %s23446_s4 = sld [smem:[#allocation91_spill]]  ;;  %p21482_p6 = scmp.ne.s32.totalorder %s397_s17, %s21481_s5 }
 0x12a   :  { %v706_v22 = vld [vmem:[%s23435_s23 + $0x8] sm:$0xff]  ;;  %s23447_s27 = sld [smem:[#allocation84_spill]]  ;;  %p21486_p7 = scmp.lt.s32.totalorder %s397_s17, %s397_s17 }
 0x12b   :  { %s23474_s15 = sld [smem:[#allocation85_spill]]  ;;  %p21487_p8 = scmp.lt.s32.totalorder %s21481_s5, %s21481_s5 }
 0x12d   :  { %p21488_p9 = por %p21487_p8, %p21486_p7 }
 0x12f   :  { %p21489_p10 = pnand %p21488_p9, %p21482_p6 }
 0x1e6   :  { %v21933_v7 = vpop.f32.mrf.mxu0 }
 0x1e8   :  { %v21935_v8 = vpop.f32.mrf.mxu0 }
 0x1e9   :  { %v18958_v9 = vpack.i.bf16 %v21935_v8, %v21933_v7 }
 0x1eb   :  { %18959 = vrot.lane.b32.xlu1 %v18958_v9, %s21671_s25  ;;  %18949 = vrot.lane.b32.xlu0 %v18958_v9, %s21672_s12 }
 0x1ef   :  { %18964 = vrot.lane.b32.xlu1 %v18958_v9, %s21674_s22  ;;  %18954 = vrot.lane.b32.xlu0 %v18958_v9, %s21675_s26 }
 0x1f3   :  { %585 = vperm.xlu1 %18969, %v567_v11   ;;  %580 = vperm.xlu0 %18968, %v566_v12  }
 0x1f7   :  { %570 = vperm.xlu1 %18969, %v564_v13   ;;  %575 = vperm.xlu0 %18968, %v565_v14  }
 0x1fb   :  { %689 = vperm.xlu1 %18969, %v675_v15   ;;  %694 = vperm.xlu0 %18968, %v676_v16   ;;  %v18983_v16 = vld [vmem:[#allocation24 + $0x10] ss:$8 sps:$4 sm:$0xff]  }
 0x1ff   :  { %721 = vperm.xlu1 %18969, %v707_v17   ;;  %726 = vperm.xlu0 %18968, %v708_v18  }
 0x203   :  { %679 = vperm.xlu1 %18969, %v673_v19   ;;  %684 = vperm.xlu0 %18968, %v674_v20  }
 0x207   :  { %711 = vperm.xlu1 %18969, %v705_v21   ;;  %716 = vperm.xlu0 %18968, %v706_v22  }
 0x25d   :  { %v18960_v23 = vpop.permute.xlu1 %18959  ;;  %v18950_v24 = vpop.permute.xlu0 %18949 }
 0x25e   :  { %v18951_v25 = vunpack.i.l.bf16 %v18950_v24  ;;  %v18952_v26 = vunpack.i.h.bf16 %v18950_v24  ;;  %v18962_v27 = vunpack.i.h.bf16 %v18960_v23  ;;  %v18961_v28 = vunpack.i.l.bf16 %v18960_v23 }
 0x260   :  { %v563_v29 = vpack.c.bf16 %v18952_v26, %v18952_v26  ;;  %v551_v30 = vsel %vm550_vm1, %v18951_v25, %v18952_v26  ;;  %v543_v41 = vsel %vm542_vm4, %v18961_v28, %v18962_v27 }
 0x261   :  { %v18965_v31 = vpop.permute.xlu1 %18964  ;;  %v18955_v32 = vpop.permute.xlu0 %18954  ;;  %v562_v33 = vpack.c.bf16 %v551_v30, %v551_v30 }
 0x262   :  { %v18957_v34 = vunpack.i.h.bf16 %v18955_v32  ;;  %v18956_v35 = vunpack.i.l.bf16 %v18955_v32  ;;  %16101 = vmatprep.subr.msk.bf16.mxu1 %vm605_vm2, %v563_v29  ;;  %v18967_v36 = vunpack.i.h.bf16 %v18965_v31  ;;  %v18966_v37 = vunpack.i.l.bf16 %v18965_v31 }
 0x263   :  { %v607_v38 = vsel %vm605_vm2, %v562_v33, 0 }
 0x264   :  { %623 = vmatpush1.bf16.msra.mxu1 %v607_v38  ;;  %v561_v39 = vpack.c.bf16 %v18962_v27, %v18957_v34  ;;  %v535_v40 = vsel %vm534_vm3, %v18956_v35, %v18957_v34  ;;  %v559_v43 = vpack.c.bf16 %v18967_v36, %v21935_v8  ;;  %v527_v44 = vsel %vm526_vm5, %v18966_v37, %v18967_v36 }
 0x265   :  { %v560_v42 = vpack.c.bf16 %v543_v41, %v535_v40  ;;  %v558_v45 = vpack.c.bf16 %v527_v44, %v21933_v7 }
 0x266   :  { %624 = vmatprep.subr.bf16.mxu1 %v561_v39 }
 0x268   :  { %625 = vmatpush1.bf16.msra.mxu1 %v560_v42 }
 0x269   :  { %626 = vmatprep.subr.bf16.mxu1 %v559_v43 }
 0x26c   :  { %627 = vmatpush1.bf16.msra.mxu1 %v558_v45 }
 0x26e   :  { %v586_v48 = vpop.permute.xlu1 %585  ;;  %v581_v49 = vpop.permute.xlu0 %580 }
 0x26f   :  { %16102 = vmatmul.mubr.msk.bf16.vlgmr.msra.gmra.mxu1 %vm598_vm6, %v18970_v46 }
 0x270   :  { %654 = vmatprep.mubr.bf16.mxu1 %v23403_v10 }
 0x272   :  { %v571_v50 = vpop.permute.xlu1 %570  ;;  %v576_v51 = vpop.permute.xlu0 %575 }
 0x276   :  { %v690_v52 = vpop.permute.xlu1 %689  ;;  %v695_v53 = vpop.permute.xlu0 %694 }
 0x277   :  { %16103 = vmatmul.mubr.msk.bf16.gmra.mxu1 %vm598_vm6, %v18971_v47  ;;  %v18978_v47 = vld [vmem:[#allocation24 + $0x4] ss:$8 sps:$4 sm:$0xff]   ;;  %vm4015_vm6 = vcmask 429056  }
 0x278   :  { %16116 = vmatprep.mubr.msk.bf16.mxu0 %vm897_vm9, %v18978_v47 }
 0x27a   :  { %v722_v54 = vpop.permute.xlu1 %721  ;;  %v727_v55 = vpop.permute.xlu0 %726 }
 0x27e   :  { %v680_v57 = vpop.permute.xlu1 %679  ;;  %v685_v3 = vpop.permute.xlu0 %684 }
 0x282   :  { %v712_v6 = vpop.permute.xlu1 %711  ;;  %v717_v21 = vpop.permute.xlu0 %716 }
 0x32f   :  { %v646_v56 = vpop.f32.mrf.mxu1 }
 0x330   :  { %v647_v58 = vadd.f32 %v646_v56, %v571_v50 }
 0x331   :  { %v648_v59 = vpop.f32.mrf.mxu1 }
 0x332   :  { %v665_v60 = vmax.f32 %v647_v58, 0.0  ;;  %v649_v61 = vadd.f32 %v648_v59, %v571_v50  ;;  %v856_v50 = vld [vmem:[%s23438_s3 + $0x8] sm:$0xff] }
 0x333   :  { %v650_v62 = vpop.f32.mrf.mxu1 }
 0x334   :  { %v697_v63 = vmul.f32 %v680_v57, %v665_v60  ;;  %v666_v0 = vmax.f32 %v649_v61, 0.0  ;;  %v651_v2 = vadd.f32 %v650_v62, %v576_v51 }
 0x335   :  { %v652_v4 = vpop.f32.mrf.mxu1 }
 0x336   :  { %v698_v5 = vmul.f32 %v680_v57, %v666_v0  ;;  %v667_v7 = vmax.f32 %v651_v2, 0.0  ;;  %v653_v8 = vadd.f32 %v652_v4, %v576_v51  ;;  %v729_v9 = vadd.f32 %v712_v6, %v697_v63  ;;  %v855_v51 = vld [vmem:[%s23438_s3] sm:$0xff] }
 0x337   :  { %v656_v11 = vpop.f32.mrf.mxu1 }
 0x338   :  { %v730_v12 = vadd.f32 %v712_v6, %v698_v5  ;;  %v699_v13 = vmul.f32 %v685_v3, %v667_v7  ;;  %v668_v14 = vmax.f32 %v653_v8, 0.0  ;;  %v657_v15 = vadd.f32 %v656_v11, %v581_v49 }
 0x339   :  { %v658_v17 = vpop.f32.mrf.mxu1 }
 0x33a   :  { %v17725_v18 = vpack.c.bf16 %v730_v12, %v729_v9  ;;  %v700_v19 = vmul.f32 %v685_v3, %v668_v14  ;;  %v669_v20 = vmax.f32 %v657_v15, 0.0  ;;  %v659_v22 = vadd.f32 %v658_v17, %v581_v49  ;;  %v857_v49 = vld [vmem:[%s23438_s3 + $0x10] sm:$0xff] }
 0x33b   :  { %v660_v23 = vpop.f32.mrf.mxu1  ;;  %v731_v24 = vadd.f32 %v717_v21, %v699_v13  ;;  %v18980_v14 = vld [vmem:[#allocation24] ss:$8 sps:$4 sm:$0xff]   ;;  %v18981_v15 = vld [vmem:[#allocation24 + $0x14] ss:$8 sps:$4 sm:$0xff]  }
 0x33c   :  { %763 = vst.msk [vmem:[#allocation3] sm:$0xff] %vm21968_vm8, %v17725_v18  ;;  %v732_v25 = vadd.f32 %v717_v21, %v700_v19  ;;  %v661_v26 = vadd.f32 %v660_v23, %v586_v48  ;;  %v701_v27 = vmul.f32 %v690_v52, %v669_v20  ;;  %v670_v28 = vmax.f32 %v659_v22, 0.0 }
 0x33d   :  { %v662_v29 = vpop.f32.mrf.mxu1 }
 0x33e   :  { %v17726_v30 = vpack.c.bf16 %v732_v25, %v731_v24  ;;  %v671_v31 = vmax.f32 %v661_v26, 0.0  ;;  %v663_v32 = vadd.f32 %v662_v29, %v586_v48  ;;  %v702_v33 = vmul.f32 %v690_v52, %v670_v28  ;;  %v858_v48 = vld [vmem:[%s23438_s3 + $0x18] sm:$0xff] }
 0x33f   :  { %v733_v36 = vadd.f32 %v722_v54, %v701_v27 }
 0x340   :  { %764 = vst.msk [vmem:[#allocation3 + $0x8] sm:$0xff] %vm21968_vm8, %v17726_v30  ;;  %v703_v34 = vmul.f32 %v695_v53, %v671_v31  ;;  %v672_v35 = vmax.f32 %v663_v32, 0.0  ;;  %v734_v37 = vadd.f32 %v722_v54, %v702_v33 }
 0x342   :  { %v704_v38 = vmul.f32 %v695_v53, %v672_v35  ;;  %v17727_v39 = vpack.c.bf16 %v734_v37, %v733_v36  ;;  %v735_v40 = vadd.f32 %v727_v55, %v703_v34 }
 0x344   :  { %v736_v41 = vadd.f32 %v727_v55, %v704_v38  ;;  %765 = vst.msk [vmem:[#allocation3 + $0x10] sm:$0xff] %vm21968_vm8, %v17727_v39 }
 0x346   :  { %v17728_v42 = vpack.c.bf16 %v736_v41, %v735_v40 }
 0x347   :  { %v18975_v45 = vld [vmem:[#allocation3 + $0x4] ss:$8 sps:$4 sm:$0xff]   ;;  %v18977_v46 = vld [vmem:[#allocation3] ss:$8 sps:$4 sm:$0xff]  }
 0x348   :  { %766 = vst.msk [vmem:[#allocation3 + $0x18] sm:$0xff] %vm21968_vm8, %v17728_v42 }
 0x34f   :  { %v18972_v43 = vld [vmem:[#allocation3 + $0x14] ss:$8 sps:$4 sm:$0xff]   ;;  %v18974_v44 = vld [vmem:[#allocation3 + $0x10] ss:$8 sps:$4 sm:$0xff]  }
 0x350   :  { %827 = vrot.lane.b32.xlu0 %v18972_v43, %s21671_s25  ;;  %825 = vrot.lane.b32.xlu1 %v18974_v44, %s21671_s25 }
 0x354   :  { %823 = vrot.lane.b32.xlu0 %v18975_v45, %s21671_s25  ;;  %821 = vrot.lane.b32.xlu1 %v18977_v46, %s21671_s25 }
 0x358   :  { %812 = vrot.lane.b32.xlu0 %v18972_v43, %s21675_s26  ;;  %810 = vrot.lane.b32.xlu1 %v18974_v44, %s21675_s26 }
 0x35c   :  { %808 = vrot.lane.b32.xlu0 %v18975_v45, %s21675_s26  ;;  %806 = vrot.lane.b32.xlu1 %v18977_v46, %s21675_s26 }
 0x360   :  { %797 = vrot.lane.b32.xlu0 %v18972_v43, %s21674_s22  ;;  %795 = vrot.lane.b32.xlu1 %v18974_v44, %s21674_s22 }
 0x364   :  { %793 = vrot.lane.b32.xlu0 %v18975_v45, %s21674_s22  ;;  %791 = vrot.lane.b32.xlu1 %v18977_v46, %s21674_s22 }
 0x368   :  { %842 = vrot.lane.b32.xlu0 %v18972_v43, %s21672_s12  ;;  %840 = vrot.lane.b32.xlu1 %v18974_v44, %s21672_s12 }
 0x36c   :  { %838 = vrot.lane.b32.xlu0 %v18975_v45, %s21672_s12  ;;  %836 = vrot.lane.b32.xlu1 %v18977_v46, %s21672_s12 }
 0x370   :  { %876 = vperm.xlu0 %18968, %v858_v48   ;;  %871 = vperm.xlu1 %18969, %v857_v49  }
 0x374   :  { %866 = vperm.xlu0 %18968, %v856_v50   ;;  %861 = vperm.xlu1 %18969, %v855_v51  }
 0x3c2   :  { %v828_v52 = vpop.permute.xlu0 %827  ;;  %v826_v53 = vpop.permute.xlu1 %825 }
 0x3c3   :  { %v831_v54 = vsel %vm542_vm4, %v826_v53, %v828_v52  ;;  %904 = vmatprep.subr.bf16.mxu0 %v828_v52 }
 0x3c4   :  { %905 = vmatpush1.bf16.msra.mxu0 %v831_v54  ;;  %v18992_v54 = vld [vmem:[#allocation25 + $0x4] ss:$8 sps:$4 sm:$0xff]  }
 0x3c5   :  { %16134 = vmatprep.mubr.msk.bf16.mxu1 %vm897_vm9, %v18992_v54  ;;  %v19024_v54 = vld [vmem:[#allocation36 + $0x10] sm:$0xff]  }
 0x3c6   :  { %v824_v55 = vpop.permute.xlu0 %823  ;;  %v822_v56 = vpop.permute.xlu1 %821 }
 0x3c7   :  { %v830_v57 = vsel %vm542_vm4, %v822_v56, %v824_v55  ;;  %906 = vmatprep.subr.bf16.mxu0 %v824_v55  ;;  %v1084_v55 = vld [vmem:[%s23441_s24 + $0x8] sm:$0xff]  ;;  %v1083_v56 = vld [vmem:[%s23441_s24] sm:$0xff] }
 0x3c8   :  { %907 = vmatpush1.bf16.msra.mxu0 %v830_v57  ;;  %v1086_v57 = vld [vmem:[%s23441_s24 + $0x18] sm:$0xff] }
 0x3ca   :  { %v813_v58 = vpop.permute.xlu0 %812  ;;  %v811_v59 = vpop.permute.xlu1 %810 }
 0x3cb   :  { %v816_v60 = vsel %vm534_vm3, %v811_v59, %v813_v58  ;;  %908 = vmatprep.subr.bf16.mxu0 %v813_v58  ;;  %v1085_v58 = vld [vmem:[%s23441_s24 + $0x10] sm:$0xff]  ;;  %v1088_v59 = vld [vmem:[%s23441_s24 + $0x28] sm:$0xff] }
 0x3cc   :  { %909 = vmatpush1.bf16.msra.mxu0 %v816_v60  ;;  %v1087_v60 = vld [vmem:[%s23441_s24 + $0x20] sm:$0xff] }
 0x3ce   :  { %v809_v61 = vpop.permute.xlu0 %808  ;;  %v807_v62 = vpop.permute.xlu1 %806 }
 0x3cf   :  { %v815_v63 = vsel %vm534_vm3, %v807_v62, %v809_v61  ;;  %910 = vmatprep.subr.bf16.mxu0 %v809_v61  ;;  %v1090_v61 = vld [vmem:[%s23441_s24 + $0x38] sm:$0xff]  ;;  %v1089_v62 = vld [vmem:[%s23441_s24 + $0x30] sm:$0xff] }
 0x3d0   :  { %911 = vmatpush1.bf16.msra.mxu0 %v815_v63  ;;  %v19002_v63 = vld [vmem:[#allocation36 + $0x78] ss:$0 sps:$4 sm:$0x33]  }
 0x3d2   :  { %v798_v0 = vpop.permute.xlu0 %797  ;;  %v796_v2 = vpop.permute.xlu1 %795 }
 0x3d3   :  { %v801_v3 = vsel %vm526_vm5, %v796_v2, %v798_v0  ;;  %912 = vmatprep.subr.bf16.mxu0 %v798_v0  ;;  %v19004_v0 = vld [vmem:[#allocation36 + $0x38] sm:$0xff]   ;;  %v19006_v2 = vld [vmem:[#allocation36 + $0x70] sm:$0xff]  }
 0x3d4   :  { %913 = vmatpush1.bf16.msra.mxu0 %v801_v3  ;;  %v19008_v3 = vld [vmem:[#allocation36 + $0x30] sm:$0xff]  }
 0x3d6   :  { %v794_v4 = vpop.permute.xlu0 %793  ;;  %v792_v5 = vpop.permute.xlu1 %791 }
 0x3d7   :  { %v800_v6 = vsel %vm526_vm5, %v792_v5, %v794_v4  ;;  %914 = vmatprep.subr.bf16.mxu0 %v794_v4  ;;  %v19010_v4 = vld [vmem:[#allocation36 + $0x68] sm:$0xff]  }
 0x3d8   :  { %915 = vmatpush1.bf16.msra.mxu0 %v800_v6  ;;  %v19012_v5 = vld [vmem:[#allocation36 + $0x28] sm:$0xff]   ;;  %v19014_v6 = vld [vmem:[#allocation36 + $0x60] sm:$0xff]  }
 0x3d9   :  { %916 = vmatprep.subr.bf16.mxu0 %v18972_v43 }
 0x3da   :  { %v843_v7 = vpop.permute.xlu0 %842  ;;  %v841_v8 = vpop.permute.xlu1 %840 }
 0x3db   :  { %v846_v9 = vsel %vm550_vm1, %v841_v8, %v843_v7  ;;  %v19018_v8 = vld [vmem:[#allocation36 + $0x58] sm:$0xff]  }
 0x3dc   :  { %917 = vmatpush1.bf16.msra.mxu0 %v18974_v44 }
 0x3dd   :  { %918 = vmatprep.subr.bf16.mxu0 %v18975_v45 }
 0x3de   :  { %v839_v11 = vpop.permute.xlu0 %838  ;;  %v837_v12 = vpop.permute.xlu1 %836 }
 0x3df   :  { %v845_v13 = vsel %vm550_vm1, %v837_v12, %v839_v11 }
 0x3e0   :  { %919 = vmatpush1.bf16.msra.mxu0 %v18977_v46 }
 0x3e1   :  { %932 = vmatprep.subr.bf16.mxu0 %v843_v7  ;;  %v19016_v7 = vld [vmem:[#allocation36 + $0x20] sm:$0xff]  }
 0x3e4   :  { %933 = vmatpush2.bf16.msra.mxu0 %v846_v9  ;;  %v19020_v9 = vld [vmem:[#allocation36 + $0x18] sm:$0xff]  }
 0x3e5   :  { %934 = vmatprep.subr.bf16.mxu0 %v839_v11 }
 0x3e8   :  { %935 = vmatpush2.bf16.msra.mxu0 %v845_v13 }
 0x3e9   :  { %18849 = vmatprep.subr.msk.bf16.mxu0 %vm1413_vm12, %v19002_v63  ;;  %v19033_v63 = vld [vmem:[#allocation37] sm:$0xff]  }
 0x3eb   :  { %937 = vmatmul.mubr.bf16.vlgmr.msra.gmra.mxu0 %v18980_v14  ;;  %v872_v17 = vpop.permute.xlu1 %871  ;;  %v877_v18 = vpop.permute.xlu0 %876 }
 0x3ec   :  { %16117 = vmatprep.mubr.msk.bf16.mxu0 %vm897_vm9, %v18981_v15  ;;  %17782 = vmatpush3.bf16.msra.mxu0 %v19004_v0 }
 0x3ed   :  { %17783 = vmatprep.subr.bf16.mxu0 %v19006_v2 }
 0x3ef   :  { %v862_v19 = vpop.permute.xlu1 %861  ;;  %v867_v24 = vpop.permute.xlu0 %866 }
 0x3f0   :  { %17784 = vmatpush3.bf16.msra.mxu0 %v19008_v3 }
 0x3f1   :  { %17785 = vmatprep.subr.bf16.mxu0 %v19010_v4 }
 0x3f3   :  { %947 = vmatmul.mubr.bf16.gmra.mxu0 %v18983_v16 }
 0x3f4   :  { %17786 = vmatpush3.bf16.msra.mxu0 %v19012_v5 }
 0x3f5   :  { %17787 = vmatprep.subr.bf16.mxu0 %v19014_v6 }
 0x3f8   :  { %17788 = vmatpush3.bf16.msra.mxu0 %v19016_v7 }
 0x3f9   :  { %17789 = vmatprep.subr.bf16.mxu0 %v19018_v8 }
 0x3fc   :  { %17790 = vmatpush3.bf16.msra.mxu0 %v19020_v9 }
 0x4ab   :  { %v938_v20 = vpop.f32.mrf.mxu0 }
 0x4ac   :  { %v939_v21 = vadd.f32 %v938_v20, %v862_v19 }
 0x4ad   :  { %v940_v22 = vpop.f32.mrf.mxu0 }
 0x4ae   :  { %v941_v23 = vadd.f32 %v940_v22, %v862_v19  ;;  %v957_v26 = vmax.f32 %v939_v21, 0.0 }
 0x4af   :  { %v942_v25 = vpop.f32.mrf.mxu0 }
 0x4b0   :  { %v958_v27 = vmax.f32 %v941_v23, 0.0  ;;  %v943_v28 = vadd.f32 %v942_v25, %v867_v24 }
 0x4b1   :  { %v944_v30 = vpop.f32.mrf.mxu0 }
 0x4b2   :  { %v17729_v31 = vpack.c.bf16 %v958_v27, %v957_v26  ;;  %v945_v32 = vadd.f32 %v944_v30, %v867_v24  ;;  %v959_v34 = vmax.f32 %v943_v28, 0.0 }
 0x4b3   :  { %v948_v33 = vpop.f32.mrf.mxu0 }
 0x4b4   :  { %991 = vst.msk [vmem:[#allocation4] sm:$0xff] %vm22011_vm11, %v17729_v31  ;;  %v960_v35 = vmax.f32 %v945_v32, 0.0  ;;  %v949_v36 = vadd.f32 %v948_v33, %v872_v17 }
 0x4b5   :  { %v950_v37 = vpop.f32.mrf.mxu0 }
 0x4b6   :  { %v17730_v38 = vpack.c.bf16 %v960_v35, %v959_v34  ;;  %v951_v39 = vadd.f32 %v950_v37, %v872_v17  ;;  %v961_v41 = vmax.f32 %v949_v36, 0.0  ;;  %v19003_v34 = vld [vmem:[#allocation37 + $0x78] ss:$0 sps:$4 sm:$0x33]   ;;  %v18990_v36 = vld [vmem:[#allocation25] ss:$8 sps:$4 sm:$0xff]  }
 0x4b7   :  { %v952_v40 = vpop.f32.mrf.mxu0  ;;  %v18993_v37 = vld [vmem:[#allocation25 + $0x14] ss:$8 sps:$4 sm:$0xff]  }
 0x4b8   :  { %992 = vst.msk [vmem:[#allocation4 + $0x8] sm:$0xff] %vm22011_vm11, %v17730_v38  ;;  %v962_v42 = vmax.f32 %v951_v39, 0.0  ;;  %v953_v43 = vadd.f32 %v952_v40, %v877_v18  ;;  %v19005_v38 = vld [vmem:[#allocation37 + $0x38] sm:$0xff]   ;;  %v19007_v39 = vld [vmem:[#allocation37 + $0x70] sm:$0xff]  }
 0x4b9   :  { %v954_v44 = vpop.f32.mrf.mxu0  ;;  %v19009_v40 = vld [vmem:[#allocation37 + $0x30] sm:$0xff]  }
 0x4ba   :  { %v17731_v45 = vpack.c.bf16 %v962_v42, %v961_v41  ;;  %v955_v46 = vadd.f32 %v954_v44, %v877_v18  ;;  %v963_v47 = vmax.f32 %v953_v43, 0.0  ;;  %v19011_v41 = vld [vmem:[#allocation37 + $0x68] sm:$0xff]  }
 0x4bb   :  { %v18995_v42 = vld [vmem:[#allocation25 + $0x10] ss:$8 sps:$4 sm:$0xff]   ;;  %v18996_v43 = vld [vmem:[#allocation25 + $0x24] ss:$8 sps:$4 sm:$0xff]  }
 0x4bc   :  { %993 = vst.msk [vmem:[#allocation4 + $0x10] sm:$0xff] %vm22011_vm11, %v17731_v45  ;;  %v964_v48 = vmax.f32 %v955_v46, 0.0  ;;  %v19013_v44 = vld [vmem:[#allocation37 + $0x28] sm:$0xff]   ;;  %v19015_v45 = vld [vmem:[#allocation37 + $0x60] sm:$0xff]  }
 0x4bd   :  { %v19017_v46 = vld [vmem:[#allocation37 + $0x20] sm:$0xff]  }
 0x4be   :  { %v17732_v49 = vpack.c.bf16 %v964_v48, %v963_v47  ;;  %v19019_v47 = vld [vmem:[#allocation37 + $0x58] sm:$0xff]  }
 0x4bf   :  { %v22031_v52 = vld [vmem:[#allocation4 + $0x4] ss:$8 sps:$4 sm:$0xff]   ;;  %v22033_v53 = vld [vmem:[#allocation4] ss:$8 sps:$4 sm:$0xff]   ;;  %v18998_v48 = vld [vmem:[#allocation25 + $0x20] ss:$8 sps:$4 sm:$0xff]  }
 0x4c0   :  { %994 = vst.msk [vmem:[#allocation4 + $0x18] sm:$0xff] %vm22011_vm11, %v17732_v49  ;;  %v18999_v49 = vld [vmem:[#allocation25 + $0x34] ss:$8 sps:$4 sm:$0xff]  }
 0x4c7   :  { %v22023_v50 = vld [vmem:[#allocation4 + $0x14] ss:$8 sps:$4 sm:$0xff]   ;;  %v22025_v51 = vld [vmem:[#allocation4 + $0x10] ss:$8 sps:$4 sm:$0xff]  }
 0x4c8   :  { %1053 = vrot.lane.b32.xlu0 %v22023_v50, %s21671_s25  ;;  %1051 = vrot.lane.b32.xlu1 %v22025_v51, %s21671_s25 }
 0x4cc   :  { %1049 = vrot.lane.b32.xlu0 %v22031_v52, %s21671_s25  ;;  %1047 = vrot.lane.b32.xlu1 %v22033_v53, %s21671_s25 }
 0x4d0   :  { %1039 = vrot.lane.b32.xlu0 %v22023_v50, %s21675_s26  ;;  %1037 = vrot.lane.b32.xlu1 %v22025_v51, %s21675_s26 }
 0x4d4   :  { %1035 = vrot.lane.b32.xlu0 %v22031_v52, %s21675_s26  ;;  %1033 = vrot.lane.b32.xlu1 %v22033_v53, %s21675_s26 }
 0x4d8   :  { %1025 = vrot.lane.b32.xlu0 %v22023_v50, %s21674_s22  ;;  %1023 = vrot.lane.b32.xlu1 %v22025_v51, %s21674_s22 }
 0x4dc   :  { %1021 = vrot.lane.b32.xlu0 %v22031_v52, %s21674_s22  ;;  %1019 = vrot.lane.b32.xlu1 %v22033_v53, %s21674_s22 }
 0x4e0   :  { %1067 = vrot.lane.b32.xlu0 %v22023_v50, %s21672_s12  ;;  %1065 = vrot.lane.b32.xlu1 %v22025_v51, %s21672_s12 }
 0x4e4   :  { %1063 = vrot.lane.b32.xlu0 %v22031_v52, %s21672_s12  ;;  %1061 = vrot.lane.b32.xlu1 %v22033_v53, %s21672_s12 }
 0x4e8   :  { %1098 = vperm.xlu0 %18968, %v1084_v55   ;;  %1093 = vperm.xlu1 %18969, %v1083_v56   ;;  %v19025_v55 = vld [vmem:[#allocation37 + $0x10] sm:$0xff]  }
 0x4e9   :  { %v19026_v56 = vld [vmem:[#allocation36 + $0x48] sm:$0xff]  }
 0x4ec   :  { %1108 = vperm.xlu0 %18968, %v1086_v57   ;;  %1103 = vperm.xlu1 %18969, %v1085_v58   ;;  %v19027_v57 = vld [vmem:[#allocation37 + $0x48] sm:$0xff]  }
 0x4ed   :  { %v19028_v58 = vld [vmem:[#allocation36 + $0x8] sm:$0xff]  }
 0x4f0   :  { %1118 = vperm.xlu0 %18968, %v1088_v59   ;;  %1113 = vperm.xlu1 %18969, %v1087_v60   ;;  %v19029_v59 = vld [vmem:[#allocation37 + $0x8] sm:$0xff]  }
 0x4f1   :  { %v19030_v60 = vld [vmem:[#allocation36 + $0x40] sm:$0xff]  }
 0x4f4   :  { %1128 = vperm.xlu0 %18968, %v1090_v61   ;;  %1123 = vperm.xlu1 %18969, %v1089_v62   ;;  %v19031_v61 = vld [vmem:[#allocation37 + $0x40] sm:$0xff]  }
 0x4f5   :  { %v19032_v62 = vld [vmem:[#allocation36] sm:$0xff]  }
 0x53a   :  { %v1054_v11 = vpop.permute.xlu0 %1053  ;;  %v1052_v12 = vpop.permute.xlu1 %1051 }
 0x53b   :  { %v1056_v13 = vsel %vm542_vm4, %v1052_v12, %v1054_v11  ;;  %1179 = vmatprep.subr.bf16.mxu1 %v1054_v11 }
 0x53c   :  { %1180 = vmatpush1.bf16.msra.mxu1 %v1056_v13 }
 0x53e   :  { %v1050_v14 = vpop.permute.xlu0 %1049  ;;  %v1048_v15 = vpop.permute.xlu1 %1047 }
 0x53f   :  { %v1055_v16 = vsel %vm542_vm4, %v1048_v15, %v1050_v14  ;;  %1181 = vmatprep.subr.bf16.mxu1 %v1050_v14  ;;  %vm2749_vm4 = vcmask 932864  }
 0x540   :  { %1182 = vmatpush1.bf16.msra.mxu1 %v1055_v16 }
 0x542   :  { %v1040_v17 = vpop.permute.xlu0 %1039  ;;  %v1038_v18 = vpop.permute.xlu1 %1037 }
 0x543   :  { %v1042_v19 = vsel %vm534_vm3, %v1038_v18, %v1040_v17  ;;  %1183 = vmatprep.subr.bf16.mxu1 %v1040_v17 }
 0x544   :  { %1184 = vmatpush1.bf16.msra.mxu1 %v1042_v19 }
 0x546   :  { %v1036_v20 = vpop.permute.xlu0 %1035  ;;  %v1034_v21 = vpop.permute.xlu1 %1033 }
 0x547   :  { %v1041_v22 = vsel %vm534_vm3, %v1034_v21, %v1036_v20  ;;  %1185 = vmatprep.subr.bf16.mxu1 %v1036_v20  ;;  %vm2774_vm3 = vcmask 1040384  }
 0x548   :  { %1186 = vmatpush1.bf16.msra.mxu1 %v1041_v22 }
 0x54a   :  { %v1026_v23 = vpop.permute.xlu0 %1025  ;;  %v1024_v24 = vpop.permute.xlu1 %1023 }
 0x54b   :  { %v1028_v25 = vsel %vm526_vm5, %v1024_v24, %v1026_v23  ;;  %1187 = vmatprep.subr.bf16.mxu1 %v1026_v23 }
 0x54c   :  { %1188 = vmatpush1.bf16.msra.mxu1 %v1028_v25 }
 0x54e   :  { %v1022_v26 = vpop.permute.xlu0 %1021  ;;  %v1020_v27 = vpop.permute.xlu1 %1019 }
 0x54f   :  { %v1027_v28 = vsel %vm526_vm5, %v1020_v27, %v1022_v26  ;;  %1189 = vmatprep.subr.bf16.mxu1 %v1022_v26  ;;  %vm3115_vm5 = vcmask 461824  }
 0x550   :  { %1190 = vmatpush1.bf16.msra.mxu1 %v1027_v28 }
 0x551   :  { %1191 = vmatprep.subr.bf16.mxu1 %v22023_v50  ;;  %v19021_v50 = vld [vmem:[#allocation37 + $0x18] sm:$0xff]  }
 0x552   :  { %v1068_v29 = vpop.permute.xlu0 %1067  ;;  %v1066_v30 = vpop.permute.xlu1 %1065 }
 0x553   :  { %v1070_v31 = vsel %vm550_vm1, %v1066_v30, %v1068_v29 }
 0x554   :  { %1192 = vmatpush1.bf16.msra.mxu1 %v22025_v51  ;;  %v19001_v51 = vld [vmem:[#allocation25 + $0x30] ss:$8 sps:$4 sm:$0xff]  }
 0x555   :  { %1193 = vmatprep.subr.bf16.mxu1 %v22031_v52  ;;  %v19022_v52 = vld [vmem:[#allocation36 + $0x50] sm:$0xff]  }
 0x556   :  { %v1064_v32 = vpop.permute.xlu0 %1063  ;;  %v1062_v33 = vpop.permute.xlu1 %1061  ;;  %17791 = vmatprep.subr.bf16.mxu0 %v19022_v52 }
 0x557   :  { %v1069_v35 = vsel %vm550_vm1, %v1062_v33, %v1064_v32  ;;  %17792 = vmatpush3.bf16.msra.mxu0 %v19024_v54  ;;  %vm2110_vm1 = vcmask 961536  }
 0x558   :  { %1194 = vmatpush1.bf16.msra.mxu1 %v22033_v53  ;;  %v19023_v53 = vld [vmem:[#allocation37 + $0x50] sm:$0xff]   ;;  %17793 = vmatprep.subr.bf16.mxu0 %v19026_v56 }
 0x559   :  { %1207 = vmatprep.subr.bf16.mxu1 %v1068_v29 }
 0x55b   :  { %17794 = vmatpush3.bf16.msra.mxu0 %v19028_v58 }
 0x55c   :  { %1208 = vmatpush2.bf16.msra.mxu1 %v1070_v31  ;;  %17795 = vmatprep.subr.bf16.mxu0 %v19030_v60 }
 0x55d   :  { %1209 = vmatprep.subr.bf16.mxu1 %v1064_v32 }
 0x55f   :  { %17796 = vmatpush3.bf16.msra.mxu0 %v19032_v62 }
 0x560   :  { %1210 = vmatpush2.bf16.msra.mxu1 %v1069_v35 }
 0x561   :  { %18850 = vmatprep.subr.msk.bf16.mxu1 %vm1413_vm12, %v19003_v34 }
 0x563   :  { %1212 = vmatmul.mubr.bf16.vlgmr.msra.gmra.mxu1 %v18990_v36  ;;  %v1099_v3 = vpop.permute.xlu0 %1098  ;;  %v1094_v4 = vpop.permute.xlu1 %1093 }
 0x564   :  { %16135 = vmatprep.mubr.msk.bf16.mxu1 %vm897_vm9, %v18993_v37  ;;  %17822 = vmatpush3.bf16.msra.mxu1 %v19005_v38 }
 0x565   :  { %17823 = vmatprep.subr.bf16.mxu1 %v19007_v39 }
 0x567   :  { %v1109_v18 = vpop.permute.xlu0 %1108  ;;  %v1104_v20 = vpop.permute.xlu1 %1103 }
 0x568   :  { %17824 = vmatpush3.bf16.msra.mxu1 %v19009_v40 }
 0x569   :  { %17825 = vmatprep.subr.bf16.mxu1 %v19011_v41 }
 0x56b   :  { %1222 = vmatmul.mubr.bf16.gmra.mxu1 %v18995_v42  ;;  %v1119_v34 = vpop.permute.xlu0 %1118  ;;  %v1114_v36 = vpop.permute.xlu1 %1113 }
 0x56c   :  { %16136 = vmatprep.mubr.msk.bf16.mxu1 %vm897_vm9, %v18996_v43  ;;  %17826 = vmatpush3.bf16.msra.mxu1 %v19013_v44 }
 0x56d   :  { %17827 = vmatprep.subr.bf16.mxu1 %v19015_v45 }
 0x56f   :  { %v1124_v52 = vpop.permute.xlu1 %1123 }
 0x570   :  { %17828 = vmatpush3.bf16.msra.mxu1 %v19017_v46 }
 0x571   :  { %17829 = vmatprep.subr.bf16.mxu1 %v19019_v47 }
 0x573   :  { %1232 = vmatmul.mubr.bf16.gmra.mxu1 %v18998_v48 }
 0x574   :  { %16137 = vmatprep.mubr.msk.bf16.mxu1 %vm897_vm9, %v18999_v49  ;;  %17830 = vmatpush3.bf16.msra.mxu1 %v19021_v50  ;;  %v1129_v50 = vpop.permute.xlu0 %1128 }
 0x575   :  { %17831 = vmatprep.subr.bf16.mxu1 %v19023_v53 }
 0x578   :  { %17832 = vmatpush3.bf16.msra.mxu1 %v19025_v55 }
 0x579   :  { %17833 = vmatprep.subr.bf16.mxu1 %v19027_v57 }
 0x57b   :  { %1242 = vmatmul.mubr.bf16.gmra.mxu1 %v19001_v51 }
 0x57c   :  { %17834 = vmatpush3.bf16.msra.mxu1 %v19029_v59 }
 0x57d   :  { %17835 = vmatprep.subr.bf16.mxu1 %v19031_v61 }
 0x580   :  { %17836 = vmatpush3.bf16.msra.mxu1 %v19033_v63 }
 0x623   :  { %v1213_v0 = vpop.f32.mrf.mxu1 }
 0x624   :  { %v1214_v8 = vadd.f32 %v1213_v0, %v1094_v4 }
 0x625   :  { %v1215_v2 = vpop.f32.mrf.mxu1 }
 0x626   :  { %v1216_v6 = vadd.f32 %v1215_v2, %v1094_v4  ;;  %v1252_v16 = vmax.f32 %v1214_v8, 0.0 }
 0x627   :  { %v1217_v5 = vpop.f32.mrf.mxu1 }
 0x628   :  { %v1218_v7 = vadd.f32 %v1217_v5, %v1099_v3  ;;  %v1253_v14 = vmax.f32 %v1216_v6, 0.0 }
 0x629   :  { %v1219_v9 = vpop.f32.mrf.mxu1 }
 0x62a   :  { %v1220_v11 = vadd.f32 %v1219_v9, %v1099_v3  ;;  %v1254_v12 = vmax.f32 %v1218_v7, 0.0 }
 0x62b   :  { %v1223_v13 = vpop.f32.mrf.mxu1 }
 0x62c   :  { %v1255_v15 = vmax.f32 %v1220_v11, 0.0  ;;  %v1268_v21 = vpack.c.bf16 %v1254_v12, %v1252_v16  ;;  %v1224_v25 = vadd.f32 %v1223_v13, %v1104_v20 }
 0x62d   :  { %v1225_v17 = vpop.f32.mrf.mxu1 }
 0x62e   :  { %v1269_v19 = vpack.c.bf16 %v1255_v15, %v1253_v14  ;;  %v1226_v23 = vadd.f32 %v1225_v17, %v1104_v20  ;;  %v1256_v32 = vmax.f32 %v1224_v25, 0.0 }
 0x62f   :  { %v1227_v22 = vpop.f32.mrf.mxu1 }
 0x630   :  { %v1228_v24 = vadd.f32 %v1227_v22, %v1109_v18  ;;  %16154 = vmatprep.mubr.msk.bf16.mxu0 %vm1400_vm13, %v1269_v19  ;;  %16174 = vmatprep.mubr.msk.bf16.mxu1 %vm1400_vm13, %v1269_v19  ;;  %v1257_v30 = vmax.f32 %v1226_v23, 0.0 }
 0x631   :  { %v1229_v26 = vpop.f32.mrf.mxu1  ;;  %1450 = vmatmul.mubr.bf16.vlgmr.msra.gmra.mxu0 %v1268_v21  ;;  %1642 = vmatmul.mubr.bf16.vlgmr.msra.gmra.mxu1 %v1268_v21 }
 0x632   :  { %v1230_v27 = vadd.f32 %v1229_v26, %v1109_v18  ;;  %v1258_v28 = vmax.f32 %v1228_v24, 0.0 }
 0x633   :  { %v1233_v29 = vpop.f32.mrf.mxu1 }
 0x634   :  { %v1259_v31 = vmax.f32 %v1230_v27, 0.0  ;;  %v1270_v37 = vpack.c.bf16 %v1258_v28, %v1256_v32  ;;  %v1234_v41 = vadd.f32 %v1233_v29, %v1114_v36 }
 0x635   :  { %v1235_v33 = vpop.f32.mrf.mxu1 }
 0x636   :  { %v1271_v35 = vpack.c.bf16 %v1259_v31, %v1257_v30  ;;  %v1236_v39 = vadd.f32 %v1235_v33, %v1114_v36  ;;  %v1260_v48 = vmax.f32 %v1234_v41, 0.0 }
 0x637   :  { %v1237_v38 = vpop.f32.mrf.mxu1 }
 0x638   :  { %v1238_v40 = vadd.f32 %v1237_v38, %v1119_v34  ;;  %16155 = vmatprep.mubr.msk.bf16.mxu0 %vm1400_vm13, %v1271_v35  ;;  %16175 = vmatprep.mubr.msk.bf16.mxu1 %vm1400_vm13, %v1271_v35  ;;  %v1261_v46 = vmax.f32 %v1236_v39, 0.0 }
 0x639   :  { %v1239_v42 = vpop.f32.mrf.mxu1  ;;  %1458 = vmatmul.mubr.bf16.gmra.mxu0 %v1270_v37  ;;  %1650 = vmatmul.mubr.bf16.gmra.mxu1 %v1270_v37 }
 0x63a   :  { %v1240_v43 = vadd.f32 %v1239_v42, %v1119_v34  ;;  %v1262_v44 = vmax.f32 %v1238_v40, 0.0 }
 0x63b   :  { %v1243_v45 = vpop.f32.mrf.mxu1 }
 0x63c   :  { %v1263_v47 = vmax.f32 %v1240_v43, 0.0  ;;  %v1272_v53 = vpack.c.bf16 %v1262_v44, %v1260_v48  ;;  %v1244_v57 = vadd.f32 %v1243_v45, %v1124_v52 }
 0x63d   :  { %v1245_v49 = vpop.f32.mrf.mxu1 }
 0x63e   :  { %v1273_v51 = vpack.c.bf16 %v1263_v47, %v1261_v46  ;;  %v1246_v55 = vadd.f32 %v1245_v49, %v1124_v52  ;;  %v1264_v63 = vmax.f32 %v1244_v57, 0.0 }
 0x63f   :  { %v1247_v54 = vpop.f32.mrf.mxu1 }
 0x640   :  { %v1248_v56 = vadd.f32 %v1247_v54, %v1129_v50  ;;  %16156 = vmatprep.mubr.msk.bf16.mxu0 %vm1400_vm13, %v1273_v51  ;;  %16176 = vmatprep.mubr.msk.bf16.mxu1 %vm1400_vm13, %v1273_v51  ;;  %v1265_v61 = vmax.f32 %v1246_v55, 0.0 }
 0x641   :  { %v1249_v58 = vpop.f32.mrf.mxu1  ;;  %1466 = vmatmul.mubr.bf16.gmra.mxu0 %v1272_v53  ;;  %1658 = vmatmul.mubr.bf16.gmra.mxu1 %v1272_v53 }
 0x642   :  { %v1250_v59 = vadd.f32 %v1249_v58, %v1129_v50  ;;  %v1266_v60 = vmax.f32 %v1248_v56, 0.0 }
 0x644   :  { %v1267_v62 = vmax.f32 %v1250_v59, 0.0  ;;  %v1274_v2 = vpack.c.bf16 %v1266_v60, %v1264_v63 }
 0x646   :  { %v1275_v0 = vpack.c.bf16 %v1267_v62, %v1265_v61 }
 0x648   :  { %16157 = vmatprep.mubr.msk.bf16.mxu0 %vm1400_vm13, %v1275_v0  ;;  %16177 = vmatprep.mubr.msk.bf16.mxu1 %vm1400_vm13, %v1275_v0 }
 0x649   :  { %1474 = vmatmul.mubr.bf16.gmra.mxu0 %v1274_v2  ;;  %1666 = vmatmul.mubr.bf16.gmra.mxu1 %v1274_v2 }
 0x6f1   :  { %v17797_v3 = vpop.f32.mrf.mxu0  ;;  %v17837_v4 = vpop.f32.mrf.mxu1 }
 0x6f3   :  { %v17798_v5 = vpop.f32.mrf.mxu0  ;;  %v17838_v6 = vpop.f32.mrf.mxu1 }
 0x6f4   :  { %v17799_v7 = vadd.f32 %v17798_v5, %v17797_v3  ;;  %v17839_v8 = vadd.f32 %v17838_v6, %v17837_v4 }
 0x6f5   :  { %v17800_v9 = vpop.f32.mrf.mxu0  ;;  %v17840_v11 = vpop.f32.mrf.mxu1 }
 0x6f6   :  { %v1674_v12 = vmax.f32 %v17799_v7, %v17839_v8 }
 0x6f7   :  { %v17801_v13 = vpop.f32.mrf.mxu0  ;;  %v17841_v14 = vpop.f32.mrf.mxu1 }
 0x6f8   :  { %v17733_v15 = vpack.c.bf16 %v1674_v12, %v1674_v12  ;;  %v17802_v16 = vadd.f32 %v17801_v13, %v17800_v9  ;;  %v17842_v17 = vadd.f32 %v17841_v14, %v17840_v11  ;;  %v19040_v9 = vld [vmem:[#allocation27 + $0x4] ss:$12 sps:$4 sm:$0xff]   ;;  %v19043_v11 = vld [vmem:[#allocation27 + $0x8] ss:$12 sps:$4 sm:$0xff]  }
 0x6f9   :  { %v17803_v18 = vpop.f32.mrf.mxu0  ;;  %v17843_v19 = vpop.f32.mrf.mxu1  ;;  %1972 = vmatprep.mubr.bf16.mxu0 %v19040_v9  ;;  %18645 = vmatprep.mubr.msk.bf16.mxu1 %vm1927_vm15, %v19043_v11  ;;  %v1826_v12 = vld [vmem:[%s23442_s11 + $0x38] sm:$0xff]  ;;  %v1825_v13 = vld [vmem:[%s23442_s11 + $0x30] sm:$0xff]  ;;  %v1824_v14 = vld [vmem:[%s23442_s11 + $0x28] sm:$0xff] }
 0x6fa   :  { %1715 = vst.msk [vmem:[#allocation5] sm:$0xf] %vm1714_vm14, %v17733_v15  ;;  %v1675_v20 = vmax.f32 %v17802_v16, %v17842_v17  ;;  %v1823_v15 = vld [vmem:[%s23442_s11 + $0x20] sm:$0xff]  ;;  %v1822_v16 = vld [vmem:[%s23442_s11 + $0x18] sm:$0xff]  ;;  %v1821_v17 = vld [vmem:[%s23442_s11 + $0x10] sm:$0xff] }
 0x6fb   :  { %v17804_v21 = vpop.f32.mrf.mxu0  ;;  %v17844_v22 = vpop.f32.mrf.mxu1 }
 0x6fc   :  { %v17734_v23 = vpack.c.bf16 %v1675_v20, %v1675_v20  ;;  %v17805_v24 = vadd.f32 %v17804_v21, %v17803_v18  ;;  %v17845_v25 = vadd.f32 %v17844_v22, %v17843_v19  ;;  %v1820_v18 = vld [vmem:[%s23442_s11 + $0x8] sm:$0xff]  ;;  %v1819_v19 = vld [vmem:[%s23442_s11] sm:$0xff] }
 0x6fd   :  { %v17806_v26 = vpop.f32.mrf.mxu0  ;;  %v17846_v27 = vpop.f32.mrf.mxu1 }
 0x6fe   :  { %1716 = vst.msk [vmem:[#allocation5 + $0x4] sm:$0xf] %vm1714_vm14, %v17734_v23  ;;  %v1676_v28 = vmax.f32 %v17805_v24, %v17845_v25 }
 0x6ff   :  { %v17807_v29 = vpop.f32.mrf.mxu0  ;;  %v17847_v30 = vpop.f32.mrf.mxu1 }
 0x700   :  { %v17735_v31 = vpack.c.bf16 %v1676_v28, %v1676_v28  ;;  %v17808_v32 = vadd.f32 %v17807_v29, %v17806_v26  ;;  %v17848_v33 = vadd.f32 %v17847_v30, %v17846_v27 }
 0x701   :  { %v17809_v34 = vpop.f32.mrf.mxu0  ;;  %v17849_v35 = vpop.f32.mrf.mxu1 }
 0x702   :  { %1717 = vst.msk [vmem:[#allocation5 + $0x8] sm:$0xf] %vm1714_vm14, %v17735_v31  ;;  %v1677_v36 = vmax.f32 %v17808_v32, %v17848_v33 }
 0x703   :  { %v17810_v37 = vpop.f32.mrf.mxu0  ;;  %v17850_v38 = vpop.f32.mrf.mxu1 }
 0x704   :  { %v17736_v39 = vpack.c.bf16 %v1677_v36, %v1677_v36  ;;  %v17811_v40 = vadd.f32 %v17810_v37, %v17809_v34  ;;  %v17851_v41 = vadd.f32 %v17850_v38, %v17849_v35  ;;  %v19038_v34 = vld [vmem:[#allocation27] ss:$12 sps:$4 sm:$0xff]   ;;  %v19041_v36 = vld [vmem:[#allocation27 + $0x1c] ss:$12 sps:$4 sm:$0xff]   ;;  %v19044_v38 = vld [vmem:[#allocation27 + $0x18] ss:$12 sps:$4 sm:$0xff]  }
 0x705   :  { %v17812_v42 = vpop.f32.mrf.mxu0  ;;  %v17852_v43 = vpop.f32.mrf.mxu1  ;;  %v22111_v8 = vld [vmem:[#allocation5] sm:$0xff]  }
 0x706   :  { %1718 = vst.msk [vmem:[#allocation5 + $0xc] sm:$0xf] %vm1714_vm14, %v17736_v39  ;;  %v1678_v44 = vmax.f32 %v17811_v40, %v17851_v41  ;;  %v19045_v39 = vld [vmem:[#allocation27 + $0x20] ss:$12 sps:$4 sm:$0xff]   ;;  %v19049_v41 = vld [vmem:[#allocation27 + $0x38] ss:$12 sps:$4 sm:$0xff]  }
 0x707   :  { %v17813_v45 = vpop.f32.mrf.mxu0  ;;  %v17853_v46 = vpop.f32.mrf.mxu1  ;;  %v19046_v40 = vld [vmem:[#allocation27 + $0x34] ss:$12 sps:$4 sm:$0xff]  }
 0x708   :  { %v17737_v47 = vpack.c.bf16 %v1678_v44, %v1678_v44  ;;  %v17814_v48 = vadd.f32 %v17813_v45, %v17812_v42  ;;  %v17854_v49 = vadd.f32 %v17853_v46, %v17852_v43  ;;  %v19048_v42 = vld [vmem:[#allocation27 + $0x30] ss:$12 sps:$4 sm:$0xff]   ;;  %v19051_v44 = vld [vmem:[#allocation27 + $0x4c] ss:$12 sps:$4 sm:$0xff]   ;;  %v19053_v45 = vld [vmem:[#allocation27 + $0x48] ss:$12 sps:$4 sm:$0xff]  }
 0x709   :  { %v17815_v50 = vpop.f32.mrf.mxu0  ;;  %v17855_v51 = vpop.f32.mrf.mxu1  ;;  %v19050_v43 = vld [vmem:[#allocation27 + $0x50] ss:$12 sps:$4 sm:$0xff]  }
 0x70a   :  { %1719 = vst.msk [vmem:[#allocation5 + $0x10] sm:$0xf] %vm1714_vm14, %v17737_v47  ;;  %v1679_v52 = vmax.f32 %v17814_v48, %v17854_v49 }
 0x70b   :  { %v17816_v53 = vpop.f32.mrf.mxu0  ;;  %v17856_v54 = vpop.f32.mrf.mxu1 }
 0x70c   :  { %v17738_v55 = vpack.c.bf16 %v1679_v52, %v1679_v52  ;;  %v17817_v56 = vadd.f32 %v17816_v53, %v17815_v50  ;;  %v17857_v57 = vadd.f32 %v17856_v54, %v17855_v51 }
 0x70d   :  { %v17818_v58 = vpop.f32.mrf.mxu0  ;;  %v17858_v59 = vpop.f32.mrf.mxu1  ;;  %v19036_v7 = vld [vmem:[#allocation5 + $0x8] sm:$0xff]  }
 0x70e   :  { %1720 = vst.msk [vmem:[#allocation5 + $0x14] sm:$0xf] %vm1714_vm14, %v17738_v55  ;;  %v1680_v60 = vmax.f32 %v17817_v56, %v17857_v57 }
 0x70f   :  { %v17819_v61 = vpop.f32.mrf.mxu0  ;;  %v17859_v62 = vpop.f32.mrf.mxu1 }
 0x710   :  { %v17739_v63 = vpack.c.bf16 %v1680_v60, %v1680_v60  ;;  %v17820_v0 = vadd.f32 %v17819_v61, %v17818_v58  ;;  %v17860_v2 = vadd.f32 %v17859_v62, %v17858_v59 }
 0x712   :  { %1721 = vst.msk [vmem:[#allocation5 + $0x18] sm:$0xf] %vm1714_vm14, %v17739_v63  ;;  %v1681_v3 = vmax.f32 %v17820_v0, %v17860_v2 }
 0x714   :  { %v17740_v4 = vpack.c.bf16 %v1681_v3, %v1681_v3 }
 0x715   :  { %v19035_v6 = vld [vmem:[#allocation5 + $0x10] sm:$0xff]  }
 0x716   :  { %1722 = vst.msk [vmem:[#allocation5 + $0x1c] sm:$0xf] %vm1714_vm14, %v17740_v4 }
 0x71d   :  { %v19034_v5 = vld [vmem:[#allocation5 + $0x18] sm:$0xff]  }
 0x71e   :  { %1761 = vrot.lane.b32.xlu0 %v19034_v5, %s21674_s22  ;;  %1785 = vrot.lane.b32.xlu1 %v19034_v5, %s21671_s25 }
 0x722   :  { %1759 = vrot.lane.b32.xlu0 %v19035_v6, %s21674_s22  ;;  %1783 = vrot.lane.b32.xlu1 %v19035_v6, %s21671_s25 }
 0x726   :  { %1757 = vrot.lane.b32.xlu0 %v19036_v7, %s21674_s22  ;;  %1781 = vrot.lane.b32.xlu1 %v19036_v7, %s21671_s25 }
 0x72a   :  { %1755 = vrot.lane.b32.xlu0 %v22111_v8, %s21674_s22  ;;  %1779 = vrot.lane.b32.xlu1 %v22111_v8, %s21671_s25 }
 0x72e   :  { %1771 = vrot.lane.b32.xlu0 %v19035_v6, %s21675_s26  ;;  %1773 = vrot.lane.b32.xlu1 %v19034_v5, %s21675_s26 }
 0x732   :  { %1767 = vrot.lane.b32.xlu0 %v22111_v8, %s21675_s26  ;;  %1769 = vrot.lane.b32.xlu1 %v19036_v7, %s21675_s26 }
 0x736   :  { %1795 = vrot.lane.b32.xlu0 %v19035_v6, %s21672_s12  ;;  %1797 = vrot.lane.b32.xlu1 %v19034_v5, %s21672_s12 }
 0x73a   :  { %1791 = vrot.lane.b32.xlu0 %v22111_v8, %s21672_s12  ;;  %1793 = vrot.lane.b32.xlu1 %v19036_v7, %s21672_s12 }
 0x73e   :  { %1864 = vperm.xlu0 %18968, %v1826_v12   ;;  %1859 = vperm.xlu1 %18969, %v1825_v13  }
 0x742   :  { %1854 = vperm.xlu0 %18968, %v1824_v14   ;;  %1849 = vperm.xlu1 %18969, %v1823_v15  }
 0x746   :  { %1844 = vperm.xlu0 %18968, %v1822_v16   ;;  %1839 = vperm.xlu1 %18969, %v1821_v17  }
 0x74a   :  { %1834 = vperm.xlu0 %18968, %v1820_v18   ;;  %1829 = vperm.xlu1 %18969, %v1819_v19  }
 0x790   :  { %v1762_v20 = vpop.permute.xlu0 %1761  ;;  %v1786_v21 = vpop.permute.xlu1 %1785 }
 0x791   :  { %17861 = vmatprep.subr.bf16.mxu0 %v1786_v21 }
 0x792   :  { %17862 = vmatpush3.bf16.msra.mxu0 %v1762_v20 }
 0x794   :  { %v1760_v22 = vpop.permute.xlu0 %1759  ;;  %v1784_v23 = vpop.permute.xlu1 %1783 }
 0x795   :  { %17863 = vmatprep.subr.bf16.mxu0 %v1784_v23 }
 0x796   :  { %17864 = vmatpush3.bf16.msra.mxu0 %v1760_v22 }
 0x798   :  { %v1758_v24 = vpop.permute.xlu0 %1757  ;;  %v1782_v25 = vpop.permute.xlu1 %1781 }
 0x799   :  { %17865 = vmatprep.subr.bf16.mxu0 %v1782_v25 }
 0x79a   :  { %17866 = vmatpush3.bf16.msra.mxu0 %v1758_v24 }
 0x79c   :  { %v1756_v26 = vpop.permute.xlu0 %1755  ;;  %v1780_v27 = vpop.permute.xlu1 %1779 }
 0x79d   :  { %17867 = vmatprep.subr.bf16.mxu0 %v1780_v27 }
 0x79e   :  { %17868 = vmatpush3.bf16.msra.mxu0 %v1756_v26 }
 0x7a0   :  { %v1772_v28 = vpop.permute.xlu0 %1771  ;;  %v1774_v29 = vpop.permute.xlu1 %1773 }
 0x7a1   :  { %17869 = vmatprep.subr.bf16.mxu0 %v1774_v29 }
 0x7a2   :  { %17870 = vmatpush3.bf16.msra.mxu0 %v19034_v5 }
 0x7a3   :  { %17871 = vmatprep.subr.bf16.mxu0 %v1772_v28 }
 0x7a4   :  { %v1768_v30 = vpop.permute.xlu0 %1767  ;;  %v1770_v31 = vpop.permute.xlu1 %1769 }
 0x7a6   :  { %17872 = vmatpush3.bf16.msra.mxu0 %v19035_v6 }
 0x7a7   :  { %17873 = vmatprep.subr.bf16.mxu0 %v1770_v31 }
 0x7a8   :  { %v1798_v32 = vpop.permute.xlu1 %1797  ;;  %v1796_v33 = vpop.permute.xlu0 %1795 }
 0x7a9   :  { %18637 = vmatprep.subr.bf16.mxu1 %v1798_v32 }
 0x7aa   :  { %17874 = vmatpush3.bf16.msra.mxu0 %v19036_v7  ;;  %18638 = vmatpush3.bf16.msra.mxu1 %v1798_v32 }
 0x7ab   :  { %17875 = vmatprep.subr.bf16.mxu0 %v1768_v30  ;;  %18639 = vmatprep.subr.bf16.mxu1 %v1796_v33 }
 0x7ac   :  { %v1794_v35 = vpop.permute.xlu1 %1793  ;;  %v1792_v37 = vpop.permute.xlu0 %1791 }
 0x7ae   :  { %17876 = vmatpush3.bf16.msra.mxu0 %v22111_v8  ;;  %18640 = vmatpush3.bf16.msra.mxu1 %v1796_v33 }
 0x7af   :  { %18641 = vmatprep.subr.bf16.mxu1 %v1794_v35 }
 0x7b1   :  { %1973 = vmatmul.mubr.bf16.vlgmr.msra.gmra.mxu0 %v19038_v34 }
 0x7b2   :  { %18642 = vmatpush3.bf16.msra.mxu1 %v1794_v35  ;;  %1980 = vmatprep.mubr.bf16.mxu0 %v19041_v36 }
 0x7b3   :  { %18643 = vmatprep.subr.bf16.mxu1 %v1792_v37 }
 0x7b6   :  { %18644 = vmatpush3.bf16.msra.mxu1 %v1792_v37 }
 0x7b9   :  { %1981 = vmatmul.mubr.bf16.gmra.mxu0 %v19044_v38  ;;  %18646 = vmatmul.mubr.msk.bf16.vlgmr.msra.gmra.mxu1 %vm1927_vm15, %v19045_v39  ;;  %v22140_v46 = vpop.permute.xlu1 %1859  ;;  %v22142_v47 = vpop.permute.xlu0 %1864 }
 0x7ba   :  { %1988 = vmatprep.mubr.bf16.mxu0 %v19046_v40  ;;  %18649 = vmatprep.mubr.msk.bf16.mxu1 %vm1927_vm15, %v19049_v41 }
 0x7bd   :  { %v1850_v48 = vpop.permute.xlu1 %1849  ;;  %v1855_v49 = vpop.permute.xlu0 %1854 }
 0x7c1   :  { %1989 = vmatmul.mubr.bf16.gmra.mxu0 %v19048_v42  ;;  %18650 = vmatmul.mubr.msk.bf16.gmra.mxu1 %vm1927_vm15, %v19050_v43  ;;  %v1840_v51 = vpop.permute.xlu1 %1839  ;;  %v1845_v54 = vpop.permute.xlu0 %1844 }
 0x7c2   :  { %1996 = vmatprep.mubr.bf16.mxu0 %v19051_v44 }
 0x7c5   :  { %v1830_v57 = vpop.permute.xlu1 %1829  ;;  %v1835_v0 = vpop.permute.xlu0 %1834 }
 0x7c9   :  { %1997 = vmatmul.mubr.bf16.gmra.mxu0 %v19053_v45 }
 0x871   :  { %v17877_v50 = vpop.f32.mrf.mxu0 }
 0x873   :  { %v17878_v52 = vpop.f32.mrf.mxu0 }
 0x874   :  { %v17879_v55 = vadd.f32 %v17878_v52, %v17877_v50 }
 0x875   :  { %v17880_v53 = vpop.f32.mrf.mxu0 }
 0x876   :  { %v1975_v61 = vadd.f32 %v17879_v55, %v1830_v57 }
 0x877   :  { %v17881_v56 = vpop.f32.mrf.mxu0 }
 0x878   :  { %v17882_v60 = vadd.f32 %v17881_v56, %v17880_v53 }
 0x879   :  { %v17883_v58 = vpop.f32.mrf.mxu0  ;;  %v18647_v59 = vpop.f32.mrf.mxu1 }
 0x87a   :  { %v1978_v8 = vadd.f32 %v17882_v60, %v1835_v0  ;;  %v19060_v60 = vld [vmem:[%s23443_s16 + $0x4] ss:$12 sps:$4 sm:$0xff]   ;;  %v2234_v0 = vld [vmem:[%s23444_s14 + $0x18] sm:$0xff] }
 0x87b   :  { %v17884_v62 = vpop.f32.mrf.mxu0  ;;  %v2039_v63 = vpop.f32.mrf.mxu1  ;;  %2503 = vmatprep.mubr.bf16.mxu0 %v19060_v60  ;;  %v19095_v60 = vld [vmem:[%s23445_s30 + $0x10] sm:$0xff]  }
 0x87c   :  { %v17885_v2 = vadd.f32 %v17884_v62, %v17883_v58  ;;  %v2040_v3 = vadd.f32 %v2039_v63, %v1975_v61  ;;  %v19063_v61 = vld [vmem:[%s23443_s16 + $0x8] ss:$12 sps:$4 sm:$0xff]   ;;  %v2231_v63 = vld [vmem:[%s23444_s14] sm:$0xff] }
 0x87d   :  { %v17886_v4 = vpop.f32.mrf.mxu0  ;;  %v18648_v5 = vpop.f32.mrf.mxu1  ;;  %18661 = vmatprep.mubr.msk.bf16.mxu1 %vm1927_vm15, %v19063_v61  ;;  %v2232_v62 = vld [vmem:[%s23444_s14 + $0x8] sm:$0xff] }
 0x87e   :  { %v1983_v6 = vadd.f32 %v17885_v2, %v1840_v51  ;;  %v2070_v7 = vmax.f32 %v2040_v3, 0.0  ;;  %v2233_v2 = vld [vmem:[%s23444_s14 + $0x10] sm:$0xff]  ;;  %v2236_v3 = vld [vmem:[%s23444_s14 + $0x28] sm:$0xff] }
 0x87f   :  { %v17887_v9 = vpop.f32.mrf.mxu0  ;;  %v2042_v11 = vpop.f32.mrf.mxu1  ;;  %v19096_v61 = vld [vmem:[%s23445_s30 + $0x8] sm:$0xff]  }
 0x880   :  { %v2048_v12 = vadd.f32 %v18647_v59, %v1983_v6  ;;  %v17741_v13 = vpack.c.bf16 %v2070_v7, %v2070_v7  ;;  %v17888_v14 = vadd.f32 %v17887_v9, %v17886_v4  ;;  %v2043_v15 = vadd.f32 %v2042_v11, %v1978_v8  ;;  %v2235_v4 = vld [vmem:[%s23444_s14 + $0x20] sm:$0xff]  ;;  %v2237_v6 = vld [vmem:[%s23444_s14 + $0x30] sm:$0xff]  ;;  %v2240_v7 = vld [vmem:[%s23444_s14 + $0x48] sm:$0xff] }
 0x881   :  { %v17889_v16 = vpop.f32.mrf.mxu0  ;;  %v18651_v17 = vpop.f32.mrf.mxu1  ;;  %v2239_v8 = vld [vmem:[%s23444_s14 + $0x40] sm:$0xff]  ;;  %v2242_v9 = vld [vmem:[%s23444_s14 + $0x58] sm:$0xff]  ;;  %v2241_v11 = vld [vmem:[%s23444_s14 + $0x50] sm:$0xff] }
 0x882   :  { %v2072_v18 = vmax.f32 %v2048_v12, 0.0  ;;  %2111 = vst.msk [vmem:[#allocation6] sm:$0xf] %vm2110_vm1, %v17741_v13  ;;  %v1986_v19 = vadd.f32 %v17888_v14, %v1845_v54  ;;  %v2071_v20 = vmax.f32 %v2043_v15, 0.0  ;;  %v2244_v12 = vld [vmem:[%s23444_s14 + $0x68] sm:$0xff]  ;;  %v2243_v13 = vld [vmem:[%s23444_s14 + $0x60] sm:$0xff] }
 0x883   :  { %v17890_v21 = vpop.f32.mrf.mxu0  ;;  %v2055_v22 = vpop.f32.mrf.mxu1  ;;  %v2246_v14 = vld [vmem:[%s23444_s14 + $0x78] sm:$0xff]  ;;  %v2245_v15 = vld [vmem:[%s23444_s14 + $0x70] sm:$0xff] }
 0x884   :  { %v17743_v23 = vpack.c.bf16 %v2072_v18, %v2072_v18  ;;  %v2051_v24 = vadd.f32 %v18648_v5, %v1986_v19  ;;  %v17742_v25 = vpack.c.bf16 %v2071_v20, %v2071_v20  ;;  %v17891_v26 = vadd.f32 %v17890_v21, %v17889_v16  ;;  %v2238_v5 = vld [vmem:[%s23444_s14 + $0x38] sm:$0xff] }
 0x885   :  { %v17892_v27 = vpop.f32.mrf.mxu0  ;;  %v18652_v28 = vpop.f32.mrf.mxu1 }
 0x886   :  { %2113 = vst.msk [vmem:[#allocation6 + $0x8] sm:$0xf] %vm2110_vm1, %v17743_v23  ;;  %v2073_v29 = vmax.f32 %v2051_v24, 0.0  ;;  %2112 = vst.msk [vmem:[#allocation6 + $0x4] sm:$0xf] %vm2110_vm1, %v17742_v25  ;;  %v1991_v30 = vadd.f32 %v17891_v26, %v1850_v48 }
 0x887   :  { %v17893_v31 = vpop.f32.mrf.mxu0  ;;  %v2058_v36 = vpop.f32.mrf.mxu1 }
 0x888   :  { %v17744_v32 = vpack.c.bf16 %v2073_v29, %v2073_v29  ;;  %v17894_v33 = vadd.f32 %v17893_v31, %v17892_v27  ;;  %v2056_v34 = vadd.f32 %v2055_v22, %v1991_v30  ;;  %v19058_v30 = vld [vmem:[%s23443_s16] ss:$12 sps:$4 sm:$0xff]  }
 0x889   :  { %v17895_v35 = vpop.f32.mrf.mxu0 }
 0x88a   :  { %2114 = vst.msk [vmem:[#allocation6 + $0xc] sm:$0xf] %vm2110_vm1, %v17744_v32  ;;  %v2074_v37 = vmax.f32 %v2056_v34, 0.0  ;;  %v1994_v38 = vadd.f32 %v17894_v33, %v1855_v49  ;;  %v19061_v32 = vld [vmem:[%s23443_s16 + $0x1c] ss:$12 sps:$4 sm:$0xff]  }
 0x88b   :  { %v17896_v39 = vpop.f32.mrf.mxu0  ;;  %v19090_v34 = vld [vmem:[%s23445_s30 + $0x38] ss:$0 sps:$4 sm:$0x11]  }
 0x88c   :  { %v17745_v40 = vpack.c.bf16 %v2074_v37, %v2074_v37  ;;  %v17897_v41 = vadd.f32 %v17896_v39, %v17895_v35  ;;  %v2059_v42 = vadd.f32 %v2058_v36, %v1994_v38  ;;  %v19064_v35 = vld [vmem:[%s23443_s16 + $0x18] ss:$12 sps:$4 sm:$0xff]   ;;  %v19065_v36 = vld [vmem:[%s23443_s16 + $0x20] ss:$12 sps:$4 sm:$0xff]   ;;  %v2776_v39 = vsel %vm2774_vm3, %v19090_v34, 0 }
 0x88d   :  { %v17898_v43 = vpop.f32.mrf.mxu0  ;;  %v22172_v59 = vld [vmem:[#allocation6] sm:$0xff]  }
 0x88e   :  { %2115 = vst.msk [vmem:[#allocation6 + $0x10] sm:$0xf] %vm2110_vm1, %v17745_v40  ;;  %v1999_v44 = vadd.f32 %v17897_v41, %v22140_v46  ;;  %v2075_v45 = vmax.f32 %v2059_v42, 0.0  ;;  %v19066_v37 = vld [vmem:[%s23443_s16 + $0x34] ss:$12 sps:$4 sm:$0xff]  }
 0x88f   :  { %v17899_v48 = vpop.f32.mrf.mxu0  ;;  %v19069_v38 = vld [vmem:[%s23443_s16 + $0x38] ss:$12 sps:$4 sm:$0xff]   ;;  %v19091_v40 = vld [vmem:[%s23445_s30 + $0x30] sm:$0xff]  }
 0x890   :  { %v2064_v50 = vadd.f32 %v18651_v17, %v1999_v44  ;;  %v17746_v51 = vpack.c.bf16 %v2075_v45, %v2075_v45  ;;  %v17900_v52 = vadd.f32 %v17899_v48, %v17898_v43  ;;  %v19068_v41 = vld [vmem:[%s23443_s16 + $0x30] ss:$12 sps:$4 sm:$0xff]   ;;  %v19071_v43 = vld [vmem:[%s23443_s16 + $0x4c] ss:$12 sps:$4 sm:$0xff]   ;;  %v19077_v44 = vld [vmem:[%s23443_s16 + $0x68] ss:$12 sps:$4 sm:$0xff]  }
 0x891   :  { %v19070_v42 = vld [vmem:[%s23443_s16 + $0x50] ss:$12 sps:$4 sm:$0xff]   ;;  %v19073_v45 = vld [vmem:[%s23443_s16 + $0x48] ss:$12 sps:$4 sm:$0xff]   ;;  %v19078_v48 = vld [vmem:[%s23443_s16 + $0x80] ss:$12 sps:$4 sm:$0xff]  }
 0x892   :  { %v2076_v53 = vmax.f32 %v2064_v50, 0.0  ;;  %2116 = vst.msk [vmem:[#allocation6 + $0x14] sm:$0xf] %vm2110_vm1, %v17746_v51  ;;  %v2002_v54 = vadd.f32 %v17900_v52, %v22142_v47  ;;  %v22166_v47 = vld [vmem:[#allocation6 + $0x8] sm:$0xff]   ;;  %v19074_v50 = vld [vmem:[%s23443_s16 + $0x64] ss:$12 sps:$4 sm:$0xff]  }
 0x893   :  { %v19085_v51 = vld [vmem:[%s23443_s16 + $0x98] ss:$12 sps:$4 sm:$0xff]   ;;  %v19076_v52 = vld [vmem:[%s23443_s16 + $0x60] ss:$12 sps:$4 sm:$0xff]  }
 0x894   :  { %v17747_v49 = vpack.c.bf16 %v2076_v53, %v2076_v53  ;;  %v2067_v55 = vadd.f32 %v18652_v28, %v2002_v54  ;;  %v19086_v53 = vld [vmem:[%s23443_s16 + $0xb0] ss:$12 sps:$4 sm:$0xff]  }
 0x895   :  { %v19079_v54 = vld [vmem:[%s23443_s16 + $0x7c] ss:$12 sps:$4 sm:$0xff]  }
 0x896   :  { %2117 = vst.msk [vmem:[#allocation6 + $0x18] sm:$0xf] %vm2110_vm1, %v17747_v49  ;;  %v2077_v56 = vmax.f32 %v2067_v55, 0.0  ;;  %v19081_v49 = vld [vmem:[%s23443_s16 + $0x78] ss:$12 sps:$4 sm:$0xff]  }
 0x897   :  { %v19082_v55 = vld [vmem:[%s23443_s16 + $0x94] ss:$12 sps:$4 sm:$0xff]  }
 0x898   :  { %v17748_v57 = vpack.c.bf16 %v2077_v56, %v2077_v56  ;;  %v19084_v56 = vld [vmem:[%s23443_s16 + $0x90] ss:$12 sps:$4 sm:$0xff]  }
 0x899   :  { %v22160_v58 = vld [vmem:[#allocation6 + $0x10] sm:$0xff]  }
 0x89a   :  { %2118 = vst.msk [vmem:[#allocation6 + $0x1c] sm:$0xf] %vm2110_vm1, %v17748_v57  ;;  %v19087_v57 = vld [vmem:[%s23443_s16 + $0xac] ss:$12 sps:$4 sm:$0xff]  }
 0x8a1   :  { %v22154_v46 = vld [vmem:[#allocation6 + $0x18] sm:$0xff]  }
 0x8a2   :  { %2157 = vrot.lane.b32.xlu0 %v22154_v46, %s21674_s22  ;;  %2181 = vrot.lane.b32.xlu1 %v22154_v46, %s21671_s25 }
 0x8a6   :  { %2155 = vrot.lane.b32.xlu0 %v22160_v58, %s21674_s22  ;;  %2179 = vrot.lane.b32.xlu1 %v22160_v58, %s21671_s25 }
 0x8aa   :  { %2153 = vrot.lane.b32.xlu0 %v22166_v47, %s21674_s22  ;;  %2177 = vrot.lane.b32.xlu1 %v22166_v47, %s21671_s25 }
 0x8ae   :  { %2151 = vrot.lane.b32.xlu0 %v22172_v59, %s21674_s22  ;;  %2175 = vrot.lane.b32.xlu1 %v22172_v59, %s21671_s25 }
 0x8b2   :  { %2167 = vrot.lane.b32.xlu0 %v22160_v58, %s21675_s26  ;;  %2169 = vrot.lane.b32.xlu1 %v22154_v46, %s21675_s26 }
 0x8b6   :  { %2163 = vrot.lane.b32.xlu0 %v22172_v59, %s21675_s26  ;;  %2165 = vrot.lane.b32.xlu1 %v22166_v47, %s21675_s26 }
 0x8ba   :  { %2191 = vrot.lane.b32.xlu0 %v22160_v58, %s21672_s12  ;;  %2193 = vrot.lane.b32.xlu1 %v22154_v46, %s21672_s12 }
 0x8be   :  { %2187 = vrot.lane.b32.xlu0 %v22172_v59, %s21672_s12  ;;  %2189 = vrot.lane.b32.xlu1 %v22166_v47, %s21672_s12 }
 0x8c2   :  { %2254 = vperm.xlu0 %18968, %v2232_v62   ;;  %2249 = vperm.xlu1 %18969, %v2231_v63   ;;  %v19097_v62 = vld [vmem:[%s23445_s30] sm:$0xff]   ;;  %v19098_v63 = vld [vmem:[%s23446_s4 + $0x38] ss:$0 sps:$4 sm:$0x11]  }
 0x8c6   :  { %2264 = vperm.xlu0 %18968, %v2234_v0   ;;  %2259 = vperm.xlu1 %18969, %v2233_v2  }
 0x8ca   :  { %2274 = vperm.xlu0 %18968, %v2236_v3   ;;  %2269 = vperm.xlu1 %18969, %v2235_v4  }
 0x8ce   :  { %2284 = vperm.xlu0 %18968, %v2238_v5   ;;  %2279 = vperm.xlu1 %18969, %v2237_v6  }
 0x8d2   :  { %2294 = vperm.xlu0 %18968, %v2240_v7   ;;  %2289 = vperm.xlu1 %18969, %v2239_v8  }
 0x8d6   :  { %2304 = vperm.xlu0 %18968, %v2242_v9   ;;  %2299 = vperm.xlu1 %18969, %v2241_v11  }
 0x8da   :  { %2314 = vperm.xlu0 %18968, %v2244_v12   ;;  %2309 = vperm.xlu1 %18969, %v2243_v13  }
 0x8de   :  { %2324 = vperm.xlu0 %18968, %v2246_v14   ;;  %2319 = vperm.xlu1 %18969, %v2245_v15  }
 0x914   :  { %v2158_v16 = vpop.permute.xlu0 %2157  ;;  %v2182_v17 = vpop.permute.xlu1 %2181 }
 0x915   :  { %17909 = vmatprep.subr.bf16.mxu0 %v2182_v17 }
 0x916   :  { %17910 = vmatpush3.bf16.msra.mxu0 %v2158_v16 }
 0x918   :  { %v2156_v18 = vpop.permute.xlu0 %2155  ;;  %v2180_v19 = vpop.permute.xlu1 %2179 }
 0x919   :  { %17911 = vmatprep.subr.bf16.mxu0 %v2180_v19 }
 0x91a   :  { %17912 = vmatpush3.bf16.msra.mxu0 %v2156_v18 }
 0x91c   :  { %v2154_v20 = vpop.permute.xlu0 %2153  ;;  %v2178_v21 = vpop.permute.xlu1 %2177 }
 0x91d   :  { %17913 = vmatprep.subr.bf16.mxu0 %v2178_v21 }
 0x91e   :  { %17914 = vmatpush3.bf16.msra.mxu0 %v2154_v20 }
 0x920   :  { %v2152_v22 = vpop.permute.xlu0 %2151  ;;  %v2176_v23 = vpop.permute.xlu1 %2175 }
 0x921   :  { %17915 = vmatprep.subr.bf16.mxu0 %v2176_v23 }
 0x922   :  { %17916 = vmatpush3.bf16.msra.mxu0 %v2152_v22 }
 0x924   :  { %v2168_v24 = vpop.permute.xlu0 %2167  ;;  %v2170_v25 = vpop.permute.xlu1 %2169 }
 0x925   :  { %17917 = vmatprep.subr.bf16.mxu0 %v2170_v25 }
 0x926   :  { %17918 = vmatpush3.bf16.msra.mxu0 %v22154_v46  ;;  %v19089_v46 = vld [vmem:[%s23443_s16 + $0xa8] ss:$12 sps:$4 sm:$0xff]  }
 0x927   :  { %17919 = vmatprep.subr.bf16.mxu0 %v2168_v24 }
 0x928   :  { %v2164_v26 = vpop.permute.xlu0 %2163  ;;  %v2166_v27 = vpop.permute.xlu1 %2165 }
 0x92a   :  { %17920 = vmatpush3.bf16.msra.mxu0 %v22160_v58  ;;  %v19092_v58 = vld [vmem:[%s23445_s30 + $0x28] sm:$0xff]  }
 0x92b   :  { %17921 = vmatprep.subr.bf16.mxu0 %v2166_v27 }
 0x92c   :  { %v2194_v28 = vpop.permute.xlu1 %2193  ;;  %v2192_v29 = vpop.permute.xlu0 %2191 }
 0x92d   :  { %18653 = vmatprep.subr.bf16.mxu1 %v2194_v28 }
 0x92e   :  { %17922 = vmatpush3.bf16.msra.mxu0 %v22166_v47  ;;  %18654 = vmatpush3.bf16.msra.mxu1 %v2194_v28  ;;  %v19093_v47 = vld [vmem:[%s23445_s30 + $0x20] sm:$0xff]  }
 0x92f   :  { %17923 = vmatprep.subr.bf16.mxu0 %v2164_v26  ;;  %18655 = vmatprep.subr.bf16.mxu1 %v2192_v29 }
 0x930   :  { %v2190_v31 = vpop.permute.xlu1 %2189  ;;  %v2188_v33 = vpop.permute.xlu0 %2187 }
 0x932   :  { %17924 = vmatpush3.bf16.msra.mxu0 %v22172_v59  ;;  %18656 = vmatpush3.bf16.msra.mxu1 %v2192_v29  ;;  %v19094_v59 = vld [vmem:[%s23445_s30 + $0x18] sm:$0xff]  }
 0x933   :  { %18657 = vmatprep.subr.bf16.mxu1 %v2190_v31 }
 0x935   :  { %2504 = vmatmul.mubr.bf16.vlgmr.msra.gmra.mxu0 %v19058_v30 }
 0x936   :  { %18658 = vmatpush3.bf16.msra.mxu1 %v2190_v31  ;;  %2511 = vmatprep.mubr.bf16.mxu0 %v19061_v32 }
 0x937   :  { %18659 = vmatprep.subr.bf16.mxu1 %v2188_v33 }
 0x93a   :  { %18660 = vmatpush3.bf16.msra.mxu1 %v2188_v33 }
 0x93b   :  { %18851 = vmatprep.subr.msk.bf16.mxu1 %vm2774_vm3, %v19090_v34 }
 0x93d   :  { %2512 = vmatmul.mubr.bf16.gmra.mxu0 %v19064_v35  ;;  %18662 = vmatmul.mubr.msk.bf16.vlgmr.msra.gmra.mxu1 %vm1927_vm15, %v19065_v36  ;;  %v2250_v4 = vpop.permute.xlu1 %2249  ;;  %v2255_v9 = vpop.permute.xlu0 %2254 }
 0x93e   :  { %2519 = vmatprep.mubr.bf16.mxu0 %v19066_v37  ;;  %18665 = vmatprep.mubr.msk.bf16.mxu1 %vm1927_vm15, %v19069_v38 }
 0x93f   :  { %18678 = vmatpush3.bf16.msra.mxu1 %v2776_v39 }
 0x940   :  { %18679 = vmatprep.subr.bf16.mxu1 %v19091_v40 }
 0x941   :  { %v2260_v14 = vpop.permute.xlu1 %2259  ;;  %v2265_v24 = vpop.permute.xlu0 %2264 }
 0x943   :  { %18680 = vmatpush3.bf16.msra.mxu1 %v19091_v40 }
 0x944   :  { %18681 = vmatprep.subr.bf16.mxu1 %v19092_v58 }
 0x945   :  { %2520 = vmatmul.mubr.bf16.gmra.mxu0 %v19068_v41  ;;  %18666 = vmatmul.mubr.msk.bf16.gmra.mxu1 %vm1927_vm15, %v19070_v42  ;;  %v2270_v35 = vpop.permute.xlu1 %2269 }
 0x946   :  { %2527 = vmatprep.mubr.bf16.mxu0 %v19071_v43  ;;  %18669 = vmatprep.mubr.msk.bf16.mxu1 %vm1927_vm15, %v19077_v44 }
 0x947   :  { %18682 = vmatpush3.bf16.msra.mxu1 %v19092_v58 }
 0x948   :  { %18683 = vmatprep.subr.bf16.mxu1 %v19093_v47 }
 0x94b   :  { %18684 = vmatpush3.bf16.msra.mxu1 %v19093_v47  ;;  %v19100_v47 = vld [vmem:[%s23446_s4 + $0x28] sm:$0xff]  }
 0x94c   :  { %18685 = vmatprep.subr.bf16.mxu1 %v19094_v59 }
 0x94d   :  { %2528 = vmatmul.mubr.bf16.gmra.mxu0 %v19073_v45  ;;  %18670 = vmatmul.mubr.msk.bf16.gmra.mxu1 %vm1927_vm15, %v19078_v48  ;;  %v2275_v45 = vpop.permute.xlu0 %2274 }
 0x94e   :  { %2535 = vmatprep.mubr.bf16.mxu0 %v19074_v50  ;;  %18673 = vmatprep.mubr.msk.bf16.mxu1 %vm1927_vm15, %v19085_v51  ;;  %v2936_v51 = vsel %vm2774_vm3, %v19098_v63, 0 }
 0x94f   :  { %18686 = vmatpush3.bf16.msra.mxu1 %v19094_v59 }
 0x950   :  { %18687 = vmatprep.subr.bf16.mxu1 %v19095_v60 }
 0x953   :  { %18688 = vmatpush3.bf16.msra.mxu1 %v19095_v60 }
 0x954   :  { %18689 = vmatprep.subr.bf16.mxu1 %v19096_v61 }
 0x955   :  { %2536 = vmatmul.mubr.bf16.gmra.mxu0 %v19076_v52  ;;  %18674 = vmatmul.mubr.msk.bf16.gmra.mxu1 %vm1927_vm15, %v19086_v53  ;;  %v19099_v52 = vld [vmem:[%s23446_s4 + $0x30] sm:$0xff]  }
 0x956   :  { %2543 = vmatprep.mubr.bf16.mxu0 %v19079_v54 }
 0x957   :  { %18690 = vmatpush3.bf16.msra.mxu1 %v19096_v61 }
 0x958   :  { %18691 = vmatprep.subr.bf16.mxu1 %v19097_v62 }
 0x95b   :  { %18692 = vmatpush3.bf16.msra.mxu1 %v19097_v62 }
 0x95c   :  { %18852 = vmatprep.subr.msk.bf16.mxu1 %vm2774_vm3, %v19098_v63 }
 0x95d   :  { %2544 = vmatmul.mubr.bf16.gmra.mxu0 %v19081_v49 }
 0x95e   :  { %2551 = vmatprep.mubr.bf16.mxu0 %v19082_v55 }
 0x965   :  { %2552 = vmatmul.mubr.bf16.gmra.mxu0 %v19084_v56 }
 0x966   :  { %2559 = vmatprep.mubr.bf16.mxu0 %v19087_v57  ;;  %v2280_v57 = vpop.permute.xlu1 %2279 }
 0x96d   :  { %2560 = vmatmul.mubr.bf16.gmra.mxu0 %v19089_v46 }
 0x9f5   :  { %v17925_v0 = vpop.f32.mrf.mxu0 }
 0x9f7   :  { %v17926_v2 = vpop.f32.mrf.mxu0 }
 0x9f8   :  { %v17927_v6 = vadd.f32 %v17926_v2, %v17925_v0  ;;  %v2285_v2 = vpop.permute.xlu0 %2284 }
 0x9f9   :  { %v17928_v3 = vpop.f32.mrf.mxu0 }
 0x9fa   :  { %v2506_v16 = vadd.f32 %v17927_v6, %v2250_v4 }
 0x9fb   :  { %v17929_v5 = vpop.f32.mrf.mxu0 }
 0x9fc   :  { %v17930_v11 = vadd.f32 %v17929_v5, %v17928_v3  ;;  %v19101_v5 = vld [vmem:[%s23446_s4 + $0x20] sm:$0xff]  }
 0x9fd   :  { %v17931_v7 = vpop.f32.mrf.mxu0  ;;  %v18663_v8 = vpop.f32.mrf.mxu1 }
 0x9fe   :  { %v2509_v21 = vadd.f32 %v17930_v11, %v2255_v9 }
 0x9ff   :  { %v17932_v12 = vpop.f32.mrf.mxu0  ;;  %v2602_v13 = vpop.f32.mrf.mxu1 }
 0xa00   :  { %v17933_v15 = vadd.f32 %v17932_v12, %v17931_v7  ;;  %v2603_v20 = vadd.f32 %v2602_v13, %v2506_v16  ;;  %v2290_v12 = vpop.permute.xlu1 %2289 }
 0xa01   :  { %v17934_v17 = vpop.f32.mrf.mxu0  ;;  %v18664_v18 = vpop.f32.mrf.mxu1 }
 0xa02   :  { %v2514_v19 = vadd.f32 %v17933_v15, %v2260_v14  ;;  %v2665_v30 = vmax.f32 %v2603_v20, 0.0  ;;  %v19102_v15 = vld [vmem:[%s23446_s4 + $0x18] sm:$0xff]  }
 0xa03   :  { %v17935_v22 = vpop.f32.mrf.mxu0  ;;  %v2605_v23 = vpop.f32.mrf.mxu1 }
 0xa04   :  { %v17936_v25 = vadd.f32 %v17935_v22, %v17934_v17  ;;  %v2606_v26 = vadd.f32 %v2605_v23, %v2509_v21  ;;  %v2611_v29 = vadd.f32 %v18663_v8, %v2514_v19  ;;  %v2295_v22 = vpop.permute.xlu0 %2294 }
 0xa05   :  { %v17937_v27 = vpop.f32.mrf.mxu0  ;;  %v18667_v28 = vpop.f32.mrf.mxu1 }
 0xa06   :  { %v2517_v31 = vadd.f32 %v17936_v25, %v2265_v24  ;;  %v2666_v32 = vmax.f32 %v2606_v26, 0.0  ;;  %v2667_v41 = vmax.f32 %v2611_v29, 0.0  ;;  %v19103_v25 = vld [vmem:[%s23446_s4 + $0x10] sm:$0xff]  }
 0xa07   :  { %v17938_v33 = vpop.f32.mrf.mxu0  ;;  %v2618_v34 = vpop.f32.mrf.mxu1 }
 0xa08   :  { %v2614_v36 = vadd.f32 %v18664_v18, %v2517_v31  ;;  %v22258_v37 = vpack.c.bf16 %v2666_v32, %v2665_v30  ;;  %v17939_v38 = vadd.f32 %v17938_v33, %v17937_v27  ;;  %v2300_v31 = vpop.permute.xlu1 %2299 }
 0xa09   :  { %v17940_v39 = vpop.f32.mrf.mxu0  ;;  %v18668_v40 = vpop.f32.mrf.mxu1 }
 0xa0a   :  { %v2668_v42 = vmax.f32 %v2614_v36, 0.0  ;;  %18693 = vmatprep.mubr.msk.bf16.mxu1 %vm2749_vm4, %v22258_v37  ;;  %v2522_v43 = vadd.f32 %v17939_v38, %v2270_v35 }
 0xa0b   :  { %v17941_v44 = vpop.f32.mrf.mxu0  ;;  %v2621_v54 = vpop.f32.mrf.mxu1 }
 0xa0c   :  { %v22262_v48 = vpack.c.bf16 %v2668_v42, %v2667_v41  ;;  %v17942_v50 = vadd.f32 %v17941_v44, %v17940_v39  ;;  %v2619_v49 = vadd.f32 %v2618_v34, %v2522_v43  ;;  %v19104_v34 = vld [vmem:[%s23446_s4 + $0x8] sm:$0xff]   ;;  %v2305_v42 = vpop.permute.xlu0 %2304 }
 0xa0d   :  { %v17943_v53 = vpop.f32.mrf.mxu0  ;;  %v18671_v60 = vpop.f32.mrf.mxu1 }
 0xa0e   :  { %18694 = vmatmul.mubr.msk.bf16.vlgmr.msra.gmra.mxu1 %vm2749_vm4, %v22262_v48  ;;  %v2525_v55 = vadd.f32 %v17942_v50, %v2275_v45  ;;  %v2669_v61 = vmax.f32 %v2619_v49, 0.0  ;;  %v19105_v45 = vld [vmem:[%s23446_s4] sm:$0xff]   ;;  %v2310_v49 = vpop.permute.xlu1 %2309 }
 0xa0f   :  { %v17944_v56 = vpop.f32.mrf.mxu0  ;;  %18710 = vmatpush3.bf16.msra.mxu1 %v2936_v51  ;;  %v2634_v7 = vpop.f32.mrf.mxu1 }
 0xa10   :  { %v17945_v46 = vadd.f32 %v17944_v56, %v17943_v53  ;;  %v2622_v58 = vadd.f32 %v2621_v54, %v2525_v55  ;;  %18711 = vmatprep.subr.bf16.mxu1 %v19099_v52 }
 0xa11   :  { %v17946_v59 = vpop.f32.mrf.mxu0  ;;  %v18672_v17 = vpop.f32.mrf.mxu1 }
 0xa12   :  { %v2530_v62 = vadd.f32 %v17945_v46, %v2280_v57  ;;  %v2670_v63 = vmax.f32 %v2622_v58, 0.0 }
 0xa13   :  { %v17947_v0 = vpop.f32.mrf.mxu0  ;;  %18712 = vmatpush3.bf16.msra.mxu1 %v19099_v52  ;;  %v2637_v27 = vpop.f32.mrf.mxu1 }
 0xa14   :  { %v22269_v3 = vpack.c.bf16 %v2670_v63, %v2669_v61  ;;  %v17948_v4 = vadd.f32 %v17947_v0, %v17946_v59  ;;  %18713 = vmatprep.subr.bf16.mxu1 %v19100_v47  ;;  %v2627_v8 = vadd.f32 %v18667_v28, %v2530_v62  ;;  %v2315_v62 = vpop.permute.xlu0 %2314 }
 0xa15   :  { %v17949_v6 = vpop.f32.mrf.mxu0  ;;  %v18675_v36 = vpop.f32.mrf.mxu1 }
 0xa16   :  { %v2533_v9 = vadd.f32 %v17948_v4, %v2285_v2  ;;  %18697 = vmatprep.mubr.msk.bf16.mxu1 %vm2749_vm4, %v22269_v3  ;;  %v2671_v18 = vmax.f32 %v2627_v8, 0.0 }
 0xa17   :  { %v17950_v11 = vpop.f32.mrf.mxu0  ;;  %18714 = vmatpush3.bf16.msra.mxu1 %v19100_v47  ;;  %v2650_v51 = vpop.f32.mrf.mxu1 }
 0xa18   :  { %v2630_v13 = vadd.f32 %v18668_v40, %v2533_v9  ;;  %v17951_v14 = vadd.f32 %v17950_v11, %v17949_v6  ;;  %18715 = vmatprep.subr.bf16.mxu1 %v19101_v5  ;;  %v2320_v9 = vpop.permute.xlu1 %2319 }
 0xa19   :  { %v17952_v16 = vpop.f32.mrf.mxu0  ;;  %v18676_v46 = vpop.f32.mrf.mxu1 }
 0xa1a   :  { %v2672_v19 = vmax.f32 %v2630_v13, 0.0  ;;  %v2538_v20 = vadd.f32 %v17951_v14, %v2290_v12 }
 0xa1b   :  { %v17953_v21 = vpop.f32.mrf.mxu0  ;;  %18716 = vmatpush3.bf16.msra.mxu1 %v19101_v5  ;;  %v2653_v2 = vpop.f32.mrf.mxu1 }
 0xa1c   :  { %v17954_v23 = vadd.f32 %v17953_v21, %v17952_v16  ;;  %v22275_v24 = vpack.c.bf16 %v2672_v19, %v2671_v18  ;;  %18717 = vmatprep.subr.bf16.mxu1 %v19102_v15  ;;  %v2635_v28 = vadd.f32 %v2634_v7, %v2538_v20  ;;  %v2325_v18 = vpop.permute.xlu0 %2324 }
 0xa1d   :  { %v17955_v26 = vpop.f32.mrf.mxu0 }
 0xa1e   :  { %18698 = vmatmul.mubr.msk.bf16.gmra.mxu1 %vm2749_vm4, %v22275_v24  ;;  %v2541_v29 = vadd.f32 %v17954_v23, %v2295_v22  ;;  %v2673_v38 = vmax.f32 %v2635_v28, 0.0 }
 0xa1f   :  { %v17956_v30 = vpop.f32.mrf.mxu0  ;;  %18718 = vmatpush3.bf16.msra.mxu1 %v19102_v15 }
 0xa20   :  { %v17957_v32 = vadd.f32 %v17956_v30, %v17955_v26  ;;  %v2638_v33 = vadd.f32 %v2637_v27, %v2541_v29  ;;  %18719 = vmatprep.subr.bf16.mxu1 %v19103_v25 }
 0xa21   :  { %v17958_v35 = vpop.f32.mrf.mxu0 }
 0xa22   :  { %v2546_v39 = vadd.f32 %v17957_v32, %v2300_v31  ;;  %v2674_v40 = vmax.f32 %v2638_v33, 0.0 }
 0xa23   :  { %v17959_v41 = vpop.f32.mrf.mxu0  ;;  %18720 = vmatpush3.bf16.msra.mxu1 %v19103_v25 }
 0xa24   :  { %v2685_v43 = vpack.c.bf16 %v2674_v40, %v2673_v38  ;;  %v17960_v44 = vadd.f32 %v17959_v41, %v17958_v35  ;;  %18721 = vmatprep.subr.bf16.mxu1 %v19104_v34  ;;  %v2643_v52 = vadd.f32 %v18671_v60, %v2546_v39 }
 0xa25   :  { %v17961_v50 = vpop.f32.mrf.mxu0 }
 0xa26   :  { %v2549_v53 = vadd.f32 %v17960_v44, %v2305_v42  ;;  %18701 = vmatprep.mubr.msk.bf16.mxu1 %vm2749_vm4, %v2685_v43  ;;  %v2675_v58 = vmax.f32 %v2643_v52, 0.0 }
 0xa27   :  { %v17962_v54 = vpop.f32.mrf.mxu0  ;;  %18722 = vmatpush3.bf16.msra.mxu1 %v19104_v34 }
 0xa28   :  { %v2646_v55 = vadd.f32 %v18672_v17, %v2549_v53  ;;  %v17963_v56 = vadd.f32 %v17962_v54, %v17961_v50  ;;  %18723 = vmatprep.subr.bf16.mxu1 %v19105_v45 }
 0xa29   :  { %v17964_v57 = vpop.f32.mrf.mxu0 }
 0xa2a   :  { %v2676_v47 = vmax.f32 %v2646_v55, 0.0  ;;  %v2554_v59 = vadd.f32 %v17963_v56, %v2310_v49 }
 0xa2b   :  { %v17965_v61 = vpop.f32.mrf.mxu0  ;;  %18724 = vmatpush3.bf16.msra.mxu1 %v19105_v45 }
 0xa2c   :  { %v17966_v63 = vadd.f32 %v17965_v61, %v17964_v57  ;;  %v2686_v0 = vpack.c.bf16 %v2676_v47, %v2675_v58  ;;  %v2651_v4 = vadd.f32 %v2650_v51, %v2554_v59 }
 0xa2d   :  { %v17967_v60 = vpop.f32.mrf.mxu0 }
 0xa2e   :  { %18702 = vmatmul.mubr.msk.bf16.gmra.mxu1 %vm2749_vm4, %v2686_v0  ;;  %v2557_v5 = vadd.f32 %v17966_v63, %v2315_v62  ;;  %v2677_v12 = vmax.f32 %v2651_v4, 0.0 }
 0xa2f   :  { %v17968_v6 = vpop.f32.mrf.mxu0 }
 0xa30   :  { %v17969_v7 = vadd.f32 %v17968_v6, %v17967_v60  ;;  %v2654_v8 = vadd.f32 %v2653_v2, %v2557_v5 }
 0xa31   :  { %v17970_v11 = vpop.f32.mrf.mxu0 }
 0xa32   :  { %v2562_v13 = vadd.f32 %v17969_v7, %v2320_v9  ;;  %v2678_v14 = vmax.f32 %v2654_v8, 0.0 }
 0xa33   :  { %v17971_v15 = vpop.f32.mrf.mxu0 }
 0xa34   :  { %v2687_v16 = vpack.c.bf16 %v2678_v14, %v2677_v12  ;;  %v17972_v17 = vadd.f32 %v17971_v15, %v17970_v11  ;;  %v2659_v19 = vadd.f32 %v18675_v36, %v2562_v13 }
 0xa36   :  { %v2565_v20 = vadd.f32 %v17972_v17, %v2325_v18  ;;  %18705 = vmatprep.mubr.msk.bf16.mxu1 %vm2749_vm4, %v2687_v16  ;;  %v2679_v22 = vmax.f32 %v2659_v19, 0.0 }
 0xa38   :  { %v2662_v21 = vadd.f32 %v18676_v46, %v2565_v20 }
 0xa3a   :  { %v2680_v23 = vmax.f32 %v2662_v21, 0.0 }
 0xa3c   :  { %v2688_v25 = vpack.c.bf16 %v2680_v23, %v2679_v22 }
 0xa3e   :  { %18706 = vmatmul.mubr.msk.bf16.gmra.mxu1 %vm2749_vm4, %v2688_v25 }
 0xa3f   :  { %18725 = vmatprep.mubr.msk.bf16.mxu1 %vm2749_vm4, %v22258_v37 }
 0xa46   :  { %18726 = vmatmul.mubr.msk.bf16.vlgmr.msra.gmra.mxu1 %vm2749_vm4, %v22262_v48 }
 0xa47   :  { %18729 = vmatprep.mubr.msk.bf16.mxu1 %vm2749_vm4, %v22269_v3 }
 0xa4e   :  { %18730 = vmatmul.mubr.msk.bf16.gmra.mxu1 %vm2749_vm4, %v22275_v24 }
 0xa4f   :  { %18733 = vmatprep.mubr.msk.bf16.mxu1 %vm2749_vm4, %v2685_v43 }
 0xa56   :  { %18734 = vmatmul.mubr.msk.bf16.gmra.mxu1 %vm2749_vm4, %v2686_v0 }
 0xa57   :  { %18737 = vmatprep.mubr.msk.bf16.mxu1 %vm2749_vm4, %v2687_v16 }
 0xa5e   :  { %18738 = vmatmul.mubr.msk.bf16.gmra.mxu1 %vm2749_vm4, %v2688_v25 }
 0xace   :  { %v18695_v26 = vpop.f32.mrf.mxu1 }
 0xad0   :  { %v2812_v27 = vpop.f32.mrf.mxu1 }
 0xad2   :  { %v18696_v37 = vpop.f32.mrf.mxu1 }
 0xad4   :  { %v2815_v28 = vpop.f32.mrf.mxu1 }
 0xade   :  { %v18699_v29 = vpop.f32.mrf.mxu1 }
 0xae0   :  { %v2828_v48 = vpop.f32.mrf.mxu1 }
 0xae2   :  { %v18700_v30 = vpop.f32.mrf.mxu1 }
 0xae4   :  { %v2831_v31 = vpop.f32.mrf.mxu1 }
 0xaee   :  { %v18703_v3 = vpop.f32.mrf.mxu1 }
 0xaf0   :  { %v2844_v32 = vpop.f32.mrf.mxu1 }
 0xaf2   :  { %v18704_v33 = vpop.f32.mrf.mxu1 }
 0xaf4   :  { %v2847_v24 = vpop.f32.mrf.mxu1 }
 0xafe   :  { %v18707_v34 = vpop.f32.mrf.mxu1 }
 0xb00   :  { %v2860_v35 = vpop.f32.mrf.mxu1 }
 0xb02   :  { %v18708_v36 = vpop.f32.mrf.mxu1 }
 0xb04   :  { %v2863_v38 = vpop.f32.mrf.mxu1 }
 0xb06   :  { %v18727_v39 = vpop.f32.mrf.mxu1 }
 0xb07   :  { %v3037_v40 = vmax.f32 %v18695_v26, %v18727_v39  ;;  %v3350_v39 = vld [vmem:[%s23447_s27 + $0x50] sm:$0xff] }
 0xb08   :  { %v2972_v41 = vpop.f32.mrf.mxu1 }
 0xb09   :  { %v17751_v42 = vpack.c.bf16 %v3037_v40, %v3037_v40  ;;  %v3035_v43 = vmax.f32 %v2812_v27, %v2972_v41  ;;  %v3351_v40 = vld [vmem:[%s23447_s27 + $0x58] sm:$0xff]  ;;  %v3348_v41 = vld [vmem:[%s23447_s27 + $0x40] sm:$0xff] }
 0xb0a   :  { %v18728_v44 = vpop.f32.mrf.mxu1 }
 0xb0b   :  { %3118 = vst.msk [vmem:[#allocation7 + $0x8] sm:$0xf] %vm3115_vm5, %v17751_v42  ;;  %v17749_v45 = vpack.c.bf16 %v3035_v43, %v3035_v43  ;;  %v3038_v50 = vmax.f32 %v18696_v37, %v18728_v44  ;;  %v3349_v42 = vld [vmem:[%s23447_s27 + $0x48] sm:$0xff]  ;;  %v3346_v43 = vld [vmem:[%s23447_s27 + $0x30] sm:$0xff]  ;;  %v3347_v44 = vld [vmem:[%s23447_s27 + $0x38] sm:$0xff] }
 0xb0c   :  { %v2975_v51 = vpop.f32.mrf.mxu1 }
 0xb0d   :  { %3116 = vst.msk [vmem:[#allocation7] sm:$0xf] %vm3115_vm5, %v17749_v45  ;;  %v17752_v52 = vpack.c.bf16 %v3038_v50, %v3038_v50  ;;  %v3036_v53 = vmax.f32 %v2815_v28, %v2975_v51  ;;  %v3344_v45 = vld [vmem:[%s23447_s27 + $0x20] sm:$0xff]  ;;  %v3345_v50 = vld [vmem:[%s23447_s27 + $0x28] sm:$0xff]  ;;  %v3342_v51 = vld [vmem:[%s23447_s27 + $0x10] sm:$0xff] }
 0xb0e   :  { %v18731_v54 = vpop.f32.mrf.mxu1 }
 0xb0f   :  { %3119 = vst.msk [vmem:[#allocation7 + $0xc] sm:$0xf] %vm3115_vm5, %v17752_v52  ;;  %v17750_v49 = vpack.c.bf16 %v3036_v53, %v3036_v53  ;;  %v3041_v55 = vmax.f32 %v18699_v29, %v18731_v54  ;;  %v3343_v52 = vld [vmem:[%s23447_s27 + $0x18] sm:$0xff]  ;;  %v3340_v53 = vld [vmem:[%s23447_s27] sm:$0xff]  ;;  %v3341_v54 = vld [vmem:[%s23447_s27 + $0x8] sm:$0xff] }
 0xb10   :  { %v2988_v56 = vpop.f32.mrf.mxu1 }
 0xb11   :  { %3117 = vst.msk [vmem:[#allocation7 + $0x4] sm:$0xf] %vm3115_vm5, %v17750_v49  ;;  %v17755_v57 = vpack.c.bf16 %v3041_v55, %v3041_v55  ;;  %v3039_v46 = vmax.f32 %v2828_v48, %v2988_v56 }
 0xb12   :  { %v18732_v58 = vpop.f32.mrf.mxu1 }
 0xb13   :  { %3122 = vst.msk [vmem:[#allocation7 + $0x18] sm:$0xf] %vm3115_vm5, %v17755_v57  ;;  %v17753_v47 = vpack.c.bf16 %v3039_v46, %v3039_v46  ;;  %v3042_v59 = vmax.f32 %v18700_v30, %v18732_v58 }
 0xb14   :  { %v2991_v61 = vpop.f32.mrf.mxu1 }
 0xb15   :  { %3120 = vst.msk [vmem:[#allocation7 + $0x10] sm:$0xf] %vm3115_vm5, %v17753_v47  ;;  %v17756_v62 = vpack.c.bf16 %v3042_v59, %v3042_v59  ;;  %v3040_v63 = vmax.f32 %v2831_v31, %v2991_v61 }
 0xb16   :  { %v18735_v0 = vpop.f32.mrf.mxu1 }
 0xb17   :  { %3123 = vst.msk [vmem:[#allocation7 + $0x1c] sm:$0xf] %vm3115_vm5, %v17756_v62  ;;  %v17754_v60 = vpack.c.bf16 %v3040_v63, %v3040_v63  ;;  %v3045_v2 = vmax.f32 %v18703_v3, %v18735_v0  ;;  %v22338_v3 = vld [vmem:[#allocation7 + $0x8] sm:$0xff]  }
 0xb18   :  { %v3004_v4 = vpop.f32.mrf.mxu1 }
 0xb19   :  { %3121 = vst.msk [vmem:[#allocation7 + $0x14] sm:$0xf] %vm3115_vm5, %v17754_v60  ;;  %v17759_v5 = vpack.c.bf16 %v3045_v2, %v3045_v2  ;;  %v3043_v6 = vmax.f32 %v2844_v32, %v3004_v4  ;;  %v22346_v32 = vld [vmem:[#allocation7] sm:$0xff]  }
 0xb1a   :  { %v18736_v7 = vpop.f32.mrf.mxu1 }
 0xb1b   :  { %3126 = vst.msk [vmem:[#allocation7 + $0x28] sm:$0xf] %vm3115_vm5, %v17759_v5  ;;  %v17757_v8 = vpack.c.bf16 %v3043_v6, %v3043_v6  ;;  %v3046_v9 = vmax.f32 %v18704_v33, %v18736_v7  ;;  %v19116_v33 = vld [vmem:[#allocation28 + $0x4] ss:$20 sps:$4 sm:$0xff]   ;;  %v19114_v5 = vld [vmem:[#allocation28] ss:$20 sps:$4 sm:$0xff]  }
 0xb1c   :  { %v3007_v11 = vpop.f32.mrf.mxu1  ;;  %3676 = vmatprep.mubr.bf16.mxu0 %v19116_v33  ;;  %v19117_v7 = vld [vmem:[#allocation28 + $0x2c] ss:$20 sps:$4 sm:$0xff]   ;;  %v19141_v33 = vld [vmem:[#allocation28 + $0x84] ss:$20 sps:$4 sm:$0xff]  }
 0xb1d   :  { %3124 = vst.msk [vmem:[#allocation7 + $0x20] sm:$0xf] %vm3115_vm5, %v17757_v8  ;;  %v17760_v12 = vpack.c.bf16 %v3046_v9, %v3046_v9  ;;  %v3044_v13 = vmax.f32 %v2847_v24, %v3007_v11  ;;  %v19125_v24 = vld [vmem:[#allocation28 + $0xc] ss:$20 sps:$4 sm:$0xff]  }
 0xb1e   :  { %v18739_v14 = vpop.f32.mrf.mxu1  ;;  %v22330_v30 = vld [vmem:[#allocation7 + $0x18] sm:$0xff]   ;;  %3773 = vmatprep.mubr.bf16.mxu1 %v19125_v24 }
 0xb1f   :  { %3127 = vst.msk [vmem:[#allocation7 + $0x2c] sm:$0xf] %vm3115_vm5, %v17760_v12  ;;  %v17758_v15 = vpack.c.bf16 %v3044_v13, %v3044_v13  ;;  %v3049_v16 = vmax.f32 %v18707_v34, %v18739_v14  ;;  %v3354_v34 = vld [vmem:[%s23447_s27 + $0x70] sm:$0xff]  ;;  %v19120_v14 = vld [vmem:[#allocation28 + $0x54] ss:$20 sps:$4 sm:$0xff]  }
 0xb20   :  { %v3020_v17 = vpop.f32.mrf.mxu1  ;;  %v22334_v31 = vld [vmem:[#allocation7 + $0x10] sm:$0xff]  }
 0xb21   :  { %3125 = vst.msk [vmem:[#allocation7 + $0x24] sm:$0xf] %vm3115_vm5, %v17758_v15  ;;  %v17763_v18 = vpack.c.bf16 %v3049_v16, %v3049_v16  ;;  %v3047_v19 = vmax.f32 %v2860_v35, %v3020_v17  ;;  %v3355_v35 = vld [vmem:[%s23447_s27 + $0x78] sm:$0xff] }
 0xb22   :  { %v18740_v20 = vpop.f32.mrf.mxu1  ;;  %v19119_v12 = vld [vmem:[#allocation28 + $0x28] ss:$20 sps:$4 sm:$0xff]  }
 0xb23   :  { %3130 = vst.msk [vmem:[#allocation7 + $0x38] sm:$0xf] %vm3115_vm5, %v17763_v18  ;;  %v17761_v21 = vpack.c.bf16 %v3047_v19, %v3047_v19  ;;  %v3050_v22 = vmax.f32 %v18708_v36, %v18740_v20  ;;  %v3352_v36 = vld [vmem:[%s23447_s27 + $0x60] sm:$0xff]  ;;  %v19123_v20 = vld [vmem:[#allocation28 + $0x8] ss:$20 sps:$4 sm:$0xff]  }
 0xb24   :  { %v3023_v23 = vpop.f32.mrf.mxu1  ;;  %v19122_v18 = vld [vmem:[#allocation28 + $0x50] ss:$20 sps:$4 sm:$0xff]  }
 0xb25   :  { %3128 = vst.msk [vmem:[#allocation7 + $0x30] sm:$0xf] %vm3115_vm5, %v17761_v21  ;;  %v17764_v25 = vpack.c.bf16 %v3050_v22, %v3050_v22  ;;  %v3048_v26 = vmax.f32 %v2863_v38, %v3023_v23  ;;  %v3353_v38 = vld [vmem:[%s23447_s27 + $0x68] sm:$0xff] }
 0xb26   :  { %v22322_v29 = vld [vmem:[#allocation7 + $0x28] sm:$0xff]  }
 0xb27   :  { %3131 = vst.msk [vmem:[#allocation7 + $0x3c] sm:$0xf] %vm3115_vm5, %v17764_v25  ;;  %v17762_v27 = vpack.c.bf16 %v3048_v26, %v3048_v26  ;;  %v19126_v21 = vld [vmem:[#allocation28 + $0x7c] ss:$20 sps:$4 sm:$0xff]   ;;  %v19129_v23 = vld [vmem:[#allocation28 + $0x34] ss:$20 sps:$4 sm:$0xff]  }
 0xb28   :  { %v22326_v48 = vld [vmem:[#allocation7 + $0x20] sm:$0xff]  }
 0xb29   :  { %3129 = vst.msk [vmem:[#allocation7 + $0x34] sm:$0xf] %vm3115_vm5, %v17762_v27  ;;  %v19128_v26 = vld [vmem:[#allocation28 + $0x78] ss:$20 sps:$4 sm:$0xff]  }
 0xb2e   :  { %v22314_v37 = vld [vmem:[#allocation7 + $0x38] sm:$0xff]  }
 0xb2f   :  { %3210 = vrot.lane.b32.xlu1 %v22314_v37, %s21674_s22 }
 0xb30   :  { %v22318_v28 = vld [vmem:[#allocation7 + $0x30] sm:$0xff]  }
 0xb31   :  { %3208 = vrot.lane.b32.xlu0 %v22318_v28, %s21674_s22 }
 0xb33   :  { %3206 = vrot.lane.b32.xlu1 %v22322_v29, %s21674_s22 }
 0xb35   :  { %3204 = vrot.lane.b32.xlu0 %v22326_v48, %s21674_s22 }
 0xb37   :  { %3202 = vrot.lane.b32.xlu1 %v22330_v30, %s21674_s22 }
 0xb39   :  { %3200 = vrot.lane.b32.xlu0 %v22334_v31, %s21674_s22 }
 0xb3b   :  { %3198 = vrot.lane.b32.xlu1 %v22338_v3, %s21674_s22 }
 0xb3d   :  { %3258 = vrot.lane.b32.xlu0 %v22314_v37, %s21671_s25 }
 0xb3f   :  { %3234 = vrot.lane.b32.xlu1 %v22314_v37, %s21675_s26 }
 0xb41   :  { %3196 = vrot.lane.b32.xlu0 %v22346_v32, %s21674_s22 }
 0xb43   :  { %3256 = vrot.lane.b32.xlu1 %v22318_v28, %s21671_s25 }
 0xb45   :  { %3232 = vrot.lane.b32.xlu0 %v22318_v28, %s21675_s26 }
 0xb47   :  { %3254 = vrot.lane.b32.xlu1 %v22322_v29, %s21671_s25 }
 0xb49   :  { %3230 = vrot.lane.b32.xlu0 %v22322_v29, %s21675_s26 }
 0xb4b   :  { %3252 = vrot.lane.b32.xlu1 %v22326_v48, %s21671_s25 }
 0xb4d   :  { %3228 = vrot.lane.b32.xlu0 %v22326_v48, %s21675_s26 }
 0xb4f   :  { %3250 = vrot.lane.b32.xlu1 %v22330_v30, %s21671_s25 }
 0xb51   :  { %3226 = vrot.lane.b32.xlu0 %v22330_v30, %s21675_s26 }
 0xb53   :  { %3248 = vrot.lane.b32.xlu1 %v22334_v31, %s21671_s25 }
 0xb55   :  { %3224 = vrot.lane.b32.xlu0 %v22334_v31, %s21675_s26 }
 0xb57   :  { %3246 = vrot.lane.b32.xlu1 %v22338_v3, %s21671_s25 }
 0xb59   :  { %3222 = vrot.lane.b32.xlu0 %v22338_v3, %s21675_s26 }
 0xb5b   :  { %3244 = vrot.lane.b32.xlu1 %v22346_v32, %s21671_s25 }
 0xb5d   :  { %3220 = vrot.lane.b32.xlu0 %v22346_v32, %s21675_s26 }
 0xb5f   :  { %3282 = vrot.lane.b32.xlu1 %v22314_v37, %s21672_s12 }
 0xb61   :  { %3280 = vrot.lane.b32.xlu0 %v22318_v28, %s21672_s12 }
 0xb63   :  { %3278 = vrot.lane.b32.xlu1 %v22322_v29, %s21672_s12 }
 0xb65   :  { %3276 = vrot.lane.b32.xlu0 %v22326_v48, %s21672_s12 }
 0xb67   :  { %3274 = vrot.lane.b32.xlu1 %v22330_v30, %s21672_s12 }
 0xb69   :  { %3272 = vrot.lane.b32.xlu0 %v22334_v31, %s21672_s12 }
 0xb6b   :  { %3270 = vrot.lane.b32.xlu1 %v22338_v3, %s21672_s12 }
 0xb6d   :  { %3268 = vrot.lane.b32.xlu0 %v22346_v32, %s21672_s12 }
 0xb6f   :  { %3428 = vperm.xlu1 %18969, %v3354_v34   ;;  %v19140_v34 = vld [vmem:[#allocation28 + $0xc8] ss:$20 sps:$4 sm:$0xff]  }
 0xb71   :  { %3433 = vperm.xlu0 %18968, %v3355_v35  }
 0xb73   :  { %3418 = vperm.xlu1 %18969, %v3352_v36   ;;  %v19143_v36 = vld [vmem:[#allocation28 + $0x80] ss:$20 sps:$4 sm:$0xff]  }
 0xb75   :  { %3423 = vperm.xlu0 %18968, %v3353_v38   ;;  %v19144_v38 = vld [vmem:[#allocation28 + $0xf4] ss:$20 sps:$4 sm:$0xff]  }
 0xb77   :  { %3408 = vperm.xlu1 %18969, %v3350_v39   ;;  %v19149_v39 = vld [vmem:[#allocation28 + $0xac] ss:$20 sps:$4 sm:$0xff]  }
 0xb79   :  { %3413 = vperm.xlu0 %18968, %v3351_v40  }
 0xb7b   :  { %3398 = vperm.xlu1 %18969, %v3348_v41   ;;  %v19146_v41 = vld [vmem:[#allocation28 + $0xf0] ss:$20 sps:$4 sm:$0xff]  }
 0xb7d   :  { %3403 = vperm.xlu0 %18968, %v3349_v42   ;;  %v19147_v42 = vld [vmem:[#allocation28 + $0xa8] ss:$20 sps:$4 sm:$0xff]  }
 0xb7f   :  { %3388 = vperm.xlu1 %18969, %v3346_v43   ;;  %v19150_v43 = vld [vmem:[#allocation28 + $0x11c] ss:$20 sps:$4 sm:$0xff]  }
 0xb81   :  { %3393 = vperm.xlu0 %18968, %v3347_v44   ;;  %v19155_v44 = vld [vmem:[#allocation28 + $0xd4] ss:$20 sps:$4 sm:$0xff]  }
 0xb83   :  { %3378 = vperm.xlu1 %18969, %v3344_v45   ;;  %v19152_v45 = vld [vmem:[#allocation28 + $0x118] ss:$20 sps:$4 sm:$0xff]  }
 0xb85   :  { %3383 = vperm.xlu0 %18968, %v3345_v50   ;;  %v19153_v50 = vld [vmem:[#allocation28 + $0xd0] ss:$20 sps:$4 sm:$0xff]  }
 0xb87   :  { %3368 = vperm.xlu1 %18969, %v3342_v51   ;;  %v19156_v51 = vld [vmem:[#allocation28 + $0x10] ss:$20 sps:$4 sm:$0xff]  }
 0xb89   :  { %3373 = vperm.xlu0 %18968, %v3343_v52   ;;  %v19159_v52 = vld [vmem:[#allocation28 + $0xfc] ss:$20 sps:$4 sm:$0xff]  }
 0xb8b   :  { %3358 = vperm.xlu1 %18969, %v3340_v53   ;;  %v19160_v53 = vld [vmem:[#allocation28 + $0x38] ss:$20 sps:$4 sm:$0xff]  }
 0xb8d   :  { %3363 = vperm.xlu0 %18968, %v3341_v54   ;;  %v19157_v54 = vld [vmem:[#allocation28 + $0xf8] ss:$20 sps:$4 sm:$0xff]  }
 0xba1   :  { %v3211_v49 = vpop.permute.xlu1 %3210 }
 0xba2   :  { %18017 = vmatprep.subr.bf16.mxu0 %v3211_v49  ;;  %v19161_v49 = vld [vmem:[#allocation28 + $0x60] ss:$20 sps:$4 sm:$0xff]  }
 0xba3   :  { %18018 = vmatpush3.bf16.msra.mxu0 %v22314_v37  ;;  %v3209_v55 = vpop.permute.xlu0 %3208  ;;  %v19131_v37 = vld [vmem:[#allocation28 + $0x30] ss:$20 sps:$4 sm:$0xff]  }
 0xba4   :  { %18019 = vmatprep.subr.bf16.mxu0 %v3209_v55  ;;  %v19164_v55 = vld [vmem:[#allocation28 + $0x124] ss:$20 sps:$4 sm:$0xff]  }
 0xba5   :  { %v3207_v56 = vpop.permute.xlu1 %3206 }
 0xba7   :  { %18020 = vmatpush3.bf16.msra.mxu0 %v22318_v28  ;;  %v3205_v57 = vpop.permute.xlu0 %3204  ;;  %v19132_v28 = vld [vmem:[#allocation28 + $0xa4] ss:$20 sps:$4 sm:$0xff]  }
 0xba8   :  { %18021 = vmatprep.subr.bf16.mxu0 %v3207_v56  ;;  %v19165_v56 = vld [vmem:[#allocation28 + $0x88] ss:$20 sps:$4 sm:$0xff]  }
 0xba9   :  { %v3203_v46 = vpop.permute.xlu1 %3202 }
 0xbab   :  { %18022 = vmatpush3.bf16.msra.mxu0 %v22322_v29  ;;  %v3201_v58 = vpop.permute.xlu0 %3200  ;;  %v19135_v29 = vld [vmem:[#allocation28 + $0x5c] ss:$20 sps:$4 sm:$0xff]  }
 0xbac   :  { %18023 = vmatprep.subr.bf16.mxu0 %v3205_v57  ;;  %v19162_v57 = vld [vmem:[#allocation28 + $0x120] ss:$20 sps:$4 sm:$0xff]  }
 0xbad   :  { %v3199_v47 = vpop.permute.xlu1 %3198 }
 0xbaf   :  { %18024 = vmatpush3.bf16.msra.mxu0 %v22326_v48  ;;  %v3259_v59 = vpop.permute.xlu0 %3258 }
 0xbb0   :  { %18025 = vmatprep.subr.bf16.mxu0 %v3203_v46  ;;  %18081 = vmatprep.subr.bf16.mxu1 %v3259_v59  ;;  %v19166_v46 = vld [vmem:[#allocation28 + $0xb0] ss:$20 sps:$4 sm:$0xff]   ;;  %v19169_v59 = vld [vmem:[#allocation28 + $0x128] ss:$20 sps:$4 sm:$0xff]  }
 0xbb1   :  { %v3235_v61 = vpop.permute.xlu1 %3234 }
 0xbb2   :  { %18082 = vmatpush3.bf16.msra.mxu1 %v3235_v61 }
 0xbb3   :  { %18026 = vmatpush3.bf16.msra.mxu0 %v22330_v30  ;;  %v3197_v62 = vpop.permute.xlu0 %3196  ;;  %v19134_v30 = vld [vmem:[#allocation28 + $0xa0] ss:$20 sps:$4 sm:$0xff]  }
 0xbb4   :  { %18027 = vmatprep.subr.bf16.mxu0 %v3201_v58  ;;  %v19167_v58 = vld [vmem:[#allocation28 + $0xd8] ss:$20 sps:$4 sm:$0xff]  }
 0xbb5   :  { %v3257_v63 = vpop.permute.xlu1 %3256 }
 0xbb6   :  { %18083 = vmatprep.subr.bf16.mxu1 %v3257_v63 }
 0xbb7   :  { %18028 = vmatpush3.bf16.msra.mxu0 %v22334_v31  ;;  %v3233_v0 = vpop.permute.xlu0 %3232 }
 0xbb8   :  { %18029 = vmatprep.subr.bf16.mxu0 %v3199_v47  ;;  %18084 = vmatpush3.bf16.msra.mxu1 %v3233_v0  ;;  %v19168_v47 = vld [vmem:[#allocation28 + $0x100] ss:$20 sps:$4 sm:$0xff]  }
 0xbb9   :  { %v3255_v60 = vpop.permute.xlu1 %3254 }
 0xbba   :  { %18085 = vmatprep.subr.bf16.mxu1 %v3255_v60 }
 0xbbb   :  { %18030 = vmatpush3.bf16.msra.mxu0 %v22338_v3  ;;  %v3231_v2 = vpop.permute.xlu0 %3230  ;;  %v19137_v3 = vld [vmem:[#allocation28 + $0x58] ss:$20 sps:$4 sm:$0xff]  }
 0xbbc   :  { %18031 = vmatprep.subr.bf16.mxu0 %v3197_v62  ;;  %18086 = vmatpush3.bf16.msra.mxu1 %v3231_v2 }
 0xbbd   :  { %v3253_v4 = vpop.permute.xlu1 %3252 }
 0xbbe   :  { %18087 = vmatprep.subr.bf16.mxu1 %v3253_v4 }
 0xbbf   :  { %18032 = vmatpush3.bf16.msra.mxu0 %v22346_v32  ;;  %v3229_v6 = vpop.permute.xlu0 %3228  ;;  %v19138_v32 = vld [vmem:[#allocation28 + $0xcc] ss:$20 sps:$4 sm:$0xff]  }
 0xbc0   :  { %18088 = vmatpush3.bf16.msra.mxu1 %v3229_v6 }
 0xbc1   :  { %v3251_v8 = vpop.permute.xlu1 %3250 }
 0xbc2   :  { %3677 = vmatmul.mubr.bf16.vlgmr.msra.gmra.mxu0 %v19114_v5  ;;  %18089 = vmatprep.subr.bf16.mxu1 %v3251_v8 }
 0xbc3   :  { %v3227_v9 = vpop.permute.xlu0 %3226  ;;  %3684 = vmatprep.mubr.bf16.mxu0 %v19117_v7 }
 0xbc4   :  { %18090 = vmatpush3.bf16.msra.mxu1 %v3227_v9 }
 0xbc5   :  { %v3249_v11 = vpop.permute.xlu1 %3248 }
 0xbc6   :  { %18091 = vmatprep.subr.bf16.mxu1 %v3249_v11 }
 0xbc7   :  { %v3225_v13 = vpop.permute.xlu0 %3224 }
 0xbc8   :  { %18092 = vmatpush3.bf16.msra.mxu1 %v3225_v13 }
 0xbc9   :  { %v3247_v15 = vpop.permute.xlu1 %3246 }
 0xbca   :  { %3685 = vmatmul.mubr.bf16.gmra.mxu0 %v19119_v12  ;;  %18093 = vmatprep.subr.bf16.mxu1 %v3247_v15 }
 0xbcb   :  { %v3223_v16 = vpop.permute.xlu0 %3222  ;;  %3692 = vmatprep.mubr.bf16.mxu0 %v19120_v14 }
 0xbcc   :  { %18094 = vmatpush3.bf16.msra.mxu1 %v3223_v16 }
 0xbcd   :  { %v3245_v17 = vpop.permute.xlu1 %3244 }
 0xbce   :  { %18095 = vmatprep.subr.bf16.mxu1 %v3245_v17 }
 0xbcf   :  { %v3221_v19 = vpop.permute.xlu0 %3220 }
 0xbd0   :  { %18096 = vmatpush3.bf16.msra.mxu1 %v3221_v19 }
 0xbd1   :  { %v3283_v22 = vpop.permute.xlu1 %3282 }
 0xbd2   :  { %3693 = vmatmul.mubr.bf16.gmra.mxu0 %v19122_v18  ;;  %18741 = vmatprep.subr.bf16.mxu0 %v3283_v22 }
 0xbd3   :  { %3774 = vmatmul.mubr.bf16.vlgmr.msra.gmra.mxu1 %v19123_v20  ;;  %18742 = vmatpush3.bf16.msra.mxu0 %v3283_v22  ;;  %v3281_v25 = vpop.permute.xlu0 %3280 }
 0xbd4   :  { %18743 = vmatprep.subr.bf16.mxu0 %v3281_v25  ;;  %3700 = vmatprep.mubr.bf16.mxu0 %v19126_v21 }
 0xbd5   :  { %3781 = vmatprep.mubr.bf16.mxu1 %v19129_v23  ;;  %v3279_v27 = vpop.permute.xlu1 %3278 }
 0xbd7   :  { %18744 = vmatpush3.bf16.msra.mxu0 %v3281_v25  ;;  %v3277_v48 = vpop.permute.xlu0 %3276 }
 0xbd8   :  { %18745 = vmatprep.subr.bf16.mxu0 %v3279_v27 }
 0xbd9   :  { %v3275_v31 = vpop.permute.xlu1 %3274 }
 0xbda   :  { %3701 = vmatmul.mubr.bf16.gmra.mxu0 %v19128_v26 }
 0xbdb   :  { %3782 = vmatmul.mubr.bf16.gmra.mxu1 %v19131_v37  ;;  %18746 = vmatpush3.bf16.msra.mxu0 %v3279_v27  ;;  %v3273_v24 = vpop.permute.xlu0 %3272 }
 0xbdc   :  { %18747 = vmatprep.subr.bf16.mxu0 %v3277_v48  ;;  %3708 = vmatprep.mubr.bf16.mxu0 %v19132_v28 }
 0xbdd   :  { %3789 = vmatprep.mubr.bf16.mxu1 %v19135_v29  ;;  %v3271_v35 = vpop.permute.xlu1 %3270 }
 0xbdf   :  { %18748 = vmatpush3.bf16.msra.mxu0 %v3277_v48  ;;  %v3269_v40 = vpop.permute.xlu0 %3268 }
 0xbe0   :  { %18749 = vmatprep.subr.bf16.mxu0 %v3275_v31 }
 0xbe2   :  { %3709 = vmatmul.mubr.bf16.gmra.mxu0 %v19134_v30 }
 0xbe3   :  { %3790 = vmatmul.mubr.bf16.gmra.mxu1 %v19137_v3  ;;  %18750 = vmatpush3.bf16.msra.mxu0 %v3275_v31 }
 0xbe4   :  { %18751 = vmatprep.subr.bf16.mxu0 %v3273_v24  ;;  %3716 = vmatprep.mubr.bf16.mxu0 %v19138_v32 }
 0xbe5   :  { %3797 = vmatprep.mubr.bf16.mxu1 %v19141_v33 }
 0xbe7   :  { %18752 = vmatpush3.bf16.msra.mxu0 %v3273_v24 }
 0xbe8   :  { %18753 = vmatprep.subr.bf16.mxu0 %v3271_v35 }
 0xbea   :  { %3717 = vmatmul.mubr.bf16.gmra.mxu0 %v19140_v34  ;;  %v22436_v11 = vpop.permute.xlu1 %3428 }
 0xbeb   :  { %3798 = vmatmul.mubr.bf16.gmra.mxu1 %v19143_v36  ;;  %18754 = vmatpush3.bf16.msra.mxu0 %v3271_v35  ;;  %23448 = vst [vmem:[#allocation96_spill] sm:$0xff] %v22436_v11 }
 0xbec   :  { %18755 = vmatprep.subr.bf16.mxu0 %v3269_v40  ;;  %3724 = vmatprep.mubr.bf16.mxu0 %v19144_v38  ;;  %v22446_v16 = vpop.permute.xlu0 %3433 }
 0xbed   :  { %3805 = vmatprep.mubr.bf16.mxu1 %v19149_v39  ;;  %23449 = vst [vmem:[#allocation97_spill] sm:$0xff] %v22446_v16 }
 0xbee   :  { %v22450_v19 = vpop.permute.xlu1 %3418 }
 0xbef   :  { %18756 = vmatpush3.bf16.msra.mxu0 %v3269_v40  ;;  %23450 = vst [vmem:[#allocation98_spill] sm:$0xff] %v22450_v19 }
 0xbf0   :  { %v22454_v25 = vpop.permute.xlu0 %3423 }
 0xbf1   :  { %23451 = vst [vmem:[#allocation99_spill] sm:$0xff] %v22454_v25 }
 0xbf2   :  { %3725 = vmatmul.mubr.bf16.gmra.mxu0 %v19146_v41  ;;  %v22458_v37 = vpop.permute.xlu1 %3408 }
 0xbf3   :  { %3806 = vmatmul.mubr.bf16.gmra.mxu1 %v19147_v42  ;;  %3732 = vmatprep.mubr.bf16.mxu0 %v19150_v43 }
 0xbf4   :  { %3813 = vmatprep.mubr.bf16.mxu1 %v19155_v44  ;;  %v22468_v31 = vpop.permute.xlu0 %3413 }
 0xbf6   :  { %v22474_v33 = vpop.permute.xlu1 %3398 }
 0xbf8   :  { %v22482_v38 = vpop.permute.xlu0 %3403 }
 0xbf9   :  { %23452 = vst [vmem:[#allocation100_spill] sm:$0xff] %v22482_v38 }
 0xbfa   :  { %3733 = vmatmul.mubr.bf16.gmra.mxu0 %v19152_v45  ;;  %v3389_v41 = vpop.permute.xlu1 %3388 }
 0xbfb   :  { %3814 = vmatmul.mubr.bf16.gmra.mxu1 %v19153_v50  ;;  %18757 = vmatprep.mubr.bf16.mxu0 %v19156_v51 }
 0xbfc   :  { %3821 = vmatprep.mubr.bf16.mxu1 %v19159_v52  ;;  %v22494_v50 = vpop.permute.xlu0 %3393 }
 0xc02   :  { %18758 = vmatmul.mubr.bf16.vlgmr.msra.gmra.mxu0 %v19160_v53  ;;  %v3379_v53 = vpop.permute.xlu1 %3378 }
 0xc03   :  { %3822 = vmatmul.mubr.bf16.gmra.mxu1 %v19157_v54  ;;  %18761 = vmatprep.mubr.bf16.mxu0 %v19161_v49 }
 0xc04   :  { %3829 = vmatprep.mubr.bf16.mxu1 %v19164_v55 }
 0xc0a   :  { %18762 = vmatmul.mubr.bf16.gmra.mxu0 %v19165_v56 }
 0xc0b   :  { %3830 = vmatmul.mubr.bf16.gmra.mxu1 %v19162_v57  ;;  %18765 = vmatprep.mubr.bf16.mxu0 %v19166_v46  ;;  %v22508_v57 = vpop.permute.xlu0 %3383 }
 0xc0f   :  { %v3374_v11 = vpop.permute.xlu0 %3373 }
 0xc12   :  { %18766 = vmatmul.mubr.bf16.gmra.mxu0 %v19167_v58 }
 0xc13   :  { %18769 = vmatprep.mubr.bf16.mxu0 %v19168_v47  ;;  %v3369_v47 = vpop.permute.xlu1 %3368 }
 0xc1a   :  { %18770 = vmatmul.mubr.bf16.gmra.mxu0 %v19169_v59 }
 0xc82   :  { %v22418_v61 = vpop.f32.mrf.mxu0 }
 0xc84   :  { %v22420_v62 = vpop.f32.mrf.mxu0 }
 0xc85   :  { %v18035_v16 = vadd.f32 %v22420_v62, %v22418_v61 }
 0xc86   :  { %v22422_v63 = vpop.f32.mrf.mxu0 }
 0xc88   :  { %v22424_v0 = vpop.f32.mrf.mxu0 }
 0xc89   :  { %v18038_v61 = vadd.f32 %v22424_v0, %v22422_v63 }
 0xc8a   :  { %v18039_v60 = vpop.f32.mrf.mxu0 }
 0xc8c   :  { %v18040_v2 = vpop.f32.mrf.mxu0 }
 0xc8d   :  { %v18041_v1 = vadd.f32 %v18040_v2, %v18039_v60  ;;  %v3359_v60 = vpop.permute.xlu1 %3358 }
 0xc8e   :  { %v22426_v4 = vpop.f32.mrf.mxu0 }
 0xc90   :  { %v22428_v5 = vpop.f32.mrf.mxu0 }
 0xc92   :  { %v22430_v6 = vpop.f32.mrf.mxu0 }
 0xc93   :  { %v22432_v7 = vpop.f32.mrf.mxu1 }
 0xc94   :  { %v22434_v8 = vpop.f32.mrf.mxu0 }
 0xc95   :  { %v18098_v9 = vpop.f32.mrf.mxu1 }
 0xc96   :  { %v22438_v12 = vpop.f32.mrf.mxu0  ;;  %v18099_v38 = vadd.f32 %v18098_v9, %v22432_v7 }
 0xc97   :  { %v22440_v13 = vpop.f32.mrf.mxu1 }
 0xc98   :  { %v22442_v14 = vpop.f32.mrf.mxu0 }
 0xc99   :  { %v22444_v15 = vpop.f32.mrf.mxu1 }
 0xc9a   :  { %v22448_v17 = vpop.f32.mrf.mxu0 }
 0xc9b   :  { %v18103_v18 = vpop.f32.mrf.mxu1 }
 0xc9c   :  { %v18052_v20 = vpop.f32.mrf.mxu0 }
 0xc9d   :  { %v18104_v21 = vpop.f32.mrf.mxu1 }
 0xc9e   :  { %v22452_v22 = vpop.f32.mrf.mxu0 }
 0xc9f   :  { %v18106_v23 = vpop.f32.mrf.mxu1 }
 0xca0   :  { %v22456_v26 = vpop.f32.mrf.mxu0 }
 0xca1   :  { %v18107_v27 = vpop.f32.mrf.mxu1 }
 0xca2   :  { %v22460_v28 = vpop.f32.mrf.mxu0  ;;  %v18108_v62 = vadd.f32 %v18107_v27, %v18106_v23 }
 0xca3   :  { %v22462_v29 = vpop.f32.mrf.mxu1 }
 0xca4   :  { %v22464_v48 = vpop.f32.mrf.mxu0 }
 0xca5   :  { %v22466_v30 = vpop.f32.mrf.mxu1 }
 0xca6   :  { %v22470_v3 = vpop.f32.mrf.mxu0 }
 0xca7   :  { %v22472_v32 = vpop.f32.mrf.mxu1 }
 0xca8   :  { %v22476_v24 = vpop.f32.mrf.mxu0 }
 0xca9   :  { %v22478_v34 = vpop.f32.mrf.mxu1 }
 0xcaa   :  { %v22480_v35 = vpop.f32.mrf.mxu0 }
 0xcab   :  { %v18115_v36 = vpop.f32.mrf.mxu1 }
 0xcac   :  { %v22484_v39 = vpop.f32.mrf.mxu0 }
 0xcad   :  { %v18116_v40 = vpop.f32.mrf.mxu1 }
 0xcae   :  { %v22486_v42 = vpop.f32.mrf.mxu0  ;;  %v18117_v63 = vadd.f32 %v18116_v40, %v18115_v36 }
 0xcaf   :  { %v22488_v43 = vpop.f32.mrf.mxu1 }
 0xcb0   :  { %v22490_v44 = vpop.f32.mrf.mxu0 }
 0xcb1   :  { %v22492_v45 = vpop.f32.mrf.mxu1 }
 0xcb2   :  { %v22496_v51 = vpop.f32.mrf.mxu0 }
 0xcb3   :  { %23453 = vst [vmem:[#allocation101_spill] sm:$0xff] %v22496_v51  ;;  %v22498_v52 = vpop.f32.mrf.mxu1  ;;  %v3687_v51 = vadd.f32 %v18041_v1, %v3369_v47  ;;  %v18053_v1 = vadd.f32 %v18052_v20, %v22448_v17 }
 0xcb4   :  { %v22500_v54 = vpop.f32.mrf.mxu0 }
 0xcb5   :  { %23454 = vst [vmem:[#allocation102_spill] sm:$0xff] %v22500_v54  ;;  %v22502_v49 = vpop.f32.mrf.mxu1 }
 0xcb6   :  { %v22504_v55 = vpop.f32.mrf.mxu0 }
 0xcb7   :  { %23455 = vst [vmem:[#allocation103_spill] sm:$0xff] %v22504_v55  ;;  %v22506_v56 = vpop.f32.mrf.mxu1  ;;  %v18105_v55 = vadd.f32 %v18104_v21, %v18103_v18 }
 0xcb8   :  { %23456 = vst [vmem:[#allocation104_spill] sm:$0xff] %v22506_v56  ;;  %v22510_v46 = vpop.f32.mrf.mxu0  ;;  %v3679_v56 = vadd.f32 %v18035_v16, %v3359_v60  ;;  %v18047_v16 = vadd.f32 %v22434_v8, %v22430_v6 }
 0xcb9   :  { %23457 = vst [vmem:[#allocation105_spill] sm:$0xff] %v22510_v46  ;;  %v22512_v58 = vpop.f32.mrf.mxu1  ;;  %v18044_v46 = vadd.f32 %v22428_v5, %v22426_v4  ;;  %v3784_v21 = vadd.f32 %v18105_v55, %v3687_v51  ;;  %v18102_v4 = vadd.f32 %v22444_v15, %v22440_v13  ;;  %v18056_v13 = vadd.f32 %v22456_v26, %v22452_v22 }
 0xcba   :  { %23458 = vst [vmem:[#allocation106_spill] sm:$0xff] %v22512_v58  ;;  %v22514_v59 = vpop.f32.mrf.mxu0  ;;  %v3776_v9 = vadd.f32 %v18099_v38, %v3679_v56  ;;  %v18111_v15 = vadd.f32 %v22466_v30, %v22462_v29  ;;  %v3695_v40 = vadd.f32 %v18047_v16, %v3379_v53  ;;  %v18120_v22 = vadd.f32 %v22492_v45, %v22488_v43 }
 0xcbb   :  { %v22516_v10 = vpop.f32.mrf.mxu1  ;;  %v18065_v53 = vadd.f32 %v22484_v39, %v22480_v35 }
 0xcbc   :  { %v22518_v25 = vpop.f32.mrf.mxu0 }
 0xcbd   :  { %v18128_v19 = vpop.f32.mrf.mxu1 }
 0xcbe   :  { %v22522_v54 = vpop.f32.mrf.mxu0 }
 0xcbf   :  { %23459 = vst [vmem:[#allocation107_spill] sm:$0xff] %v22522_v54  ;;  %v22527_v58 = vpop.f32.mrf.mxu1  ;;  %v3690_v54 = vadd.f32 %v18044_v46, %v3374_v11  ;;  %v3703_v11 = vadd.f32 %v18053_v1, %v3389_v41  ;;  %v18050_v46 = vadd.f32 %v22442_v14, %v22438_v12  ;;  %v18114_v12 = vadd.f32 %v22478_v34, %v22472_v32 }
 0xcc0   :  { %v22529_v2 = vpop.f32.mrf.mxu0  ;;  %v3719_v34 = vadd.f32 %v18065_v53, %v22458_v37 }
 0xcc1   :  { %23460 = vst [vmem:[#allocation108_spill] sm:$0xff] %v22529_v2  ;;  %v22533_v18 = vpop.f32.mrf.mxu1  ;;  %v3364_v2 = vpop.permute.xlu0 %3363  ;;  %v3787_v17 = vadd.f32 %v18108_v62, %v3690_v54  ;;  %v3800_v41 = vadd.f32 %v18117_v63, %v3703_v11  ;;  %v3792_v62 = vadd.f32 %v18111_v15, %v3695_v40  ;;  %v3698_v1 = vadd.f32 %v18050_v46, %v22508_v57  ;;  %v23461_v15 = vld [vmem:[#allocation104_spill] sm:$0xff] }
 0xcc2   :  { %v18759_v47 = vpop.f32.mrf.mxu0  ;;  %v3682_v23 = vadd.f32 %v18038_v61, %v3364_v2  ;;  %v3706_v2 = vadd.f32 %v18056_v13, %v22494_v50  ;;  %v18129_v50 = vadd.f32 %v18128_v19, %v22516_v10  ;;  %v18123_v57 = vadd.f32 %v22502_v49, %v22498_v52 }
 0xcc3   :  { %v3881_v5 = vadd.f32 %v18759_v47, %v3784_v21  ;;  %v22538_v7 = vpop.f32.mrf.mxu1  ;;  %v18059_v47 = vadd.f32 %v22464_v48, %v22460_v28  ;;  %v3795_v48 = vadd.f32 %v18114_v12, %v3698_v1 }
 0xcc4   :  { %v3872_v0 = vpop.f32.mrf.mxu0  ;;  %v3779_v36 = vadd.f32 %v18102_v4, %v3682_v23  ;;  %v3803_v32 = vadd.f32 %v18120_v22, %v3706_v2  ;;  %v18062_v23 = vadd.f32 %v22476_v24, %v22470_v3  ;;  %v23462_v3 = vld [vmem:[#allocation106_spill] sm:$0xff]  ;;  %v23466_v22 = vld [vmem:[#allocation96_spill] sm:$0xff] }
 0xcc5   :  { %v3937_v27 = vmax.f32 %v3881_v5, 0.0  ;;  %v3873_v51 = vadd.f32 %v3872_v0, %v3776_v9  ;;  %v22542_v55 = vpop.f32.mrf.mxu1  ;;  %v18068_v9 = vadd.f32 %v22490_v44, %v22486_v42  ;;  %v3711_v0 = vadd.f32 %v18059_v47, %v22474_v33  ;;  %v23470_v47 = vld [vmem:[#allocation103_spill] sm:$0xff] }
 0xcc6   :  { %v18760_v20 = vpop.f32.mrf.mxu0  ;;  %v18132_v42 = vadd.f32 %v22533_v18, %v22527_v58  ;;  %v18126_v24 = vadd.f32 %v23462_v3, %v23461_v15  ;;  %v18135_v53 = vadd.f32 %v22542_v55, %v22538_v7 }
 0xcc7   :  { %v17767_v38 = vpack.c.bf16 %v3937_v27, %v3937_v27  ;;  %v3935_v56 = vmax.f32 %v3873_v51, 0.0  ;;  %v3884_v6 = vadd.f32 %v18760_v20, %v3787_v17  ;;  %v22548_v8 = vpop.f32.mrf.mxu1  ;;  %v3816_v27 = vadd.f32 %v18129_v50, %v3719_v34  ;;  %v23471_v50 = vld [vmem:[#allocation105_spill] sm:$0xff] }
 0xcc8   :  { %v3875_v54 = vpop.f32.mrf.mxu0  ;;  %v3722_v51 = vadd.f32 %v18068_v9, %v22468_v31  ;;  %v18077_v17 = vadd.f32 %v22518_v25, %v22514_v59  ;;  %v3808_v13 = vadd.f32 %v18123_v57, %v3711_v0  ;;  %v23472_v34 = vld [vmem:[#allocation97_spill] sm:$0xff] }
 0xcc9   :  { %4018 = vst.msk [vmem:[#allocation8 + $0x8] sm:$0xf] %vm4015_vm6, %v17767_v38  ;;  %v17765_v26 = vpack.c.bf16 %v3935_v56, %v3935_v56  ;;  %v3938_v29 = vmax.f32 %v3884_v6, 0.0  ;;  %v3876_v30 = vadd.f32 %v3875_v54, %v3779_v36  ;;  %v22555_v60 = vpop.f32.mrf.mxu1  ;;  %v23463_v38 = vld [vmem:[#allocation100_spill] sm:$0xff]  ;;  %v23464_v6 = vld [vmem:[#allocation101_spill] sm:$0xff]  ;;  %v23465_v36 = vld [vmem:[#allocation102_spill] sm:$0xff] }
 0xcca   :  { %v18763_v61 = vpop.f32.mrf.mxu0  ;;  %v3714_v56 = vadd.f32 %v18062_v23, %v23463_v38  ;;  %v18071_v40 = vadd.f32 %v23465_v36, %v23464_v6 }
 0xccb   :  { %4016 = vst.msk [vmem:[#allocation8] sm:$0xf] %vm4015_vm6, %v17765_v26  ;;  %v17768_v14 = vpack.c.bf16 %v3938_v29, %v3938_v29  ;;  %v3936_v43 = vmax.f32 %v3876_v30, 0.0  ;;  %v3897_v45 = vadd.f32 %v18763_v61, %v3800_v41  ;;  %v18139_v21 = vpop.f32.mrf.mxu1  ;;  %v3819_v41 = vadd.f32 %v18132_v42, %v3722_v51  ;;  %v23467_v29 = vld [vmem:[#allocation107_spill] sm:$0xff]  ;;  %v23468_v30 = vld [vmem:[#allocation108_spill] sm:$0xff] }
 0xccc   :  { %v3888_v4 = vpop.f32.mrf.mxu0  ;;  %v3735_v26 = vadd.f32 %v18077_v17, %v23466_v22  ;;  %v18080_v2 = vadd.f32 %v23468_v30, %v23467_v29  ;;  %v4300_v22 = vld [vmem:[%s23474_s15 + $0x60] sm:$0xff]  ;;  %v4317_v30 = vld [vmem:[%s23474_s15 + $0xe8] sm:$0xff] }
 0xccd   :  { %4019 = vst.msk [vmem:[#allocation8 + $0xc] sm:$0xf] %vm4015_vm6, %v17768_v14  ;;  %v17766_v35 = vpack.c.bf16 %v3936_v43, %v3936_v43  ;;  %v3941_v39 = vmax.f32 %v3897_v45, 0.0  ;;  %v3889_v5 = vadd.f32 %v3888_v4, %v3792_v62  ;;  %v18140_v16 = vpop.f32.mrf.mxu1  ;;  %v3811_v45 = vadd.f32 %v18126_v24, %v3714_v56  ;;  %v4316_v29 = vld [vmem:[%s23474_s15 + $0xe0] sm:$0xff] }
 0xcce   :  { %v18764_v63 = vpop.f32.mrf.mxu0  ;;  %v18141_v31 = vadd.f32 %v18140_v16, %v18139_v21  ;;  %v23469_v21 = vld [vmem:[#allocation98_spill] sm:$0xff]  ;;  %v18074_v4 = vadd.f32 %v23471_v50, %v23470_v47  ;;  %v3738_v9 = vadd.f32 %v18080_v2, %v23472_v34  ;;  %v4311_v50 = vld [vmem:[%s23474_s15 + $0xb8] sm:$0xff] }
 0xccf   :  { %4017 = vst.msk [vmem:[#allocation8 + $0x4] sm:$0xf] %vm4015_vm6, %v17766_v35  ;;  %v17771_v10 = vpack.c.bf16 %v3941_v39, %v3941_v39  ;;  %v3939_v19 = vmax.f32 %v3889_v5, 0.0  ;;  %v3900_v28 = vadd.f32 %v18764_v63, %v3803_v32  ;;  %v18142_v11 = vpop.f32.mrf.mxu1  ;;  %v3727_v1 = vadd.f32 %v18071_v40, %v23469_v21  ;;  %v4298_v2 = vld [vmem:[%s23474_s15 + $0x50] sm:$0xff] }
 0xcd0   :  { %v3891_v37 = vpop.f32.mrf.mxu0  ;;  %v3832_v39 = vadd.f32 %v18141_v31, %v3735_v26  ;;  %v18138_v63 = vadd.f32 %v22555_v60, %v22548_v8  ;;  %v19180_v31 = vld [vmem:[#allocation30 + $0x4] ss:$20 sps:$4 sm:$0xff]  }
 0xcd1   :  { %4022 = vst.msk [vmem:[#allocation8 + $0x18] sm:$0xf] %vm4015_vm6, %v17771_v10  ;;  %v17769_v44 = vpack.c.bf16 %v3939_v19, %v3939_v19  ;;  %v3942_v52 = vmax.f32 %v3900_v28, 0.0  ;;  %v3892_v49 = vadd.f32 %v3891_v37, %v3795_v48  ;;  %v18143_v61 = vpop.f32.mrf.mxu1  ;;  %v3824_v16 = vadd.f32 %v18135_v53, %v3727_v1  ;;  %v23473_v48 = vld [vmem:[#allocation99_spill] sm:$0xff]  ;;  %4928 = vmatprep.mubr.bf16.mxu1 %v19180_v31  ;;  %v4301_v26 = vld [vmem:[%s23474_s15 + $0x68] sm:$0xff] }
 0xcd2   :  { %v18767_v33 = vpop.f32.mrf.mxu0  ;;  %v18144_v5 = vadd.f32 %v18143_v61, %v18142_v11  ;;  %v3730_v0 = vadd.f32 %v18074_v4, %v23473_v48  ;;  %v4299_v53 = vld [vmem:[%s23474_s15 + $0x58] sm:$0xff]  ;;  %v4314_v61 = vld [vmem:[%s23474_s15 + $0xd0] sm:$0xff]  ;;  %v4292_v4 = vld [vmem:[%s23474_s15 + $0x20] sm:$0xff] }
 0xcd3   :  { %4020 = vst.msk [vmem:[#allocation8 + $0x10] sm:$0xf] %vm4015_vm6, %v17769_v44  ;;  %v17772_v20 = vpack.c.bf16 %v3942_v52, %v3942_v52  ;;  %v3940_v58 = vmax.f32 %v3892_v49, 0.0  ;;  %v3913_v18 = vadd.f32 %v18767_v33, %v3816_v27  ;;  %v4294_v21 = vld [vmem:[%s23474_s15 + $0x30] sm:$0xff]  ;;  %v4295_v1 = vld [vmem:[%s23474_s15 + $0x38] sm:$0xff] }
 0xcd4   :  { %v3904_v46 = vpop.f32.mrf.mxu0  ;;  %v3835_v44 = vadd.f32 %v18144_v5, %v3738_v9  ;;  %v3827_v60 = vadd.f32 %v18138_v63, %v3730_v0  ;;  %v22635_v36 = vld [vmem:[#allocation8 + $0x8] sm:$0xff]   ;;  %v4310_v47 = vld [vmem:[%s23474_s15 + $0xb0] sm:$0xff]  ;;  %v4307_v9 = vld [vmem:[%s23474_s15 + $0x98] sm:$0xff] }
 0xcd5   :  { %4023 = vst.msk [vmem:[#allocation8 + $0x1c] sm:$0xf] %vm4015_vm6, %v17772_v20  ;;  %v17770_v25 = vpack.c.bf16 %v3940_v58, %v3940_v58  ;;  %v3945_v59 = vmax.f32 %v3913_v18, 0.0  ;;  %v3905_v54 = vadd.f32 %v3904_v46, %v3808_v13  ;;  %v19189_v46 = vld [vmem:[#allocation30 + $0xc] ss:$20 sps:$4 sm:$0xff]   ;;  %v4309_v5 = vld [vmem:[%s23474_s15 + $0xa8] sm:$0xff] }
 0xcd6   :  { %v18768_v62 = vpop.f32.mrf.mxu0  ;;  %v22639_v40 = vld [vmem:[#allocation8] sm:$0xff]   ;;  %5089 = vmatprep.mubr.bf16.mxu0 %v19189_v46  ;;  %v4305_v0 = vld [vmem:[%s23474_s15 + $0x88] sm:$0xff] }
 0xcd7   :  { %4021 = vst.msk [vmem:[#allocation8 + $0x14] sm:$0xf] %vm4015_vm6, %v17770_v25  ;;  %v17775_v12 = vpack.c.bf16 %v3945_v59, %v3945_v59  ;;  %v3943_v14 = vmax.f32 %v3905_v54, 0.0  ;;  %v3916_v43 = vadd.f32 %v18768_v62, %v3819_v41  ;;  %v4302_v25 = vld [vmem:[%s23474_s15 + $0x70] sm:$0xff]  ;;  %v4303_v59 = vld [vmem:[%s23474_s15 + $0x78] sm:$0xff] }
 0xcd8   :  { %v3907_v35 = vpop.f32.mrf.mxu0  ;;  %v4318_v54 = vld [vmem:[%s23474_s15 + $0xf0] sm:$0xff]  ;;  %v4319_v41 = vld [vmem:[%s23474_s15 + $0xf8] sm:$0xff] }
 0xcd9   :  { %4026 = vst.msk [vmem:[#allocation8 + $0x28] sm:$0xf] %vm4015_vm6, %v17775_v12  ;;  %v17773_v32 = vpack.c.bf16 %v3943_v14, %v3943_v14  ;;  %v3946_v7 = vmax.f32 %v3916_v43, 0.0  ;;  %v3908_v55 = vadd.f32 %v3907_v35, %v3811_v45  ;;  %v4315_v62 = vld [vmem:[%s23474_s15 + $0xd8] sm:$0xff]  ;;  %v4296_v12 = vld [vmem:[%s23474_s15 + $0x40] sm:$0xff]  ;;  %v4297_v14 = vld [vmem:[%s23474_s15 + $0x48] sm:$0xff] }
 0xcda   :  { %v18771_v57 = vpop.f32.mrf.mxu0  ;;  %v4312_v43 = vld [vmem:[%s23474_s15 + $0xc0] sm:$0xff]  ;;  %v4313_v45 = vld [vmem:[%s23474_s15 + $0xc8] sm:$0xff] }
 0xcdb   :  { %4024 = vst.msk [vmem:[#allocation8 + $0x20] sm:$0xf] %vm4015_vm6, %v17773_v32  ;;  %v17776_v10 = vpack.c.bf16 %v3946_v7, %v3946_v7  ;;  %v3944_v19 = vmax.f32 %v3908_v55, 0.0  ;;  %v3929_v28 = vadd.f32 %v18771_v57, %v3832_v39  ;;  %v4293_v35 = vld [vmem:[%s23474_s15 + $0x28] sm:$0xff]  ;;  %v4308_v39 = vld [vmem:[%s23474_s15 + $0xa0] sm:$0xff]  ;;  %v4290_v32 = vld [vmem:[%s23474_s15 + $0x10] sm:$0xff] }
 0xcdc   :  { %v3920_v23 = vpop.f32.mrf.mxu0  ;;  %v22627_v56 = vld [vmem:[#allocation8 + $0x18] sm:$0xff]   ;;  %v4306_v55 = vld [vmem:[%s23474_s15 + $0x90] sm:$0xff] }
 0xcdd   :  { %4027 = vst.msk [vmem:[#allocation8 + $0x2c] sm:$0xf] %vm4015_vm6, %v17776_v10  ;;  %v17774_v37 = vpack.c.bf16 %v3944_v19, %v3944_v19  ;;  %v3949_v27 = vmax.f32 %v3929_v28, 0.0  ;;  %v3921_v42 = vadd.f32 %v3920_v23, %v3824_v16  ;;  %v4291_v7 = vld [vmem:[%s23474_s15 + $0x18] sm:$0xff]  ;;  %v4288_v16 = vld [vmem:[%s23474_s15] sm:$0xff]  ;;  %v4289_v10 = vld [vmem:[%s23474_s15 + $0x8] sm:$0xff] }
 0xcde   :  { %v18772_v52 = vpop.f32.mrf.mxu0  ;;  %v22631_v6 = vld [vmem:[#allocation8 + $0x10] sm:$0xff]   ;;  %v4304_v28 = vld [vmem:[%s23474_s15 + $0x80] sm:$0xff] }
 0xcdf   :  { %4025 = vst.msk [vmem:[#allocation8 + $0x24] sm:$0xf] %vm4015_vm6, %v17774_v37  ;;  %v17779_v49 = vpack.c.bf16 %v3949_v27, %v3949_v27  ;;  %v3947_v51 = vmax.f32 %v3921_v42, 0.0  ;;  %v3932_v8 = vadd.f32 %v18772_v52, %v3835_v44  ;;  %v19192_v31 = vld [vmem:[#allocation30 + $0x7c] ss:$20 sps:$4 sm:$0xff]  }
 0xce0   :  { %v3923_v17 = vpop.f32.mrf.mxu0 }
 0xce1   :  { %4030 = vst.msk [vmem:[#allocation8 + $0x38] sm:$0xf] %vm4015_vm6, %v17779_v49  ;;  %v17777_v11 = vpack.c.bf16 %v3947_v51, %v3947_v51  ;;  %v3950_v33 = vmax.f32 %v3932_v8, 0.0  ;;  %v3924_v13 = vadd.f32 %v3923_v17, %v3827_v60  ;;  %v19178_v17 = vld [vmem:[#allocation30] ss:$20 sps:$4 sm:$0xff]  }
 0xce3   :  { %4028 = vst.msk [vmem:[#allocation8 + $0x30] sm:$0xf] %vm4015_vm6, %v17777_v11  ;;  %v17780_v15 = vpack.c.bf16 %v3950_v33, %v3950_v33  ;;  %v3948_v3 = vmax.f32 %v3924_v13, 0.0  ;;  %v19183_v33 = vld [vmem:[#allocation30 + $0x2c] ss:$20 sps:$4 sm:$0xff]  }
 0xce4   :  { %v22619_v18 = vld [vmem:[#allocation8 + $0x28] sm:$0xff]  }
 0xce5   :  { %4031 = vst.msk [vmem:[#allocation8 + $0x3c] sm:$0xf] %vm4015_vm6, %v17780_v15  ;;  %v17778_v24 = vpack.c.bf16 %v3948_v3, %v3948_v3 }
 0xce6   :  { %v22623_v38 = vld [vmem:[#allocation8 + $0x20] sm:$0xff]  }
 0xce7   :  { %4029 = vst.msk [vmem:[#allocation8 + $0x34] sm:$0xf] %vm4015_vm6, %v17778_v24  ;;  %v19181_v24 = vld [vmem:[#allocation30 + $0x28] ss:$20 sps:$4 sm:$0xff]  }
 0xcec   :  { %v22611_v20 = vld [vmem:[#allocation8 + $0x38] sm:$0xff]  }
 0xced   :  { %4110 = vrot.lane.b32.xlu1 %v22611_v20, %s21674_s22 }
 0xcee   :  { %v22615_v58 = vld [vmem:[#allocation8 + $0x30] sm:$0xff]  }
 0xcef   :  { %4108 = vrot.lane.b32.xlu0 %v22615_v58, %s21674_s22 }
 0xcf1   :  { %4106 = vrot.lane.b32.xlu1 %v22619_v18, %s21674_s22 }
 0xcf3   :  { %4104 = vrot.lane.b32.xlu0 %v22623_v38, %s21674_s22 }
 0xcf5   :  { %4102 = vrot.lane.b32.xlu1 %v22627_v56, %s21674_s22 }
 0xcf7   :  { %4100 = vrot.lane.b32.xlu0 %v22631_v6, %s21674_s22 }
 0xcf9   :  { %4098 = vrot.lane.b32.xlu1 %v22635_v36, %s21674_s22 }
 0xcfb   :  { %4096 = vrot.lane.b32.xlu0 %v22639_v40, %s21674_s22 }
 0xcfd   :  { %4158 = vrot.lane.b32.xlu1 %v22611_v20, %s21671_s25 }
 0xcff   :  { %4134 = vrot.lane.b32.xlu0 %v22611_v20, %s21675_s26 }
 0xd01   :  { %4156 = vrot.lane.b32.xlu1 %v22615_v58, %s21671_s25 }
 0xd03   :  { %4132 = vrot.lane.b32.xlu0 %v22615_v58, %s21675_s26 }
 0xd05   :  { %4154 = vrot.lane.b32.xlu1 %v22619_v18, %s21671_s25 }
 0xd07   :  { %4130 = vrot.lane.b32.xlu0 %v22619_v18, %s21675_s26 }
 0xd09   :  { %4152 = vrot.lane.b32.xlu1 %v22623_v38, %s21671_s25 }
 0xd0b   :  { %4128 = vrot.lane.b32.xlu0 %v22623_v38, %s21675_s26 }
 0xd0d   :  { %4150 = vrot.lane.b32.xlu1 %v22627_v56, %s21671_s25 }
 0xd0f   :  { %4126 = vrot.lane.b32.xlu0 %v22627_v56, %s21675_s26 }
 0xd11   :  { %4148 = vrot.lane.b32.xlu1 %v22631_v6, %s21671_s25 }
 0xd13   :  { %4124 = vrot.lane.b32.xlu0 %v22631_v6, %s21675_s26 }
 0xd15   :  { %4146 = vrot.lane.b32.xlu1 %v22635_v36, %s21671_s25 }
 0xd17   :  { %4122 = vrot.lane.b32.xlu0 %v22635_v36, %s21675_s26 }
 0xd19   :  { %4144 = vrot.lane.b32.xlu1 %v22639_v40, %s21671_s25 }
 0xd1b   :  { %4120 = vrot.lane.b32.xlu0 %v22639_v40, %s21675_s26 }
 0xd1d   :  { %4182 = vrot.lane.b32.xlu1 %v22611_v20, %s21672_s12 }
 0xd1f   :  { %4180 = vrot.lane.b32.xlu0 %v22615_v58, %s21672_s12 }
 0xd21   :  { %4178 = vrot.lane.b32.xlu1 %v22619_v18, %s21672_s12 }
 0xd23   :  { %4176 = vrot.lane.b32.xlu0 %v22623_v38, %s21672_s12 }
 0xd25   :  { %4174 = vrot.lane.b32.xlu1 %v22627_v56, %s21672_s12 }
 0xd27   :  { %4172 = vrot.lane.b32.xlu0 %v22631_v6, %s21672_s12 }
 0xd29   :  { %4170 = vrot.lane.b32.xlu1 %v22635_v36, %s21672_s12 }
 0xd2b   :  { %4168 = vrot.lane.b32.xlu0 %v22639_v40, %s21672_s12 }
 0xd2d   :  { %4392 = vperm.xlu1 %18969, %v4302_v25   ;;  %v19195_v25 = vld [vmem:[#allocation30 + $0x34] ss:$20 sps:$4 sm:$0xff]  }
 0xd2f   :  { %4397 = vperm.xlu0 %18968, %v4303_v59  }
 0xd31   :  { %4472 = vperm.xlu1 %18969, %v4318_v54   ;;  %v19190_v54 = vld [vmem:[#allocation30 + $0x78] ss:$20 sps:$4 sm:$0xff]  }
 0xd33   :  { %4477 = vperm.xlu0 %18968, %v4319_v41  }
 0xd35   :  { %4382 = vperm.xlu1 %18969, %v4300_v22   ;;  %v19193_v22 = vld [vmem:[#allocation30 + $0x30] ss:$20 sps:$4 sm:$0xff]  }
 0xd37   :  { %4387 = vperm.xlu0 %18968, %v4301_v26   ;;  %v19198_v26 = vld [vmem:[#allocation30 + $0xa4] ss:$20 sps:$4 sm:$0xff]  }
 0xd39   :  { %4462 = vperm.xlu1 %18969, %v4316_v29   ;;  %v19201_v29 = vld [vmem:[#allocation30 + $0x5c] ss:$20 sps:$4 sm:$0xff]  }
 0xd3b   :  { %4467 = vperm.xlu0 %18968, %v4317_v30  }
 0xd3d   :  { %4372 = vperm.xlu1 %18969, %v4298_v2   ;;  %v19196_v2 = vld [vmem:[#allocation30 + $0xa0] ss:$20 sps:$4 sm:$0xff]  }
 0xd3f   :  { %4377 = vperm.xlu0 %18968, %v4299_v53  }
 0xd41   :  { %4452 = vperm.xlu1 %18969, %v4314_v61   ;;  %v19199_v61 = vld [vmem:[#allocation30 + $0x58] ss:$20 sps:$4 sm:$0xff]  }
 0xd43   :  { %4457 = vperm.xlu0 %18968, %v4315_v62   ;;  %v19204_v62 = vld [vmem:[#allocation30 + $0xcc] ss:$20 sps:$4 sm:$0xff]  }
 0xd45   :  { %4362 = vperm.xlu1 %18969, %v4296_v12   ;;  %v19207_v12 = vld [vmem:[#allocation30 + $0x84] ss:$20 sps:$4 sm:$0xff]  }
 0xd47   :  { %4367 = vperm.xlu0 %18968, %v4297_v14  }
 0xd49   :  { %4442 = vperm.xlu1 %18969, %v4312_v43   ;;  %v19202_v43 = vld [vmem:[#allocation30 + $0xc8] ss:$20 sps:$4 sm:$0xff]  }
 0xd4b   :  { %4447 = vperm.xlu0 %18968, %v4313_v45  }
 0xd4d   :  { %4352 = vperm.xlu1 %18969, %v4294_v21   ;;  %v19205_v21 = vld [vmem:[#allocation30 + $0x80] ss:$20 sps:$4 sm:$0xff]  }
 0xd4f   :  { %4357 = vperm.xlu0 %18968, %v4295_v1   ;;  %v19210_v1 = vld [vmem:[#allocation30 + $0xf4] ss:$20 sps:$4 sm:$0xff]  }
 0xd51   :  { %4432 = vperm.xlu1 %18969, %v4310_v47   ;;  %v19213_v47 = vld [vmem:[#allocation30 + $0xac] ss:$20 sps:$4 sm:$0xff]  }
 0xd53   :  { %4437 = vperm.xlu0 %18968, %v4311_v50  }
 0xd55   :  { %4342 = vperm.xlu1 %18969, %v4292_v4   ;;  %v19208_v4 = vld [vmem:[#allocation30 + $0xf0] ss:$20 sps:$4 sm:$0xff]  }
 0xd57   :  { %4347 = vperm.xlu0 %18968, %v4293_v35   ;;  %v19211_v35 = vld [vmem:[#allocation30 + $0xa8] ss:$20 sps:$4 sm:$0xff]  }
 0xd59   :  { %4422 = vperm.xlu1 %18969, %v4308_v39   ;;  %v19216_v39 = vld [vmem:[#allocation30 + $0x11c] ss:$20 sps:$4 sm:$0xff]  }
 0xd5b   :  { %4427 = vperm.xlu0 %18968, %v4309_v5   ;;  %v19219_v5 = vld [vmem:[#allocation30 + $0xd4] ss:$20 sps:$4 sm:$0xff]  }
 0xd5d   :  { %4332 = vperm.xlu1 %18969, %v4290_v32   ;;  %v19214_v32 = vld [vmem:[#allocation30 + $0x118] ss:$20 sps:$4 sm:$0xff]  }
 0xd5f   :  { %v4111_v34 = vpop.permute.xlu1 %4110  ;;  %4337 = vperm.xlu0 %18968, %v4291_v7   ;;  %v19217_v7 = vld [vmem:[#allocation30 + $0xd0] ss:$20 sps:$4 sm:$0xff]  }
 0xd60   :  { %18161 = vmatprep.subr.bf16.mxu1 %v4111_v34  ;;  %v19225_v34 = vld [vmem:[#allocation30 + $0xfc] ss:$20 sps:$4 sm:$0xff]  }
 0xd61   :  { %18162 = vmatpush3.bf16.msra.mxu1 %v22611_v20  ;;  %4412 = vperm.xlu1 %18969, %v4306_v55   ;;  %v4109_v57 = vpop.permute.xlu0 %4108  ;;  %v19222_v55 = vld [vmem:[#allocation30 + $0x144] ss:$20 sps:$4 sm:$0xff]  }
 0xd62   :  { %18163 = vmatprep.subr.bf16.mxu1 %v4109_v57  ;;  %v19223_v57 = vld [vmem:[#allocation30 + $0xf8] ss:$20 sps:$4 sm:$0xff]  }
 0xd63   :  { %v4107_v63 = vpop.permute.xlu1 %4106  ;;  %4417 = vperm.xlu0 %18968, %v4307_v9   ;;  %v19220_v9 = vld [vmem:[#allocation30 + $0x140] ss:$20 sps:$4 sm:$0xff]  }
 0xd65   :  { %4322 = vperm.xlu1 %18969, %v4288_v16   ;;  %18164 = vmatpush3.bf16.msra.mxu1 %v22615_v58  ;;  %v4105_v19 = vpop.permute.xlu0 %4104  ;;  %v19186_v58 = vld [vmem:[#allocation30 + $0x54] ss:$20 sps:$4 sm:$0xff]   ;;  %v19228_v16 = vld [vmem:[#allocation30 + $0x16c] ss:$20 sps:$4 sm:$0xff]  }
 0xd66   :  { %18165 = vmatprep.subr.bf16.mxu1 %v4107_v63  ;;  %v19231_v63 = vld [vmem:[#allocation30 + $0x124] ss:$20 sps:$4 sm:$0xff]  }
 0xd67   :  { %v4103_v48 = vpop.permute.xlu1 %4102  ;;  %4327 = vperm.xlu0 %18968, %v4289_v10   ;;  %v19226_v10 = vld [vmem:[#allocation30 + $0x168] ss:$20 sps:$4 sm:$0xff]  }
 0xd69   :  { %4402 = vperm.xlu1 %18969, %v4304_v28   ;;  %18166 = vmatpush3.bf16.msra.mxu1 %v22619_v18  ;;  %v4101_v23 = vpop.permute.xlu0 %4100  ;;  %v19234_v28 = vld [vmem:[#allocation30 + $0x194] ss:$20 sps:$4 sm:$0xff]  }
 0xd6a   :  { %18167 = vmatprep.subr.bf16.mxu1 %v4105_v19  ;;  %v19229_v19 = vld [vmem:[#allocation30 + $0x120] ss:$20 sps:$4 sm:$0xff]  }
 0xd6b   :  { %v4099_v37 = vpop.permute.xlu1 %4098  ;;  %4407 = vperm.xlu0 %18968, %v4305_v0   ;;  %v19232_v0 = vld [vmem:[#allocation30 + $0x190] ss:$20 sps:$4 sm:$0xff]  }
 0xd6d   :  { %18168 = vmatpush3.bf16.msra.mxu1 %v22623_v38  ;;  %v4097_v27 = vpop.permute.xlu0 %4096 }
 0xd6e   :  { %18169 = vmatprep.subr.bf16.mxu1 %v4103_v48  ;;  %v19237_v48 = vld [vmem:[#allocation30 + $0x14c] ss:$20 sps:$4 sm:$0xff]  }
 0xd6f   :  { %v4159_v42 = vpop.permute.xlu1 %4158 }
 0xd70   :  { %18273 = vmatprep.subr.bf16.mxu0 %v4159_v42  ;;  %v19238_v42 = vld [vmem:[#allocation30 + $0x1b8] ss:$20 sps:$4 sm:$0xff]  }
 0xd71   :  { %18170 = vmatpush3.bf16.msra.mxu1 %v22627_v56  ;;  %v4135_v44 = vpop.permute.xlu0 %4134 }
 0xd72   :  { %18171 = vmatprep.subr.bf16.mxu1 %v4101_v23  ;;  %18274 = vmatpush3.bf16.msra.mxu0 %v4135_v44  ;;  %v19235_v23 = vld [vmem:[#allocation30 + $0x148] ss:$20 sps:$4 sm:$0xff]   ;;  %v19241_v44 = vld [vmem:[#allocation30 + $0x170] ss:$20 sps:$4 sm:$0xff]  }
 0xd73   :  { %v4157_v52 = vpop.permute.xlu1 %4156 }
 0xd74   :  { %18275 = vmatprep.subr.bf16.mxu0 %v4157_v52  ;;  %v19246_v52 = vld [vmem:[#allocation30 + $0x1e4] ss:$20 sps:$4 sm:$0xff]  }
 0xd75   :  { %18172 = vmatpush3.bf16.msra.mxu1 %v22631_v6  ;;  %v4133_v49 = vpop.permute.xlu0 %4132  ;;  %v19184_v6 = vld [vmem:[#allocation30 + $0x50] ss:$20 sps:$4 sm:$0xff]  }
 0xd76   :  { %18173 = vmatprep.subr.bf16.mxu1 %v4099_v37  ;;  %18276 = vmatpush3.bf16.msra.mxu0 %v4133_v49  ;;  %v19240_v37 = vld [vmem:[#allocation30 + $0x1bc] ss:$20 sps:$4 sm:$0xff]  }
 0xd77   :  { %v4155_v51 = vpop.permute.xlu1 %4154  ;;  %v19249_v49 = vld [vmem:[#allocation30 + $0x19c] ss:$20 sps:$4 sm:$0xff]  }
 0xd78   :  { %18277 = vmatprep.subr.bf16.mxu0 %v4155_v51  ;;  %v19244_v51 = vld [vmem:[#allocation30 + $0x1e0] ss:$20 sps:$4 sm:$0xff]  }
 0xd79   :  { %18174 = vmatpush3.bf16.msra.mxu1 %v22635_v36  ;;  %v4131_v8 = vpop.permute.xlu0 %4130 }
 0xd7a   :  { %18175 = vmatprep.subr.bf16.mxu1 %v4097_v27  ;;  %18278 = vmatpush3.bf16.msra.mxu0 %v4131_v8  ;;  %v19243_v27 = vld [vmem:[#allocation30 + $0x174] ss:$20 sps:$4 sm:$0xff]   ;;  %v19247_v8 = vld [vmem:[#allocation30 + $0x198] ss:$20 sps:$4 sm:$0xff]  }
 0xd7b   :  { %v4153_v60 = vpop.permute.xlu1 %4152 }
 0xd7c   :  { %18279 = vmatprep.subr.bf16.mxu0 %v4153_v60  ;;  %v19252_v60 = vld [vmem:[#allocation30 + $0x20c] ss:$20 sps:$4 sm:$0xff]  }
 0xd7d   :  { %18176 = vmatpush3.bf16.msra.mxu1 %v22639_v40  ;;  %v4129_v11 = vpop.permute.xlu0 %4128  ;;  %v19187_v40 = vld [vmem:[#allocation30 + $0x8] ss:$20 sps:$4 sm:$0xff]  }
 0xd7e   :  { %18280 = vmatpush3.bf16.msra.mxu0 %v4129_v11  ;;  %v19250_v11 = vld [vmem:[#allocation30 + $0x208] ss:$20 sps:$4 sm:$0xff]  }
 0xd7f   :  { %v4151_v13 = vpop.permute.xlu1 %4150 }
 0xd80   :  { %4929 = vmatmul.mubr.bf16.vlgmr.msra.gmra.mxu1 %v19178_v17  ;;  %18281 = vmatprep.subr.bf16.mxu0 %v4151_v13  ;;  %v19255_v17 = vld [vmem:[#allocation30 + $0x1c4] ss:$20 sps:$4 sm:$0xff]   ;;  %v19258_v13 = vld [vmem:[#allocation30 + $0x234] ss:$20 sps:$4 sm:$0xff]  }
 0xd81   :  { %v4127_v15 = vpop.permute.xlu0 %4126  ;;  %4936 = vmatprep.mubr.bf16.mxu1 %v19183_v33  ;;  %v19253_v33 = vld [vmem:[#allocation30 + $0x1c0] ss:$20 sps:$4 sm:$0xff]  }
 0xd82   :  { %18282 = vmatpush3.bf16.msra.mxu0 %v4127_v15  ;;  %v19261_v15 = vld [vmem:[#allocation30 + $0x1ec] ss:$20 sps:$4 sm:$0xff]  }
 0xd83   :  { %v4149_v3 = vpop.permute.xlu1 %4148 }
 0xd84   :  { %18283 = vmatprep.subr.bf16.mxu0 %v4149_v3  ;;  %v19256_v3 = vld [vmem:[#allocation30 + $0x230] ss:$20 sps:$4 sm:$0xff]  }
 0xd85   :  { %v4125_v20 = vpop.permute.xlu0 %4124 }
 0xd86   :  { %18284 = vmatpush3.bf16.msra.mxu0 %v4125_v20  ;;  %v19264_v20 = vld [vmem:[#allocation30 + $0x25c] ss:$20 sps:$4 sm:$0xff]  }
 0xd87   :  { %v4147_v18 = vpop.permute.xlu1 %4146 }
 0xd88   :  { %4937 = vmatmul.mubr.bf16.gmra.mxu1 %v19181_v24  ;;  %18285 = vmatprep.subr.bf16.mxu0 %v4147_v18  ;;  %v19259_v24 = vld [vmem:[#allocation30 + $0x1e8] ss:$20 sps:$4 sm:$0xff]   ;;  %v19262_v18 = vld [vmem:[#allocation30 + $0x258] ss:$20 sps:$4 sm:$0xff]  }
 0xd89   :  { %v4123_v38 = vpop.permute.xlu0 %4122  ;;  %4944 = vmatprep.mubr.bf16.mxu1 %v19186_v58  ;;  %v19267_v58 = vld [vmem:[#allocation30 + $0x214] ss:$20 sps:$4 sm:$0xff]  }
 0xd8a   :  { %18286 = vmatpush3.bf16.msra.mxu0 %v4123_v38  ;;  %v19265_v38 = vld [vmem:[#allocation30 + $0x210] ss:$20 sps:$4 sm:$0xff]  }
 0xd8b   :  { %v4145_v56 = vpop.permute.xlu1 %4144 }
 0xd8c   :  { %18287 = vmatprep.subr.bf16.mxu0 %v4145_v56  ;;  %v19268_v56 = vld [vmem:[#allocation30 + $0x10] ss:$20 sps:$4 sm:$0xff]  }
 0xd8d   :  { %v4121_v36 = vpop.permute.xlu0 %4120 }
 0xd8e   :  { %18288 = vmatpush3.bf16.msra.mxu0 %v4121_v36  ;;  %v19272_v36 = vld [vmem:[#allocation30 + $0x38] ss:$20 sps:$4 sm:$0xff]  }
 0xd8f   :  { %v4183_v46 = vpop.permute.xlu1 %4182 }
 0xd90   :  { %4945 = vmatmul.mubr.bf16.gmra.mxu1 %v19184_v6  ;;  %18773 = vmatprep.subr.bf16.mxu1 %v4183_v46  ;;  %v19271_v6 = vld [vmem:[#allocation30 + $0x23c] ss:$20 sps:$4 sm:$0xff]  }
 0xd91   :  { %5090 = vmatmul.mubr.bf16.vlgmr.msra.gmra.mxu0 %v19187_v40  ;;  %18774 = vmatpush3.bf16.msra.mxu1 %v4183_v46  ;;  %v4181_v59 = vpop.permute.xlu0 %4180  ;;  %v19269_v40 = vld [vmem:[#allocation30 + $0x238] ss:$20 sps:$4 sm:$0xff]  }
 0xd92   :  { %18775 = vmatprep.subr.bf16.mxu1 %v4181_v59  ;;  %4952 = vmatprep.mubr.bf16.mxu1 %v19192_v31  ;;  %v19273_v31 = vld [vmem:[#allocation30 + $0x60] ss:$20 sps:$4 sm:$0xff]   ;;  %v19276_v46 = vld [vmem:[#allocation30 + $0x264] ss:$20 sps:$4 sm:$0xff]  }
 0xd93   :  { %5097 = vmatprep.mubr.bf16.mxu0 %v19195_v25  ;;  %v4179_v41 = vpop.permute.xlu1 %4178 }
 0xd95   :  { %18776 = vmatpush3.bf16.msra.mxu1 %v4181_v59  ;;  %v4177_v30 = vpop.permute.xlu0 %4176 }
 0xd96   :  { %18777 = vmatprep.subr.bf16.mxu1 %v4179_v41 }
 0xd97   :  { %v4175_v53 = vpop.permute.xlu1 %4174 }
 0xd98   :  { %4953 = vmatmul.mubr.bf16.gmra.mxu1 %v19190_v54  ;;  %v19277_v54 = vld [vmem:[#allocation30 + $0x88] ss:$20 sps:$4 sm:$0xff]  }
 0xd99   :  { %5098 = vmatmul.mubr.bf16.gmra.mxu0 %v19193_v22  ;;  %18778 = vmatpush3.bf16.msra.mxu1 %v4179_v41  ;;  %v4173_v14 = vpop.permute.xlu0 %4172  ;;  %v19274_v22 = vld [vmem:[#allocation30 + $0x260] ss:$20 sps:$4 sm:$0xff]  }
 0xd9a   :  { %18779 = vmatprep.subr.bf16.mxu1 %v4177_v30  ;;  %4960 = vmatprep.mubr.bf16.mxu1 %v19198_v26  ;;  %v19278_v26 = vld [vmem:[#allocation30 + $0xb0] ss:$20 sps:$4 sm:$0xff]  }
 0xd9b   :  { %5105 = vmatprep.mubr.bf16.mxu0 %v19201_v29  ;;  %v4171_v45 = vpop.permute.xlu1 %4170 }
 0xd9d   :  { %18780 = vmatpush3.bf16.msra.mxu1 %v4177_v30  ;;  %v4169_v50 = vpop.permute.xlu0 %4168 }
 0xd9e   :  { %18781 = vmatprep.subr.bf16.mxu1 %v4175_v53 }
 0xda0   :  { %4961 = vmatmul.mubr.bf16.gmra.mxu1 %v19196_v2  ;;  %v19279_v2 = vld [vmem:[#allocation30 + $0xd8] ss:$20 sps:$4 sm:$0xff]  }
 0xda1   :  { %5106 = vmatmul.mubr.bf16.gmra.mxu0 %v19199_v61  ;;  %18782 = vmatpush3.bf16.msra.mxu1 %v4175_v53  ;;  %v19280_v53 = vld [vmem:[#allocation30 + $0x100] ss:$20 sps:$4 sm:$0xff]  }
 0xda2   :  { %18783 = vmatprep.subr.bf16.mxu1 %v4173_v14  ;;  %4968 = vmatprep.mubr.bf16.mxu1 %v19204_v62 }
 0xda3   :  { %5113 = vmatprep.mubr.bf16.mxu0 %v19207_v12  ;;  %v19281_v12 = vld [vmem:[#allocation30 + $0x128] ss:$20 sps:$4 sm:$0xff]  }
 0xda5   :  { %18784 = vmatpush3.bf16.msra.mxu1 %v4173_v14 }
 0xda6   :  { %18785 = vmatprep.subr.bf16.mxu1 %v4171_v45 }
 0xda8   :  { %4969 = vmatmul.mubr.bf16.gmra.mxu1 %v19202_v43  ;;  %v22731_v25 = vpop.permute.xlu1 %4392  ;;  %v19282_v43 = vld [vmem:[#allocation30 + $0x150] ss:$20 sps:$4 sm:$0xff]  }
 0xda9   :  { %5114 = vmatmul.mubr.bf16.gmra.mxu0 %v19205_v21  ;;  %18786 = vmatpush3.bf16.msra.mxu1 %v4171_v45 }
 0xdaa   :  { %18787 = vmatprep.subr.bf16.mxu1 %v4169_v50  ;;  %4976 = vmatprep.mubr.bf16.mxu1 %v19210_v1  ;;  %v22733_v59 = vpop.permute.xlu0 %4397  ;;  %v19283_v1 = vld [vmem:[#allocation30 + $0x178] ss:$20 sps:$4 sm:$0xff]  }
 0xdab   :  { %5121 = vmatprep.mubr.bf16.mxu0 %v19213_v47 }
 0xdac   :  { %v22735_v41 = vpop.permute.xlu1 %4472 }
 0xdad   :  { %18788 = vmatpush3.bf16.msra.mxu1 %v4169_v50  ;;  %v19284_v50 = vld [vmem:[#allocation30 + $0x1a0] ss:$20 sps:$4 sm:$0xff]  }
 0xdae   :  { %v22737_v29 = vpop.permute.xlu0 %4477 }
 0xdb0   :  { %4977 = vmatmul.mubr.bf16.gmra.mxu1 %v19208_v4  ;;  %v22739_v30 = vpop.permute.xlu1 %4382 }
 0xdb1   :  { %5122 = vmatmul.mubr.bf16.gmra.mxu0 %v19211_v35  ;;  %4984 = vmatprep.mubr.bf16.mxu1 %v19216_v39  ;;  %v19285_v39 = vld [vmem:[#allocation30 + $0x1c8] ss:$20 sps:$4 sm:$0xff]  }
 0xdb2   :  { %5129 = vmatprep.mubr.bf16.mxu0 %v19219_v5  ;;  %v22741_v61 = vpop.permute.xlu0 %4387  ;;  %v19286_v5 = vld [vmem:[#allocation30 + $0x1f0] ss:$20 sps:$4 sm:$0xff]  }
 0xdb4   :  { %v22743_v62 = vpop.permute.xlu1 %4462 }
 0xdb6   :  { %v22745_v14 = vpop.permute.xlu0 %4467 }
 0xdb8   :  { %4985 = vmatmul.mubr.bf16.gmra.mxu1 %v19214_v32  ;;  %v22747_v45 = vpop.permute.xlu1 %4372 }
 0xdb9   :  { %5130 = vmatmul.mubr.bf16.gmra.mxu0 %v19217_v7  ;;  %4992 = vmatprep.mubr.bf16.mxu1 %v19222_v55  ;;  %v19287_v55 = vld [vmem:[#allocation30 + $0x218] ss:$20 sps:$4 sm:$0xff]  }
 0xdba   :  { %5137 = vmatprep.mubr.bf16.mxu0 %v19225_v34  ;;  %v22749_v21 = vpop.permute.xlu0 %4377 }
 0xdbc   :  { %v22751_v47 = vpop.permute.xlu1 %4452 }
 0xdbe   :  { %v22753_v4 = vpop.permute.xlu0 %4457 }
 0xdc0   :  { %4993 = vmatmul.mubr.bf16.gmra.mxu1 %v19220_v9  ;;  %v22755_v35 = vpop.permute.xlu1 %4362  ;;  %v19288_v9 = vld [vmem:[#allocation30 + $0x240] ss:$20 sps:$4 sm:$0xff]  }
 0xdc1   :  { %5138 = vmatmul.mubr.bf16.gmra.mxu0 %v19223_v57  ;;  %5000 = vmatprep.mubr.bf16.mxu1 %v19228_v16 }
 0xdc2   :  { %5145 = vmatprep.mubr.bf16.mxu0 %v19231_v63  ;;  %v22757_v32 = vpop.permute.xlu0 %4367  ;;  %v19289_v63 = vld [vmem:[#allocation30 + $0x268] ss:$20 sps:$4 sm:$0xff]  }
 0xdc4   :  { %v22759_v7 = vpop.permute.xlu1 %4442 }
 0xdc6   :  { %v22761_v34 = vpop.permute.xlu0 %4447 }
 0xdc8   :  { %5001 = vmatmul.mubr.bf16.gmra.mxu1 %v19226_v10  ;;  %v22763_v57 = vpop.permute.xlu1 %4352 }
 0xdc9   :  { %5146 = vmatmul.mubr.bf16.gmra.mxu0 %v19229_v19  ;;  %5008 = vmatprep.mubr.bf16.mxu1 %v19234_v28 }
 0xdca   :  { %5153 = vmatprep.mubr.bf16.mxu0 %v19237_v48  ;;  %v22765_v16 = vpop.permute.xlu0 %4357 }
 0xdcc   :  { %v22767_v10 = vpop.permute.xlu1 %4432 }
 0xdce   :  { %v22769_v19 = vpop.permute.xlu0 %4437 }
 0xdd0   :  { %5009 = vmatmul.mubr.bf16.gmra.mxu1 %v19232_v0  ;;  %v4343_v28 = vpop.permute.xlu1 %4342 }
 0xdd1   :  { %5154 = vmatmul.mubr.bf16.gmra.mxu0 %v19235_v23  ;;  %5016 = vmatprep.mubr.bf16.mxu1 %v19240_v37 }
 0xdd2   :  { %5161 = vmatprep.mubr.bf16.mxu0 %v19243_v27  ;;  %v22771_v48 = vpop.permute.xlu0 %4347 }
 0xdd4   :  { %v22773_v23 = vpop.permute.xlu1 %4422 }
 0xdd8   :  { %5017 = vmatmul.mubr.bf16.gmra.mxu1 %v19238_v42 }
 0xdd9   :  { %5162 = vmatmul.mubr.bf16.gmra.mxu0 %v19241_v44  ;;  %5024 = vmatprep.mubr.bf16.mxu1 %v19246_v52  ;;  %v22775_v44 = vpop.permute.xlu0 %4427 }
 0xdda   :  { %5169 = vmatprep.mubr.bf16.mxu0 %v19249_v49  ;;  %v4333_v49 = vpop.permute.xlu1 %4332 }
 0xde0   :  { %5025 = vmatmul.mubr.bf16.gmra.mxu1 %v19244_v51 }
 0xde1   :  { %5170 = vmatmul.mubr.bf16.gmra.mxu0 %v19247_v8  ;;  %5032 = vmatprep.mubr.bf16.mxu1 %v19252_v60 }
 0xde2   :  { %5177 = vmatprep.mubr.bf16.mxu0 %v19255_v17  ;;  %v4338_v17 = vpop.permute.xlu0 %4337 }
 0xde8   :  { %5033 = vmatmul.mubr.bf16.gmra.mxu1 %v19250_v11 }
 0xde9   :  { %5178 = vmatmul.mubr.bf16.gmra.mxu0 %v19253_v33  ;;  %5040 = vmatprep.mubr.bf16.mxu1 %v19258_v13  ;;  %v22777_v13 = vpop.permute.xlu1 %4412 }
 0xdea   :  { %5185 = vmatprep.mubr.bf16.mxu0 %v19261_v15 }
 0xdf0   :  { %5041 = vmatmul.mubr.bf16.gmra.mxu1 %v19256_v3 }
 0xdf1   :  { %5186 = vmatmul.mubr.bf16.gmra.mxu0 %v19259_v24  ;;  %5048 = vmatprep.mubr.bf16.mxu1 %v19264_v20  ;;  %v22779_v20 = vpop.permute.xlu0 %4417 }
 0xdf2   :  { %5193 = vmatprep.mubr.bf16.mxu0 %v19267_v58 }
 0xdf8   :  { %5049 = vmatmul.mubr.bf16.gmra.mxu1 %v19262_v18 }
 0xdf9   :  { %5194 = vmatmul.mubr.bf16.gmra.mxu0 %v19265_v38  ;;  %18789 = vmatprep.mubr.bf16.mxu1 %v19268_v56  ;;  %v4323_v38 = vpop.permute.xlu1 %4322 }
 0xdfa   :  { %5201 = vmatprep.mubr.bf16.mxu0 %v19271_v6 }
 0xe00   :  { %18790 = vmatmul.mubr.bf16.vlgmr.msra.gmra.mxu1 %v19272_v36 }
 0xe01   :  { %5202 = vmatmul.mubr.bf16.gmra.mxu0 %v19269_v40  ;;  %18793 = vmatprep.mubr.bf16.mxu1 %v19273_v31 }
 0xe02   :  { %5209 = vmatprep.mubr.bf16.mxu0 %v19276_v46 }
 0xe08   :  { %18794 = vmatmul.mubr.bf16.gmra.mxu1 %v19277_v54 }
 0xe09   :  { %5210 = vmatmul.mubr.bf16.gmra.mxu0 %v19274_v22  ;;  %18797 = vmatprep.mubr.bf16.mxu1 %v19278_v26  ;;  %v4328_v26 = vpop.permute.xlu0 %4327 }
 0xe10   :  { %18798 = vmatmul.mubr.bf16.gmra.mxu1 %v19279_v2 }
 0xe11   :  { %18801 = vmatprep.mubr.bf16.mxu1 %v19280_v53 }
 0xe18   :  { %18802 = vmatmul.mubr.bf16.gmra.mxu1 %v19281_v12 }
 0xe19   :  { %18805 = vmatprep.mubr.bf16.mxu1 %v19282_v43 }
 0xe20   :  { %18806 = vmatmul.mubr.bf16.gmra.mxu1 %v19283_v1 }
 0xe21   :  { %18809 = vmatprep.mubr.bf16.mxu1 %v19284_v50 }
 0xe28   :  { %18810 = vmatmul.mubr.bf16.gmra.mxu1 %v19285_v39 }
 0xe29   :  { %18813 = vmatprep.mubr.bf16.mxu1 %v19286_v5 }
 0xe30   :  { %18814 = vmatmul.mubr.bf16.gmra.mxu1 %v19287_v55 }
 0xe31   :  { %18817 = vmatprep.mubr.bf16.mxu1 %v19288_v9 }
 0xe38   :  { %18818 = vmatmul.mubr.bf16.gmra.mxu1 %v19289_v63 }
 0xe40   :  { %v18177_v0 = vpop.f32.mrf.mxu1 }
 0xe42   :  { %v18178_v37 = vpop.f32.mrf.mxu1 }
 0xe43   :  { %v18179_v27 = vadd.f32 %v18178_v37, %v18177_v0 }
 0xe44   :  { %v18180_v42 = vpop.f32.mrf.mxu1 }
 0xe45   :  { %v4931_v36 = vadd.f32 %v18179_v27, %v4323_v38 }
 0xe46   :  { %v18181_v52 = vpop.f32.mrf.mxu1 }
 0xe47   :  { %v18182_v51 = vadd.f32 %v18181_v52, %v18180_v42 }
 0xe48   :  { %v18183_v8 = vpop.f32.mrf.mxu1 }
 0xe49   :  { %v4934_v12 = vadd.f32 %v18182_v51, %v4328_v26 }
 0xe4a   :  { %v18184_v60 = vpop.f32.mrf.mxu1 }
 0xe4b   :  { %v18185_v11 = vadd.f32 %v18184_v60, %v18183_v8 }
 0xe4c   :  { %v18186_v33 = vpop.f32.mrf.mxu1 }
 0xe4d   :  { %v4939_v63 = vadd.f32 %v18185_v11, %v4333_v49 }
 0xe4e   :  { %v18187_v15 = vpop.f32.mrf.mxu1 }
 0xe4f   :  { %v18188_v3 = vadd.f32 %v18187_v15, %v18186_v33 }
 0xe50   :  { %v18189_v24 = vpop.f32.mrf.mxu1 }
 0xe51   :  { %v18289_v58 = vpop.f32.mrf.mxu0  ;;  %v4942_v33 = vadd.f32 %v18188_v3, %v4338_v17 }
 0xe52   :  { %v18190_v18 = vpop.f32.mrf.mxu1 }
 0xe53   :  { %v18191_v56 = vadd.f32 %v18190_v18, %v18189_v24  ;;  %v18290_v6 = vpop.f32.mrf.mxu0 }
 0xe54   :  { %v18291_v40 = vadd.f32 %v18290_v6, %v18289_v58  ;;  %v18192_v31 = vpop.f32.mrf.mxu1 }
 0xe55   :  { %v18292_v46 = vpop.f32.mrf.mxu0 }
 0xe56   :  { %v18193_v54 = vpop.f32.mrf.mxu1  ;;  %v22781_v22 = vadd.f32 %v18291_v40, %v4931_v36  ;;  %v4947_v36 = vadd.f32 %v18191_v56, %v4343_v28 }
 0xe57   :  { %v18194_v2 = vadd.f32 %v18193_v54, %v18192_v31  ;;  %v18293_v53 = vpop.f32.mrf.mxu0 }
 0xe58   :  { %v18294_v43 = vadd.f32 %v18293_v53, %v18292_v46  ;;  %v18195_v1 = vpop.f32.mrf.mxu1 }
 0xe59   :  { %v18295_v50 = vpop.f32.mrf.mxu0  ;;  %v4950_v53 = vadd.f32 %v18194_v2, %v22771_v48 }
 0xe5a   :  { %v18196_v39 = vpop.f32.mrf.mxu1  ;;  %v22783_v5 = vadd.f32 %v18294_v43, %v4934_v12 }
 0xe5b   :  { %v18197_v55 = vadd.f32 %v18196_v39, %v18195_v1  ;;  %v18296_v9 = vpop.f32.mrf.mxu0 }
 0xe5c   :  { %v18297_v0 = vadd.f32 %v18296_v9, %v18295_v50  ;;  %v18198_v37 = vpop.f32.mrf.mxu1 }
 0xe5d   :  { %v18298_v27 = vpop.f32.mrf.mxu0  ;;  %v4955_v28 = vadd.f32 %v18197_v55, %v22763_v57 }
 0xe5e   :  { %v18199_v42 = vpop.f32.mrf.mxu1  ;;  %v22785_v52 = vadd.f32 %v18297_v0, %v4939_v63 }
 0xe5f   :  { %v18200_v8 = vadd.f32 %v18199_v42, %v18198_v37  ;;  %v18299_v60 = vpop.f32.mrf.mxu0 }
 0xe60   :  { %v18300_v15 = vadd.f32 %v18299_v60, %v18298_v27  ;;  %v18201_v51 = vpop.f32.mrf.mxu1 }
 0xe61   :  { %v18301_v24 = vpop.f32.mrf.mxu0  ;;  %v4958_v48 = vadd.f32 %v18200_v8, %v22765_v16 }
 0xe62   :  { %v18202_v58 = vpop.f32.mrf.mxu1  ;;  %v22787_v18 = vadd.f32 %v18300_v15, %v4942_v33 }
 0xe63   :  { %v18203_v38 = vadd.f32 %v18202_v58, %v18201_v51  ;;  %v18302_v6 = vpop.f32.mrf.mxu0 }
 0xe64   :  { %v18303_v40 = vadd.f32 %v18302_v6, %v18301_v24  ;;  %v18204_v49 = vpop.f32.mrf.mxu1 }
 0xe65   :  { %v18304_v11 = vpop.f32.mrf.mxu0  ;;  %v4963_v57 = vadd.f32 %v18203_v38, %v22755_v35 }
 0xe66   :  { %v18205_v31 = vpop.f32.mrf.mxu1  ;;  %v22789_v46 = vadd.f32 %v18303_v40, %v4947_v36 }
 0xe67   :  { %v18206_v54 = vadd.f32 %v18205_v31, %v18204_v49  ;;  %v18305_v26 = vpop.f32.mrf.mxu0 }
 0xe68   :  { %v18306_v17 = vadd.f32 %v18305_v26, %v18304_v11  ;;  %v18207_v3 = vpop.f32.mrf.mxu1 }
 0xe69   :  { %v18307_v12 = vpop.f32.mrf.mxu0  ;;  %v4966_v16 = vadd.f32 %v18206_v54, %v22757_v32 }
 0xe6a   :  { %v18208_v43 = vpop.f32.mrf.mxu1  ;;  %v22792_v1 = vadd.f32 %v18306_v17, %v4950_v53 }
 0xe6b   :  { %v18209_v50 = vadd.f32 %v18208_v43, %v18207_v3  ;;  %v18308_v39 = vpop.f32.mrf.mxu0 }
 0xe6c   :  { %v18309_v56 = vadd.f32 %v18308_v39, %v18307_v12  ;;  %v18210_v9 = vpop.f32.mrf.mxu1 }
 0xe6d   :  { %v18310_v63 = vpop.f32.mrf.mxu0  ;;  %v4971_v35 = vadd.f32 %v18209_v50, %v22747_v45 }
 0xe6e   :  { %v18211_v0 = vpop.f32.mrf.mxu1  ;;  %v22795_v37 = vadd.f32 %v18309_v56, %v4955_v28 }
 0xe6f   :  { %v18212_v27 = vadd.f32 %v18211_v0, %v18210_v9  ;;  %v18311_v42 = vpop.f32.mrf.mxu0 }
 0xe70   :  { %v18312_v2 = vadd.f32 %v18311_v42, %v18310_v63  ;;  %v18213_v60 = vpop.f32.mrf.mxu1 }
 0xe71   :  { %v18313_v33 = vpop.f32.mrf.mxu0  ;;  %v4974_v32 = vadd.f32 %v18212_v27, %v22749_v21 }
 0xe72   :  { %v18214_v15 = vpop.f32.mrf.mxu1  ;;  %v22798_v51 = vadd.f32 %v18312_v2, %v4958_v48 }
 0xe73   :  { %v18215_v24 = vadd.f32 %v18214_v15, %v18213_v60  ;;  %v18314_v58 = vpop.f32.mrf.mxu0 }
 0xe74   :  { %v18315_v55 = vadd.f32 %v18314_v58, %v18313_v33  ;;  %v18216_v6 = vpop.f32.mrf.mxu1 }
 0xe75   :  { %v18316_v36 = vpop.f32.mrf.mxu0  ;;  %v4979_v45 = vadd.f32 %v18215_v24, %v22739_v30 }
 0xe76   :  { %v18217_v40 = vpop.f32.mrf.mxu1  ;;  %v22801_v49 = vadd.f32 %v18315_v55, %v4963_v57 }
 0xe77   :  { %v18218_v11 = vadd.f32 %v18217_v40, %v18216_v6  ;;  %v18317_v31 = vpop.f32.mrf.mxu0 }
 0xe78   :  { %v18318_v8 = vadd.f32 %v18317_v31, %v18316_v36  ;;  %v18219_v26 = vpop.f32.mrf.mxu1 }
 0xe79   :  { %v18319_v53 = vpop.f32.mrf.mxu0  ;;  %v4982_v21 = vadd.f32 %v18218_v11, %v22741_v61 }
 0xe7a   :  { %v18220_v17 = vpop.f32.mrf.mxu1  ;;  %v22804_v3 = vadd.f32 %v18318_v8, %v4966_v16 }
 0xe7b   :  { %v18221_v12 = vadd.f32 %v18220_v17, %v18219_v26  ;;  %v18320_v43 = vpop.f32.mrf.mxu0 }
 0xe7c   :  { %v18321_v38 = vadd.f32 %v18320_v43, %v18319_v53  ;;  %v18222_v39 = vpop.f32.mrf.mxu1 }
 0xe7d   :  { %v18322_v28 = vpop.f32.mrf.mxu0  ;;  %v4987_v30 = vadd.f32 %v18221_v12, %v22731_v25 }
 0xe7e   :  { %v18223_v56 = vpop.f32.mrf.mxu1  ;;  %v22807_v9 = vadd.f32 %v18321_v38, %v4971_v35 }
 0xe7f   :  { %v18224_v63 = vadd.f32 %v18223_v56, %v18222_v39  ;;  %v18323_v0 = vpop.f32.mrf.mxu0 }
 0xe80   :  { %v18324_v54 = vadd.f32 %v18323_v0, %v18322_v28  ;;  %v18225_v42 = vpop.f32.mrf.mxu1 }
 0xe81   :  { %v18325_v48 = vpop.f32.mrf.mxu0  ;;  %v4990_v61 = vadd.f32 %v18224_v63, %v22733_v59 }
 0xe82   :  { %v18226_v2 = vpop.f32.mrf.mxu1  ;;  %v22810_v60 = vadd.f32 %v18324_v54, %v4974_v32 }
 0xe83   :  { %v18227_v33 = vadd.f32 %v18226_v2, %v18225_v42  ;;  %v18326_v15 = vpop.f32.mrf.mxu0 }
 0xe84   :  { %v18327_v50 = vadd.f32 %v18326_v15, %v18325_v48  ;;  %v18228_v58 = vpop.f32.mrf.mxu1  ;;  %v4403_v48 = vpop.permute.xlu1 %4402 }
 0xe85   :  { %v18328_v57 = vpop.f32.mrf.mxu0  ;;  %v4995_v25 = vadd.f32 %v18227_v33, %v4403_v48 }
 0xe86   :  { %v18229_v55 = vpop.f32.mrf.mxu1  ;;  %v22813_v6 = vadd.f32 %v18327_v50, %v4979_v45 }
 0xe87   :  { %v18230_v36 = vadd.f32 %v18229_v55, %v18228_v58  ;;  %v18329_v40 = vpop.f32.mrf.mxu0  ;;  %v4408_v55 = vpop.permute.xlu0 %4407 }
 0xe88   :  { %v18330_v27 = vadd.f32 %v18329_v40, %v18328_v57  ;;  %v18231_v31 = vpop.f32.mrf.mxu1 }
 0xe89   :  { %v18331_v16 = vpop.f32.mrf.mxu0  ;;  %v4998_v59 = vadd.f32 %v18230_v36, %v4408_v55 }
 0xe8a   :  { %v18232_v8 = vpop.f32.mrf.mxu1  ;;  %v22816_v26 = vadd.f32 %v18330_v27, %v4982_v21 }
 0xe8b   :  { %v18233_v53 = vadd.f32 %v18232_v8, %v18231_v31  ;;  %v18332_v17 = vpop.f32.mrf.mxu0 }
 0xe8c   :  { %v18333_v24 = vadd.f32 %v18332_v17, %v18331_v16  ;;  %v18234_v43 = vpop.f32.mrf.mxu1 }
 0xe8d   :  { %v18334_v35 = vpop.f32.mrf.mxu0  ;;  %v5003_v33 = vadd.f32 %v18233_v53, %v22777_v13 }
 0xe8e   :  { %v18235_v38 = vpop.f32.mrf.mxu1  ;;  %v22819_v39 = vadd.f32 %v18333_v24, %v4987_v30 }
 0xe8f   :  { %v18236_v28 = vadd.f32 %v18235_v38, %v18234_v43  ;;  %v18335_v56 = vpop.f32.mrf.mxu0 }
 0xe90   :  { %v18336_v11 = vadd.f32 %v18335_v56, %v18334_v35  ;;  %v18237_v0 = vpop.f32.mrf.mxu1 }
 0xe91   :  { %v18337_v32 = vpop.f32.mrf.mxu0  ;;  %v5006_v36 = vadd.f32 %v18236_v28, %v22779_v20 }
 0xe92   :  { %v18238_v54 = vpop.f32.mrf.mxu1  ;;  %v22822_v42 = vadd.f32 %v18336_v11, %v4990_v61 }
 0xe93   :  { %v18239_v2 = vadd.f32 %v18238_v54, %v18237_v0  ;;  %v18338_v15 = vpop.f32.mrf.mxu0 }
 0xe94   :  { %v18339_v12 = vadd.f32 %v18338_v15, %v18337_v32  ;;  %v18240_v45 = vpop.f32.mrf.mxu1 }
 0xe95   :  { %v18340_v50 = vpop.f32.mrf.mxu0  ;;  %v5011_v53 = vadd.f32 %v18239_v2, %v22773_v23 }
 0xe96   :  { %v18241_v58 = vpop.f32.mrf.mxu1  ;;  %v22824_v57 = vadd.f32 %v18339_v12, %v4995_v25 }
 0xe97   :  { %v18242_v40 = vadd.f32 %v18241_v58, %v18240_v45  ;;  %v18341_v21 = vpop.f32.mrf.mxu0 }
 0xe98   :  { %v18342_v63 = vadd.f32 %v18341_v21, %v18340_v50  ;;  %v18243_v27 = vpop.f32.mrf.mxu1 }
 0xe99   :  { %v18343_v31 = vpop.f32.mrf.mxu0  ;;  %v5014_v28 = vadd.f32 %v18242_v40, %v22775_v44 }
 0xe9a   :  { %v18244_v16 = vpop.f32.mrf.mxu1  ;;  %v22826_v8 = vadd.f32 %v18342_v63, %v4998_v59 }
 0xe9b   :  { %v18245_v17 = vadd.f32 %v18244_v16, %v18243_v27  ;;  %v18344_v30 = vpop.f32.mrf.mxu0 }
 0xe9c   :  { %v18345_v24 = vadd.f32 %v18344_v30, %v18343_v31  ;;  %v18246_v43 = vpop.f32.mrf.mxu1 }
 0xe9d   :  { %v18346_v35 = vpop.f32.mrf.mxu0  ;;  %v5019_v2 = vadd.f32 %v18245_v17, %v22767_v10 }
 0xe9e   :  { %v18247_v38 = vpop.f32.mrf.mxu1  ;;  %v22829_v56 = vadd.f32 %v18345_v24, %v5003_v33 }
 0xe9f   :  { %v22831_v61 = vadd.f32 %v18247_v38, %v18246_v43  ;;  %v18347_v11 = vpop.f32.mrf.mxu0 }
 0xea0   :  { %v18348_v0 = vadd.f32 %v18347_v11, %v18346_v35  ;;  %v18249_v32 = vpop.f32.mrf.mxu1 }
 0xea1   :  { %v18349_v54 = vpop.f32.mrf.mxu0 }
 0xea2   :  { %v18250_v48 = vpop.f32.mrf.mxu1  ;;  %v22834_v15 = vadd.f32 %v18348_v0, %v5006_v36 }
 0xea3   :  { %v22836_v25 = vadd.f32 %v18250_v48, %v18249_v32  ;;  %v18350_v13 = vpop.f32.mrf.mxu0 }
 0xea4   :  { %v18351_v12 = vadd.f32 %v18350_v13, %v18349_v54  ;;  %v18252_v45 = vpop.f32.mrf.mxu1 }
 0xea5   :  { %v18352_v50 = vpop.f32.mrf.mxu0 }
 0xea6   :  { %v18253_v58 = vpop.f32.mrf.mxu1  ;;  %v22839_v55 = vadd.f32 %v18351_v12, %v5011_v53 }
 0xea7   :  { %v22841_v21 = vadd.f32 %v18253_v58, %v18252_v45  ;;  %v18353_v20 = vpop.f32.mrf.mxu0  ;;  %v22871_v45 = vld [vmem:[#allocation39] sm:$0xff]  }
 0xea8   :  { %v18354_v59 = vadd.f32 %v18353_v20, %v18352_v50  ;;  %v18255_v63 = vpop.f32.mrf.mxu1  ;;  %23475 = vst [vmem:[#allocation104_spill] sm:$0xff] %v22871_v45  ;;  %v22873_v50 = vld [vmem:[#allocation40] sm:$0xff]   ;;  %18425 = vmatprep.mubr.msk.bf16.mxu0 %vm5438_vm7, %v22871_v45 }
 0xea9   :  { %v18355_v27 = vpop.f32.mrf.mxu0  ;;  %23476 = vst [vmem:[#allocation106_spill] sm:$0xff] %v22873_v50  ;;  %18445 = vmatprep.mubr.msk.bf16.mxu1 %vm5438_vm7, %v22873_v50 }
 0xeaa   :  { %v18256_v31 = vpop.f32.mrf.mxu1  ;;  %v22844_v16 = vadd.f32 %v18354_v59, %v5014_v28 }
 0xeab   :  { %v22846_v30 = vadd.f32 %v18256_v31, %v18255_v63  ;;  %v18356_v23 = vpop.f32.mrf.mxu0 }
 0xeac   :  { %v18357_v33 = vadd.f32 %v18356_v23, %v18355_v27  ;;  %v18258_v24 = vpop.f32.mrf.mxu1 }
 0xead   :  { %v22853_v11 = vpop.f32.mrf.mxu0 }
 0xeae   :  { %v18259_v43 = vpop.f32.mrf.mxu1  ;;  %v22849_v35 = vadd.f32 %v18357_v33, %v5019_v2 }
 0xeaf   :  { %v22851_v38 = vadd.f32 %v18259_v43, %v18258_v24  ;;  %v22857_v0 = vpop.f32.mrf.mxu0 }
 0xeb0   :  { %v18261_v44 = vpop.f32.mrf.mxu1 }
 0xeb1   :  { %v22861_v10 = vpop.f32.mrf.mxu0 }
 0xeb2   :  { %v18262_v40 = vpop.f32.mrf.mxu1 }
 0xeb3   :  { %v22855_v36 = vadd.f32 %v18262_v40, %v18261_v44  ;;  %v22867_v53 = vpop.f32.mrf.mxu0 }
 0xeb4   :  { %v18264_v32 = vpop.f32.mrf.mxu1 }
 0xeb5   :  { %v22881_v20 = vpop.f32.mrf.mxu0 }
 0xeb6   :  { %v18265_v54 = vpop.f32.mrf.mxu1 }
 0xeb7   :  { %v22859_v48 = vadd.f32 %v18265_v54, %v18264_v32  ;;  %v22885_v31 = vpop.f32.mrf.mxu0 }
 0xeb8   :  { %v22863_v17 = vpop.f32.mrf.mxu1 }
 0xeb9   :  { %v22889_v40 = vpop.f32.mrf.mxu0 }
 0xeba   :  { %v22865_v13 = vpop.f32.mrf.mxu1 }
 0xebc   :  { %v22869_v12 = vpop.f32.mrf.mxu1 }
 0xebe   :  { %v22875_v58 = vpop.f32.mrf.mxu1 }
 0xec0   :  { %v18791_v28 = vpop.f32.mrf.mxu1 }
 0xec1   :  { %v5261_v59 = vadd.f32 %v18791_v28, %v22785_v52 }
 0xec2   :  { %v5252_v63 = vpop.f32.mrf.mxu1 }
 0xec3   :  { %v5253_v27 = vadd.f32 %v5252_v63, %v22781_v22  ;;  %v5381_v24 = vmax.f32 %v5261_v59, 0.0 }
 0xec4   :  { %v18792_v23 = vpop.f32.mrf.mxu1 }
 0xec5   :  { %v5264_v2 = vadd.f32 %v18792_v23, %v22787_v18  ;;  %v5379_v54 = vmax.f32 %v5253_v27, 0.0  ;;  %v22897_v18 = vpop.f32.mrf.mxu0 }
 0xec6   :  { %v5255_v33 = vpop.f32.mrf.mxu1 }
 0xec7   :  { %v5382_v43 = vmax.f32 %v5264_v2, 0.0  ;;  %v5256_v44 = vadd.f32 %v5255_v33, %v22783_v5 }
 0xec8   :  { %v18795_v32 = vpop.f32.mrf.mxu1 }
 0xec9   :  { %v22891_v50 = vpack.c.bf16 %v5382_v43, %v5381_v24  ;;  %v5380_v52 = vmax.f32 %v5256_v44, 0.0  ;;  %v5277_v28 = vadd.f32 %v18795_v32, %v22795_v37  ;;  %v22901_v24 = vpop.f32.mrf.mxu0 }
 0xeca   :  { %v5268_v22 = vpop.f32.mrf.mxu1 }
 0xecb   :  { %v22894_v63 = vpack.c.bf16 %v5380_v52, %v5379_v54  ;;  %v5269_v45 = vadd.f32 %v5268_v22, %v22789_v46  ;;  %v5385_v2 = vmax.f32 %v5277_v28, 0.0 }
 0xecc   :  { %v18796_v59 = vpop.f32.mrf.mxu1 }
 0xecd   :  { %23477 = vst [vmem:[#allocation100_spill] sm:$0xff] %v22894_v63  ;;  %v5280_v23 = vadd.f32 %v18796_v59, %v22798_v51  ;;  %v5383_v44 = vmax.f32 %v5269_v45, 0.0  ;;  %v18371_v51 = vpop.f32.mrf.mxu0 }
 0xece   :  { %v5271_v5 = vpop.f32.mrf.mxu1 }
 0xecf   :  { %v5386_v33 = vmax.f32 %v5280_v23, 0.0  ;;  %v5272_v27 = vadd.f32 %v5271_v5, %v22792_v1  ;;  %v22911_v45 = vpop.f32.mrf.mxu0 }
 0xed0   :  { %v18799_v43 = vpop.f32.mrf.mxu1 }
 0xed1   :  { %v22903_v37 = vpack.c.bf16 %v5386_v33, %v5385_v2  ;;  %v5384_v32 = vmax.f32 %v5272_v27, 0.0  ;;  %v5293_v46 = vadd.f32 %v18799_v43, %v22807_v9  ;;  %v22918_v43 = vpop.f32.mrf.mxu0 }
 0xed2   :  { %v5284_v54 = vpop.f32.mrf.mxu1 }
 0xed3   :  { %v22905_v52 = vpack.c.bf16 %v5384_v32, %v5383_v44  ;;  %v5285_v22 = vadd.f32 %v5284_v54, %v22801_v49  ;;  %v5389_v1 = vmax.f32 %v5293_v46, 0.0 }
 0xed4   :  { %v18800_v59 = vpop.f32.mrf.mxu1 }
 0xed5   :  { %v5296_v28 = vadd.f32 %v18800_v59, %v22810_v60  ;;  %v5387_v33 = vmax.f32 %v5285_v22, 0.0 }
 0xed6   :  { %v5287_v23 = vpop.f32.mrf.mxu1 }
 0xed7   :  { %v5390_v5 = vmax.f32 %v5296_v28, 0.0  ;;  %v5288_v63 = vadd.f32 %v5287_v23, %v22804_v3  ;;  %v22923_v23 = vpop.f32.mrf.mxu0 }
 0xed8   :  { %v18803_v2 = vpop.f32.mrf.mxu1 }
 0xed9   :  { %v22913_v27 = vpack.c.bf16 %v5390_v5, %v5389_v1  ;;  %v5388_v44 = vmax.f32 %v5288_v63, 0.0  ;;  %v5309_v49 = vadd.f32 %v18803_v2, %v22819_v39 }
 0xeda   :  { %v5300_v32 = vpop.f32.mrf.mxu1 }
 0xedb   :  { %v22915_v9 = vpack.c.bf16 %v5388_v44, %v5387_v33  ;;  %v5301_v54 = vadd.f32 %v5300_v32, %v22813_v6  ;;  %v5393_v59 = vmax.f32 %v5309_v49, 0.0 }
 0xedc   :  { %v18804_v60 = vpop.f32.mrf.mxu1 }
 0xedd   :  { %v5312_v46 = vadd.f32 %v18804_v60, %v22822_v42  ;;  %v5391_v1 = vmax.f32 %v5301_v54, 0.0  ;;  %v18377_v42 = vpop.f32.mrf.mxu0 }
 0xede   :  { %v5303_v3 = vpop.f32.mrf.mxu1 }
 0xedf   :  { %v5394_v28 = vmax.f32 %v5312_v46, 0.0  ;;  %v5304_v22 = vadd.f32 %v5303_v3, %v22816_v26  ;;  %v18360_v26 = vadd.f32 %v22857_v0, %v22853_v11 }
 0xee0   :  { %v18807_v63 = vpop.f32.mrf.mxu1 }
 0xee1   :  { %v22925_v5 = vpack.c.bf16 %v5394_v28, %v5393_v59  ;;  %v5392_v33 = vmax.f32 %v5304_v22, 0.0  ;;  %v5325_v39 = vadd.f32 %v18807_v63, %v22829_v56  ;;  %v18379_v59 = vpop.f32.mrf.mxu0  ;;  %v5022_v56 = vadd.f32 %v22831_v61, %v22769_v19 }
 0xee2   :  { %v5316_v2 = vpop.f32.mrf.mxu1  ;;  %v5035_v19 = vadd.f32 %v22846_v30, %v22751_v47  ;;  %v18363_v61 = vadd.f32 %v22867_v53, %v22861_v10 }
 0xee3   :  { %v22928_v44 = vpack.c.bf16 %v5392_v33, %v5391_v1  ;;  %v5317_v6 = vadd.f32 %v5316_v2, %v22824_v57  ;;  %v5397_v46 = vmax.f32 %v5325_v39, 0.0  ;;  %v5183_v2 = vadd.f32 %v18360_v26, %v5022_v56  ;;  %v18380_v11 = vpop.f32.mrf.mxu0 }
 0xee4   :  { %v18808_v32 = vpop.f32.mrf.mxu1 }
 0xee5   :  { %v5328_v49 = vadd.f32 %v18808_v32, %v22834_v15  ;;  %v5395_v22 = vmax.f32 %v5317_v6, 0.0  ;;  %v18382_v47 = vpop.f32.mrf.mxu0 }
 0xee6   :  { %v5319_v60 = vpop.f32.mrf.mxu1 }
 0xee7   :  { %v5398_v54 = vmax.f32 %v5328_v49, 0.0  ;;  %v5320_v3 = vadd.f32 %v5319_v60, %v22826_v8  ;;  %v18369_v8 = vadd.f32 %v22897_v18, %v22889_v40  ;;  %v18372_v49 = vadd.f32 %v18371_v51, %v22901_v24 }
 0xee8   :  { %v18811_v28 = vpop.f32.mrf.mxu1  ;;  %v18366_v40 = vadd.f32 %v22885_v31, %v22881_v20  ;;  %v5030_v51 = vadd.f32 %v22841_v21, %v22761_v34  ;;  %v18272_v20 = vadd.f32 %v22875_v58, %v22869_v12  ;;  %v18383_v31 = vpop.f32.mrf.mxu0  ;;  %v18375_v21 = vadd.f32 %v22918_v43, %v22911_v45 }
 0xee9   :  { %v22937_v63 = vpack.c.bf16 %v5398_v54, %v5397_v46  ;;  %v5396_v57 = vmax.f32 %v5320_v3, 0.0  ;;  %v5341_v15 = vadd.f32 %v18811_v28, %v22849_v35  ;;  %v5027_v46 = vadd.f32 %v22836_v25, %v22759_v7 }
 0xeea   :  { %v5332_v1 = vpop.f32.mrf.mxu1  ;;  %v5196_v24 = vadd.f32 %v18369_v8, %v5035_v19  ;;  %v18381_v28 = vadd.f32 %v18380_v11, %v18379_v59  ;;  %v5054_v12 = vadd.f32 %v18272_v20, %v22737_v29  ;;  %v18378_v58 = vadd.f32 %v18377_v42, %v22923_v23 }
 0xeeb   :  { %v22939_v33 = vpack.c.bf16 %v5396_v57, %v5395_v22  ;;  %v5333_v39 = vadd.f32 %v5332_v1, %v22839_v55  ;;  %v5401_v60 = vmax.f32 %v5341_v15, 0.0  ;;  %v5038_v55 = vadd.f32 %v22851_v38, %v22753_v4 }
 0xeec   :  { %v18812_v0 = vpop.f32.mrf.mxu1  ;;  %v5188_v38 = vadd.f32 %v18363_v61, %v5027_v46  ;;  %v5191_v57 = vadd.f32 %v18366_v40, %v5030_v51  ;;  %v5046_v45 = vadd.f32 %v22859_v48, %v22745_v14  ;;  %v5467_v14 = vsel %vm5438_vm7, %v22925_v5, 0 }
 0xeed   :  { %v5344_v32 = vadd.f32 %v18812_v0, %v5183_v2  ;;  %v5399_v18 = vmax.f32 %v5333_v39, 0.0  ;;  %v5199_v54 = vadd.f32 %v18372_v49, %v5038_v55  ;;  %v5043_v0 = vadd.f32 %v22855_v36, %v22743_v62 }
 0xeee   :  { %v5335_v6 = vpop.f32.mrf.mxu1  ;;  %v5207_v36 = vadd.f32 %v18378_v58, %v5046_v45  ;;  %v5464_v48 = vsel %vm5438_vm7, %v22928_v44, 0  ;;  %v5458_v5 = vsel %vm5438_vm7, %v22915_v9, 0  ;;  %v5452_v9 = vsel %vm5438_vm7, %v22905_v52, 0  ;;  %v23478_v52 = vld [vmem:[#allocation100_spill] sm:$0xff] }
 0xeef   :  { %v5402_v35 = vmax.f32 %v5344_v32, 0.0  ;;  %v5336_v26 = vadd.f32 %v5335_v6, %v22844_v16  ;;  %v18269_v16 = vadd.f32 %v22865_v13, %v22863_v17  ;;  %v18384_v13 = vadd.f32 %v18383_v31, %v18382_v47 }
 0xef0   :  { %v18815_v30 = vpop.f32.mrf.mxu1  ;;  %v5204_v61 = vadd.f32 %v18375_v21, %v5043_v0  ;;  %v5461_v47 = vsel %vm5438_vm7, %v22913_v27, 0  ;;  %v5455_v27 = vsel %vm5438_vm7, %v22903_v37, 0  ;;  %v5449_v37 = vsel %vm5438_vm7, %v22891_v50, 0 }
 0xef1   :  { %v22957_v10 = vpack.c.bf16 %v5402_v35, %v5401_v60  ;;  %v5400_v53 = vmax.f32 %v5336_v26, 0.0  ;;  %v5357_v4 = vadd.f32 %v18815_v30, %v5196_v24  ;;  %v5051_v34 = vadd.f32 %v18269_v16, %v22735_v41  ;;  %v19292_v30 = vld [vmem:[#allocation39 + $0x8] ss:$0 sps:$4 sm:$0xff]  }
 0xef2   :  { %v5348_v7 = vpop.f32.mrf.mxu1  ;;  %v5215_v6 = vadd.f32 %v18384_v13, %v5054_v12  ;;  %v5446_v44 = vsel %vm5438_vm7, %v23478_v52, 0 }
 0xef3   :  { %v22963_v25 = vpack.c.bf16 %v5400_v53, %v5399_v18  ;;  %v5349_v56 = vadd.f32 %v5348_v7, %v5188_v38  ;;  %v5405_v1 = vmax.f32 %v5357_v4, 0.0  ;;  %v5212_v41 = vadd.f32 %v18381_v28, %v5051_v34  ;;  %v19293_v18 = vld [vmem:[#allocation40 + $0x8] ss:$0 sps:$4 sm:$0xff]  }
 0xef4   :  { %v18816_v3 = vpop.f32.mrf.mxu1 }
 0xef5   :  { %v5360_v22 = vadd.f32 %v18816_v3, %v5199_v54  ;;  %v5403_v11 = vmax.f32 %v5349_v56, 0.0 }
 0xef6   :  { %v5351_v17 = vpop.f32.mrf.mxu1 }
 0xef7   :  { %v5406_v15 = vmax.f32 %v5360_v22, 0.0  ;;  %v5352_v2 = vadd.f32 %v5351_v17, %v5191_v57 }
 0xef8   :  { %v18819_v59 = vpop.f32.mrf.mxu1 }
 0xef9   :  { %v5424_v8 = vpack.c.bf16 %v5406_v15, %v5405_v1  ;;  %v5404_v39 = vmax.f32 %v5352_v2, 0.0  ;;  %v5373_v19 = vadd.f32 %v18819_v59, %v5212_v41 }
 0xefa   :  { %v5364_v43 = vpop.f32.mrf.mxu1 }
 0xefb   :  { %v5423_v32 = vpack.c.bf16 %v5404_v39, %v5403_v11  ;;  %v5365_v60 = vadd.f32 %v5364_v43, %v5204_v61  ;;  %v5409_v35 = vmax.f32 %v5373_v19, 0.0 }
 0xefc   :  { %v18820_v49 = vpop.f32.mrf.mxu1 }
 0xefd   :  { %v5376_v62 = vadd.f32 %v18820_v49, %v5215_v6  ;;  %v5407_v26 = vmax.f32 %v5365_v60, 0.0 }
 0xefe   :  { %v5367_v29 = vpop.f32.mrf.mxu1 }
 0xeff   :  { %v5410_v23 = vmax.f32 %v5376_v62, 0.0  ;;  %v5368_v42 = vadd.f32 %v5367_v29, %v5207_v36 }
 0xf01   :  { %v5426_v46 = vpack.c.bf16 %v5410_v23, %v5409_v35  ;;  %v5408_v55 = vmax.f32 %v5368_v42, 0.0 }
 0xf03   :  { %v5425_v40 = vpack.c.bf16 %v5408_v55, %v5407_v26  ;;  %18853 = vmatprep.subr.msk.bf16.mxu0 %vm5438_vm7, %v5426_v46  ;;  %18861 = vmatprep.subr.msk.bf16.mxu1 %vm5438_vm7, %v5426_v46 }
 0xf04   :  { %18410 = vmatpush3.bf16.xpose.msra.mxu0 %v5467_v14  ;;  %18430 = vmatpush3.bf16.xpose.msra.mxu1 %v5467_v14 }
 0xf05   :  { %18854 = vmatprep.subr.msk.bf16.mxu0 %vm5438_vm7, %v5425_v40  ;;  %18862 = vmatprep.subr.msk.bf16.mxu1 %vm5438_vm7, %v5425_v40 }
 0xf0c   :  { %18412 = vmatpush3.bf16.xpose.msra.mxu0 %v5464_v48  ;;  %18432 = vmatpush3.bf16.xpose.msra.mxu1 %v5464_v48 }
 0xf0d   :  { %18855 = vmatprep.subr.msk.bf16.mxu0 %vm5438_vm7, %v5424_v8  ;;  %18863 = vmatprep.subr.msk.bf16.mxu1 %vm5438_vm7, %v5424_v8 }
 0xf14   :  { %18414 = vmatpush3.bf16.xpose.msra.mxu0 %v5461_v47  ;;  %18434 = vmatpush3.bf16.xpose.msra.mxu1 %v5461_v47 }
 0xf15   :  { %18856 = vmatprep.subr.msk.bf16.mxu0 %vm5438_vm7, %v5423_v32  ;;  %18864 = vmatprep.subr.msk.bf16.mxu1 %vm5438_vm7, %v5423_v32 }
 0xf1c   :  { %18416 = vmatpush3.bf16.xpose.msra.mxu0 %v5458_v5  ;;  %18436 = vmatpush3.bf16.xpose.msra.mxu1 %v5458_v5 }
 0xf1d   :  { %18857 = vmatprep.subr.msk.bf16.mxu0 %vm5438_vm7, %v22957_v10  ;;  %18865 = vmatprep.subr.msk.bf16.mxu1 %vm5438_vm7, %v22957_v10  ;;  %v23479_v10 = vld [vmem:[#allocation104_spill] sm:$0xff] }
 0xf24   :  { %18418 = vmatpush3.bf16.xpose.msra.mxu0 %v5455_v27  ;;  %18438 = vmatpush3.bf16.xpose.msra.mxu1 %v5455_v27 }
 0xf25   :  { %18858 = vmatprep.subr.msk.bf16.mxu0 %vm5438_vm7, %v22963_v25  ;;  %18866 = vmatprep.subr.msk.bf16.mxu1 %vm5438_vm7, %v22963_v25 }
 0xf2c   :  { %18420 = vmatpush3.bf16.xpose.msra.mxu0 %v5452_v9  ;;  %18440 = vmatpush3.bf16.xpose.msra.mxu1 %v5452_v9 }
 0xf2d   :  { %18859 = vmatprep.subr.msk.bf16.mxu0 %vm5438_vm7, %v22937_v63  ;;  %18867 = vmatprep.subr.msk.bf16.mxu1 %vm5438_vm7, %v22937_v63  ;;  %v23480_v63 = vld [vmem:[#allocation106_spill] sm:$0xff] }
 0xf34   :  { %18422 = vmatpush3.bf16.xpose.msra.mxu0 %v5449_v37  ;;  %18442 = vmatpush3.bf16.xpose.msra.mxu1 %v5449_v37 }
 0xf35   :  { %18860 = vmatprep.subr.msk.bf16.mxu0 %vm5438_vm7, %v22939_v33  ;;  %18868 = vmatprep.subr.msk.bf16.mxu1 %vm5438_vm7, %v22939_v33 }
 0xf3c   :  { %18424 = vmatpush3.bf16.xpose.msra.mxu0 %v5446_v44  ;;  %18444 = vmatpush3.bf16.xpose.msra.mxu1 %v5446_v44 }
 0xf43   :  { %18426 = vmatmul.mubr.msk.bf16.vlgmr.msra.gmra.mxu0 %vm5438_vm7, %v23479_v10  ;;  %18446 = vmatmul.mubr.msk.bf16.vlgmr.msra.gmra.mxu1 %vm5438_vm7, %v23480_v63 }
 0xf44   :  { %18427 = vmatprep.mubr.msk.bf16.mxu0 %vm5438_vm7, %v19292_v30  ;;  %18447 = vmatprep.mubr.msk.bf16.mxu1 %vm5438_vm7, %v19293_v18 }
 0xf4b   :  { %18428 = vmatmul.mubr.msk.bf16.gmra.mxu0 %vm5438_vm7, %v19292_v30  ;;  %18448 = vmatmul.mubr.msk.bf16.gmra.mxu1 %vm5438_vm7, %v19293_v18 }
 0xf4c   :  { %21492 = shalt.err (!%p21489_p10)  }
 0xf4d   :  { %s23481_s20 = sld [smem:[#allocation86_spill]]  ;;  %s21501_s2 = scalar_lea.vmem %s409_s1, 40960 }
 0xf4e   :  { %p21502_p11 = scmp.ne.s32.totalorder %s409_s1, %s21501_s2  ;;  %p21506_p12 = scmp.lt.s32.totalorder %s409_s1, %s409_s1 }
 0xf4f   :  { %p21507_p13 = scmp.lt.s32.totalorder %s21501_s2, %s21501_s2 }
 0xf51   :  { %p21508_p0 = por %p21507_p13, %p21506_p12 }
 0xf53   :  { %399 = dma.hbm_to_vmem [thread:$0]  %s23481_s20, 20480, %s397_s17, [#allocation16] }
 0xf54   :  { %p21509_p1 = pnand %p21508_p0, %p21502_p11 }
 0xf56   :  { %21512 = shalt.err (!%p21509_p1)  }
 0xf57   :  { %s23482_s0 = sld [smem:[#allocation87_spill]]  ;;  %s21678_s29 = smov [#allocation14]  }
 0xf58   :  { %s420_s7 = sshll.u32 %s21678_s29, 4  ;;  %s21679_s10 = smov [#allocation15]   ;;  %s421_s7 = int_to_ptr.vmem [resolvable:$true] %s420_s7 }
 0xf59   :  { %s432_s8 = sshll.u32 %s21679_s10, 4  ;;  %s21521_s19 = scalar_lea.vmem %s421_s7, 81920  ;;  %s433_s8 = int_to_ptr.vmem [resolvable:$true] %s432_s8 }
 0xf5a   :  { %p21522_p2 = scmp.ne.s32.totalorder %s421_s7, %s21521_s19  ;;  %p21526_p3 = scmp.lt.s32.totalorder %s421_s7, %s421_s7 }
 0xf5b   :  { %p21527_p4 = scmp.lt.s32.totalorder %s21521_s19, %s21521_s19 }
 0xf5d   :  { %411 = dma.hbm_to_vmem [thread:$0]  %s23482_s0, 40960, %s409_s1, [#allocation16 + $0x1] }
 0xf5e   :  { %p21528_p5 = por %p21527_p4, %p21526_p3 }
 0xf60   :  { %p21529_p6 = pnand %p21528_p5, %p21522_p2 }
 0xf62   :  { %21532 = shalt.err (!%p21529_p6)  }
 0xf63   :  { %s23483_s13 = sld [smem:[#allocation88_spill]]  ;;  %s21541_s25 = scalar_lea.vmem %s433_s8, 16384 }
 0xf64   :  { %p21542_p7 = scmp.ne.s32.totalorder %s433_s8, %s21541_s25  ;;  %p21546_p8 = scmp.lt.s32.totalorder %s433_s8, %s433_s8 }
 0xf65   :  { %p21547_p9 = scmp.lt.s32.totalorder %s21541_s25, %s21541_s25 }
 0xf67   :  { %p21548_p10 = por %p21547_p9, %p21546_p8 }
 0xf69   :  { %423 = dma.hbm_to_vmem [thread:$0]  %s23483_s13, 81920, %s421_s7, [#allocation16 + $0x2] }
 0xf6a   :  { %p21549_p11 = pnand %p21548_p10, %p21542_p7 }
 0xf6c   :  { %21552 = shalt.err (!%p21549_p11)  }
 0xf6d   :  { %s23484_s12 = sld [smem:[#allocation89_spill]] }
 0xf73   :  { %435 = dma.hbm_to_vmem [thread:$0]  %s23484_s12, 16384, %s433_s8, [#allocation16 + $0x3] }
0x1003   :  { %v5527_v50 = vpop.f32.mrf.mxu0  ;;  %v5595_v33 = vpop.f32.mrf.mxu1 }
0x1004   :  { %v5612_v53 = vmax.f32 %v5527_v50, %v5595_v33 }
0x1005   :  { %v5529_v24 = vpop.f32.mrf.mxu0  ;;  %v5597_v51 = vpop.f32.mrf.mxu1 }
0x1006   :  { %5618 = vst [vmem:[#allocation9 + $0x28] sm:$0xff] %v5612_v53  ;;  %v5613_v16 = vmax.f32 %v5529_v24, %v5597_v51 }
0x1007   :  { %v5531_v7 = vpop.f32.mrf.mxu0  ;;  %v5599_v25 = vpop.f32.mrf.mxu1 }
0x1008   :  { %5619 = vst [vmem:[#allocation9 + $0x10] sm:$0xff] %v5613_v16  ;;  %v5614_v4 = vmax.f32 %v5531_v7, %v5599_v25 }
0x1009   :  { %v5533_v38 = vpop.f32.mrf.mxu0  ;;  %v5601_v54 = vpop.f32.mrf.mxu1 }
0x100a   :  { %5620 = vst [vmem:[#allocation9 + $0x8] sm:$0xff] %v5614_v4  ;;  %v5615_v20 = vmax.f32 %v5533_v38, %v5601_v54 }
0x100b   :  { %v5537_v31 = vpop.f32.mrf.mxu0  ;;  %v5605_v3 = vpop.f32.mrf.mxu1 }
0x100c   :  { %5621 = vst [vmem:[#allocation9] sm:$0xff] %v5615_v20  ;;  %v5616_v28 = vmax.f32 %v5537_v31, %v5605_v3 }
0x100d   :  { %v5539_v56 = vpop.f32.mrf.mxu0  ;;  %v5607_v22 = vpop.f32.mrf.mxu1 }
0x100e   :  { %5622 = vst [vmem:[#allocation9 + $0x18] sm:$0xff] %v5616_v28  ;;  %v5617_v57 = vmax.f32 %v5539_v56, %v5607_v22 }
0x100f   :  { %v5541_v34 = vpop.f32.mrf.mxu0  ;;  %v5609_v21 = vpop.f32.mrf.mxu1 }
0x1010   :  { %5623 = vst [vmem:[#allocation9 + $0x20] sm:$0xff] %v5617_v57 }
0x1011   :  { %v5542_v17 = vpop.f32.mrf.mxu0  ;;  %v5610_v13 = vpop.f32.mrf.mxu1 }
0x1012   :  { %21593 = dma.done.wait [#allocation16], 20480 }
0x1013   :  { %21594 = vsyncadd [#allocation16], 4294946816  ;;  %v19294_v1 = vld [vmem:[#allocation12 + $0x74] ss:$8 sps:$4 sm:$0xff]   ;;  %v19296_v15 = vld [vmem:[#allocation12 + $0x70] ss:$8 sps:$4 sm:$0xff]  }
0x1014   :  { %6727 = vmatprep.subr.bf16.mxu0 %v19294_v1  ;;  %v19297_v2 = vld [vmem:[#allocation12 + $0x174] ss:$8 sps:$4 sm:$0xff]   ;;  %v19299_v0 = vld [vmem:[#allocation12 + $0x170] ss:$8 sps:$4 sm:$0xff]   ;;  %v19300_v12 = vld [vmem:[#allocation12 + $0x64] ss:$8 sps:$4 sm:$0xff]  }
0x1015   :  { %6728 = vmatpush1.bf16.msra.mxu0 %v19296_v15  ;;  %v19302_v58 = vld [vmem:[#allocation12 + $0x60] ss:$8 sps:$4 sm:$0xff]   ;;  %6778 = vmatprep.subr.bf16.mxu1 %v19297_v2  ;;  %v19303_v59 = vld [vmem:[#allocation12 + $0x164] ss:$8 sps:$4 sm:$0xff]   ;;  %v19306_v8 = vld [vmem:[#allocation12 + $0x54] ss:$8 sps:$4 sm:$0xff]  }
0x1016   :  { %6779 = vmatpush1.bf16.msra.mxu1 %v19299_v0  ;;  %6729 = vmatprep.subr.bf16.mxu0 %v19300_v12  ;;  %v19305_v11 = vld [vmem:[#allocation12 + $0x160] ss:$8 sps:$4 sm:$0xff]   ;;  %v19308_v39 = vld [vmem:[#allocation12 + $0x50] ss:$8 sps:$4 sm:$0xff]   ;;  %v19309_v41 = vld [vmem:[#allocation12 + $0x154] ss:$8 sps:$4 sm:$0xff]  }
0x1017   :  { %6780 = vmatprep.subr.bf16.mxu1 %v19303_v59  ;;  %v19312_v45 = vld [vmem:[#allocation12 + $0x44] ss:$8 sps:$4 sm:$0xff]   ;;  %v19311_v43 = vld [vmem:[#allocation12 + $0x150] ss:$8 sps:$4 sm:$0xff]   ;;  %v19314_v19 = vld [vmem:[#allocation12 + $0x40] ss:$8 sps:$4 sm:$0xff]  }
0x1018   :  { %v19315_v32 = vld [vmem:[#allocation12 + $0x144] ss:$8 sps:$4 sm:$0xff]   ;;  %v19318_v61 = vld [vmem:[#allocation12 + $0x34] ss:$8 sps:$4 sm:$0xff]   ;;  %v19317_v6 = vld [vmem:[#allocation12 + $0x140] ss:$8 sps:$4 sm:$0xff]  }
0x1019   :  { %6730 = vmatpush1.bf16.msra.mxu0 %v19302_v58  ;;  %v19321_v49 = vld [vmem:[#allocation12 + $0x134] ss:$8 sps:$4 sm:$0xff]   ;;  %v19320_v60 = vld [vmem:[#allocation12 + $0x30] ss:$8 sps:$4 sm:$0xff]   ;;  %v19324_v62 = vld [vmem:[#allocation12 + $0x24] ss:$8 sps:$4 sm:$0xff]  }
0x101a   :  { %6731 = vmatprep.subr.bf16.mxu0 %v19306_v8  ;;  %6781 = vmatpush1.bf16.msra.mxu1 %v19305_v11  ;;  %v19323_v36 = vld [vmem:[#allocation12 + $0x130] ss:$8 sps:$4 sm:$0xff]   ;;  %v19327_v29 = vld [vmem:[#allocation12 + $0x124] ss:$8 sps:$4 sm:$0xff]   ;;  %v19326_v35 = vld [vmem:[#allocation12 + $0x20] ss:$8 sps:$4 sm:$0xff]  }
0x101b   :  { %6782 = vmatprep.subr.bf16.mxu1 %v19309_v41  ;;  %v19330_v23 = vld [vmem:[#allocation12 + $0x14] ss:$8 sps:$4 sm:$0xff]   ;;  %v19329_v42 = vld [vmem:[#allocation12 + $0x120] ss:$8 sps:$4 sm:$0xff]   ;;  %v19332_v46 = vld [vmem:[#allocation12 + $0x10] ss:$8 sps:$4 sm:$0xff]  }
0x101c   :  { %v19333_v26 = vld [vmem:[#allocation12 + $0x114] ss:$8 sps:$4 sm:$0xff]   ;;  %v19336_v55 = vld [vmem:[#allocation12 + $0x4] ss:$8 sps:$4 sm:$0xff]   ;;  %v19335_v40 = vld [vmem:[#allocation12 + $0x110] ss:$8 sps:$4 sm:$0xff]  }
0x101d   :  { %6732 = vmatpush1.bf16.msra.mxu0 %v19308_v39  ;;  %v19339_v14 = vld [vmem:[#allocation12 + $0x104] ss:$8 sps:$4 sm:$0xff]   ;;  %v19338_v48 = vld [vmem:[#allocation12] ss:$8 sps:$4 sm:$0xff]   ;;  %v19342_v47 = vld [vmem:[#allocation12 + $0xf4] ss:$8 sps:$4 sm:$0xff]  }
0x101e   :  { %6733 = vmatprep.subr.bf16.mxu0 %v19312_v45  ;;  %6783 = vmatpush1.bf16.msra.mxu1 %v19311_v43  ;;  %v19341_v5 = vld [vmem:[#allocation12 + $0x100] ss:$8 sps:$4 sm:$0xff]   ;;  %v19345_v27 = vld [vmem:[#allocation12 + $0x1f4] ss:$8 sps:$4 sm:$0xff]   ;;  %v19344_v9 = vld [vmem:[#allocation12 + $0xf0] ss:$8 sps:$4 sm:$0xff]  }
0x101f   :  { %6784 = vmatprep.subr.bf16.mxu1 %v19315_v32  ;;  %v19348_v37 = vld [vmem:[#allocation12 + $0xe4] ss:$8 sps:$4 sm:$0xff]   ;;  %v19347_v52 = vld [vmem:[#allocation12 + $0x1f0] ss:$8 sps:$4 sm:$0xff]   ;;  %v19350_v30 = vld [vmem:[#allocation12 + $0xe0] ss:$8 sps:$4 sm:$0xff]  }
0x1020   :  { %v19351_v44 = vld [vmem:[#allocation12 + $0x1e4] ss:$8 sps:$4 sm:$0xff]   ;;  %v19354_v18 = vld [vmem:[#allocation12 + $0xd4] ss:$8 sps:$4 sm:$0xff]   ;;  %v19353_v10 = vld [vmem:[#allocation12 + $0x1e0] ss:$8 sps:$4 sm:$0xff]  }
0x1021   :  { %6734 = vmatpush1.bf16.msra.mxu0 %v19314_v19  ;;  %v19357_v63 = vld [vmem:[#allocation12 + $0x1d4] ss:$8 sps:$4 sm:$0xff]   ;;  %v19356_v50 = vld [vmem:[#allocation12 + $0xd0] ss:$8 sps:$4 sm:$0xff]   ;;  %v19360_v33 = vld [vmem:[#allocation12 + $0xc4] ss:$8 sps:$4 sm:$0xff]  }
0x1022   :  { %6735 = vmatprep.subr.bf16.mxu0 %v19318_v61  ;;  %6785 = vmatpush1.bf16.msra.mxu1 %v19317_v6  ;;  %v19359_v53 = vld [vmem:[#allocation12 + $0x1d0] ss:$8 sps:$4 sm:$0xff]   ;;  %v19363_v24 = vld [vmem:[#allocation12 + $0x1c4] ss:$8 sps:$4 sm:$0xff]   ;;  %v19362_v7 = vld [vmem:[#allocation12 + $0xc0] ss:$8 sps:$4 sm:$0xff]  }
0x1023   :  { %6786 = vmatprep.subr.bf16.mxu1 %v19321_v49  ;;  %v5629_v51 = vld [vmem:[#allocation9 + $0x10] sm:$0xff]  ;;  %v23028_v16 = vld [vmem:[#allocation9] sm:$0xff]  ;;  %vm5656_vm8 = vcmask 1046528   ;;  %v23037_v58 = vld [vmem:[#allocation9 + $0x8] sm:$0xff]  ;;  %vm5677_vm10 = vcmask 1045504   ;;  %vm5698_vm11 = vcmask 1044480  }
0x1024   :  { %v5736_v25 = vpack.c.bf16 %v23028_v16, %v5629_v51  ;;  %v19366_v4 = vld [vmem:[#allocation12 + $0xb4] ss:$8 sps:$4 sm:$0xff]   ;;  %v5661_v38 = vrot.slane %v23028_v16, 1  ;;  %v19365_v54 = vld [vmem:[#allocation12 + $0x1c0] ss:$8 sps:$4 sm:$0xff]   ;;  %v5658_v43 = vrot.slane %v23037_v58, 1 }
0x1025   :  { %6736 = vmatpush1.bf16.msra.mxu0 %v19320_v60  ;;  %v5635_v20 = vld [vmem:[#allocation9 + $0x10] sm:$0xfe]  ;;  %v5637_v31 = vld [vmem:[#allocation9 + $0x20] sm:$0x1f]  ;;  %v5634_v59 = vld [vmem:[#allocation9 + $0x28] sm:$0xfe] }
0x1026   :  { %6737 = vmatprep.subr.bf16.mxu0 %v19324_v62  ;;  %6787 = vmatpush1.bf16.msra.mxu1 %v19323_v36  ;;  %v19368_v3 = vld [vmem:[#allocation12 + $0xb0] ss:$8 sps:$4 sm:$0xff]   ;;  %v19369_v28 = vld [vmem:[#allocation12 + $0x1b4] ss:$8 sps:$4 sm:$0xff]   ;;  %v5660_v56 = vrot.slane %v5635_v20, 1  ;;  %v23032_v22 = vrot.slane %v5637_v31, 1 }
0x1027   :  { %6788 = vmatprep.subr.bf16.mxu1 %v19327_v29  ;;  %6759 = vmatprep.mubr.bf16.mxu0 %v5736_v25  ;;  %v19372_v57 = vld [vmem:[#allocation12 + $0xa4] ss:$8 sps:$4 sm:$0xff]   ;;  %v19371_v17 = vld [vmem:[#allocation12 + $0x1b0] ss:$8 sps:$4 sm:$0xff]   ;;  %v19374_v1 = vld [vmem:[#allocation12 + $0xa0] ss:$8 sps:$4 sm:$0xff]  }
0x1028   :  { %v5662_v34 = vsel %vm5656_vm8, %v5660_v56, %v5661_v38  ;;  %v5666_v21 = vsel %vm5656_vm8, %v5661_v38, %v23032_v22  ;;  %v19375_v15 = vld [vmem:[#allocation12 + $0x1a4] ss:$8 sps:$4 sm:$0xff]   ;;  %v19377_v2 = vld [vmem:[#allocation12 + $0x1a0] ss:$8 sps:$4 sm:$0xff]   ;;  %v19378_v0 = vld [vmem:[#allocation12 + $0x94] ss:$8 sps:$4 sm:$0xff]  }
0x1029   :  { %6738 = vmatpush1.bf16.msra.mxu0 %v19326_v35  ;;  %v5738_v13 = vpack.c.bf16 %v5666_v21, %v5662_v34  ;;  %v19381_v12 = vld [vmem:[#allocation12 + $0x194] ss:$8 sps:$4 sm:$0xff]   ;;  %v19380_v8 = vld [vmem:[#allocation12 + $0x90] ss:$8 sps:$4 sm:$0xff]   ;;  %v19384_v39 = vld [vmem:[#allocation12 + $0x84] ss:$8 sps:$4 sm:$0xff]  }
0x102a   :  { %6739 = vmatprep.subr.bf16.mxu0 %v19330_v23  ;;  %6789 = vmatpush1.bf16.msra.mxu1 %v19329_v42  ;;  %v5636_v11 = vld [vmem:[#allocation9 + $0x18] sm:$0x1f]  ;;  %v5657_v45 = vrot.slane %v5634_v59, 1  ;;  %v19386_v19 = vld [vmem:[#allocation12 + $0x80] ss:$8 sps:$4 sm:$0xff]   ;;  %v5682_v56 = vrot.slane %v23028_v16, 2 }
0x102b   :  { %6790 = vmatprep.subr.bf16.mxu1 %v19333_v26  ;;  %6810 = vmatprep.mubr.bf16.mxu1 %v5738_v13  ;;  %v19383_v41 = vld [vmem:[#allocation12 + $0x190] ss:$8 sps:$4 sm:$0xff]   ;;  %v5663_v32 = vrot.slane %v5636_v11, 1  ;;  %v19387_v61 = vld [vmem:[#allocation12 + $0x184] ss:$8 sps:$4 sm:$0xff]  }
0x102c   :  { %v5628_v6 = vld [vmem:[#allocation9 + $0x28] sm:$0xff]  ;;  %v19392_v49 = vld [vmem:[#allocation12 + $0x274] ss:$8 sps:$4 sm:$0xff]   ;;  %v5659_v62 = vsel %vm5656_vm8, %v5657_v45, %v5658_v43  ;;  %v19390_v23 = vld [vmem:[#allocation12 + $0x270] ss:$8 sps:$4 sm:$0xff]  }
0x102d   :  { %6740 = vmatpush1.bf16.msra.mxu0 %v19332_v46  ;;  %v19389_v60 = vld [vmem:[#allocation12 + $0x180] ss:$8 sps:$4 sm:$0xff]   ;;  %v5664_v36 = vsel %vm5656_vm8, %v5658_v43, %v5663_v32  ;;  %v5735_v29 = vpack.c.bf16 %v23037_v58, %v5628_v6  ;;  %v19395_v35 = vld [vmem:[#allocation12 + $0x374] ss:$8 sps:$4 sm:$0xff]   ;;  %v19398_v26 = vld [vmem:[#allocation12 + $0x264] ss:$8 sps:$4 sm:$0xff]  }
0x102e   :  { %6741 = vmatprep.subr.bf16.mxu0 %v19336_v55  ;;  %6791 = vmatpush1.bf16.msra.mxu1 %v19335_v40  ;;  %v5737_v42 = vpack.c.bf16 %v5664_v36, %v5659_v62  ;;  %v19393_v46 = vld [vmem:[#allocation12 + $0x370] ss:$8 sps:$4 sm:$0xff]   ;;  %v5748_v55 = vpack.c.bf16 %v23032_v22, %v23032_v22  ;;  %v19401_v40 = vld [vmem:[#allocation12 + $0x364] ss:$8 sps:$4 sm:$0xff]   ;;  %v19420_v38 = vld [vmem:[#allocation12 + $0x220] ss:$8 sps:$4 sm:$0xff]  }
0x102f   :  { %6792 = vmatprep.subr.bf16.mxu1 %v19339_v14  ;;  %v19396_v14 = vld [vmem:[#allocation12 + $0x260] ss:$8 sps:$4 sm:$0xff]   ;;  %v5632_v51 = vld [vmem:[#allocation9 + $0x18] sm:$0xf]  ;;  %v19431_v31 = vld [vmem:[#allocation12 + $0x314] ss:$8 sps:$4 sm:$0xff]  }
0x1030   :  { %v5745_v25 = vpack.c.bf16 %v5632_v51, %v5632_v51  ;;  %v19423_v20 = vld [vmem:[#allocation12 + $0x320] ss:$8 sps:$4 sm:$0xff]   ;;  %v19429_v22 = vld [vmem:[#allocation12 + $0x310] ss:$8 sps:$4 sm:$0xff]   ;;  %v19437_v21 = vld [vmem:[#allocation12 + $0x304] ss:$8 sps:$4 sm:$0xff]  }
0x1031   :  { %6742 = vmatpush1.bf16.msra.mxu0 %v19338_v48  ;;  %v19404_v48 = vld [vmem:[#allocation12 + $0x254] ss:$8 sps:$4 sm:$0xff]   ;;  %v5641_v34 = vld [vmem:[#allocation9 + $0x20] sm:$0x3f] }
0x1032   :  { %6743 = vmatprep.subr.bf16.mxu0 %v19342_v47  ;;  %6793 = vmatpush1.bf16.msra.mxu1 %v19341_v5  ;;  %v19399_v47 = vld [vmem:[#allocation12 + $0x360] ss:$8 sps:$4 sm:$0xff]   ;;  %v19407_v5 = vld [vmem:[#allocation12 + $0x354] ss:$8 sps:$4 sm:$0xff]   ;;  %v23046_v13 = vrot.slane %v5641_v34, 2 }
0x1033   :  { %6794 = vmatprep.subr.bf16.mxu1 %v19345_v27  ;;  %v19402_v27 = vld [vmem:[#allocation12 + $0x250] ss:$8 sps:$4 sm:$0xff]   ;;  %v5645_v11 = vld [vmem:[#allocation9 + $0x20] sm:$0x7f]  ;;  %v19443_v43 = vld [vmem:[#allocation12 + $0x3f4] ss:$8 sps:$4 sm:$0xff]  }
0x1034   :  { %v5643_v59 = vld [vmem:[#allocation9 + $0x10] sm:$0xf8]  ;;  %v23052_v45 = vrot.slane %v5645_v11, 3  ;;  %v19446_v6 = vld [vmem:[#allocation12 + $0x2e4] ss:$8 sps:$4 sm:$0xff]  }
0x1035   :  { %6744 = vmatpush2.bf16.msra.mxu0 %v19344_v9  ;;  %v19410_v9 = vld [vmem:[#allocation12 + $0x244] ss:$8 sps:$4 sm:$0xff]   ;;  %v19444_v36 = vld [vmem:[#allocation12 + $0x2e0] ss:$8 sps:$4 sm:$0xff]  }
0x1036   :  { %6745 = vmatprep.subr.bf16.mxu0 %v19348_v37  ;;  %6795 = vmatpush2.bf16.msra.mxu1 %v19347_v52  ;;  %v5747_v37 = vpack.c.bf16 %v5663_v32, %v5663_v32  ;;  %v19405_v52 = vld [vmem:[#allocation12 + $0x350] ss:$8 sps:$4 sm:$0xff]   ;;  %v19449_v62 = vld [vmem:[#allocation12 + $0x3e4] ss:$8 sps:$4 sm:$0xff]  }
0x1037   :  { %6796 = vmatprep.subr.bf16.mxu1 %v19351_v44  ;;  %v19413_v44 = vld [vmem:[#allocation12 + $0x344] ss:$8 sps:$4 sm:$0xff]   ;;  %v19438_v32 = vld [vmem:[#allocation12 + $0x2f0] ss:$8 sps:$4 sm:$0xff]  }
0x1039   :  { %6746 = vmatpush2.bf16.msra.mxu0 %v19350_v30  ;;  %v19408_v30 = vld [vmem:[#allocation12 + $0x240] ss:$8 sps:$4 sm:$0xff]  }
0x103a   :  { %6747 = vmatprep.subr.bf16.mxu0 %v19354_v18  ;;  %6797 = vmatpush2.bf16.msra.mxu1 %v19353_v10  ;;  %v19416_v18 = vld [vmem:[#allocation12 + $0x234] ss:$8 sps:$4 sm:$0xff]   ;;  %v19411_v10 = vld [vmem:[#allocation12 + $0x340] ss:$8 sps:$4 sm:$0xff]  }
0x103b   :  { %6798 = vmatprep.subr.bf16.mxu1 %v19357_v63  ;;  %v19414_v63 = vld [vmem:[#allocation12 + $0x230] ss:$8 sps:$4 sm:$0xff]  }
0x103d   :  { %6748 = vmatpush2.bf16.msra.mxu0 %v19356_v50  ;;  %v19419_v50 = vld [vmem:[#allocation12 + $0x334] ss:$8 sps:$4 sm:$0xff]  }
0x103e   :  { %6749 = vmatprep.subr.bf16.mxu0 %v19360_v33  ;;  %6799 = vmatpush2.bf16.msra.mxu1 %v19359_v53  ;;  %v5633_v33 = vld [vmem:[#allocation9 + $0x20] sm:$0xf]  ;;  %v19422_v53 = vld [vmem:[#allocation12 + $0x224] ss:$8 sps:$4 sm:$0xff]  }
0x103f   :  { %6800 = vmatprep.subr.bf16.mxu1 %v19363_v24  ;;  %v5746_v24 = vpack.c.bf16 %v5633_v33, %v5633_v33  ;;  %v5644_v33 = vld [vmem:[#allocation9 + $0x18] sm:$0x7f] }
0x1041   :  { %6750 = vmatpush2.bf16.msra.mxu0 %v19362_v7  ;;  %v19417_v7 = vld [vmem:[#allocation12 + $0x330] ss:$8 sps:$4 sm:$0xff]  }
0x1042   :  { %6751 = vmatprep.subr.bf16.mxu0 %v19366_v4  ;;  %6801 = vmatpush2.bf16.msra.mxu1 %v19365_v54  ;;  %v19425_v4 = vld [vmem:[#allocation12 + $0x324] ss:$8 sps:$4 sm:$0xff]   ;;  %v19428_v54 = vld [vmem:[#allocation12 + $0x214] ss:$8 sps:$4 sm:$0xff]  }
0x1043   :  { %6802 = vmatprep.subr.bf16.mxu1 %v19369_v28  ;;  %v19434_v28 = vld [vmem:[#allocation12 + $0x204] ss:$8 sps:$4 sm:$0xff]  }
0x1045   :  { %6752 = vmatpush2.bf16.msra.mxu0 %v19368_v3  ;;  %v19426_v3 = vld [vmem:[#allocation12 + $0x210] ss:$8 sps:$4 sm:$0xff]  }
0x1046   :  { %6753 = vmatprep.subr.bf16.mxu0 %v19372_v57  ;;  %6803 = vmatpush2.bf16.msra.mxu1 %v19371_v17  ;;  %v5639_v57 = vld [vmem:[#allocation9 + $0x10] sm:$0xfc] }
0x1047   :  { %6804 = vmatprep.subr.bf16.mxu1 %v19375_v15  ;;  %v5681_v17 = vrot.slane %v5639_v57, 2  ;;  %v5703_v15 = vrot.slane %v23028_v16, 3  ;;  %v19483_v57 = vld [vmem:[#allocation12 + $0x380] ss:$8 sps:$4 sm:$0xff]  }
0x1049   :  { %6754 = vmatpush2.bf16.msra.mxu0 %v19374_v1  ;;  %v19432_v1 = vld [vmem:[#allocation12 + $0x200] ss:$8 sps:$4 sm:$0xff]  }
0x104a   :  { %6755 = vmatprep.subr.bf16.mxu0 %v19378_v0  ;;  %6805 = vmatpush2.bf16.msra.mxu1 %v19377_v2  ;;  %v19440_v2 = vld [vmem:[#allocation12 + $0x2f4] ss:$8 sps:$4 sm:$0xff]   ;;  %v5683_v0 = vsel %vm5677_vm10, %v5681_v17, %v5682_v56 }
0x104b   :  { %6806 = vmatprep.subr.bf16.mxu1 %v19381_v12  ;;  %v5687_v12 = vsel %vm5677_vm10, %v5682_v56, %v23046_v13  ;;  %v5647_v17 = vld [vmem:[#allocation9 + $0x10] sm:$0xf0] }
0x104c   :  { %v5722_v11 = vrot.slane %v5647_v17, 4 }
0x104d   :  { %6756 = vmatpush2.bf16.msra.mxu0 %v19380_v8  ;;  %v19435_v8 = vld [vmem:[#allocation12 + $0x300] ss:$8 sps:$4 sm:$0xff]  }
0x104e   :  { %6757 = vmatprep.subr.bf16.mxu0 %v19384_v39  ;;  %6807 = vmatpush2.bf16.msra.mxu1 %v19383_v41  ;;  %v5740_v39 = vpack.c.bf16 %v5687_v12, %v5683_v0  ;;  %v5702_v41 = vrot.slane %v5643_v59, 3  ;;  %v5750_v0 = vpack.c.bf16 %v23046_v13, %v23046_v13  ;;  %v19491_v59 = vld [vmem:[#allocation12 + $0x464] ss:$8 sps:$4 sm:$0xff]  }
0x104f   :  { %6808 = vmatprep.subr.bf16.mxu1 %v19387_v61  ;;  %v5708_v61 = vsel %vm5698_vm11, %v5703_v15, %v23052_v45 }
0x1051   :  { %6758 = vmatpush2.bf16.msra.mxu0 %v19386_v19  ;;  %v5704_v19 = vsel %vm5698_vm11, %v5702_v41, %v5703_v15  ;;  %v5752_v41 = vpack.c.bf16 %v23052_v45, %v23052_v45  ;;  %v19497_v45 = vld [vmem:[#allocation12 + $0x444] ss:$8 sps:$4 sm:$0xff]  }
0x1052   :  { %6829 = vmatprep.subr.bf16.mxu0 %v19392_v49  ;;  %6809 = vmatpush2.bf16.msra.mxu1 %v19389_v60  ;;  %v5742_v49 = vpack.c.bf16 %v5708_v61, %v5704_v19  ;;  %v19441_v60 = vld [vmem:[#allocation12 + $0x3f0] ss:$8 sps:$4 sm:$0xff]  }
0x1053   :  { %6880 = vmatprep.subr.bf16.mxu1 %v19395_v35  ;;  %v19447_v35 = vld [vmem:[#allocation12 + $0x3e0] ss:$8 sps:$4 sm:$0xff]   ;;  %v19492_v61 = vld [vmem:[#allocation12 + $0x450] ss:$8 sps:$4 sm:$0xff]  }
0x1054   :  { %6760 = vmatmul.mubr.bf16.vlgmr.msra.gmra.mxu0 %v5735_v29  ;;  %v19452_v29 = vld [vmem:[#allocation12 + $0x2d4] ss:$8 sps:$4 sm:$0xff]  }
0x1055   :  { %6830 = vmatpush1.bf16.msra.mxu0 %v19390_v23  ;;  %6811 = vmatmul.mubr.bf16.vlgmr.msra.gmra.mxu1 %v5737_v42  ;;  %v19455_v23 = vld [vmem:[#allocation12 + $0x3d4] ss:$8 sps:$4 sm:$0xff]   ;;  %v19450_v42 = vld [vmem:[#allocation12 + $0x2d0] ss:$8 sps:$4 sm:$0xff]  }
0x1056   :  { %6831 = vmatprep.subr.bf16.mxu0 %v19398_v26  ;;  %6881 = vmatpush1.bf16.msra.mxu1 %v19393_v46  ;;  %v19458_v26 = vld [vmem:[#allocation12 + $0x2c4] ss:$8 sps:$4 sm:$0xff]   ;;  %v19453_v46 = vld [vmem:[#allocation12 + $0x3d0] ss:$8 sps:$4 sm:$0xff]  }
0x1057   :  { %6820 = vmatprep.mubr.bf16.mxu1 %v5748_v55  ;;  %6882 = vmatprep.subr.bf16.mxu1 %v19401_v40  ;;  %v19461_v55 = vld [vmem:[#allocation12 + $0x3c4] ss:$8 sps:$4 sm:$0xff]   ;;  %v19456_v40 = vld [vmem:[#allocation12 + $0x2c0] ss:$8 sps:$4 sm:$0xff]  }
0x1058   :  { %6769 = vmatprep.mubr.bf16.mxu0 %v5746_v24  ;;  %v19474_v24 = vld [vmem:[#allocation12 + $0x290] ss:$8 sps:$4 sm:$0xff]  }
0x1059   :  { %6832 = vmatpush1.bf16.msra.mxu0 %v19396_v14  ;;  %v19464_v14 = vld [vmem:[#allocation12 + $0x2b4] ss:$8 sps:$4 sm:$0xff]  }
0x105a   :  { %6833 = vmatprep.subr.bf16.mxu0 %v19404_v48  ;;  %6883 = vmatpush1.bf16.msra.mxu1 %v19399_v47  ;;  %v19459_v48 = vld [vmem:[#allocation12 + $0x3c0] ss:$8 sps:$4 sm:$0xff]   ;;  %v19467_v47 = vld [vmem:[#allocation12 + $0x3b4] ss:$8 sps:$4 sm:$0xff]  }
0x105b   :  { %6884 = vmatprep.subr.bf16.mxu1 %v19407_v5  ;;  %v19462_v5 = vld [vmem:[#allocation12 + $0x2b0] ss:$8 sps:$4 sm:$0xff]  }
0x105c   :  { %6770 = vmatmul.mubr.bf16.gmra.mxu0 %v5745_v25  ;;  %v19482_v25 = vld [vmem:[#allocation12 + $0x284] ss:$8 sps:$4 sm:$0xff]  }
0x105d   :  { %6834 = vmatpush1.bf16.msra.mxu0 %v19402_v27  ;;  %6821 = vmatmul.mubr.bf16.gmra.mxu1 %v5747_v37  ;;  %v19470_v27 = vld [vmem:[#allocation12 + $0x2a4] ss:$8 sps:$4 sm:$0xff]  }
0x105e   :  { %6835 = vmatprep.subr.bf16.mxu0 %v19410_v9  ;;  %6885 = vmatpush1.bf16.msra.mxu1 %v19405_v52  ;;  %v19465_v9 = vld [vmem:[#allocation12 + $0x3b0] ss:$8 sps:$4 sm:$0xff]   ;;  %v19473_v37 = vld [vmem:[#allocation12 + $0x3a4] ss:$8 sps:$4 sm:$0xff]   ;;  %v19468_v52 = vld [vmem:[#allocation12 + $0x2a0] ss:$8 sps:$4 sm:$0xff]  }
0x105f   :  { %6886 = vmatprep.subr.bf16.mxu1 %v19413_v44  ;;  %6861 = vmatprep.mubr.bf16.mxu0 %v5740_v39  ;;  %v19476_v44 = vld [vmem:[#allocation12 + $0x294] ss:$8 sps:$4 sm:$0xff]  }
0x1060   :  { %6912 = vmatprep.mubr.bf16.mxu1 %v5742_v49 }
0x1061   :  { %6836 = vmatpush1.bf16.msra.mxu0 %v19408_v30  ;;  %v5638_v30 = vld [vmem:[#allocation9 + $0x28] sm:$0xfc] }
0x1062   :  { %6837 = vmatprep.subr.bf16.mxu0 %v19416_v18  ;;  %6887 = vmatpush1.bf16.msra.mxu1 %v19411_v10  ;;  %v5640_v18 = vld [vmem:[#allocation9 + $0x18] sm:$0x3f]  ;;  %v19471_v10 = vld [vmem:[#allocation12 + $0x3a0] ss:$8 sps:$4 sm:$0xff]   ;;  %v5678_v51 = vrot.slane %v5638_v30, 2 }
0x1063   :  { %6888 = vmatprep.subr.bf16.mxu1 %v19419_v50  ;;  %v5642_v50 = vld [vmem:[#allocation9 + $0x28] sm:$0xf8] }
0x1064   :  { %v19525_v30 = vld [vmem:[#allocation12 + $0x4a0] ss:$8 sps:$4 sm:$0xff]  }
0x1065   :  { %6838 = vmatpush1.bf16.msra.mxu0 %v19414_v63  ;;  %v19479_v63 = vld [vmem:[#allocation12 + $0x394] ss:$8 sps:$4 sm:$0xff]  }
0x1066   :  { %6839 = vmatprep.subr.bf16.mxu0 %v19422_v53  ;;  %6889 = vmatpush1.bf16.msra.mxu1 %v19417_v7  ;;  %v5679_v53 = vrot.slane %v23037_v58, 2  ;;  %v5684_v7 = vrot.slane %v5640_v18, 2  ;;  %v19530_v18 = vld [vmem:[#allocation12 + $0x494] ss:$8 sps:$4 sm:$0xff]  }
0x1067   :  { %6890 = vmatprep.subr.bf16.mxu1 %v19425_v4  ;;  %v5700_v4 = vrot.slane %v23037_v58, 3 }
0x1068   :  { %v5685_v56 = vsel %vm5677_vm10, %v5679_v53, %v5684_v7 }
0x1069   :  { %6840 = vmatpush1.bf16.msra.mxu0 %v19420_v38  ;;  %v19477_v38 = vld [vmem:[#allocation12 + $0x390] ss:$8 sps:$4 sm:$0xff]  }
0x106a   :  { %6841 = vmatprep.subr.bf16.mxu0 %v19428_v54  ;;  %6891 = vmatpush1.bf16.msra.mxu1 %v19423_v20  ;;  %v5699_v54 = vrot.slane %v5642_v50, 3  ;;  %v5705_v20 = vrot.slane %v5644_v33, 3  ;;  %v19528_v50 = vld [vmem:[#allocation12 + $0x490] ss:$8 sps:$4 sm:$0xff]  }
0x106b   :  { %6892 = vmatprep.subr.bf16.mxu1 %v19431_v31  ;;  %v19485_v31 = vld [vmem:[#allocation12 + $0x384] ss:$8 sps:$4 sm:$0xff]  }
0x106c   :  { %v5701_v34 = vsel %vm5698_vm11, %v5699_v54, %v5700_v4  ;;  %v5751_v49 = vpack.c.bf16 %v5705_v20, %v5705_v20 }
0x106d   :  { %6842 = vmatpush1.bf16.msra.mxu0 %v19426_v3  ;;  %v19480_v3 = vld [vmem:[#allocation12 + $0x280] ss:$8 sps:$4 sm:$0xff]  }
0x106e   :  { %6843 = vmatprep.subr.bf16.mxu0 %v19434_v28  ;;  %6893 = vmatpush1.bf16.msra.mxu1 %v19429_v22  ;;  %v5680_v28 = vsel %vm5677_vm10, %v5678_v51, %v5679_v53  ;;  %v19488_v22 = vld [vmem:[#allocation12 + $0x474] ss:$8 sps:$4 sm:$0xff]   ;;  %v5720_v53 = vrot.slane %v23037_v58, 4  ;;  %v19533_v51 = vld [vmem:[#allocation12 + $0x484] ss:$8 sps:$4 sm:$0xff]   ;;  %v5917_v58 = vlaneseq }
0x106f   :  { %6894 = vmatprep.subr.bf16.mxu1 %v19437_v21  ;;  %v5706_v21 = vsel %vm5698_vm11, %v5700_v4, %v5705_v20  ;;  %v5739_v15 = vpack.c.bf16 %v5685_v56, %v5680_v28  ;;  %v5915_v28 = vld [vmem:[#allocation31] sm:$0x3] }
0x1070   :  { %v5741_v12 = vpack.c.bf16 %v5706_v21, %v5701_v34 }
0x1071   :  { %6844 = vmatpush1.bf16.msra.mxu0 %v19432_v1  ;;  %v5649_v1 = vld [vmem:[#allocation9 + $0x20] sm:$0xff] }
0x1072   :  { %6845 = vmatprep.subr.bf16.mxu0 %v19440_v2  ;;  %6895 = vmatpush1.bf16.msra.mxu1 %v19435_v8  ;;  %v19486_v2 = vld [vmem:[#allocation12 + $0x470] ss:$8 sps:$4 sm:$0xff]   ;;  %v5723_v8 = vrot.slane %v23028_v16, 4  ;;  %v23066_v39 = vrot.slane %v5649_v1, 4  ;;  %v5749_v16 = vpack.c.bf16 %v5684_v7, %v5684_v7  ;;  %v19531_v7 = vld [vmem:[#allocation12 + $0x480] ss:$8 sps:$4 sm:$0xff]  }
0x1073   :  { %6896 = vmatprep.subr.bf16.mxu1 %v19443_v43  ;;  %v19489_v43 = vld [vmem:[#allocation12 + $0x460] ss:$8 sps:$4 sm:$0xff]  }
0x1074   :  { %v5724_v13 = vsel %vm605_vm2, %v5722_v11, %v5723_v8  ;;  %v5728_v19 = vsel %vm605_vm2, %v5723_v8, %v23066_v39  ;;  %v5754_v54 = vpack.c.bf16 %v23066_v39, %v23066_v39 }
0x1075   :  { %6846 = vmatpush2.bf16.msra.mxu0 %v19438_v32  ;;  %v19494_v32 = vld [vmem:[#allocation12 + $0x454] ss:$8 sps:$4 sm:$0xff]  }
0x1076   :  { %6847 = vmatprep.subr.bf16.mxu0 %v19446_v6  ;;  %6897 = vmatpush2.bf16.msra.mxu1 %v19441_v60  ;;  %v5744_v6 = vpack.c.bf16 %v5728_v19, %v5724_v13  ;;  %v19495_v60 = vld [vmem:[#allocation12 + $0x440] ss:$8 sps:$4 sm:$0xff]  }
0x1077   :  { %6898 = vmatprep.subr.bf16.mxu1 %v19449_v62  ;;  %v19500_v62 = vld [vmem:[#allocation12 + $0x434] ss:$8 sps:$4 sm:$0xff]  }
0x1079   :  { %6848 = vmatpush2.bf16.msra.mxu0 %v19444_v36  ;;  %v19498_v36 = vld [vmem:[#allocation12 + $0x430] ss:$8 sps:$4 sm:$0xff]  }
0x107a   :  { %6849 = vmatprep.subr.bf16.mxu0 %v19452_v29  ;;  %6899 = vmatpush2.bf16.msra.mxu1 %v19447_v35  ;;  %v19503_v29 = vld [vmem:[#allocation12 + $0x424] ss:$8 sps:$4 sm:$0xff]   ;;  %v19501_v35 = vld [vmem:[#allocation12 + $0x420] ss:$8 sps:$4 sm:$0xff]  }
0x107b   :  { %6900 = vmatprep.subr.bf16.mxu1 %v19455_v23  ;;  %v19506_v23 = vld [vmem:[#allocation12 + $0x414] ss:$8 sps:$4 sm:$0xff]  }
0x107d   :  { %6850 = vmatpush2.bf16.msra.mxu0 %v19450_v42  ;;  %v19504_v42 = vld [vmem:[#allocation12 + $0x410] ss:$8 sps:$4 sm:$0xff]  }
0x107e   :  { %6851 = vmatprep.subr.bf16.mxu0 %v19458_v26  ;;  %6901 = vmatpush2.bf16.msra.mxu1 %v19453_v46  ;;  %v19509_v26 = vld [vmem:[#allocation12 + $0x404] ss:$8 sps:$4 sm:$0xff]   ;;  %v19507_v46 = vld [vmem:[#allocation12 + $0x400] ss:$8 sps:$4 sm:$0xff]  }
0x107f   :  { %6902 = vmatprep.subr.bf16.mxu1 %v19461_v55  ;;  %v19512_v55 = vld [vmem:[#allocation12 + $0x4f4] ss:$8 sps:$4 sm:$0xff]  }
0x1081   :  { %6852 = vmatpush2.bf16.msra.mxu0 %v19456_v40  ;;  %v19510_v40 = vld [vmem:[#allocation12 + $0x4f0] ss:$8 sps:$4 sm:$0xff]  }
0x1082   :  { %6853 = vmatprep.subr.bf16.mxu0 %v19464_v14  ;;  %6903 = vmatpush2.bf16.msra.mxu1 %v19459_v48  ;;  %v19515_v14 = vld [vmem:[#allocation12 + $0x4e4] ss:$8 sps:$4 sm:$0xff]   ;;  %v19513_v48 = vld [vmem:[#allocation12 + $0x4e0] ss:$8 sps:$4 sm:$0xff]  }
0x1083   :  { %6904 = vmatprep.subr.bf16.mxu1 %v19467_v47  ;;  %v19518_v47 = vld [vmem:[#allocation12 + $0x4d4] ss:$8 sps:$4 sm:$0xff]  }
0x1085   :  { %6854 = vmatpush2.bf16.msra.mxu0 %v19462_v5  ;;  %v19516_v5 = vld [vmem:[#allocation12 + $0x4d0] ss:$8 sps:$4 sm:$0xff]  }
0x1086   :  { %6855 = vmatprep.subr.bf16.mxu0 %v19470_v27  ;;  %6905 = vmatpush2.bf16.msra.mxu1 %v19465_v9  ;;  %v19521_v27 = vld [vmem:[#allocation12 + $0x4c4] ss:$8 sps:$4 sm:$0xff]   ;;  %v19519_v9 = vld [vmem:[#allocation12 + $0x4c0] ss:$8 sps:$4 sm:$0xff]  }
0x1087   :  { %6906 = vmatprep.subr.bf16.mxu1 %v19473_v37  ;;  %v19524_v37 = vld [vmem:[#allocation12 + $0x4b4] ss:$8 sps:$4 sm:$0xff]  }
0x1089   :  { %6856 = vmatpush2.bf16.msra.mxu0 %v19468_v52  ;;  %v19522_v52 = vld [vmem:[#allocation12 + $0x4b0] ss:$8 sps:$4 sm:$0xff]  }
0x108a   :  { %6857 = vmatprep.subr.bf16.mxu0 %v19476_v44  ;;  %6907 = vmatpush2.bf16.msra.mxu1 %v19471_v10  ;;  %v19527_v44 = vld [vmem:[#allocation12 + $0x4a4] ss:$8 sps:$4 sm:$0xff]  }
0x108b   :  { %6908 = vmatprep.subr.bf16.mxu1 %v19479_v63  ;;  %v5646_v10 = vld [vmem:[#allocation9 + $0x28] sm:$0xf0]  ;;  %v5648_v63 = vld [vmem:[#allocation9 + $0x18] sm:$0xff] }
0x108c   :  { %v5719_v33 = vrot.slane %v5646_v10, 4 }
0x108d   :  { %6858 = vmatpush2.bf16.msra.mxu0 %v19474_v24  ;;  %v5725_v24 = vrot.slane %v5648_v63, 4 }
0x108e   :  { %6859 = vmatprep.subr.bf16.mxu0 %v19482_v25  ;;  %6909 = vmatpush2.bf16.msra.mxu1 %v19477_v38  ;;  %v5721_v25 = vsel %vm605_vm2, %v5719_v33, %v5720_v53 }
0x108f   :  { %6910 = vmatprep.subr.bf16.mxu1 %v19485_v31  ;;  %v5726_v4 = vsel %vm605_vm2, %v5720_v53, %v5725_v24  ;;  %v5753_v20 = vpack.c.bf16 %v5725_v24, %v5725_v24  ;;  %v23078_v31 = vshrl.u32 %v5917_v58, 7 }
0x1090   :  { %v5743_v38 = vpack.c.bf16 %v5726_v4, %v5721_v25 }
0x1091   :  { %6860 = vmatpush2.bf16.msra.mxu0 %v19480_v3  ;;  %v23081_v3 = vsub.s32 0, %v23078_v31  ;;  %v23084_v56 = vsub.s32 1, %v23078_v31 }
0x1092   :  { %6931 = vmatprep.subr.bf16.mxu0 %v19488_v22  ;;  %6911 = vmatpush2.bf16.msra.mxu1 %v19483_v57 }
0x1093   :  { %v5920_v22 = vrot.slane %v5915_v28, %v23081_v3  ;;  %v5924_v57 = vrot.slane %v5915_v28, %v23084_v56 }
0x1094   :  { %6862 = vmatmul.mubr.bf16.vlgmr.msra.gmra.mxu0 %v5739_v15 }
0x1095   :  { %6932 = vmatpush1.bf16.msra.mxu0 %v19486_v2  ;;  %6871 = vmatprep.mubr.bf16.mxu0 %v5750_v0 }
0x1096   :  { %6913 = vmatmul.mubr.bf16.vlgmr.msra.gmra.mxu1 %v5741_v12  ;;  %6933 = vmatprep.subr.bf16.mxu0 %v19491_v59 }
0x1097   :  { %6922 = vmatprep.mubr.bf16.mxu1 %v5752_v41 }
0x1099   :  { %6934 = vmatpush1.bf16.msra.mxu0 %v19489_v43 }
0x109a   :  { %6935 = vmatprep.subr.bf16.mxu0 %v19494_v32 }
0x109c   :  { %6872 = vmatmul.mubr.bf16.gmra.mxu0 %v5749_v16 }
0x109d   :  { %6936 = vmatpush1.bf16.msra.mxu0 %v19492_v61  ;;  %6963 = vmatprep.mubr.bf16.mxu0 %v5744_v6 }
0x109e   :  { %6923 = vmatmul.mubr.bf16.gmra.mxu1 %v5751_v49  ;;  %6937 = vmatprep.subr.bf16.mxu0 %v19497_v45 }
0x10a1   :  { %6938 = vmatpush1.bf16.msra.mxu0 %v19495_v60 }
0x10a2   :  { %6939 = vmatprep.subr.bf16.mxu0 %v19500_v62 }
0x10a5   :  { %6940 = vmatpush1.bf16.msra.mxu0 %v19498_v36 }
0x10a6   :  { %6941 = vmatprep.subr.bf16.mxu0 %v19503_v29 }
0x10a9   :  { %6942 = vmatpush1.bf16.msra.mxu0 %v19501_v35 }
0x10aa   :  { %6943 = vmatprep.subr.bf16.mxu0 %v19506_v23 }
0x10ad   :  { %6944 = vmatpush1.bf16.msra.mxu0 %v19504_v42 }
0x10ae   :  { %6945 = vmatprep.subr.bf16.mxu0 %v19509_v26 }
0x10b1   :  { %6946 = vmatpush1.bf16.msra.mxu0 %v19507_v46 }
0x10b2   :  { %6947 = vmatprep.subr.bf16.mxu0 %v19512_v55 }
0x10b5   :  { %6948 = vmatpush2.bf16.msra.mxu0 %v19510_v40 }
0x10b6   :  { %6949 = vmatprep.subr.bf16.mxu0 %v19515_v14 }
0x10b9   :  { %6950 = vmatpush2.bf16.msra.mxu0 %v19513_v48 }
0x10ba   :  { %6951 = vmatprep.subr.bf16.mxu0 %v19518_v47 }
0x10bd   :  { %6952 = vmatpush2.bf16.msra.mxu0 %v19516_v5 }
0x10be   :  { %6953 = vmatprep.subr.bf16.mxu0 %v19521_v27 }
0x10c1   :  { %6954 = vmatpush2.bf16.msra.mxu0 %v19519_v9 }
0x10c2   :  { %6955 = vmatprep.subr.bf16.mxu0 %v19524_v37 }
0x10c5   :  { %6956 = vmatpush2.bf16.msra.mxu0 %v19522_v52 }
0x10c6   :  { %6957 = vmatprep.subr.bf16.mxu0 %v19527_v44 }
0x10c9   :  { %6958 = vmatpush2.bf16.msra.mxu0 %v19525_v30 }
0x10ca   :  { %6959 = vmatprep.subr.bf16.mxu0 %v19530_v18 }
0x10cd   :  { %6960 = vmatpush2.bf16.msra.mxu0 %v19528_v50 }
0x10ce   :  { %6961 = vmatprep.subr.bf16.mxu0 %v19533_v51 }
0x10d1   :  { %6962 = vmatpush2.bf16.msra.mxu0 %v19531_v7 }
0x10d4   :  { %6964 = vmatmul.mubr.bf16.vlgmr.msra.gmra.mxu0 %v5743_v38 }
0x10d5   :  { %6973 = vmatprep.mubr.bf16.mxu0 %v5754_v54 }
0x10dc   :  { %6974 = vmatmul.mubr.bf16.gmra.mxu0 %v5753_v20 }
0x1114   :  { %v6761_v34 = vpop.f32.mrf.mxu0 }
0x1115   :  { %v6762_v21 = vadd.f32 %v6761_v34, %v5920_v22  ;;  %v6812_v1 = vpop.f32.mrf.mxu1 }
0x1116   :  { %v6763_v17 = vpop.f32.mrf.mxu0 }
0x1117   :  { %v6764_v15 = vadd.f32 %v6763_v17, %v5924_v57  ;;  %v6813_v2 = vadd.f32 %v6812_v1, %v6762_v21  ;;  %v6814_v12 = vpop.f32.mrf.mxu1 }
0x1118   :  { %v6765_v0 = vpop.f32.mrf.mxu0 }
0x1119   :  { %v6766_v59 = vadd.f32 %v6765_v0, %v5920_v22  ;;  %v6815_v11 = vadd.f32 %v6814_v12, %v6764_v15  ;;  %v6816_v39 = vpop.f32.mrf.mxu1 }
0x111a   :  { %v6767_v8 = vpop.f32.mrf.mxu0 }
0x111b   :  { %v6768_v41 = vadd.f32 %v6767_v8, %v5924_v57  ;;  %v6817_v43 = vadd.f32 %v6816_v39, %v6766_v59  ;;  %v6818_v32 = vpop.f32.mrf.mxu1 }
0x111c   :  { %v6771_v49 = vpop.f32.mrf.mxu0 }
0x111d   :  { %v6819_v13 = vadd.f32 %v6818_v32, %v6768_v41  ;;  %v6822_v19 = vpop.f32.mrf.mxu1  ;;  %v6772_v45 = vadd.f32 %v6771_v49, %v5920_v22 }
0x111e   :  { %v6773_v60 = vpop.f32.mrf.mxu0 }
0x111f   :  { %v6824_v16 = vpop.f32.mrf.mxu1  ;;  %v6774_v62 = vadd.f32 %v6773_v60, %v5924_v57  ;;  %v6823_v36 = vadd.f32 %v6822_v19, %v6772_v45 }
0x1120   :  { %v6775_v29 = vpop.f32.mrf.mxu0 }
0x1121   :  { %v6826_v61 = vpop.f32.mrf.mxu1  ;;  %v6825_v35 = vadd.f32 %v6824_v16, %v6774_v62 }
0x1122   :  { %v6776_v23 = vpop.f32.mrf.mxu0 }
0x1123   :  { %v6827_v6 = vpop.f32.mrf.mxu1 }
0x1154   :  { %v6863_v42 = vpop.f32.mrf.mxu0 }
0x1155   :  { %v6864_v10 = vadd.f32 %v6863_v42, %v6813_v2 }
0x1156   :  { %v6865_v26 = vpop.f32.mrf.mxu0  ;;  %v6914_v46 = vpop.f32.mrf.mxu1 }
0x1157   :  { %v6866_v63 = vadd.f32 %v6865_v26, %v6815_v11  ;;  %v6915_v50 = vadd.f32 %v6914_v46, %v6864_v10 }
0x1158   :  { %v6867_v55 = vpop.f32.mrf.mxu0  ;;  %v6916_v40 = vpop.f32.mrf.mxu1 }
0x1159   :  { %v6868_v33 = vadd.f32 %v6867_v55, %v6817_v43  ;;  %v6917_v24 = vadd.f32 %v6916_v40, %v6866_v63 }
0x115a   :  { %v6869_v14 = vpop.f32.mrf.mxu0  ;;  %v6918_v48 = vpop.f32.mrf.mxu1 }
0x115b   :  { %v6870_v51 = vadd.f32 %v6869_v14, %v6819_v13  ;;  %v6919_v4 = vadd.f32 %v6918_v48, %v6868_v33 }
0x115c   :  { %v6873_v47 = vpop.f32.mrf.mxu0  ;;  %v6920_v5 = vpop.f32.mrf.mxu1 }
0x115d   :  { %v6874_v38 = vadd.f32 %v6873_v47, %v6823_v36  ;;  %v6921_v28 = vadd.f32 %v6920_v5, %v6870_v51 }
0x115e   :  { %v6875_v27 = vpop.f32.mrf.mxu0  ;;  %v6924_v9 = vpop.f32.mrf.mxu1 }
0x115f   :  { %v6876_v22 = vadd.f32 %v6875_v27, %v6825_v35  ;;  %v6925_v17 = vadd.f32 %v6924_v9, %v6874_v38 }
0x1160   :  { %v6926_v37 = vpop.f32.mrf.mxu1  ;;  %v6877_v52 = vpop.f32.mrf.mxu0 }
0x1161   :  { %v6927_v0 = vadd.f32 %v6926_v37, %v6876_v22 }
0x1162   :  { %v6878_v44 = vpop.f32.mrf.mxu0  ;;  %v6928_v30 = vpop.f32.mrf.mxu1 }
0x1164   :  { %v6929_v18 = vpop.f32.mrf.mxu1 }
0x1194   :  { %v6965_v53 = vpop.f32.mrf.mxu0 }
0x1195   :  { %v6966_v7 = vadd.f32 %v6965_v53, %v6915_v50 }
0x1196   :  { %v6967_v25 = vpop.f32.mrf.mxu0 }
0x1197   :  { %v6982_v54 = vmax.f32 %v6966_v7, 0.0  ;;  %v6968_v20 = vadd.f32 %v6967_v25, %v6917_v24 }
0x1198   :  { %v6969_v58 = vpop.f32.mrf.mxu0 }
0x1199   :  { %6988 = vst [vmem:[#allocation10] sm:$0xff] %v6982_v54  ;;  %v6983_v57 = vmax.f32 %v6968_v20, 0.0  ;;  %v6970_v34 = vadd.f32 %v6969_v58, %v6919_v4 }
0x119a   :  { %v6971_v21 = vpop.f32.mrf.mxu0 }
0x119b   :  { %6989 = vst [vmem:[#allocation10 + $0x8] sm:$0xff] %v6983_v57  ;;  %v6984_v1 = vmax.f32 %v6970_v34, 0.0  ;;  %v6972_v15 = vadd.f32 %v6971_v21, %v6921_v28 }
0x119c   :  { %v6975_v2 = vpop.f32.mrf.mxu0 }
0x119d   :  { %6990 = vst [vmem:[#allocation10 + $0x20] sm:$0xff] %v6984_v1  ;;  %v6985_v12 = vmax.f32 %v6972_v15, 0.0  ;;  %v6976_v59 = vadd.f32 %v6975_v2, %v6925_v17 }
0x119e   :  { %v6977_v11 = vpop.f32.mrf.mxu0 }
0x119f   :  { %6991 = vst [vmem:[#allocation10 + $0x18] sm:$0xff] %v6985_v12  ;;  %v6986_v8 = vmax.f32 %v6976_v59, 0.0  ;;  %v6978_v39 = vadd.f32 %v6977_v11, %v6927_v0 }
0x11a0   :  { %v6979_v41 = vpop.f32.mrf.mxu0 }
0x11a1   :  { %6992 = vst [vmem:[#allocation10 + $0x28] sm:$0xf] %v6986_v8  ;;  %v6987_v43 = vmax.f32 %v6978_v39, 0.0 }
0x11a2   :  { %v6980_v32 = vpop.f32.mrf.mxu0 }
0x11a3   :  { %6993 = vst [vmem:[#allocation10 + $0x10] sm:$0xf] %v6987_v43 }
0x11a4   :  { %21595 = dma.done.wait [#allocation16 + $0x1], 40960 }
0x11a5   :  { %21596 = vsyncadd [#allocation16 + $0x1], 4294926336  ;;  %v19534_v13 = vld [vmem:[#allocation13 + $0xe4] ss:$16 sps:$4 sm:$0xff]   ;;  %v19538_v16 = vld [vmem:[#allocation13 + $0xe0] ss:$16 sps:$4 sm:$0xff]  }
0x11a6   :  { %v19536_v19 = vld [vmem:[#allocation13 + $0x2e4] ss:$16 sps:$4 sm:$0xff]   ;;  %9043 = vmatprep.subr.bf16.mxu1 %v19534_v13  ;;  %v19539_v61 = vld [vmem:[#allocation13 + $0x2e0] ss:$16 sps:$4 sm:$0xff]   ;;  %v6998_v21 = vld [vmem:[#allocation10 + $0x8] sm:$0xff] }
0x11a7   :  { %9086 = vmatprep.subr.bf16.mxu0 %v19536_v19  ;;  %v19540_v6 = vld [vmem:[#allocation13 + $0xc4] ss:$16 sps:$4 sm:$0xff]   ;;  %9044 = vmatpush1.bf16.msra.mxu1 %v19538_v16  ;;  %v19544_v45 = vld [vmem:[#allocation13 + $0xc0] ss:$16 sps:$4 sm:$0xff]   ;;  %v23088_v17 = vld [vmem:[#allocation10 + $0x18] sm:$0xff] }
0x11a8   :  { %9087 = vmatpush1.bf16.msra.mxu0 %v19539_v61  ;;  %v19542_v49 = vld [vmem:[#allocation13 + $0x2c4] ss:$16 sps:$4 sm:$0xff]   ;;  %9045 = vmatprep.subr.bf16.mxu1 %v19540_v6  ;;  %v19545_v60 = vld [vmem:[#allocation13 + $0x2c0] ss:$16 sps:$4 sm:$0xff]   ;;  %v7002_v1 = vld [vmem:[#allocation10 + $0x8] sm:$0xfe]  ;;  %v23091_v0 = vpack.c.bf16 %v23088_v17, %v6998_v21 }
0x11a9   :  { %9088 = vmatprep.subr.bf16.mxu0 %v19542_v49  ;;  %v19546_v62 = vld [vmem:[#allocation13 + $0xa4] ss:$16 sps:$4 sm:$0xff]   ;;  %v19550_v29 = vld [vmem:[#allocation13 + $0xa0] ss:$16 sps:$4 sm:$0xff]   ;;  %v7026_v12 = vrot.slane %v7002_v1, 1  ;;  %v7027_v59 = vrot.slane %v23088_v17, 1 }
0x11aa   :  { %v19548_v36 = vld [vmem:[#allocation13 + $0x2a4] ss:$16 sps:$4 sm:$0xff]   ;;  %v19551_v35 = vld [vmem:[#allocation13 + $0x2a0] ss:$16 sps:$4 sm:$0xff]   ;;  %9075 = vmatprep.mubr.bf16.mxu1 %v23091_v0 }
0x11ab   :  { %9046 = vmatpush1.bf16.msra.mxu1 %v19544_v45  ;;  %v19552_v23 = vld [vmem:[#allocation13 + $0x84] ss:$16 sps:$4 sm:$0xff]   ;;  %v19556_v26 = vld [vmem:[#allocation13 + $0x80] ss:$16 sps:$4 sm:$0xff]   ;;  %v7028_v41 = vsel %vm5656_vm8, %v7026_v12, %v7027_v59 }
0x11ac   :  { %9089 = vmatpush1.bf16.msra.mxu0 %v19545_v60  ;;  %9047 = vmatprep.subr.bf16.mxu1 %v19546_v62  ;;  %v19554_v42 = vld [vmem:[#allocation13 + $0x284] ss:$16 sps:$4 sm:$0xff]   ;;  %v19557_v46 = vld [vmem:[#allocation13 + $0x280] ss:$16 sps:$4 sm:$0xff]  }
0x11ad   :  { %9090 = vmatprep.subr.bf16.mxu0 %v19548_v36  ;;  %v19558_v55 = vld [vmem:[#allocation13 + $0x64] ss:$16 sps:$4 sm:$0xff]   ;;  %v19562_v14 = vld [vmem:[#allocation13 + $0x60] ss:$16 sps:$4 sm:$0xff]  }
0x11ae   :  { %v19560_v40 = vld [vmem:[#allocation13 + $0x264] ss:$16 sps:$4 sm:$0xff]   ;;  %v19563_v48 = vld [vmem:[#allocation13 + $0x260] ss:$16 sps:$4 sm:$0xff]  }
0x11af   :  { %9048 = vmatpush1.bf16.msra.mxu1 %v19550_v29  ;;  %v19564_v47 = vld [vmem:[#allocation13 + $0x44] ss:$16 sps:$4 sm:$0xff]   ;;  %v19568_v27 = vld [vmem:[#allocation13 + $0x40] ss:$16 sps:$4 sm:$0xff]   ;;  %v7003_v29 = vld [vmem:[#allocation10 + $0x28] sm:$0x1] }
0x11b0   :  { %9091 = vmatpush1.bf16.msra.mxu0 %v19551_v35  ;;  %9049 = vmatprep.subr.bf16.mxu1 %v19552_v23  ;;  %v19566_v5 = vld [vmem:[#allocation13 + $0x244] ss:$16 sps:$4 sm:$0xff]   ;;  %v19569_v9 = vld [vmem:[#allocation13 + $0x240] ss:$16 sps:$4 sm:$0xff]  }
0x11b1   :  { %9092 = vmatprep.subr.bf16.mxu0 %v19554_v42  ;;  %v19570_v37 = vld [vmem:[#allocation13 + $0x24] ss:$16 sps:$4 sm:$0xff]   ;;  %v19574_v44 = vld [vmem:[#allocation13 + $0x20] ss:$16 sps:$4 sm:$0xff]  }
0x11b2   :  { %v19572_v52 = vld [vmem:[#allocation13 + $0x224] ss:$16 sps:$4 sm:$0xff]   ;;  %v19575_v30 = vld [vmem:[#allocation13 + $0x220] ss:$16 sps:$4 sm:$0xff]  }
0x11b3   :  { %9050 = vmatpush1.bf16.msra.mxu1 %v19556_v26  ;;  %v19576_v18 = vld [vmem:[#allocation13 + $0x4] ss:$16 sps:$4 sm:$0xff]   ;;  %v19580_v63 = vld [vmem:[#allocation13] ss:$16 sps:$4 sm:$0xff]  }
0x11b4   :  { %9093 = vmatpush1.bf16.msra.mxu0 %v19557_v46  ;;  %9051 = vmatprep.subr.bf16.mxu1 %v19558_v55  ;;  %v19578_v10 = vld [vmem:[#allocation13 + $0x204] ss:$16 sps:$4 sm:$0xff]   ;;  %v19581_v50 = vld [vmem:[#allocation13 + $0x200] ss:$16 sps:$4 sm:$0xff]   ;;  %v7029_v46 = vrot.slane %v7003_v29, 1 }
0x11b5   :  { %9094 = vmatprep.subr.bf16.mxu0 %v19560_v40  ;;  %v19582_v33 = vld [vmem:[#allocation13 + $0x1e4] ss:$16 sps:$4 sm:$0xff]   ;;  %v19586_v24 = vld [vmem:[#allocation13 + $0x1e0] ss:$16 sps:$4 sm:$0xff]  }
0x11b6   :  { %v19584_v53 = vld [vmem:[#allocation13 + $0x3e4] ss:$16 sps:$4 sm:$0xff]   ;;  %v19587_v51 = vld [vmem:[#allocation13 + $0x3e0] ss:$16 sps:$4 sm:$0xff]  }
0x11b7   :  { %9052 = vmatpush1.bf16.msra.mxu1 %v19562_v14  ;;  %v19588_v7 = vld [vmem:[#allocation13 + $0x1c4] ss:$16 sps:$4 sm:$0xff]   ;;  %v19592_v4 = vld [vmem:[#allocation13 + $0x1c0] ss:$16 sps:$4 sm:$0xff]  }
0x11b8   :  { %9095 = vmatpush1.bf16.msra.mxu0 %v19563_v48  ;;  %9053 = vmatprep.subr.bf16.mxu1 %v19564_v47  ;;  %v19590_v25 = vld [vmem:[#allocation13 + $0x3c4] ss:$16 sps:$4 sm:$0xff]   ;;  %v19593_v38 = vld [vmem:[#allocation13 + $0x3c0] ss:$16 sps:$4 sm:$0xff]  }
0x11b9   :  { %9096 = vmatprep.subr.bf16.mxu0 %v19566_v5  ;;  %v19594_v54 = vld [vmem:[#allocation13 + $0x1a4] ss:$16 sps:$4 sm:$0xff]   ;;  %v19598_v58 = vld [vmem:[#allocation13 + $0x1a0] ss:$16 sps:$4 sm:$0xff]  }
0x11ba   :  { %v19596_v20 = vld [vmem:[#allocation13 + $0x3a4] ss:$16 sps:$4 sm:$0xff]   ;;  %v19599_v28 = vld [vmem:[#allocation13 + $0x3a0] ss:$16 sps:$4 sm:$0xff]  }
0x11bb   :  { %9054 = vmatpush1.bf16.msra.mxu1 %v19568_v27  ;;  %v19600_v22 = vld [vmem:[#allocation13 + $0x184] ss:$16 sps:$4 sm:$0xff]   ;;  %v19604_v34 = vld [vmem:[#allocation13 + $0x180] ss:$16 sps:$4 sm:$0xff]  }
0x11bc   :  { %9097 = vmatpush1.bf16.msra.mxu0 %v19569_v9  ;;  %9055 = vmatprep.subr.bf16.mxu1 %v19570_v37  ;;  %v19602_v57 = vld [vmem:[#allocation13 + $0x384] ss:$16 sps:$4 sm:$0xff]   ;;  %v7004_v15 = vld [vmem:[#allocation10 + $0x10] sm:$0x1] }
0x11bd   :  { %9098 = vmatprep.subr.bf16.mxu0 %v19572_v52  ;;  %v19605_v2 = vld [vmem:[#allocation13 + $0x380] ss:$16 sps:$4 sm:$0xff]   ;;  %v7031_v11 = vrot.slane %v7004_v15, 1  ;;  %v19606_v8 = vld [vmem:[#allocation13 + $0x164] ss:$16 sps:$4 sm:$0xff]  }
0x11be   :  { %v19608_v39 = vld [vmem:[#allocation13 + $0x364] ss:$16 sps:$4 sm:$0xff]   ;;  %v19610_v32 = vld [vmem:[#allocation13 + $0x160] ss:$16 sps:$4 sm:$0xff]  }
0x11bf   :  { %9056 = vmatpush1.bf16.msra.mxu1 %v19574_v44  ;;  %v7032_v43 = vsel %vm5656_vm8, %v7027_v59, %v7031_v11  ;;  %v19611_v19 = vld [vmem:[#allocation13 + $0x360] ss:$16 sps:$4 sm:$0xff]   ;;  %v19612_v16 = vld [vmem:[#allocation13 + $0x144] ss:$16 sps:$4 sm:$0xff]  }
0x11c0   :  { %9099 = vmatpush1.bf16.msra.mxu0 %v19575_v30  ;;  %9057 = vmatprep.subr.bf16.mxu1 %v19576_v18  ;;  %v23097_v13 = vpack.c.bf16 %v7032_v43, %v7028_v41  ;;  %v19614_v61 = vld [vmem:[#allocation13 + $0x344] ss:$16 sps:$4 sm:$0xff]   ;;  %v19616_v6 = vld [vmem:[#allocation13 + $0x140] ss:$16 sps:$4 sm:$0xff]   ;;  %v7006_v43 = vld [vmem:[#allocation10 + $0x8] sm:$0xfc] }
0x11c1   :  { %9100 = vmatprep.subr.bf16.mxu0 %v19578_v10  ;;  %v19617_v49 = vld [vmem:[#allocation13 + $0x340] ss:$16 sps:$4 sm:$0xff]   ;;  %v19618_v45 = vld [vmem:[#allocation13 + $0x124] ss:$16 sps:$4 sm:$0xff]  }
0x11c2   :  { %9118 = vmatprep.mubr.bf16.mxu0 %v23097_v13  ;;  %v19620_v60 = vld [vmem:[#allocation13 + $0x324] ss:$16 sps:$4 sm:$0xff]   ;;  %v19622_v35 = vld [vmem:[#allocation13 + $0x120] ss:$16 sps:$4 sm:$0xff]  }
0x11c3   :  { %9058 = vmatpush1.bf16.msra.mxu1 %v19580_v63  ;;  %v23100_v62 = vld [vmem:[#allocation10 + $0x20] sm:$0xff] }
0x11c4   :  { %9101 = vmatpush1.bf16.msra.mxu0 %v19581_v50  ;;  %9059 = vmatprep.subr.bf16.mxu1 %v19582_v33  ;;  %v7001_v36 = vld [vmem:[#allocation10] sm:$0xfe]  ;;  %v7024_v26 = vrot.slane %v23100_v62, 1 }
0x11c5   :  { %9102 = vmatprep.subr.bf16.mxu0 %v19584_v53  ;;  %v19623_v23 = vld [vmem:[#allocation13 + $0x320] ss:$16 sps:$4 sm:$0xff]   ;;  %v7023_v42 = vrot.slane %v7001_v36, 1  ;;  %v19624_v55 = vld [vmem:[#allocation13 + $0x104] ss:$16 sps:$4 sm:$0xff]  }
0x11c6   :  { %v19626_v40 = vld [vmem:[#allocation13 + $0x304] ss:$16 sps:$4 sm:$0xff]   ;;  %v19628_v14 = vld [vmem:[#allocation13 + $0x100] ss:$16 sps:$4 sm:$0xff]   ;;  %v7030_v27 = vsel %vm5656_vm8, %v7024_v26, %v7029_v46 }
0x11c7   :  { %9060 = vmatpush2.bf16.msra.mxu1 %v19586_v24  ;;  %v19629_v48 = vld [vmem:[#allocation13 + $0x300] ss:$16 sps:$4 sm:$0xff]   ;;  %v7025_v5 = vsel %vm5656_vm8, %v7023_v42, %v7024_v26  ;;  %v19632_v9 = vld [vmem:[#allocation13 + $0x4e4] ss:$16 sps:$4 sm:$0xff]  }
0x11c8   :  { %9103 = vmatpush2.bf16.msra.mxu0 %v19587_v51  ;;  %9061 = vmatprep.subr.bf16.mxu1 %v19588_v7  ;;  %v6997_v47 = vld [vmem:[#allocation10] sm:$0xff]  ;;  %v23108_v44 = vpack.c.bf16 %v7030_v27, %v7025_v5 }
0x11c9   :  { %9104 = vmatprep.subr.bf16.mxu0 %v19590_v25  ;;  %v19635_v37 = vld [vmem:[#allocation13 + $0x6e4] ss:$16 sps:$4 sm:$0xff]   ;;  %v23106_v52 = vpack.c.bf16 %v23100_v62, %v6997_v47  ;;  %v19630_v30 = vld [vmem:[#allocation13 + $0x4e0] ss:$16 sps:$4 sm:$0xff]  }
0x11ca   :  { %v19633_v18 = vld [vmem:[#allocation13 + $0x6e0] ss:$16 sps:$4 sm:$0xff]   ;;  %v19638_v10 = vld [vmem:[#allocation13 + $0x4c4] ss:$16 sps:$4 sm:$0xff]  }
0x11cb   :  { %9062 = vmatpush2.bf16.msra.mxu1 %v19592_v4  ;;  %v19641_v63 = vld [vmem:[#allocation13 + $0x6c4] ss:$16 sps:$4 sm:$0xff]   ;;  %v19636_v50 = vld [vmem:[#allocation13 + $0x4c0] ss:$16 sps:$4 sm:$0xff]  }
0x11cc   :  { %9105 = vmatpush2.bf16.msra.mxu0 %v19593_v38  ;;  %9063 = vmatprep.subr.bf16.mxu1 %v19594_v54  ;;  %v19639_v33 = vld [vmem:[#allocation13 + $0x6c0] ss:$16 sps:$4 sm:$0xff]   ;;  %v19644_v53 = vld [vmem:[#allocation13 + $0x4a4] ss:$16 sps:$4 sm:$0xff]  }
0x11cd   :  { %9106 = vmatprep.subr.bf16.mxu0 %v19596_v20  ;;  %v19647_v24 = vld [vmem:[#allocation13 + $0x6a4] ss:$16 sps:$4 sm:$0xff]   ;;  %v19642_v51 = vld [vmem:[#allocation13 + $0x4a0] ss:$16 sps:$4 sm:$0xff]  }
0x11ce   :  { %v19645_v7 = vld [vmem:[#allocation13 + $0x6a0] ss:$16 sps:$4 sm:$0xff]   ;;  %v19650_v25 = vld [vmem:[#allocation13 + $0x484] ss:$16 sps:$4 sm:$0xff]  }
0x11cf   :  { %9064 = vmatpush2.bf16.msra.mxu1 %v19598_v58  ;;  %v19653_v4 = vld [vmem:[#allocation13 + $0x684] ss:$16 sps:$4 sm:$0xff]   ;;  %v19648_v38 = vld [vmem:[#allocation13 + $0x480] ss:$16 sps:$4 sm:$0xff]  }
0x11d0   :  { %9107 = vmatpush2.bf16.msra.mxu0 %v19599_v28  ;;  %9065 = vmatprep.subr.bf16.mxu1 %v19600_v22  ;;  %v19651_v54 = vld [vmem:[#allocation13 + $0x680] ss:$16 sps:$4 sm:$0xff]   ;;  %v19656_v20 = vld [vmem:[#allocation13 + $0x464] ss:$16 sps:$4 sm:$0xff]  }
0x11d1   :  { %9108 = vmatprep.subr.bf16.mxu0 %v19602_v57  ;;  %v19659_v58 = vld [vmem:[#allocation13 + $0x664] ss:$16 sps:$4 sm:$0xff]   ;;  %v19654_v28 = vld [vmem:[#allocation13 + $0x460] ss:$16 sps:$4 sm:$0xff]  }
0x11d2   :  { %v19657_v22 = vld [vmem:[#allocation13 + $0x660] ss:$16 sps:$4 sm:$0xff]   ;;  %v19662_v57 = vld [vmem:[#allocation13 + $0x444] ss:$16 sps:$4 sm:$0xff]  }
0x11d3   :  { %9066 = vmatpush2.bf16.msra.mxu1 %v19604_v34  ;;  %v19665_v34 = vld [vmem:[#allocation13 + $0x644] ss:$16 sps:$4 sm:$0xff]   ;;  %v19660_v21 = vld [vmem:[#allocation13 + $0x440] ss:$16 sps:$4 sm:$0xff]  }
0x11d4   :  { %9109 = vmatpush2.bf16.msra.mxu0 %v19605_v2  ;;  %9067 = vmatprep.subr.bf16.mxu1 %v19606_v8  ;;  %v19663_v1 = vld [vmem:[#allocation13 + $0x640] ss:$16 sps:$4 sm:$0xff]   ;;  %v19668_v15 = vld [vmem:[#allocation13 + $0x424] ss:$16 sps:$4 sm:$0xff]   ;;  %v7045_v8 = vrot.slane %v23088_v17, 2 }
0x11d5   :  { %9110 = vmatprep.subr.bf16.mxu0 %v19608_v39  ;;  %v19671_v2 = vld [vmem:[#allocation13 + $0x624] ss:$16 sps:$4 sm:$0xff]   ;;  %v19666_v12 = vld [vmem:[#allocation13 + $0x420] ss:$16 sps:$4 sm:$0xff]   ;;  %v7063_v39 = vrot.slane %v23088_v17, 3 }
0x11d6   :  { %v19669_v59 = vld [vmem:[#allocation13 + $0x620] ss:$16 sps:$4 sm:$0xff]   ;;  %v19674_v11 = vld [vmem:[#allocation13 + $0x404] ss:$16 sps:$4 sm:$0xff]  }
0x11d7   :  { %9068 = vmatpush2.bf16.msra.mxu1 %v19610_v32  ;;  %v19677_v41 = vld [vmem:[#allocation13 + $0x604] ss:$16 sps:$4 sm:$0xff]   ;;  %v7008_v32 = vld [vmem:[#allocation10 + $0x10] sm:$0x3] }
0x11d8   :  { %9111 = vmatpush2.bf16.msra.mxu0 %v19611_v19  ;;  %9069 = vmatprep.subr.bf16.mxu1 %v19612_v16  ;;  %v7044_v19 = vrot.slane %v7006_v43, 2  ;;  %v7049_v16 = vrot.slane %v7008_v32, 2  ;;  %v19675_v36 = vld [vmem:[#allocation13 + $0x600] ss:$16 sps:$4 sm:$0xff]   ;;  %v19686_v47 = vld [vmem:[#allocation13 + $0x5c4] ss:$16 sps:$4 sm:$0xff]  }
0x11d9   :  { %9112 = vmatprep.subr.bf16.mxu0 %v19614_v61  ;;  %v7010_v61 = vld [vmem:[#allocation10 + $0x8] sm:$0xf8]  ;;  %v19689_v5 = vld [vmem:[#allocation13 + $0x7c4] ss:$16 sps:$4 sm:$0xff]   ;;  %v19684_v27 = vld [vmem:[#allocation13 + $0x5c0] ss:$16 sps:$4 sm:$0xff]  }
0x11da   :  { %v7046_v29 = vsel %vm5677_vm10, %v7044_v19, %v7045_v8  ;;  %v19725_v43 = vld [vmem:[#allocation13 + $0x704] ss:$16 sps:$4 sm:$0xff]   ;;  %v19720_v32 = vld [vmem:[#allocation13 + $0x500] ss:$16 sps:$4 sm:$0xff]  }
0x11db   :  { %9070 = vmatpush2.bf16.msra.mxu1 %v19616_v6  ;;  %v7012_v6 = vld [vmem:[#allocation10 + $0x10] sm:$0x7] }
0x11dc   :  { %9113 = vmatpush2.bf16.msra.mxu0 %v19617_v49  ;;  %9071 = vmatprep.subr.bf16.mxu1 %v19618_v45  ;;  %v7062_v49 = vrot.slane %v7010_v61, 3  ;;  %v7067_v45 = vrot.slane %v7012_v6, 3  ;;  %v19723_v19 = vld [vmem:[#allocation13 + $0x700] ss:$16 sps:$4 sm:$0xff]  }
0x11dd   :  { %9114 = vmatprep.subr.bf16.mxu0 %v19620_v60  ;;  %v19672_v60 = vld [vmem:[#allocation13 + $0x400] ss:$16 sps:$4 sm:$0xff]  }
0x11de   :  { %v7064_v26 = vsel %vm5698_vm11, %v7062_v49, %v7063_v39  ;;  %v7068_v46 = vsel %vm5698_vm11, %v7063_v39, %v7067_v45  ;;  %v7060_v39 = vrot.slane %v23100_v62, 3  ;;  %v19728_v45 = vld [vmem:[#allocation13 + $0x8e4] ss:$16 sps:$4 sm:$0xff]  }
0x11df   :  { %9072 = vmatpush2.bf16.msra.mxu1 %v19622_v35  ;;  %v7050_v35 = vsel %vm5677_vm10, %v7045_v8, %v7049_v16 }
0x11e0   :  { %9115 = vmatpush2.bf16.msra.mxu0 %v19623_v23  ;;  %9073 = vmatprep.subr.bf16.mxu1 %v19624_v55  ;;  %v19680_v23 = vld [vmem:[#allocation13 + $0x5e4] ss:$16 sps:$4 sm:$0xff]   ;;  %v23116_v42 = vpack.c.bf16 %v7050_v35, %v7046_v29  ;;  %v19726_v35 = vld [vmem:[#allocation13 + $0x8e0] ss:$16 sps:$4 sm:$0xff]  }
0x11e1   :  { %9116 = vmatprep.subr.bf16.mxu0 %v19626_v40  ;;  %v19683_v55 = vld [vmem:[#allocation13 + $0x7e4] ss:$16 sps:$4 sm:$0xff]   ;;  %v23120_v40 = vpack.c.bf16 %v7068_v46, %v7064_v26  ;;  %v19737_v46 = vld [vmem:[#allocation13 + $0xcc] ss:$16 sps:$4 sm:$0xff]  }
0x11e2   :  { %v19734_v26 = vld [vmem:[#allocation13 + $0x8c4] ss:$16 sps:$4 sm:$0xff]  }
0x11e3   :  { %9074 = vmatpush2.bf16.msra.mxu1 %v19628_v14  ;;  %v19678_v14 = vld [vmem:[#allocation13 + $0x5e0] ss:$16 sps:$4 sm:$0xff]  }
0x11e4   :  { %9117 = vmatpush2.bf16.msra.mxu0 %v19629_v48  ;;  %9129 = vmatprep.subr.bf16.mxu1 %v19632_v9  ;;  %v19681_v48 = vld [vmem:[#allocation13 + $0x7e0] ss:$16 sps:$4 sm:$0xff]  }
0x11e5   :  { %9172 = vmatprep.subr.bf16.mxu0 %v19635_v37  ;;  %v19687_v9 = vld [vmem:[#allocation13 + $0x7c0] ss:$16 sps:$4 sm:$0xff]   ;;  %v19692_v37 = vld [vmem:[#allocation13 + $0x5a4] ss:$16 sps:$4 sm:$0xff]  }
0x11e6   :  { %9076 = vmatmul.mubr.bf16.vlgmr.msra.gmra.mxu1 %v23106_v52 }
0x11e7   :  { %9119 = vmatmul.mubr.bf16.vlgmr.msra.gmra.mxu0 %v23108_v44  ;;  %9130 = vmatpush1.bf16.msra.mxu1 %v19630_v30  ;;  %v19695_v30 = vld [vmem:[#allocation13 + $0x7a4] ss:$16 sps:$4 sm:$0xff]  }
0x11e8   :  { %9173 = vmatpush1.bf16.msra.mxu0 %v19633_v18  ;;  %9131 = vmatprep.subr.bf16.mxu1 %v19638_v10  ;;  %v19690_v18 = vld [vmem:[#allocation13 + $0x5a0] ss:$16 sps:$4 sm:$0xff]  }
0x11e9   :  { %9174 = vmatprep.subr.bf16.mxu0 %v19641_v63  ;;  %9161 = vmatprep.mubr.bf16.mxu1 %v23116_v42  ;;  %v19693_v10 = vld [vmem:[#allocation13 + $0x7a0] ss:$16 sps:$4 sm:$0xff]   ;;  %v19698_v63 = vld [vmem:[#allocation13 + $0x584] ss:$16 sps:$4 sm:$0xff]  }
0x11ea   :  { %9204 = vmatprep.mubr.bf16.mxu0 %v23120_v40 }
0x11eb   :  { %9132 = vmatpush1.bf16.msra.mxu1 %v19636_v50  ;;  %v19701_v50 = vld [vmem:[#allocation13 + $0x784] ss:$16 sps:$4 sm:$0xff]  }
0x11ec   :  { %9175 = vmatpush1.bf16.msra.mxu0 %v19639_v33  ;;  %9133 = vmatprep.subr.bf16.mxu1 %v19644_v53  ;;  %v19696_v33 = vld [vmem:[#allocation13 + $0x580] ss:$16 sps:$4 sm:$0xff]  }
0x11ed   :  { %9176 = vmatprep.subr.bf16.mxu0 %v19647_v24  ;;  %v19699_v53 = vld [vmem:[#allocation13 + $0x780] ss:$16 sps:$4 sm:$0xff]   ;;  %v19704_v24 = vld [vmem:[#allocation13 + $0x564] ss:$16 sps:$4 sm:$0xff]  }
0x11ef   :  { %9134 = vmatpush1.bf16.msra.mxu1 %v19642_v51  ;;  %v19707_v51 = vld [vmem:[#allocation13 + $0x764] ss:$16 sps:$4 sm:$0xff]  }
0x11f0   :  { %9177 = vmatpush1.bf16.msra.mxu0 %v19645_v7  ;;  %9135 = vmatprep.subr.bf16.mxu1 %v19650_v25  ;;  %v19702_v7 = vld [vmem:[#allocation13 + $0x560] ss:$16 sps:$4 sm:$0xff]  }
0x11f1   :  { %9178 = vmatprep.subr.bf16.mxu0 %v19653_v4  ;;  %v19705_v25 = vld [vmem:[#allocation13 + $0x760] ss:$16 sps:$4 sm:$0xff]   ;;  %v19710_v4 = vld [vmem:[#allocation13 + $0x544] ss:$16 sps:$4 sm:$0xff]  }
0x11f3   :  { %9136 = vmatpush1.bf16.msra.mxu1 %v19648_v38  ;;  %v19713_v38 = vld [vmem:[#allocation13 + $0x744] ss:$16 sps:$4 sm:$0xff]  }
0x11f4   :  { %9179 = vmatpush1.bf16.msra.mxu0 %v19651_v54  ;;  %9137 = vmatprep.subr.bf16.mxu1 %v19656_v20  ;;  %v19708_v54 = vld [vmem:[#allocation13 + $0x540] ss:$16 sps:$4 sm:$0xff]  }
0x11f5   :  { %9180 = vmatprep.subr.bf16.mxu0 %v19659_v58  ;;  %v19711_v20 = vld [vmem:[#allocation13 + $0x740] ss:$16 sps:$4 sm:$0xff]   ;;  %v19716_v58 = vld [vmem:[#allocation13 + $0x524] ss:$16 sps:$4 sm:$0xff]  }
0x11f7   :  { %9138 = vmatpush1.bf16.msra.mxu1 %v19654_v28  ;;  %v19719_v28 = vld [vmem:[#allocation13 + $0x724] ss:$16 sps:$4 sm:$0xff]  }
0x11f8   :  { %9181 = vmatpush1.bf16.msra.mxu0 %v19657_v22  ;;  %9139 = vmatprep.subr.bf16.mxu1 %v19662_v57  ;;  %v7005_v22 = vld [vmem:[#allocation10] sm:$0xfc]  ;;  %v7007_v57 = vld [vmem:[#allocation10 + $0x28] sm:$0x3] }
0x11f9   :  { %9182 = vmatprep.subr.bf16.mxu0 %v19665_v34  ;;  %v7009_v34 = vld [vmem:[#allocation10] sm:$0xf8] }
0x11fa   :  { %v7059_v8 = vrot.slane %v7009_v34, 3  ;;  %v19765_v34 = vld [vmem:[#allocation13 + $0x28] ss:$16 sps:$4 sm:$0xff]  }
0x11fb   :  { %9140 = vmatpush1.bf16.msra.mxu1 %v19660_v21  ;;  %v7011_v21 = vld [vmem:[#allocation10 + $0x28] sm:$0x7] }
0x11fc   :  { %9183 = vmatpush1.bf16.msra.mxu0 %v19663_v1  ;;  %9141 = vmatprep.subr.bf16.mxu1 %v19668_v15  ;;  %v19714_v1 = vld [vmem:[#allocation13 + $0x520] ss:$16 sps:$4 sm:$0xff]   ;;  %v7042_v15 = vrot.slane %v23100_v62, 2  ;;  %v7061_v6 = vsel %vm5698_vm11, %v7059_v8, %v7060_v39  ;;  %v19777_v8 = vld [vmem:[#allocation13 + $0x1e8] ss:$16 sps:$4 sm:$0xff]  }
0x11fd   :  { %9184 = vmatprep.subr.bf16.mxu0 %v19671_v2  ;;  %v19717_v2 = vld [vmem:[#allocation13 + $0x720] ss:$16 sps:$4 sm:$0xff]  }
0x11ff   :  { %9142 = vmatpush1.bf16.msra.mxu1 %v19666_v12  ;;  %v19722_v12 = vld [vmem:[#allocation13 + $0x504] ss:$16 sps:$4 sm:$0xff]  }
0x1200   :  { %9185 = vmatpush1.bf16.msra.mxu0 %v19669_v59  ;;  %9143 = vmatprep.subr.bf16.mxu1 %v19674_v11  ;;  %v7041_v59 = vrot.slane %v7005_v22, 2  ;;  %v7047_v11 = vrot.slane %v7007_v57, 2  ;;  %v19767_v22 = vld [vmem:[#allocation13 + $0x2c] ss:$16 sps:$4 sm:$0xff]   ;;  %v19762_v57 = vld [vmem:[#allocation13 + $0x820] ss:$16 sps:$4 sm:$0xff]  }
0x1201   :  { %9186 = vmatprep.subr.bf16.mxu0 %v19677_v41  ;;  %v7065_v41 = vrot.slane %v7011_v21, 3  ;;  %v19770_v21 = vld [vmem:[#allocation13 + $0x804] ss:$16 sps:$4 sm:$0xff]  }
0x1202   :  { %v7043_v16 = vsel %vm5677_vm10, %v7041_v59, %v7042_v15  ;;  %v7048_v61 = vsel %vm5677_vm10, %v7042_v15, %v7047_v11  ;;  %v19768_v15 = vld [vmem:[#allocation13 + $0x800] ss:$16 sps:$4 sm:$0xff]   ;;  %v19779_v59 = vld [vmem:[#allocation13 + $0x1ec] ss:$16 sps:$4 sm:$0xff]  }
0x1203   :  { %9144 = vmatpush1.bf16.msra.mxu1 %v19672_v60  ;;  %v7066_v49 = vsel %vm5698_vm11, %v7060_v39, %v7065_v41  ;;  %v19731_v60 = vld [vmem:[#allocation13 + $0xec] ss:$16 sps:$4 sm:$0xff]   ;;  %v19774_v11 = vld [vmem:[#allocation13 + $0x9e0] ss:$16 sps:$4 sm:$0xff]   ;;  %v19782_v39 = vld [vmem:[#allocation13 + $0x9c4] ss:$16 sps:$4 sm:$0xff]  }
0x1204   :  { %9187 = vmatpush1.bf16.msra.mxu0 %v19675_v36  ;;  %9145 = vmatprep.subr.bf16.mxu1 %v19680_v23  ;;  %v23130_v36 = vpack.c.bf16 %v7048_v61, %v7043_v16  ;;  %v23132_v29 = vpack.c.bf16 %v7066_v49, %v7061_v6  ;;  %v19729_v23 = vld [vmem:[#allocation13 + $0xe8] ss:$16 sps:$4 sm:$0xff]   ;;  %v19785_v41 = vld [vmem:[#allocation13 + $0x1cc] ss:$16 sps:$4 sm:$0xff]   ;;  %v19786_v61 = vld [vmem:[#allocation13 + $0x9a0] ss:$16 sps:$4 sm:$0xff]  }
0x1205   :  { %9188 = vmatprep.subr.bf16.mxu0 %v19683_v55  ;;  %v19732_v55 = vld [vmem:[#allocation13 + $0x8c0] ss:$16 sps:$4 sm:$0xff]   ;;  %v19791_v16 = vld [vmem:[#allocation13 + $0x1ac] ss:$16 sps:$4 sm:$0xff]   ;;  %v19789_v6 = vld [vmem:[#allocation13 + $0x1a8] ss:$16 sps:$4 sm:$0xff]  }
0x1206   :  { %v19794_v49 = vld [vmem:[#allocation13 + $0x984] ss:$16 sps:$4 sm:$0xff]  }
0x1207   :  { %9146 = vmatpush2.bf16.msra.mxu1 %v19678_v14  ;;  %v19735_v14 = vld [vmem:[#allocation13 + $0xc8] ss:$16 sps:$4 sm:$0xff]  }
0x1208   :  { %9189 = vmatpush2.bf16.msra.mxu0 %v19681_v48  ;;  %9147 = vmatprep.subr.bf16.mxu1 %v19686_v47  ;;  %v19740_v48 = vld [vmem:[#allocation13 + $0x8a4] ss:$16 sps:$4 sm:$0xff]   ;;  %v19743_v47 = vld [vmem:[#allocation13 + $0xac] ss:$16 sps:$4 sm:$0xff]  }
0x1209   :  { %9190 = vmatprep.subr.bf16.mxu0 %v19689_v5  ;;  %v7081_v5 = vrot.slane %v23088_v17, 4  ;;  %v19747_v17 = vld [vmem:[#allocation13 + $0x88] ss:$16 sps:$4 sm:$0xff]  }
0x120b   :  { %9148 = vmatpush2.bf16.msra.mxu1 %v19684_v27  ;;  %v7014_v27 = vld [vmem:[#allocation10 + $0x8] sm:$0xf0] }
0x120c   :  { %9191 = vmatpush2.bf16.msra.mxu0 %v19687_v9  ;;  %9149 = vmatprep.subr.bf16.mxu1 %v19692_v37  ;;  %v19738_v9 = vld [vmem:[#allocation13 + $0x8a0] ss:$16 sps:$4 sm:$0xff]  }
0x120d   :  { %9192 = vmatprep.subr.bf16.mxu0 %v19695_v30  ;;  %v7016_v37 = vld [vmem:[#allocation10 + $0x10] sm:$0xf]  ;;  %v7080_v30 = vrot.slane %v7014_v27, 4  ;;  %v19812_v27 = vld [vmem:[#allocation13 + $0x924] ss:$16 sps:$4 sm:$0xff]  }
0x120f   :  { %9150 = vmatpush2.bf16.msra.mxu1 %v19690_v18  ;;  %v19741_v18 = vld [vmem:[#allocation13 + $0xa8] ss:$16 sps:$4 sm:$0xff]  }
0x1210   :  { %9193 = vmatpush2.bf16.msra.mxu0 %v19693_v10  ;;  %9151 = vmatprep.subr.bf16.mxu1 %v19698_v63  ;;  %v7085_v10 = vrot.slane %v7016_v37, 4  ;;  %v19746_v63 = vld [vmem:[#allocation13 + $0x884] ss:$16 sps:$4 sm:$0xff]  }
0x1211   :  { %9194 = vmatprep.subr.bf16.mxu0 %v19701_v50  ;;  %v19749_v50 = vld [vmem:[#allocation13 + $0x8c] ss:$16 sps:$4 sm:$0xff]   ;;  %v7013_v37 = vld [vmem:[#allocation10] sm:$0xf0] }
0x1213   :  { %9152 = vmatpush2.bf16.msra.mxu1 %v19696_v33  ;;  %v7082_v33 = vsel %vm605_vm2, %v7080_v30, %v7081_v5  ;;  %v7015_v30 = vld [vmem:[#allocation10 + $0x28] sm:$0xf] }
0x1214   :  { %9195 = vmatpush2.bf16.msra.mxu0 %v19699_v53  ;;  %9153 = vmatprep.subr.bf16.mxu1 %v19704_v24  ;;  %v7086_v53 = vsel %vm605_vm2, %v7081_v5, %v7085_v10  ;;  %v19744_v24 = vld [vmem:[#allocation13 + $0x880] ss:$16 sps:$4 sm:$0xff]   ;;  %v19807_v5 = vld [vmem:[#allocation13 + $0x148] ss:$16 sps:$4 sm:$0xff]   ;;  %v7078_v10 = vrot.slane %v23100_v62, 4 }
0x1215   :  { %9196 = vmatprep.subr.bf16.mxu0 %v19707_v51  ;;  %v23140_v51 = vpack.c.bf16 %v7086_v53, %v7082_v33  ;;  %v7083_v33 = vrot.slane %v7015_v30, 4  ;;  %v19818_v53 = vld [vmem:[#allocation13 + $0x904] ss:$16 sps:$4 sm:$0xff]   ;;  %v19824_v62 = vld [vmem:[#allocation13 + $0x2ec] ss:$16 sps:$4 sm:$0xff]  }
0x1216   :  { %v19885_v30 = vld [vmem:[#allocation13 + $0x5a8] ss:$16 sps:$4 sm:$0xff]  }
0x1217   :  { %9154 = vmatpush2.bf16.msra.mxu1 %v19702_v7  ;;  %v19755_v7 = vld [vmem:[#allocation13 + $0x6c] ss:$16 sps:$4 sm:$0xff]  }
0x1218   :  { %9197 = vmatpush2.bf16.msra.mxu0 %v19705_v25  ;;  %9155 = vmatprep.subr.bf16.mxu1 %v19710_v4  ;;  %v19750_v25 = vld [vmem:[#allocation13 + $0x860] ss:$16 sps:$4 sm:$0xff]   ;;  %v19753_v4 = vld [vmem:[#allocation13 + $0x68] ss:$16 sps:$4 sm:$0xff]  }
0x1219   :  { %9198 = vmatprep.subr.bf16.mxu0 %v19713_v38  ;;  %v19758_v38 = vld [vmem:[#allocation13 + $0x844] ss:$16 sps:$4 sm:$0xff]  }
0x121b   :  { %9156 = vmatpush2.bf16.msra.mxu1 %v19708_v54  ;;  %v19761_v54 = vld [vmem:[#allocation13 + $0x4c] ss:$16 sps:$4 sm:$0xff]  }
0x121c   :  { %9199 = vmatpush2.bf16.msra.mxu0 %v19711_v20  ;;  %9157 = vmatprep.subr.bf16.mxu1 %v19716_v58  ;;  %v19756_v20 = vld [vmem:[#allocation13 + $0x840] ss:$16 sps:$4 sm:$0xff]   ;;  %v19759_v58 = vld [vmem:[#allocation13 + $0x48] ss:$16 sps:$4 sm:$0xff]  }
0x121d   :  { %9200 = vmatprep.subr.bf16.mxu0 %v19719_v28  ;;  %v19764_v28 = vld [vmem:[#allocation13 + $0x824] ss:$16 sps:$4 sm:$0xff]  }
0x121f   :  { %9158 = vmatpush2.bf16.msra.mxu1 %v19714_v1  ;;  %v19773_v1 = vld [vmem:[#allocation13 + $0xc] ss:$16 sps:$4 sm:$0xff]  }
0x1220   :  { %9201 = vmatpush2.bf16.msra.mxu0 %v19717_v2  ;;  %9159 = vmatprep.subr.bf16.mxu1 %v19722_v12  ;;  %v19771_v2 = vld [vmem:[#allocation13 + $0x8] ss:$16 sps:$4 sm:$0xff]   ;;  %v19776_v12 = vld [vmem:[#allocation13 + $0x9e4] ss:$16 sps:$4 sm:$0xff]  }
0x1221   :  { %9202 = vmatprep.subr.bf16.mxu0 %v19725_v43  ;;  %v19780_v43 = vld [vmem:[#allocation13 + $0x9c0] ss:$16 sps:$4 sm:$0xff]  }
0x1223   :  { %9160 = vmatpush2.bf16.msra.mxu1 %v19720_v32  ;;  %v19783_v32 = vld [vmem:[#allocation13 + $0x1c8] ss:$16 sps:$4 sm:$0xff]  }
0x1224   :  { %9203 = vmatpush2.bf16.msra.mxu0 %v19723_v19  ;;  %9215 = vmatprep.subr.bf16.mxu1 %v19728_v45  ;;  %v19788_v19 = vld [vmem:[#allocation13 + $0x9a4] ss:$16 sps:$4 sm:$0xff]   ;;  %v19797_v45 = vld [vmem:[#allocation13 + $0x18c] ss:$16 sps:$4 sm:$0xff]  }
0x1225   :  { %9258 = vmatprep.subr.bf16.mxu0 %v19731_v60  ;;  %v19792_v60 = vld [vmem:[#allocation13 + $0x980] ss:$16 sps:$4 sm:$0xff]  }
0x1226   :  { %9162 = vmatmul.mubr.bf16.vlgmr.msra.gmra.mxu1 %v23130_v36 }
0x1227   :  { %9205 = vmatmul.mubr.bf16.vlgmr.msra.gmra.mxu0 %v23132_v29  ;;  %9216 = vmatpush1.bf16.msra.mxu1 %v19726_v35  ;;  %v19795_v35 = vld [vmem:[#allocation13 + $0x188] ss:$16 sps:$4 sm:$0xff]  }
0x1228   :  { %9259 = vmatpush1.bf16.msra.mxu0 %v19729_v23  ;;  %9217 = vmatprep.subr.bf16.mxu1 %v19734_v26  ;;  %v19800_v23 = vld [vmem:[#allocation13 + $0x964] ss:$16 sps:$4 sm:$0xff]   ;;  %v19803_v26 = vld [vmem:[#allocation13 + $0x16c] ss:$16 sps:$4 sm:$0xff]  }
0x1229   :  { %9260 = vmatprep.subr.bf16.mxu0 %v19737_v46  ;;  %9290 = vmatprep.mubr.bf16.mxu0 %v23091_v0  ;;  %v19752_v0 = vld [vmem:[#allocation13 + $0x864] ss:$16 sps:$4 sm:$0xff]   ;;  %v19798_v46 = vld [vmem:[#allocation13 + $0x960] ss:$16 sps:$4 sm:$0xff]  }
0x122a   :  { %9247 = vmatprep.mubr.bf16.mxu1 %v23140_v51 }
0x122b   :  { %9218 = vmatpush1.bf16.msra.mxu1 %v19732_v55  ;;  %v19801_v55 = vld [vmem:[#allocation13 + $0x168] ss:$16 sps:$4 sm:$0xff]  }
0x122c   :  { %9261 = vmatpush1.bf16.msra.mxu0 %v19735_v14  ;;  %9219 = vmatprep.subr.bf16.mxu1 %v19740_v48  ;;  %v19806_v14 = vld [vmem:[#allocation13 + $0x944] ss:$16 sps:$4 sm:$0xff]   ;;  %v19809_v48 = vld [vmem:[#allocation13 + $0x14c] ss:$16 sps:$4 sm:$0xff]  }
0x122d   :  { %9262 = vmatprep.subr.bf16.mxu0 %v19743_v47  ;;  %v19804_v47 = vld [vmem:[#allocation13 + $0x940] ss:$16 sps:$4 sm:$0xff]  }
0x122f   :  { %9220 = vmatpush1.bf16.msra.mxu1 %v19738_v9  ;;  %v19815_v9 = vld [vmem:[#allocation13 + $0x12c] ss:$16 sps:$4 sm:$0xff]  }
0x1230   :  { %9263 = vmatpush1.bf16.msra.mxu0 %v19741_v18  ;;  %9221 = vmatprep.subr.bf16.mxu1 %v19746_v63  ;;  %v19810_v18 = vld [vmem:[#allocation13 + $0x920] ss:$16 sps:$4 sm:$0xff]   ;;  %v19813_v63 = vld [vmem:[#allocation13 + $0x128] ss:$16 sps:$4 sm:$0xff]  }
0x1231   :  { %9264 = vmatprep.subr.bf16.mxu0 %v19749_v50  ;;  %v7077_v50 = vrot.slane %v7013_v37, 4  ;;  %v19882_v37 = vld [vmem:[#allocation13 + $0x3a8] ss:$16 sps:$4 sm:$0xff]  }
0x1233   :  { %9222 = vmatpush1.bf16.msra.mxu1 %v19744_v24  ;;  %v19821_v24 = vld [vmem:[#allocation13 + $0x10c] ss:$16 sps:$4 sm:$0xff]  }
0x1234   :  { %9265 = vmatpush1.bf16.msra.mxu0 %v19747_v17  ;;  %9223 = vmatprep.subr.bf16.mxu1 %v19752_v0  ;;  %v19816_v17 = vld [vmem:[#allocation13 + $0x900] ss:$16 sps:$4 sm:$0xff]   ;;  %v19819_v0 = vld [vmem:[#allocation13 + $0x108] ss:$16 sps:$4 sm:$0xff]  }
0x1235   :  { %9266 = vmatprep.subr.bf16.mxu0 %v19755_v7  ;;  %v7079_v7 = vsel %vm605_vm2, %v7077_v50, %v7078_v10  ;;  %v19891_v50 = vld [vmem:[#allocation13 + $0x588] ss:$16 sps:$4 sm:$0xff]  }
0x1237   :  { %9224 = vmatpush1.bf16.msra.mxu1 %v19750_v25  ;;  %v7084_v25 = vsel %vm605_vm2, %v7078_v10, %v7083_v33  ;;  %v19893_v10 = vld [vmem:[#allocation13 + $0x58c] ss:$16 sps:$4 sm:$0xff]  }
0x1238   :  { %9267 = vmatpush1.bf16.msra.mxu0 %v19753_v4  ;;  %9225 = vmatprep.subr.bf16.mxu1 %v19758_v38  ;;  %v19827_v4 = vld [vmem:[#allocation13 + $0x4ec] ss:$16 sps:$4 sm:$0xff]   ;;  %v23146_v38 = vpack.c.bf16 %v7084_v25, %v7079_v7  ;;  %v19900_v25 = vld [vmem:[#allocation13 + $0x348] ss:$16 sps:$4 sm:$0xff]  }
0x1239   :  { %9268 = vmatprep.subr.bf16.mxu0 %v19761_v54  ;;  %v19822_v54 = vld [vmem:[#allocation13 + $0x2e8] ss:$16 sps:$4 sm:$0xff]   ;;  %v19896_v33 = vld [vmem:[#allocation13 + $0x36c] ss:$16 sps:$4 sm:$0xff]  }
0x123a   :  { %v19905_v7 = vld [vmem:[#allocation13 + $0x54c] ss:$16 sps:$4 sm:$0xff]  }
0x123b   :  { %9226 = vmatpush1.bf16.msra.mxu1 %v19756_v20  ;;  %v19825_v20 = vld [vmem:[#allocation13 + $0x4e8] ss:$16 sps:$4 sm:$0xff]  }
0x123c   :  { %9269 = vmatpush1.bf16.msra.mxu0 %v19759_v58  ;;  %9227 = vmatprep.subr.bf16.mxu1 %v19764_v28  ;;  %v19830_v58 = vld [vmem:[#allocation13 + $0x2cc] ss:$16 sps:$4 sm:$0xff]  }
0x123d   :  { %9270 = vmatprep.subr.bf16.mxu0 %v19767_v22  ;;  %v19833_v28 = vld [vmem:[#allocation13 + $0x4cc] ss:$16 sps:$4 sm:$0xff]   ;;  %v19828_v22 = vld [vmem:[#allocation13 + $0x2c8] ss:$16 sps:$4 sm:$0xff]  }
0x123f   :  { %9228 = vmatpush1.bf16.msra.mxu1 %v19762_v57  ;;  %v19831_v57 = vld [vmem:[#allocation13 + $0x4c8] ss:$16 sps:$4 sm:$0xff]  }
0x1240   :  { %9271 = vmatpush1.bf16.msra.mxu0 %v19765_v34  ;;  %9229 = vmatprep.subr.bf16.mxu1 %v19770_v21  ;;  %v19836_v34 = vld [vmem:[#allocation13 + $0x2ac] ss:$16 sps:$4 sm:$0xff]  }
0x1241   :  { %9272 = vmatprep.subr.bf16.mxu0 %v19773_v1  ;;  %v19839_v21 = vld [vmem:[#allocation13 + $0x4ac] ss:$16 sps:$4 sm:$0xff]   ;;  %v19834_v1 = vld [vmem:[#allocation13 + $0x2a8] ss:$16 sps:$4 sm:$0xff]  }
0x1243   :  { %9230 = vmatpush1.bf16.msra.mxu1 %v19768_v15  ;;  %v19837_v15 = vld [vmem:[#allocation13 + $0x4a8] ss:$16 sps:$4 sm:$0xff]  }
0x1244   :  { %9273 = vmatpush1.bf16.msra.mxu0 %v19771_v2  ;;  %9231 = vmatprep.subr.bf16.mxu1 %v19776_v12  ;;  %v19842_v2 = vld [vmem:[#allocation13 + $0x28c] ss:$16 sps:$4 sm:$0xff]   ;;  %v19840_v12 = vld [vmem:[#allocation13 + $0x288] ss:$16 sps:$4 sm:$0xff]  }
0x1245   :  { %9274 = vmatprep.subr.bf16.mxu0 %v19779_v59  ;;  %v19843_v59 = vld [vmem:[#allocation13 + $0x488] ss:$16 sps:$4 sm:$0xff]  }
0x1247   :  { %9232 = vmatpush2.bf16.msra.mxu1 %v19774_v11  ;;  %v19848_v11 = vld [vmem:[#allocation13 + $0x26c] ss:$16 sps:$4 sm:$0xff]  }
0x1248   :  { %9275 = vmatpush2.bf16.msra.mxu0 %v19777_v8  ;;  %9233 = vmatprep.subr.bf16.mxu1 %v19782_v39  ;;  %v19851_v8 = vld [vmem:[#allocation13 + $0x46c] ss:$16 sps:$4 sm:$0xff]   ;;  %v19846_v39 = vld [vmem:[#allocation13 + $0x268] ss:$16 sps:$4 sm:$0xff]  }
0x1249   :  { %9276 = vmatprep.subr.bf16.mxu0 %v19785_v41  ;;  %v19857_v41 = vld [vmem:[#allocation13 + $0x44c] ss:$16 sps:$4 sm:$0xff]  }
0x124b   :  { %9234 = vmatpush2.bf16.msra.mxu1 %v19780_v43  ;;  %v19852_v43 = vld [vmem:[#allocation13 + $0x248] ss:$16 sps:$4 sm:$0xff]  }
0x124c   :  { %9277 = vmatpush2.bf16.msra.mxu0 %v19783_v32  ;;  %9235 = vmatprep.subr.bf16.mxu1 %v19788_v19  ;;  %v19855_v32 = vld [vmem:[#allocation13 + $0x448] ss:$16 sps:$4 sm:$0xff]   ;;  %v19860_v19 = vld [vmem:[#allocation13 + $0x22c] ss:$16 sps:$4 sm:$0xff]  }
0x124d   :  { %9278 = vmatprep.subr.bf16.mxu0 %v19791_v16  ;;  %v19863_v16 = vld [vmem:[#allocation13 + $0x42c] ss:$16 sps:$4 sm:$0xff]  }
0x124f   :  { %9236 = vmatpush2.bf16.msra.mxu1 %v19786_v61  ;;  %v19858_v61 = vld [vmem:[#allocation13 + $0x228] ss:$16 sps:$4 sm:$0xff]  }
0x1250   :  { %9279 = vmatpush2.bf16.msra.mxu0 %v19789_v6  ;;  %9237 = vmatprep.subr.bf16.mxu1 %v19794_v49  ;;  %v19861_v6 = vld [vmem:[#allocation13 + $0x428] ss:$16 sps:$4 sm:$0xff]   ;;  %v19866_v49 = vld [vmem:[#allocation13 + $0x20c] ss:$16 sps:$4 sm:$0xff]  }
0x1251   :  { %9280 = vmatprep.subr.bf16.mxu0 %v19797_v45  ;;  %v19869_v45 = vld [vmem:[#allocation13 + $0x40c] ss:$16 sps:$4 sm:$0xff]  }
0x1253   :  { %9238 = vmatpush2.bf16.msra.mxu1 %v19792_v60  ;;  %v19864_v60 = vld [vmem:[#allocation13 + $0x208] ss:$16 sps:$4 sm:$0xff]  }
0x1254   :  { %9281 = vmatpush2.bf16.msra.mxu0 %v19795_v35  ;;  %9239 = vmatprep.subr.bf16.mxu1 %v19800_v23  ;;  %v19867_v35 = vld [vmem:[#allocation13 + $0x408] ss:$16 sps:$4 sm:$0xff]   ;;  %v19872_v23 = vld [vmem:[#allocation13 + $0x3ec] ss:$16 sps:$4 sm:$0xff]  }
0x1255   :  { %9282 = vmatprep.subr.bf16.mxu0 %v19803_v26  ;;  %v19875_v26 = vld [vmem:[#allocation13 + $0x5ec] ss:$16 sps:$4 sm:$0xff]  }
0x1257   :  { %9240 = vmatpush2.bf16.msra.mxu1 %v19798_v46  ;;  %v19870_v46 = vld [vmem:[#allocation13 + $0x3e8] ss:$16 sps:$4 sm:$0xff]  }
0x1258   :  { %9283 = vmatpush2.bf16.msra.mxu0 %v19801_v55  ;;  %9241 = vmatprep.subr.bf16.mxu1 %v19806_v14  ;;  %v19873_v55 = vld [vmem:[#allocation13 + $0x5e8] ss:$16 sps:$4 sm:$0xff]   ;;  %v19878_v14 = vld [vmem:[#allocation13 + $0x3cc] ss:$16 sps:$4 sm:$0xff]  }
0x1259   :  { %9284 = vmatprep.subr.bf16.mxu0 %v19809_v48  ;;  %v19881_v48 = vld [vmem:[#allocation13 + $0x5cc] ss:$16 sps:$4 sm:$0xff]  }
0x125b   :  { %9242 = vmatpush2.bf16.msra.mxu1 %v19804_v47  ;;  %v19876_v47 = vld [vmem:[#allocation13 + $0x3c8] ss:$16 sps:$4 sm:$0xff]  }
0x125c   :  { %9285 = vmatpush2.bf16.msra.mxu0 %v19807_v5  ;;  %9243 = vmatprep.subr.bf16.mxu1 %v19812_v27  ;;  %v19879_v5 = vld [vmem:[#allocation13 + $0x5c8] ss:$16 sps:$4 sm:$0xff]   ;;  %v19884_v27 = vld [vmem:[#allocation13 + $0x3ac] ss:$16 sps:$4 sm:$0xff]  }
0x125d   :  { %9286 = vmatprep.subr.bf16.mxu0 %v19815_v9  ;;  %v19887_v9 = vld [vmem:[#allocation13 + $0x5ac] ss:$16 sps:$4 sm:$0xff]  }
0x125f   :  { %9244 = vmatpush2.bf16.msra.mxu1 %v19810_v18  ;;  %v19890_v18 = vld [vmem:[#allocation13 + $0x38c] ss:$16 sps:$4 sm:$0xff]  }
0x1260   :  { %9287 = vmatpush2.bf16.msra.mxu0 %v19813_v63  ;;  %9245 = vmatprep.subr.bf16.mxu1 %v19818_v53  ;;  %v19888_v63 = vld [vmem:[#allocation13 + $0x388] ss:$16 sps:$4 sm:$0xff]   ;;  %v19899_v53 = vld [vmem:[#allocation13 + $0x56c] ss:$16 sps:$4 sm:$0xff]  }
0x1261   :  { %9288 = vmatprep.subr.bf16.mxu0 %v19821_v24  ;;  %v19894_v24 = vld [vmem:[#allocation13 + $0x368] ss:$16 sps:$4 sm:$0xff]  }
0x1263   :  { %9246 = vmatpush2.bf16.msra.mxu1 %v19816_v17  ;;  %v19897_v17 = vld [vmem:[#allocation13 + $0x568] ss:$16 sps:$4 sm:$0xff]  }
0x1264   :  { %9289 = vmatpush2.bf16.msra.mxu0 %v19819_v0  ;;  %9301 = vmatprep.subr.bf16.mxu1 %v19824_v62  ;;  %v19902_v0 = vld [vmem:[#allocation13 + $0x34c] ss:$16 sps:$4 sm:$0xff]   ;;  %v19903_v62 = vld [vmem:[#allocation13 + $0x548] ss:$16 sps:$4 sm:$0xff]  }
0x1265   :  { %9344 = vmatprep.subr.bf16.mxu0 %v19827_v4  ;;  %v19908_v4 = vld [vmem:[#allocation13 + $0x32c] ss:$16 sps:$4 sm:$0xff]  }
0x1266   :  { %9248 = vmatmul.mubr.bf16.vlgmr.msra.gmra.mxu1 %v23146_v38 }
0x1267   :  { %9291 = vmatmul.mubr.bf16.vlgmr.msra.gmra.mxu0 %v23106_v52  ;;  %9302 = vmatpush1.bf16.msra.mxu1 %v19822_v54  ;;  %v19845_v52 = vld [vmem:[#allocation13 + $0x48c] ss:$16 sps:$4 sm:$0xff]  }
0x1268   :  { %9345 = vmatpush1.bf16.msra.mxu0 %v19825_v20  ;;  %9303 = vmatprep.subr.bf16.mxu1 %v19830_v58  ;;  %v19911_v54 = vld [vmem:[#allocation13 + $0x52c] ss:$16 sps:$4 sm:$0xff]   ;;  %v19906_v20 = vld [vmem:[#allocation13 + $0x328] ss:$16 sps:$4 sm:$0xff]  }
0x1269   :  { %9346 = vmatprep.subr.bf16.mxu0 %v19833_v28  ;;  %9333 = vmatprep.mubr.bf16.mxu1 %v23097_v13  ;;  %v19849_v13 = vld [vmem:[#allocation13 + $0x468] ss:$16 sps:$4 sm:$0xff]   ;;  %v19914_v28 = vld [vmem:[#allocation13 + $0x30c] ss:$16 sps:$4 sm:$0xff]  }
0x126a   :  { %9376 = vmatprep.mubr.bf16.mxu0 %v23116_v42  ;;  %v19854_v42 = vld [vmem:[#allocation13 + $0x24c] ss:$16 sps:$4 sm:$0xff]   ;;  %v19909_v58 = vld [vmem:[#allocation13 + $0x528] ss:$16 sps:$4 sm:$0xff]  }
0x126b   :  { %9304 = vmatpush1.bf16.msra.mxu1 %v19828_v22  ;;  %v19917_v22 = vld [vmem:[#allocation13 + $0x50c] ss:$16 sps:$4 sm:$0xff]  }
0x126c   :  { %9347 = vmatpush1.bf16.msra.mxu0 %v19831_v57  ;;  %9305 = vmatprep.subr.bf16.mxu1 %v19836_v34  ;;  %v19912_v57 = vld [vmem:[#allocation13 + $0x308] ss:$16 sps:$4 sm:$0xff]  }
0x126d   :  { %9348 = vmatprep.subr.bf16.mxu0 %v19839_v21  ;;  %v19915_v34 = vld [vmem:[#allocation13 + $0x508] ss:$16 sps:$4 sm:$0xff]   ;;  %v19920_v21 = vld [vmem:[#allocation13 + $0x6ec] ss:$16 sps:$4 sm:$0xff]  }
0x126f   :  { %9306 = vmatpush1.bf16.msra.mxu1 %v19834_v1  ;;  %v19923_v1 = vld [vmem:[#allocation13 + $0x8ec] ss:$16 sps:$4 sm:$0xff]  }
0x1270   :  { %9349 = vmatpush1.bf16.msra.mxu0 %v19837_v15  ;;  %9307 = vmatprep.subr.bf16.mxu1 %v19842_v2  ;;  %v19918_v15 = vld [vmem:[#allocation13 + $0x6e8] ss:$16 sps:$4 sm:$0xff]  }
0x1271   :  { %9350 = vmatprep.subr.bf16.mxu0 %v19845_v52  ;;  %v19921_v2 = vld [vmem:[#allocation13 + $0x8e8] ss:$16 sps:$4 sm:$0xff]   ;;  %v19926_v52 = vld [vmem:[#allocation13 + $0x6cc] ss:$16 sps:$4 sm:$0xff]  }
0x1273   :  { %9308 = vmatpush1.bf16.msra.mxu1 %v19840_v12  ;;  %v19929_v12 = vld [vmem:[#allocation13 + $0x8cc] ss:$16 sps:$4 sm:$0xff]  }
0x1274   :  { %9351 = vmatpush1.bf16.msra.mxu0 %v19843_v59  ;;  %9309 = vmatprep.subr.bf16.mxu1 %v19848_v11  ;;  %v19924_v59 = vld [vmem:[#allocation13 + $0x6c8] ss:$16 sps:$4 sm:$0xff]  }
0x1275   :  { %9352 = vmatprep.subr.bf16.mxu0 %v19851_v8  ;;  %v19927_v11 = vld [vmem:[#allocation13 + $0x8c8] ss:$16 sps:$4 sm:$0xff]   ;;  %v19932_v8 = vld [vmem:[#allocation13 + $0x6ac] ss:$16 sps:$4 sm:$0xff]  }
0x1277   :  { %9310 = vmatpush1.bf16.msra.mxu1 %v19846_v39  ;;  %v19935_v39 = vld [vmem:[#allocation13 + $0x8ac] ss:$16 sps:$4 sm:$0xff]  }
0x1278   :  { %9353 = vmatpush1.bf16.msra.mxu0 %v19849_v13  ;;  %9311 = vmatprep.subr.bf16.mxu1 %v19854_v42  ;;  %v19930_v13 = vld [vmem:[#allocation13 + $0x6a8] ss:$16 sps:$4 sm:$0xff]  }
0x1279   :  { %9354 = vmatprep.subr.bf16.mxu0 %v19857_v41  ;;  %v19933_v42 = vld [vmem:[#allocation13 + $0x8a8] ss:$16 sps:$4 sm:$0xff]  }
0x127a   :  { %v19936_v41 = vld [vmem:[#allocation13 + $0x688] ss:$16 sps:$4 sm:$0xff]  }
0x127b   :  { %9312 = vmatpush1.bf16.msra.mxu1 %v19852_v43  ;;  %v19939_v43 = vld [vmem:[#allocation13 + $0x888] ss:$16 sps:$4 sm:$0xff]  }
0x127c   :  { %9355 = vmatpush1.bf16.msra.mxu0 %v19855_v32  ;;  %9313 = vmatprep.subr.bf16.mxu1 %v19860_v19  ;;  %v19944_v32 = vld [vmem:[#allocation13 + $0x66c] ss:$16 sps:$4 sm:$0xff]  }
0x127d   :  { %9356 = vmatprep.subr.bf16.mxu0 %v19863_v16  ;;  %v19947_v19 = vld [vmem:[#allocation13 + $0x86c] ss:$16 sps:$4 sm:$0xff]  }
0x127e   :  { %v19950_v16 = vld [vmem:[#allocation13 + $0x64c] ss:$16 sps:$4 sm:$0xff]  }
0x127f   :  { %9314 = vmatpush1.bf16.msra.mxu1 %v19858_v61  ;;  %v19953_v61 = vld [vmem:[#allocation13 + $0x84c] ss:$16 sps:$4 sm:$0xff]  }
0x1280   :  { %9357 = vmatpush1.bf16.msra.mxu0 %v19861_v6  ;;  %9315 = vmatprep.subr.bf16.mxu1 %v19866_v49  ;;  %v19948_v6 = vld [vmem:[#allocation13 + $0x648] ss:$16 sps:$4 sm:$0xff]  }
0x1281   :  { %9358 = vmatprep.subr.bf16.mxu0 %v19869_v45  ;;  %v19951_v49 = vld [vmem:[#allocation13 + $0x848] ss:$16 sps:$4 sm:$0xff]   ;;  %v19956_v45 = vld [vmem:[#allocation13 + $0x62c] ss:$16 sps:$4 sm:$0xff]  }
0x1283   :  { %9316 = vmatpush1.bf16.msra.mxu1 %v19864_v60  ;;  %v19959_v60 = vld [vmem:[#allocation13 + $0x82c] ss:$16 sps:$4 sm:$0xff]  }
0x1284   :  { %9359 = vmatpush1.bf16.msra.mxu0 %v19867_v35  ;;  %9317 = vmatprep.subr.bf16.mxu1 %v19872_v23  ;;  %v19954_v35 = vld [vmem:[#allocation13 + $0x628] ss:$16 sps:$4 sm:$0xff]  }
0x1285   :  { %9360 = vmatprep.subr.bf16.mxu0 %v19875_v26  ;;  %v19957_v23 = vld [vmem:[#allocation13 + $0x828] ss:$16 sps:$4 sm:$0xff]   ;;  %v19962_v26 = vld [vmem:[#allocation13 + $0x60c] ss:$16 sps:$4 sm:$0xff]  }
0x1287   :  { %9318 = vmatpush2.bf16.msra.mxu1 %v19870_v46  ;;  %v19965_v46 = vld [vmem:[#allocation13 + $0x80c] ss:$16 sps:$4 sm:$0xff]  }
0x1288   :  { %9361 = vmatpush2.bf16.msra.mxu0 %v19873_v55  ;;  %9319 = vmatprep.subr.bf16.mxu1 %v19878_v14  ;;  %v19960_v55 = vld [vmem:[#allocation13 + $0x608] ss:$16 sps:$4 sm:$0xff]  }
0x1289   :  { %9362 = vmatprep.subr.bf16.mxu0 %v19881_v48  ;;  %v19963_v14 = vld [vmem:[#allocation13 + $0x808] ss:$16 sps:$4 sm:$0xff]   ;;  %v19968_v48 = vld [vmem:[#allocation13 + $0x7ec] ss:$16 sps:$4 sm:$0xff]  }
0x128b   :  { %9320 = vmatpush2.bf16.msra.mxu1 %v19876_v47  ;;  %v19971_v47 = vld [vmem:[#allocation13 + $0x9ec] ss:$16 sps:$4 sm:$0xff]  }
0x128c   :  { %9363 = vmatpush2.bf16.msra.mxu0 %v19879_v5  ;;  %9321 = vmatprep.subr.bf16.mxu1 %v19884_v27  ;;  %v19966_v5 = vld [vmem:[#allocation13 + $0x7e8] ss:$16 sps:$4 sm:$0xff]  }
0x128d   :  { %9364 = vmatprep.subr.bf16.mxu0 %v19887_v9  ;;  %v19969_v27 = vld [vmem:[#allocation13 + $0x9e8] ss:$16 sps:$4 sm:$0xff]   ;;  %v19974_v9 = vld [vmem:[#allocation13 + $0x7cc] ss:$16 sps:$4 sm:$0xff]  }
0x128f   :  { %9322 = vmatpush2.bf16.msra.mxu1 %v19882_v37  ;;  %v19977_v37 = vld [vmem:[#allocation13 + $0x9cc] ss:$16 sps:$4 sm:$0xff]  }
0x1290   :  { %9365 = vmatpush2.bf16.msra.mxu0 %v19885_v30  ;;  %9323 = vmatprep.subr.bf16.mxu1 %v19890_v18  ;;  %v19972_v30 = vld [vmem:[#allocation13 + $0x7c8] ss:$16 sps:$4 sm:$0xff]  }
0x1291   :  { %9366 = vmatprep.subr.bf16.mxu0 %v19893_v10  ;;  %v19975_v18 = vld [vmem:[#allocation13 + $0x9c8] ss:$16 sps:$4 sm:$0xff]   ;;  %v19980_v10 = vld [vmem:[#allocation13 + $0x7ac] ss:$16 sps:$4 sm:$0xff]  }
0x1293   :  { %9324 = vmatpush2.bf16.msra.mxu1 %v19888_v63  ;;  %v19983_v63 = vld [vmem:[#allocation13 + $0x9ac] ss:$16 sps:$4 sm:$0xff]  }
0x1294   :  { %9367 = vmatpush2.bf16.msra.mxu0 %v19891_v50  ;;  %9325 = vmatprep.subr.bf16.mxu1 %v19896_v33  ;;  %v19978_v50 = vld [vmem:[#allocation13 + $0x7a8] ss:$16 sps:$4 sm:$0xff]  }
0x1295   :  { %9368 = vmatprep.subr.bf16.mxu0 %v19899_v53  ;;  %v19981_v33 = vld [vmem:[#allocation13 + $0x9a8] ss:$16 sps:$4 sm:$0xff]   ;;  %v19986_v53 = vld [vmem:[#allocation13 + $0x78c] ss:$16 sps:$4 sm:$0xff]  }
0x1297   :  { %9326 = vmatpush2.bf16.msra.mxu1 %v19894_v24  ;;  %v19989_v24 = vld [vmem:[#allocation13 + $0x98c] ss:$16 sps:$4 sm:$0xff]  }
0x1298   :  { %9369 = vmatpush2.bf16.msra.mxu0 %v19897_v17  ;;  %9327 = vmatprep.subr.bf16.mxu1 %v19902_v0  ;;  %v19984_v17 = vld [vmem:[#allocation13 + $0x788] ss:$16 sps:$4 sm:$0xff]  }
0x1299   :  { %9370 = vmatprep.subr.bf16.mxu0 %v19905_v7  ;;  %v19987_v0 = vld [vmem:[#allocation13 + $0x988] ss:$16 sps:$4 sm:$0xff]   ;;  %v19992_v7 = vld [vmem:[#allocation13 + $0x76c] ss:$16 sps:$4 sm:$0xff]  }
0x129b   :  { %9328 = vmatpush2.bf16.msra.mxu1 %v19900_v25  ;;  %v19995_v25 = vld [vmem:[#allocation13 + $0x96c] ss:$16 sps:$4 sm:$0xff]  }
0x129c   :  { %9371 = vmatpush2.bf16.msra.mxu0 %v19903_v62  ;;  %9329 = vmatprep.subr.bf16.mxu1 %v19908_v4  ;;  %v19990_v62 = vld [vmem:[#allocation13 + $0x768] ss:$16 sps:$4 sm:$0xff]  }
0x129d   :  { %9372 = vmatprep.subr.bf16.mxu0 %v19911_v54  ;;  %v19993_v4 = vld [vmem:[#allocation13 + $0x968] ss:$16 sps:$4 sm:$0xff]   ;;  %v19998_v54 = vld [vmem:[#allocation13 + $0x74c] ss:$16 sps:$4 sm:$0xff]  }
0x129f   :  { %9330 = vmatpush2.bf16.msra.mxu1 %v19906_v20  ;;  %v20001_v20 = vld [vmem:[#allocation13 + $0x94c] ss:$16 sps:$4 sm:$0xff]  }
0x12a0   :  { %9373 = vmatpush2.bf16.msra.mxu0 %v19909_v58  ;;  %9331 = vmatprep.subr.bf16.mxu1 %v19914_v28  ;;  %v19996_v58 = vld [vmem:[#allocation13 + $0x748] ss:$16 sps:$4 sm:$0xff]  }
0x12a1   :  { %9374 = vmatprep.subr.bf16.mxu0 %v19917_v22  ;;  %v19999_v28 = vld [vmem:[#allocation13 + $0x948] ss:$16 sps:$4 sm:$0xff]   ;;  %v20004_v22 = vld [vmem:[#allocation13 + $0x72c] ss:$16 sps:$4 sm:$0xff]  }
0x12a3   :  { %9332 = vmatpush2.bf16.msra.mxu1 %v19912_v57  ;;  %v20007_v57 = vld [vmem:[#allocation13 + $0x92c] ss:$16 sps:$4 sm:$0xff]  }
0x12a4   :  { %9375 = vmatpush2.bf16.msra.mxu0 %v19915_v34  ;;  %9387 = vmatprep.subr.bf16.mxu1 %v19920_v21  ;;  %v20002_v34 = vld [vmem:[#allocation13 + $0x728] ss:$16 sps:$4 sm:$0xff]  }
0x12a5   :  { %9430 = vmatprep.subr.bf16.mxu0 %v19923_v1  ;;  %v20005_v21 = vld [vmem:[#allocation13 + $0x928] ss:$16 sps:$4 sm:$0xff]   ;;  %v20010_v1 = vld [vmem:[#allocation13 + $0x70c] ss:$16 sps:$4 sm:$0xff]  }
0x12a6   :  { %9334 = vmatmul.mubr.bf16.vlgmr.msra.gmra.mxu1 %v23108_v44  ;;  %v19938_v44 = vld [vmem:[#allocation13 + $0x68c] ss:$16 sps:$4 sm:$0xff]  }
0x12a7   :  { %9377 = vmatmul.mubr.bf16.vlgmr.msra.gmra.mxu0 %v23130_v36  ;;  %9388 = vmatpush1.bf16.msra.mxu1 %v19918_v15  ;;  %v19941_v36 = vld [vmem:[#allocation13 + $0x88c] ss:$16 sps:$4 sm:$0xff]  }
0x12a8   :  { %9431 = vmatpush1.bf16.msra.mxu0 %v19921_v2  ;;  %9389 = vmatprep.subr.bf16.mxu1 %v19926_v52  ;;  %v20013_v15 = vld [vmem:[#allocation13 + $0x90c] ss:$16 sps:$4 sm:$0xff]   ;;  %v20008_v2 = vld [vmem:[#allocation13 + $0x708] ss:$16 sps:$4 sm:$0xff]  }
0x12a9   :  { %9432 = vmatprep.subr.bf16.mxu0 %v19929_v12  ;;  %9419 = vmatprep.mubr.bf16.mxu1 %v23120_v40  ;;  %v19942_v40 = vld [vmem:[#allocation13 + $0x668] ss:$16 sps:$4 sm:$0xff]   ;;  %v23485_v12 = vmov 0  }
0x12aa   :  { %9462 = vmatprep.mubr.bf16.mxu0 %v23140_v51  ;;  %v19945_v51 = vld [vmem:[#allocation13 + $0x868] ss:$16 sps:$4 sm:$0xff]  }
0x12ab   :  { %9390 = vmatpush1.bf16.msra.mxu1 %v19924_v59  ;;  %v20011_v52 = vld [vmem:[#allocation13 + $0x908] ss:$16 sps:$4 sm:$0xff]   ;;  %v9077_v59 = vpop.f32.mrf.mxu1 }
0x12ac   :  { %9433 = vmatpush1.bf16.msra.mxu0 %v19927_v11  ;;  %9391 = vmatprep.subr.bf16.mxu1 %v19932_v8  ;;  %v9120_v8 = vpop.f32.mrf.mxu0 }
0x12ad   :  { %9434 = vmatprep.subr.bf16.mxu0 %v19935_v39  ;;  %v9079_v11 = vpop.f32.mrf.mxu1 }
0x12af   :  { %9392 = vmatpush1.bf16.msra.mxu1 %v19930_v13  ;;  %v9081_v39 = vpop.f32.mrf.mxu1  ;;  %v9122_v13 = vpop.f32.mrf.mxu0 }
0x12b0   :  { %9435 = vmatpush1.bf16.msra.mxu0 %v19933_v42  ;;  %9393 = vmatprep.subr.bf16.mxu1 %v19938_v44  ;;  %v23160_v44 = vld [vmem:[#allocation33] sm:$0xf] }
0x12b1   :  { %9436 = vmatprep.subr.bf16.mxu0 %v19941_v36  ;;  %v9083_v42 = vpop.f32.mrf.mxu1  ;;  %v9124_v36 = vpop.f32.mrf.mxu0 }
0x12b3   :  { %9394 = vmatpush1.bf16.msra.mxu1 %v19936_v41 }
0x12b4   :  { %9437 = vmatpush1.bf16.msra.mxu0 %v19939_v43  ;;  %9395 = vmatprep.subr.bf16.mxu1 %v19944_v32  ;;  %v7430_v43 = vrot.slane %v23160_v44, %v23084_v56 }
0x12b5   :  { %9438 = vmatprep.subr.bf16.mxu0 %v19947_v19 }
0x12b7   :  { %9396 = vmatpush1.bf16.msra.mxu1 %v19942_v40  ;;  %v9080_v40 = vadd.f32 %v9079_v11, %v7430_v43 }
0x12b8   :  { %9439 = vmatpush1.bf16.msra.mxu0 %v19945_v51  ;;  %9397 = vmatprep.subr.bf16.mxu1 %v19950_v16 }
0x12b9   :  { %9440 = vmatprep.subr.bf16.mxu0 %v19953_v61 }
0x12bb   :  { %9398 = vmatpush1.bf16.msra.mxu1 %v19948_v6  ;;  %v9084_v6 = vadd.f32 %v9083_v42, %v7430_v43 }
0x12bc   :  { %9441 = vmatpush1.bf16.msra.mxu0 %v19951_v49  ;;  %9399 = vmatprep.subr.bf16.mxu1 %v19956_v45  ;;  %v9123_v45 = vadd.f32 %v9122_v13, %v9080_v40 }
0x12bd   :  { %9442 = vmatprep.subr.bf16.mxu0 %v19959_v60 }
0x12bf   :  { %9400 = vmatpush1.bf16.msra.mxu1 %v19954_v35 }
0x12c0   :  { %9443 = vmatpush1.bf16.msra.mxu0 %v19957_v23  ;;  %9401 = vmatprep.subr.bf16.mxu1 %v19962_v26 }
0x12c1   :  { %9444 = vmatprep.subr.bf16.mxu0 %v19965_v46 }
0x12c3   :  { %9402 = vmatpush1.bf16.msra.mxu1 %v19960_v55 }
0x12c4   :  { %9445 = vmatpush1.bf16.msra.mxu0 %v19963_v14  ;;  %9403 = vmatprep.subr.bf16.mxu1 %v19968_v48 }
0x12c5   :  { %9446 = vmatprep.subr.bf16.mxu0 %v19971_v47 }
0x12c7   :  { %9404 = vmatpush2.bf16.msra.mxu1 %v19966_v5 }
0x12c8   :  { %9447 = vmatpush2.bf16.msra.mxu0 %v19969_v27  ;;  %9405 = vmatprep.subr.bf16.mxu1 %v19974_v9 }
0x12c9   :  { %9448 = vmatprep.subr.bf16.mxu0 %v19977_v37 }
0x12cb   :  { %9406 = vmatpush2.bf16.msra.mxu1 %v19972_v30 }
0x12cc   :  { %9449 = vmatpush2.bf16.msra.mxu0 %v19975_v18  ;;  %9407 = vmatprep.subr.bf16.mxu1 %v19980_v10 }
0x12cd   :  { %9450 = vmatprep.subr.bf16.mxu0 %v19983_v63 }
0x12cf   :  { %9408 = vmatpush2.bf16.msra.mxu1 %v19978_v50 }
0x12d0   :  { %9451 = vmatpush2.bf16.msra.mxu0 %v19981_v33  ;;  %9409 = vmatprep.subr.bf16.mxu1 %v19986_v53 }
0x12d1   :  { %9452 = vmatprep.subr.bf16.mxu0 %v19989_v24 }
0x12d3   :  { %9410 = vmatpush2.bf16.msra.mxu1 %v19984_v17 }
0x12d4   :  { %9453 = vmatpush2.bf16.msra.mxu0 %v19987_v0  ;;  %9411 = vmatprep.subr.bf16.mxu1 %v19992_v7 }
0x12d5   :  { %9454 = vmatprep.subr.bf16.mxu0 %v19995_v25 }
0x12d7   :  { %9412 = vmatpush2.bf16.msra.mxu1 %v19990_v62 }
0x12d8   :  { %9455 = vmatpush2.bf16.msra.mxu0 %v19993_v4  ;;  %9413 = vmatprep.subr.bf16.mxu1 %v19998_v54 }
0x12d9   :  { %9456 = vmatprep.subr.bf16.mxu0 %v20001_v20  ;;  %v9485_v20 = vld [vmem:[#allocation42] sm:$0xf] }
0x12db   :  { %9414 = vmatpush2.bf16.msra.mxu1 %v19996_v58  ;;  %v9571_v58 = vld [vmem:[#allocation43] sm:$0xf] }
0x12dc   :  { %9457 = vmatpush2.bf16.msra.mxu0 %v19999_v28  ;;  %9415 = vmatprep.subr.bf16.mxu1 %v20004_v22 }
0x12dd   :  { %9458 = vmatprep.subr.bf16.mxu0 %v20007_v57 }
0x12df   :  { %9416 = vmatpush2.bf16.msra.mxu1 %v20002_v34 }
0x12e0   :  { %9459 = vmatpush2.bf16.msra.mxu0 %v20005_v21  ;;  %9417 = vmatprep.subr.bf16.mxu1 %v20010_v1 }
0x12e1   :  { %9460 = vmatprep.subr.bf16.mxu0 %v20013_v15  ;;  %v7437_v15 = vsub.s32 3, %v23078_v31 }
0x12e3   :  { %9418 = vmatpush2.bf16.msra.mxu1 %v20008_v2  ;;  %v7433_v2 = vsub.s32 2, %v23078_v31  ;;  %v7438_v11 = vrot.slane %v23160_v44, %v7437_v15 }
0x12e4   :  { %9461 = vmatpush2.bf16.msra.mxu0 %v20011_v52 }
0x12e6   :  { %9420 = vmatmul.mubr.bf16.vlgmr.msra.gmra.mxu1 %v23132_v29  ;;  %v9163_v41 = vpop.f32.mrf.mxu1  ;;  %v7426_v29 = vrot.slane %v23160_v44, %v23081_v3 }
0x12e7   :  { %9463 = vmatmul.mubr.bf16.vlgmr.msra.gmra.mxu0 %v23146_v38  ;;  %9607 = vmatprep.mubr.bf16.mxu1 %v23485_v12  ;;  %v9126_v38 = vpop.f32.mrf.mxu0 }
0x12e8   :  { %9521 = vmatprep.mubr.bf16.mxu0 %v23485_v12  ;;  %v9165_v32 = vpop.f32.mrf.mxu1  ;;  %v9082_v51 = vadd.f32 %v9081_v39, %v7426_v29  ;;  %v9078_v16 = vadd.f32 %v9077_v59, %v7426_v29  ;;  %v9127_v26 = vadd.f32 %v9126_v38, %v9084_v6 }
0x12e9   :  { %v9206_v19 = vpop.f32.mrf.mxu0  ;;  %v9166_v46 = vadd.f32 %v9165_v32, %v9123_v45 }
0x12ea   :  { %v9167_v61 = vpop.f32.mrf.mxu1  ;;  %v9125_v60 = vadd.f32 %v9124_v36, %v9082_v51  ;;  %v9121_v35 = vadd.f32 %v9120_v8, %v9078_v16  ;;  %v7434_v8 = vrot.slane %v23160_v44, %v7433_v2 }
0x12eb   :  { %v9208_v49 = vpop.f32.mrf.mxu0 }
0x12ec   :  { %v9169_v23 = vpop.f32.mrf.mxu1  ;;  %v9168_v55 = vadd.f32 %v9167_v61, %v9125_v60  ;;  %v9164_v14 = vadd.f32 %v9163_v41, %v9121_v35  ;;  %v9209_v9 = vadd.f32 %v9208_v49, %v9166_v46 }
0x12ed   :  { %v9210_v48 = vpop.f32.mrf.mxu0  ;;  %v9170_v5 = vadd.f32 %v9169_v23, %v9127_v26 }
0x12ee   :  { %v9211_v37 = vadd.f32 %v9210_v48, %v9168_v55  ;;  %v9207_v30 = vadd.f32 %v9206_v19, %v9164_v14 }
0x12ef   :  { %v9212_v18 = vpop.f32.mrf.mxu0 }
0x12f0   :  { %v9213_v63 = vadd.f32 %v9212_v18, %v9170_v5 }
0x1326   :  { %v9249_v47 = vpop.f32.mrf.mxu1 }
0x1327   :  { %v9250_v53 = vadd.f32 %v9249_v47, %v9207_v30  ;;  %v9292_v28 = vpop.f32.mrf.mxu0 }
0x1328   :  { %v9251_v27 = vpop.f32.mrf.mxu1  ;;  %v9293_v36 = vadd.f32 %v9292_v28, %v7434_v8 }
0x1329   :  { %v9252_v50 = vadd.f32 %v9251_v27, %v9209_v9  ;;  %v9473_v62 = vmax.f32 %v9250_v53, 0.0  ;;  %v9294_v22 = vpop.f32.mrf.mxu0 }
0x132a   :  { %v9253_v10 = vpop.f32.mrf.mxu1  ;;  %v9295_v42 = vadd.f32 %v9294_v22, %v7438_v11 }
0x132b   :  { %v9254_v33 = vadd.f32 %v9253_v10, %v9211_v37  ;;  %v9474_v7 = vmax.f32 %v9252_v50, 0.0  ;;  %v9296_v57 = vpop.f32.mrf.mxu0 }
0x132c   :  { %v9255_v24 = vpop.f32.mrf.mxu1  ;;  %v9297_v41 = vadd.f32 %v9296_v57, %v7434_v8 }
0x132d   :  { %v9256_v17 = vadd.f32 %v9255_v24, %v9213_v63  ;;  %v9477_v0 = vmax.f32 %v9254_v33, 0.0  ;;  %v9298_v34 = vpop.f32.mrf.mxu0 }
0x132e   :  { %v9299_v19 = vadd.f32 %v9298_v34, %v7438_v11 }
0x132f   :  { %v9478_v25 = vmax.f32 %v9256_v17, 0.0  ;;  %v9481_v54 = vpack.c.bf16 %v9477_v0, %v9473_v62 }
0x1331   :  { %v9482_v4 = vpack.c.bf16 %v9478_v25, %v9474_v7 }
0x1333   :  { %9503 = vmatprep.subr.bf16.mxu0 %v9482_v4  ;;  %9589 = vmatprep.subr.bf16.mxu1 %v9482_v4 }
0x1334   :  { %9504 = vmatpush1.bf16.msra.mxu0 %v9481_v54  ;;  %9590 = vmatpush1.bf16.msra.mxu1 %v9481_v54 }
0x1337   :  { %16938 = vmatmul.mubr.msk.bf16.vlgmr.msra.gmra.mxu0 %vm441_vm0, %v9485_v20  ;;  %16940 = vmatmul.mubr.msk.bf16.vlgmr.msra.gmra.mxu1 %vm441_vm0, %v9571_v58 }
0x1338   :  { %9562 = vmatprep.mubr.bf16.mxu0 %v23485_v12 }
0x1366   :  { %v9335_v21 = vpop.f32.mrf.mxu1 }
0x1367   :  { %v9378_v1 = vpop.f32.mrf.mxu0  ;;  %v9336_v29 = vadd.f32 %v9335_v21, %v9293_v36 }
0x1368   :  { %v9337_v52 = vpop.f32.mrf.mxu1 }
0x1369   :  { %v9380_v59 = vpop.f32.mrf.mxu0  ;;  %v9338_v43 = vadd.f32 %v9337_v52, %v9295_v42  ;;  %v9379_v49 = vadd.f32 %v9378_v1, %v9336_v29 }
0x136a   :  { %v9339_v39 = vpop.f32.mrf.mxu1 }
0x136b   :  { %v9382_v13 = vpop.f32.mrf.mxu0  ;;  %v9340_v40 = vadd.f32 %v9339_v39, %v9297_v41  ;;  %v9381_v61 = vadd.f32 %v9380_v59, %v9338_v43 }
0x136c   :  { %v9341_v38 = vpop.f32.mrf.mxu1 }
0x136d   :  { %v9384_v32 = vpop.f32.mrf.mxu0  ;;  %v9342_v6 = vadd.f32 %v9341_v38, %v9299_v19  ;;  %v9383_v35 = vadd.f32 %v9382_v13, %v9340_v40 }
0x136f   :  { %v9385_v55 = vadd.f32 %v9384_v32, %v9342_v6 }
0x13a6   :  { %v9421_v51 = vpop.f32.mrf.mxu1 }
0x13a7   :  { %v9464_v16 = vpop.f32.mrf.mxu0  ;;  %v9422_v23 = vadd.f32 %v9421_v51, %v9379_v49 }
0x13a8   :  { %v9423_v45 = vpop.f32.mrf.mxu1 }
0x13a9   :  { %v9466_v60 = vpop.f32.mrf.mxu0  ;;  %v9424_v44 = vadd.f32 %v9423_v45, %v9381_v61  ;;  %v9465_v9 = vadd.f32 %v9464_v16, %v9422_v23 }
0x13aa   :  { %v9425_v26 = vpop.f32.mrf.mxu1 }
0x13ab   :  { %v9468_v46 = vpop.f32.mrf.mxu0  ;;  %v9426_v14 = vadd.f32 %v9425_v26, %v9383_v35  ;;  %v9467_v47 = vadd.f32 %v9466_v60, %v9424_v44  ;;  %v9475_v50 = vmax.f32 %v9465_v9, 0.0 }
0x13ac   :  { %v9427_v48 = vpop.f32.mrf.mxu1 }
0x13ad   :  { %v9469_v5 = vadd.f32 %v9468_v46, %v9426_v14  ;;  %v9428_v27 = vadd.f32 %v9427_v48, %v9385_v55  ;;  %v9470_v37 = vpop.f32.mrf.mxu0  ;;  %v9476_v10 = vmax.f32 %v9467_v47, 0.0 }
0x13af   :  { %v9471_v30 = vadd.f32 %v9470_v37, %v9428_v27  ;;  %v9479_v18 = vmax.f32 %v9469_v5, 0.0 }
0x13b1   :  { %v9480_v63 = vmax.f32 %v9471_v30, 0.0  ;;  %v9483_v53 = vpack.c.bf16 %v9479_v18, %v9475_v50 }
0x13b3   :  { %v9484_v33 = vpack.c.bf16 %v9480_v63, %v9476_v10 }
0x13b5   :  { %9544 = vmatprep.subr.bf16.mxu0 %v9484_v33 }
0x13b6   :  { %9545 = vmatpush1.bf16.msra.mxu0 %v9483_v53 }
0x13b7   :  { %9630 = vmatprep.subr.bf16.mxu0 %v9484_v33 }
0x13b9   :  { %16939 = vmatmul.mubr.msk.bf16.vlgmr.msra.gmra.mxu0 %vm441_vm0, %v9485_v20 }
0x13ba   :  { %9631 = vmatpush1.bf16.msra.mxu0 %v9483_v53  ;;  %9648 = vmatprep.mubr.bf16.mxu0 %v23485_v12 }
0x13c1   :  { %16941 = vmatmul.mubr.msk.bf16.vlgmr.msra.gmra.mxu0 %vm441_vm0, %v9571_v58 }
0x13f7   :  { %v9523_v24 = vpop.f32.mrf.mxu0  ;;  %v9609_v17 = vpop.f32.mrf.mxu1 }
0x13f8   :  { %v9657_v0 = vmax.f32 %v9523_v24, %v9609_v17 }
0x13f9   :  { %v9525_v7 = vpop.f32.mrf.mxu0  ;;  %v9611_v25 = vpop.f32.mrf.mxu1 }
0x13fa   :  { %9661 = vst [vmem:[#allocation11 + $0x8] sm:$0xff] %v9657_v0  ;;  %v9658_v62 = vmax.f32 %v9525_v7, %v9611_v25 }
0x13fb   :  { %v9527_v4 = vpop.f32.mrf.mxu0  ;;  %v9613_v54 = vpop.f32.mrf.mxu1 }
0x13fc   :  { %9662 = vst [vmem:[#allocation11] sm:$0xff] %v9658_v62 }
0x13fd   :  { %v9528_v28 = vpop.f32.mrf.mxu0  ;;  %v9614_v22 = vpop.f32.mrf.mxu1 }
0x1479   :  { %v9564_v57 = vpop.f32.mrf.mxu0 }
0x147b   :  { %v9566_v34 = vpop.f32.mrf.mxu0 }
0x147d   :  { %v9568_v20 = vpop.f32.mrf.mxu0 }
0x147f   :  { %v9569_v21 = vpop.f32.mrf.mxu0 }
0x1481   :  { %v9650_v1 = vpop.f32.mrf.mxu0 }
0x1482   :  { %v9659_v12 = vmax.f32 %v9564_v57, %v9650_v1 }
0x1483   :  { %v9652_v52 = vpop.f32.mrf.mxu0 }
0x1484   :  { %9663 = vst [vmem:[#allocation11 + $0x10] sm:$0xff] %v9659_v12  ;;  %v9660_v58 = vmax.f32 %v9566_v34, %v9652_v52 }
0x1485   :  { %v9654_v59 = vpop.f32.mrf.mxu0 }
0x1486   :  { %9664 = vst [vmem:[#allocation11 + $0x18] sm:$0xff] %v9660_v58 }
0x1487   :  { %v9655_v11 = vpop.f32.mrf.mxu0 }
0x1488   :  { %21597 = dma.done.wait [#allocation16 + $0x2], 81920 }
0x1489   :  { %21598 = vsyncadd [#allocation16 + $0x2], 4294885376  ;;  %v20014_v8 = vld [vmem:[#allocation14 + $0xe4] ss:$16 sps:$4 sm:$0xff]   ;;  %v20018_v13 = vld [vmem:[#allocation14 + $0xe0] ss:$16 sps:$4 sm:$0xff]  }
0x148a   :  { %v20016_v39 = vld [vmem:[#allocation14 + $0x2e4] ss:$16 sps:$4 sm:$0xff]   ;;  %13619 = vmatprep.subr.bf16.mxu1 %v20014_v8  ;;  %v20019_v42 = vld [vmem:[#allocation14 + $0x2e0] ss:$16 sps:$4 sm:$0xff]  }
0x148b   :  { %13660 = vmatprep.subr.bf16.mxu0 %v20016_v39  ;;  %v20020_v36 = vld [vmem:[#allocation14 + $0xc4] ss:$16 sps:$4 sm:$0xff]   ;;  %13620 = vmatpush1.bf16.msra.mxu1 %v20018_v13  ;;  %v20024_v43 = vld [vmem:[#allocation14 + $0xc0] ss:$16 sps:$4 sm:$0xff]  }
0x148c   :  { %13661 = vmatpush1.bf16.msra.mxu0 %v20019_v42  ;;  %v20022_v41 = vld [vmem:[#allocation14 + $0x2c4] ss:$16 sps:$4 sm:$0xff]   ;;  %13621 = vmatprep.subr.bf16.mxu1 %v20020_v36  ;;  %v20025_v29 = vld [vmem:[#allocation14 + $0x2c0] ss:$16 sps:$4 sm:$0xff]  }
0x148d   :  { %13662 = vmatprep.subr.bf16.mxu0 %v20022_v41  ;;  %v20026_v38 = vld [vmem:[#allocation14 + $0xa4] ss:$16 sps:$4 sm:$0xff]   ;;  %v20030_v19 = vld [vmem:[#allocation14 + $0xa0] ss:$16 sps:$4 sm:$0xff]   ;;  %v9672_v34 = vld [vmem:[#allocation11 + $0x18] sm:$0xf] }
0x148e   :  { %v20028_v32 = vld [vmem:[#allocation14 + $0x2a4] ss:$16 sps:$4 sm:$0xff]   ;;  %v20031_v40 = vld [vmem:[#allocation14 + $0x2a0] ss:$16 sps:$4 sm:$0xff]   ;;  %v23182_v21 = vpack.c.bf16 %v9672_v34, %v9672_v34 }
0x148f   :  { %13622 = vmatpush1.bf16.msra.mxu1 %v20024_v43  ;;  %v20032_v51 = vld [vmem:[#allocation14 + $0x84] ss:$16 sps:$4 sm:$0xff]   ;;  %v20036_v61 = vld [vmem:[#allocation14 + $0x80] ss:$16 sps:$4 sm:$0xff]  }
0x1490   :  { %13663 = vmatpush1.bf16.msra.mxu0 %v20025_v29  ;;  %13623 = vmatprep.subr.bf16.mxu1 %v20026_v38  ;;  %v20034_v16 = vld [vmem:[#allocation14 + $0x284] ss:$16 sps:$4 sm:$0xff]   ;;  %v20037_v6 = vld [vmem:[#allocation14 + $0x280] ss:$16 sps:$4 sm:$0xff]  }
0x1491   :  { %13664 = vmatprep.subr.bf16.mxu0 %v20028_v32  ;;  %v20038_v49 = vld [vmem:[#allocation14 + $0x64] ss:$16 sps:$4 sm:$0xff]   ;;  %v20042_v60 = vld [vmem:[#allocation14 + $0x60] ss:$16 sps:$4 sm:$0xff]   ;;  %13692 = vmatprep.mubr.bf16.mxu0 %v23182_v21  ;;  %v9669_v32 = vld [vmem:[#allocation11 + $0x8] sm:$0xf] }
0x1492   :  { %v20040_v45 = vld [vmem:[#allocation14 + $0x264] ss:$16 sps:$4 sm:$0xff]   ;;  %v20043_v35 = vld [vmem:[#allocation14 + $0x260] ss:$16 sps:$4 sm:$0xff]  }
0x1493   :  { %13624 = vmatpush1.bf16.msra.mxu1 %v20030_v19  ;;  %v20044_v44 = vld [vmem:[#allocation14 + $0x44] ss:$16 sps:$4 sm:$0xff]   ;;  %v20048_v26 = vld [vmem:[#allocation14 + $0x40] ss:$16 sps:$4 sm:$0xff]  }
0x1494   :  { %13665 = vmatpush1.bf16.msra.mxu0 %v20031_v40  ;;  %13625 = vmatprep.subr.bf16.mxu1 %v20032_v51  ;;  %v20046_v23 = vld [vmem:[#allocation14 + $0x244] ss:$16 sps:$4 sm:$0xff]   ;;  %v20049_v46 = vld [vmem:[#allocation14 + $0x240] ss:$16 sps:$4 sm:$0xff]  }
0x1495   :  { %13666 = vmatprep.subr.bf16.mxu0 %v20034_v16  ;;  %v20050_v55 = vld [vmem:[#allocation14 + $0x24] ss:$16 sps:$4 sm:$0xff]   ;;  %v20054_v48 = vld [vmem:[#allocation14 + $0x20] ss:$16 sps:$4 sm:$0xff]   ;;  %v23186_v16 = vpack.c.bf16 %v9669_v32, %v9669_v32 }
0x1496   :  { %v20052_v14 = vld [vmem:[#allocation14 + $0x224] ss:$16 sps:$4 sm:$0xff]   ;;  %v20055_v47 = vld [vmem:[#allocation14 + $0x220] ss:$16 sps:$4 sm:$0xff]  }
0x1497   :  { %13626 = vmatpush1.bf16.msra.mxu1 %v20036_v61  ;;  %v20056_v5 = vld [vmem:[#allocation14 + $0x4] ss:$16 sps:$4 sm:$0xff]   ;;  %v20060_v9 = vld [vmem:[#allocation14] ss:$16 sps:$4 sm:$0xff]  }
0x1498   :  { %13667 = vmatpush1.bf16.msra.mxu0 %v20037_v6  ;;  %13627 = vmatprep.subr.bf16.mxu1 %v20038_v49  ;;  %v20058_v27 = vld [vmem:[#allocation14 + $0x204] ss:$16 sps:$4 sm:$0xff]   ;;  %v20061_v37 = vld [vmem:[#allocation14 + $0x200] ss:$16 sps:$4 sm:$0xff]  }
0x1499   :  { %13668 = vmatprep.subr.bf16.mxu0 %v20040_v45  ;;  %v20062_v30 = vld [vmem:[#allocation14 + $0x1e4] ss:$16 sps:$4 sm:$0xff]   ;;  %v20066_v10 = vld [vmem:[#allocation14 + $0x1e0] ss:$16 sps:$4 sm:$0xff]  }
0x149a   :  { %v20064_v18 = vld [vmem:[#allocation14 + $0x3e4] ss:$16 sps:$4 sm:$0xff]   ;;  %v20067_v63 = vld [vmem:[#allocation14 + $0x3e0] ss:$16 sps:$4 sm:$0xff]  }
0x149b   :  { %13628 = vmatpush1.bf16.msra.mxu1 %v20042_v60  ;;  %v20068_v50 = vld [vmem:[#allocation14 + $0x1c4] ss:$16 sps:$4 sm:$0xff]   ;;  %v20072_v53 = vld [vmem:[#allocation14 + $0x1c0] ss:$16 sps:$4 sm:$0xff]  }
0x149c   :  { %13669 = vmatpush1.bf16.msra.mxu0 %v20043_v35  ;;  %13629 = vmatprep.subr.bf16.mxu1 %v20044_v44  ;;  %v20070_v33 = vld [vmem:[#allocation14 + $0x3c4] ss:$16 sps:$4 sm:$0xff]   ;;  %v20073_v24 = vld [vmem:[#allocation14 + $0x3c0] ss:$16 sps:$4 sm:$0xff]  }
0x149d   :  { %13670 = vmatprep.subr.bf16.mxu0 %v20046_v23  ;;  %v20074_v17 = vld [vmem:[#allocation14 + $0x1a4] ss:$16 sps:$4 sm:$0xff]   ;;  %v20078_v7 = vld [vmem:[#allocation14 + $0x1a0] ss:$16 sps:$4 sm:$0xff]  }
0x149e   :  { %v20076_v0 = vld [vmem:[#allocation14 + $0x3a4] ss:$16 sps:$4 sm:$0xff]   ;;  %v20079_v25 = vld [vmem:[#allocation14 + $0x3a0] ss:$16 sps:$4 sm:$0xff]  }
0x149f   :  { %13630 = vmatpush1.bf16.msra.mxu1 %v20048_v26  ;;  %v20080_v62 = vld [vmem:[#allocation14 + $0x184] ss:$16 sps:$4 sm:$0xff]   ;;  %v9670_v54 = vld [vmem:[#allocation11] sm:$0xf]  ;;  %v9671_v19 = vld [vmem:[#allocation11 + $0x10] sm:$0xf] }
0x14a0   :  { %13671 = vmatpush1.bf16.msra.mxu0 %v20049_v46  ;;  %13631 = vmatprep.subr.bf16.mxu1 %v20050_v55  ;;  %v20082_v4 = vld [vmem:[#allocation14 + $0x384] ss:$16 sps:$4 sm:$0xff]   ;;  %v20084_v28 = vld [vmem:[#allocation14 + $0x180] ss:$16 sps:$4 sm:$0xff]   ;;  %v23180_v57 = vpack.c.bf16 %v9670_v54, %v9670_v54  ;;  %v23188_v61 = vpack.c.bf16 %v9671_v19, %v9671_v19 }
0x14a1   :  { %13672 = vmatprep.subr.bf16.mxu0 %v20052_v14  ;;  %v20085_v22 = vld [vmem:[#allocation14 + $0x380] ss:$16 sps:$4 sm:$0xff]   ;;  %v20086_v20 = vld [vmem:[#allocation14 + $0x164] ss:$16 sps:$4 sm:$0xff]  }
0x14a2   :  { %v20088_v1 = vld [vmem:[#allocation14 + $0x364] ss:$16 sps:$4 sm:$0xff]   ;;  %13651 = vmatprep.mubr.bf16.mxu1 %v23180_v57  ;;  %v20090_v12 = vld [vmem:[#allocation14 + $0x160] ss:$16 sps:$4 sm:$0xff]  }
0x14a3   :  { %13632 = vmatpush1.bf16.msra.mxu1 %v20054_v48  ;;  %v20091_v52 = vld [vmem:[#allocation14 + $0x360] ss:$16 sps:$4 sm:$0xff]   ;;  %v20092_v58 = vld [vmem:[#allocation14 + $0x144] ss:$16 sps:$4 sm:$0xff]  }
0x14a4   :  { %13673 = vmatpush1.bf16.msra.mxu0 %v20055_v47  ;;  %13633 = vmatprep.subr.bf16.mxu1 %v20056_v5  ;;  %v20094_v59 = vld [vmem:[#allocation14 + $0x344] ss:$16 sps:$4 sm:$0xff]   ;;  %v20096_v11 = vld [vmem:[#allocation14 + $0x140] ss:$16 sps:$4 sm:$0xff]  }
0x14a5   :  { %13674 = vmatprep.subr.bf16.mxu0 %v20058_v27  ;;  %v20097_v8 = vld [vmem:[#allocation14 + $0x340] ss:$16 sps:$4 sm:$0xff]   ;;  %v20098_v39 = vld [vmem:[#allocation14 + $0x124] ss:$16 sps:$4 sm:$0xff]  }
0x14a6   :  { %v20100_v13 = vld [vmem:[#allocation14 + $0x324] ss:$16 sps:$4 sm:$0xff]   ;;  %v20102_v42 = vld [vmem:[#allocation14 + $0x120] ss:$16 sps:$4 sm:$0xff]  }
0x14a7   :  { %13634 = vmatpush1.bf16.msra.mxu1 %v20060_v9  ;;  %v20103_v36 = vld [vmem:[#allocation14 + $0x320] ss:$16 sps:$4 sm:$0xff]   ;;  %v20104_v41 = vld [vmem:[#allocation14 + $0x104] ss:$16 sps:$4 sm:$0xff]  }
0x14a8   :  { %13675 = vmatpush1.bf16.msra.mxu0 %v20061_v37  ;;  %13635 = vmatprep.subr.bf16.mxu1 %v20062_v30  ;;  %v20106_v43 = vld [vmem:[#allocation14 + $0x304] ss:$16 sps:$4 sm:$0xff]   ;;  %v20108_v29 = vld [vmem:[#allocation14 + $0x100] ss:$16 sps:$4 sm:$0xff]  }
0x14a9   :  { %13676 = vmatprep.subr.bf16.mxu0 %v20064_v18  ;;  %v20109_v38 = vld [vmem:[#allocation14 + $0x300] ss:$16 sps:$4 sm:$0xff]   ;;  %v20112_v40 = vld [vmem:[#allocation14 + $0x4e4] ss:$16 sps:$4 sm:$0xff]  }
0x14aa   :  { %v20115_v51 = vld [vmem:[#allocation14 + $0x6e4] ss:$16 sps:$4 sm:$0xff]   ;;  %v20110_v6 = vld [vmem:[#allocation14 + $0x4e0] ss:$16 sps:$4 sm:$0xff]  }
0x14ab   :  { %13636 = vmatpush2.bf16.msra.mxu1 %v20066_v10  ;;  %v20113_v49 = vld [vmem:[#allocation14 + $0x6e0] ss:$16 sps:$4 sm:$0xff]   ;;  %v20118_v45 = vld [vmem:[#allocation14 + $0x4c4] ss:$16 sps:$4 sm:$0xff]  }
0x14ac   :  { %13677 = vmatpush2.bf16.msra.mxu0 %v20067_v63  ;;  %13637 = vmatprep.subr.bf16.mxu1 %v20068_v50  ;;  %v20121_v60 = vld [vmem:[#allocation14 + $0x6c4] ss:$16 sps:$4 sm:$0xff]   ;;  %v20116_v35 = vld [vmem:[#allocation14 + $0x4c0] ss:$16 sps:$4 sm:$0xff]  }
0x14ad   :  { %13678 = vmatprep.subr.bf16.mxu0 %v20070_v33  ;;  %v20119_v44 = vld [vmem:[#allocation14 + $0x6c0] ss:$16 sps:$4 sm:$0xff]   ;;  %v20124_v23 = vld [vmem:[#allocation14 + $0x4a4] ss:$16 sps:$4 sm:$0xff]  }
0x14ae   :  { %v20127_v26 = vld [vmem:[#allocation14 + $0x6a4] ss:$16 sps:$4 sm:$0xff]   ;;  %v20122_v46 = vld [vmem:[#allocation14 + $0x4a0] ss:$16 sps:$4 sm:$0xff]  }
0x14af   :  { %13638 = vmatpush2.bf16.msra.mxu1 %v20072_v53  ;;  %v20125_v55 = vld [vmem:[#allocation14 + $0x6a0] ss:$16 sps:$4 sm:$0xff]   ;;  %v20130_v14 = vld [vmem:[#allocation14 + $0x484] ss:$16 sps:$4 sm:$0xff]  }
0x14b0   :  { %13679 = vmatpush2.bf16.msra.mxu0 %v20073_v24  ;;  %13639 = vmatprep.subr.bf16.mxu1 %v20074_v17  ;;  %v20133_v48 = vld [vmem:[#allocation14 + $0x684] ss:$16 sps:$4 sm:$0xff]   ;;  %v20128_v47 = vld [vmem:[#allocation14 + $0x480] ss:$16 sps:$4 sm:$0xff]  }
0x14b1   :  { %13680 = vmatprep.subr.bf16.mxu0 %v20076_v0  ;;  %v20131_v5 = vld [vmem:[#allocation14 + $0x680] ss:$16 sps:$4 sm:$0xff]   ;;  %v20136_v27 = vld [vmem:[#allocation14 + $0x464] ss:$16 sps:$4 sm:$0xff]  }
0x14b2   :  { %v20139_v9 = vld [vmem:[#allocation14 + $0x664] ss:$16 sps:$4 sm:$0xff]   ;;  %v20134_v37 = vld [vmem:[#allocation14 + $0x460] ss:$16 sps:$4 sm:$0xff]  }
0x14b3   :  { %13640 = vmatpush2.bf16.msra.mxu1 %v20078_v7  ;;  %v20137_v30 = vld [vmem:[#allocation14 + $0x660] ss:$16 sps:$4 sm:$0xff]   ;;  %v20142_v18 = vld [vmem:[#allocation14 + $0x444] ss:$16 sps:$4 sm:$0xff]   ;;  %v9676_v7 = vld [vmem:[#allocation11 + $0x18] sm:$0x1e] }
0x14b4   :  { %13681 = vmatpush2.bf16.msra.mxu0 %v20079_v25  ;;  %13641 = vmatprep.subr.bf16.mxu1 %v20080_v62  ;;  %v20145_v10 = vld [vmem:[#allocation14 + $0x644] ss:$16 sps:$4 sm:$0xff]   ;;  %v20140_v63 = vld [vmem:[#allocation14 + $0x440] ss:$16 sps:$4 sm:$0xff]   ;;  %v9696_v62 = vrot.slane %v9676_v7, 1 }
0x14b5   :  { %13682 = vmatprep.subr.bf16.mxu0 %v20082_v4  ;;  %v20143_v50 = vld [vmem:[#allocation14 + $0x640] ss:$16 sps:$4 sm:$0xff]   ;;  %v20148_v33 = vld [vmem:[#allocation14 + $0x424] ss:$16 sps:$4 sm:$0xff]  }
0x14b6   :  { %v20151_v53 = vld [vmem:[#allocation14 + $0x624] ss:$16 sps:$4 sm:$0xff]   ;;  %v20146_v17 = vld [vmem:[#allocation14 + $0x420] ss:$16 sps:$4 sm:$0xff]  }
0x14b7   :  { %13642 = vmatpush2.bf16.msra.mxu1 %v20084_v28  ;;  %v9674_v24 = vld [vmem:[#allocation11] sm:$0x1e] }
0x14b8   :  { %13683 = vmatpush2.bf16.msra.mxu0 %v20085_v22  ;;  %13643 = vmatprep.subr.bf16.mxu1 %v20086_v20  ;;  %v9694_v0 = vrot.slane %v9674_v24, 1  ;;  %v20149_v25 = vld [vmem:[#allocation14 + $0x620] ss:$16 sps:$4 sm:$0xff]   ;;  %v20154_v4 = vld [vmem:[#allocation14 + $0x404] ss:$16 sps:$4 sm:$0xff]   ;;  %v23194_v22 = vpack.c.bf16 %v9696_v62, %v9696_v62 }
0x14b9   :  { %13684 = vmatprep.subr.bf16.mxu0 %v20088_v1  ;;  %v20157_v54 = vld [vmem:[#allocation14 + $0x604] ss:$16 sps:$4 sm:$0xff]   ;;  %v20152_v34 = vld [vmem:[#allocation14 + $0x400] ss:$16 sps:$4 sm:$0xff]  }
0x14ba   :  { %v23192_v28 = vpack.c.bf16 %v9694_v0, %v9694_v0  ;;  %v20155_v20 = vld [vmem:[#allocation14 + $0x600] ss:$16 sps:$4 sm:$0xff]   ;;  %v20160_v1 = vld [vmem:[#allocation14 + $0x5e4] ss:$16 sps:$4 sm:$0xff]  }
0x14bb   :  { %13644 = vmatpush2.bf16.msra.mxu1 %v20090_v12  ;;  %v20163_v12 = vld [vmem:[#allocation14 + $0x7e4] ss:$16 sps:$4 sm:$0xff]   ;;  %v20179_v32 = vld [vmem:[#allocation14 + $0x780] ss:$16 sps:$4 sm:$0xff]  }
0x14bc   :  { %13685 = vmatpush2.bf16.msra.mxu0 %v20091_v52  ;;  %13645 = vmatprep.subr.bf16.mxu1 %v20092_v58  ;;  %v20158_v52 = vld [vmem:[#allocation14 + $0x5e0] ss:$16 sps:$4 sm:$0xff]   ;;  %v20184_v19 = vld [vmem:[#allocation14 + $0x564] ss:$16 sps:$4 sm:$0xff]  }
0x14bd   :  { %13686 = vmatprep.subr.bf16.mxu0 %v20094_v59  ;;  %v20161_v58 = vld [vmem:[#allocation14 + $0x7e0] ss:$16 sps:$4 sm:$0xff]   ;;  %v20166_v59 = vld [vmem:[#allocation14 + $0x5c4] ss:$16 sps:$4 sm:$0xff]  }
0x14be   :  { %v20217_v24 = vld [vmem:[#allocation14 + $0xac4] ss:$16 sps:$4 sm:$0xff]   ;;  %v20212_v0 = vld [vmem:[#allocation14 + $0x8c0] ss:$16 sps:$4 sm:$0xff]  }
0x14bf   :  { %13646 = vmatpush2.bf16.msra.mxu1 %v20096_v11  ;;  %v20169_v11 = vld [vmem:[#allocation14 + $0x7c4] ss:$16 sps:$4 sm:$0xff]   ;;  %v20215_v62 = vld [vmem:[#allocation14 + $0xac0] ss:$16 sps:$4 sm:$0xff]  }
0x14c0   :  { %13687 = vmatpush2.bf16.msra.mxu0 %v20097_v8  ;;  %13647 = vmatprep.subr.bf16.mxu1 %v20098_v39  ;;  %v20164_v8 = vld [vmem:[#allocation14 + $0x5c0] ss:$16 sps:$4 sm:$0xff]  }
0x14c1   :  { %13688 = vmatprep.subr.bf16.mxu0 %v20100_v13  ;;  %v20167_v39 = vld [vmem:[#allocation14 + $0x7c0] ss:$16 sps:$4 sm:$0xff]   ;;  %v20172_v13 = vld [vmem:[#allocation14 + $0x5a4] ss:$16 sps:$4 sm:$0xff]  }
0x14c3   :  { %13648 = vmatpush2.bf16.msra.mxu1 %v20102_v42  ;;  %v20175_v42 = vld [vmem:[#allocation14 + $0x7a4] ss:$16 sps:$4 sm:$0xff]  }
0x14c4   :  { %13689 = vmatpush2.bf16.msra.mxu0 %v20103_v36  ;;  %13649 = vmatprep.subr.bf16.mxu1 %v20104_v41  ;;  %v20170_v36 = vld [vmem:[#allocation14 + $0x5a0] ss:$16 sps:$4 sm:$0xff]  }
0x14c5   :  { %13690 = vmatprep.subr.bf16.mxu0 %v20106_v43  ;;  %v20173_v41 = vld [vmem:[#allocation14 + $0x7a0] ss:$16 sps:$4 sm:$0xff]   ;;  %v20178_v43 = vld [vmem:[#allocation14 + $0x584] ss:$16 sps:$4 sm:$0xff]  }
0x14c7   :  { %13650 = vmatpush2.bf16.msra.mxu1 %v20108_v29  ;;  %v20181_v29 = vld [vmem:[#allocation14 + $0x784] ss:$16 sps:$4 sm:$0xff]  }
0x14c8   :  { %13691 = vmatpush2.bf16.msra.mxu0 %v20109_v38  ;;  %13701 = vmatprep.subr.bf16.mxu1 %v20112_v40  ;;  %v20176_v38 = vld [vmem:[#allocation14 + $0x580] ss:$16 sps:$4 sm:$0xff]   ;;  %v20187_v40 = vld [vmem:[#allocation14 + $0x764] ss:$16 sps:$4 sm:$0xff]  }
0x14c9   :  { %13742 = vmatprep.subr.bf16.mxu0 %v20115_v51  ;;  %v20182_v51 = vld [vmem:[#allocation14 + $0x560] ss:$16 sps:$4 sm:$0xff]  }
0x14ca   :  { %13652 = vmatmul.mubr.bf16.vlgmr.msra.gmra.mxu1 %v23186_v16 }
0x14cb   :  { %13693 = vmatmul.mubr.bf16.vlgmr.msra.gmra.mxu0 %v23188_v61  ;;  %13702 = vmatpush1.bf16.msra.mxu1 %v20110_v6  ;;  %v20185_v6 = vld [vmem:[#allocation14 + $0x760] ss:$16 sps:$4 sm:$0xff]  }
0x14cc   :  { %13743 = vmatpush1.bf16.msra.mxu0 %v20113_v49  ;;  %13703 = vmatprep.subr.bf16.mxu1 %v20118_v45  ;;  %v20190_v49 = vld [vmem:[#allocation14 + $0x544] ss:$16 sps:$4 sm:$0xff]  }
0x14cd   :  { %13744 = vmatprep.subr.bf16.mxu0 %v20121_v60  ;;  %13733 = vmatprep.mubr.bf16.mxu1 %v23192_v28  ;;  %v20193_v45 = vld [vmem:[#allocation14 + $0x744] ss:$16 sps:$4 sm:$0xff]   ;;  %v20188_v60 = vld [vmem:[#allocation14 + $0x540] ss:$16 sps:$4 sm:$0xff]  }
0x14ce   :  { %13774 = vmatprep.mubr.bf16.mxu0 %v23194_v22 }
0x14cf   :  { %13704 = vmatpush1.bf16.msra.mxu1 %v20116_v35  ;;  %v20191_v35 = vld [vmem:[#allocation14 + $0x740] ss:$16 sps:$4 sm:$0xff]  }
0x14d0   :  { %13745 = vmatpush1.bf16.msra.mxu0 %v20119_v44  ;;  %13705 = vmatprep.subr.bf16.mxu1 %v20124_v23  ;;  %v20196_v44 = vld [vmem:[#allocation14 + $0x524] ss:$16 sps:$4 sm:$0xff]  }
0x14d1   :  { %13746 = vmatprep.subr.bf16.mxu0 %v20127_v26  ;;  %v20199_v23 = vld [vmem:[#allocation14 + $0x724] ss:$16 sps:$4 sm:$0xff]   ;;  %v20194_v26 = vld [vmem:[#allocation14 + $0x520] ss:$16 sps:$4 sm:$0xff]  }
0x14d3   :  { %13706 = vmatpush1.bf16.msra.mxu1 %v20122_v46  ;;  %v20197_v46 = vld [vmem:[#allocation14 + $0x720] ss:$16 sps:$4 sm:$0xff]  }
0x14d4   :  { %13747 = vmatpush1.bf16.msra.mxu0 %v20125_v55  ;;  %13707 = vmatprep.subr.bf16.mxu1 %v20130_v14  ;;  %v20202_v55 = vld [vmem:[#allocation14 + $0x504] ss:$16 sps:$4 sm:$0xff]   ;;  %v9673_v14 = vld [vmem:[#allocation11 + $0x8] sm:$0x1e] }
0x14d5   :  { %13748 = vmatprep.subr.bf16.mxu0 %v20133_v48  ;;  %v9675_v48 = vld [vmem:[#allocation11 + $0x10] sm:$0x1e] }
0x14d7   :  { %13708 = vmatpush1.bf16.msra.mxu1 %v20128_v47  ;;  %v20205_v47 = vld [vmem:[#allocation14 + $0x704] ss:$16 sps:$4 sm:$0xff]  }
0x14d8   :  { %13749 = vmatpush1.bf16.msra.mxu0 %v20131_v5  ;;  %13709 = vmatprep.subr.bf16.mxu1 %v20136_v27  ;;  %v20200_v5 = vld [vmem:[#allocation14 + $0x500] ss:$16 sps:$4 sm:$0xff]  }
0x14d9   :  { %13750 = vmatprep.subr.bf16.mxu0 %v20139_v9  ;;  %v20203_v27 = vld [vmem:[#allocation14 + $0x700] ss:$16 sps:$4 sm:$0xff]   ;;  %v9693_v9 = vrot.slane %v9673_v14, 1 }
0x14da   :  { %v20260_v14 = vld [vmem:[#allocation14 + $0x9c0] ss:$16 sps:$4 sm:$0xff]  }
0x14db   :  { %13710 = vmatpush1.bf16.msra.mxu1 %v20134_v37  ;;  %v9695_v37 = vrot.slane %v9675_v48, 1  ;;  %v20263_v48 = vld [vmem:[#allocation14 + $0xbc0] ss:$16 sps:$4 sm:$0xff]  }
0x14dc   :  { %13751 = vmatpush1.bf16.msra.mxu0 %v20137_v30  ;;  %13711 = vmatprep.subr.bf16.mxu1 %v20142_v18  ;;  %v20208_v30 = vld [vmem:[#allocation14 + $0x8e4] ss:$16 sps:$4 sm:$0xff]  }
0x14dd   :  { %13752 = vmatprep.subr.bf16.mxu0 %v20145_v10  ;;  %v20211_v18 = vld [vmem:[#allocation14 + $0xae4] ss:$16 sps:$4 sm:$0xff]   ;;  %v23198_v10 = vpack.c.bf16 %v9693_v9, %v9693_v9  ;;  %v20269_v9 = vld [vmem:[#allocation14 + $0xba0] ss:$16 sps:$4 sm:$0xff]  }
0x14df   :  { %13712 = vmatpush1.bf16.msra.mxu1 %v20140_v63  ;;  %v23200_v63 = vpack.c.bf16 %v9695_v37, %v9695_v37  ;;  %v20274_v37 = vld [vmem:[#allocation14 + $0x984] ss:$16 sps:$4 sm:$0xff]  }
0x14e0   :  { %13753 = vmatpush1.bf16.msra.mxu0 %v20143_v50  ;;  %13713 = vmatprep.subr.bf16.mxu1 %v20148_v33  ;;  %v20206_v50 = vld [vmem:[#allocation14 + $0x8e0] ss:$16 sps:$4 sm:$0xff]  }
0x14e1   :  { %13754 = vmatprep.subr.bf16.mxu0 %v20151_v53  ;;  %v20209_v33 = vld [vmem:[#allocation14 + $0xae0] ss:$16 sps:$4 sm:$0xff]   ;;  %v20214_v53 = vld [vmem:[#allocation14 + $0x8c4] ss:$16 sps:$4 sm:$0xff]  }
0x14e3   :  { %13714 = vmatpush1.bf16.msra.mxu1 %v20146_v17  ;;  %v9678_v17 = vld [vmem:[#allocation11] sm:$0x3c] }
0x14e4   :  { %13755 = vmatpush1.bf16.msra.mxu0 %v20149_v25  ;;  %13715 = vmatprep.subr.bf16.mxu1 %v20154_v4  ;;  %v9706_v7 = vrot.slane %v9678_v17, 2  ;;  %v9680_v25 = vld [vmem:[#allocation11 + $0x18] sm:$0x3c]  ;;  %v20281_v17 = vld [vmem:[#allocation14 + $0xb60] ss:$16 sps:$4 sm:$0xff]  }
0x14e5   :  { %13756 = vmatprep.subr.bf16.mxu0 %v20157_v54  ;;  %v9708_v4 = vrot.slane %v9680_v25, 2  ;;  %v20220_v54 = vld [vmem:[#allocation14 + $0x8a4] ss:$16 sps:$4 sm:$0xff]   ;;  %v20284_v25 = vld [vmem:[#allocation14 + $0x940] ss:$16 sps:$4 sm:$0xff]  }
0x14e7   :  { %13716 = vmatpush1.bf16.msra.mxu1 %v20152_v34  ;;  %v20223_v34 = vld [vmem:[#allocation14 + $0xaa4] ss:$16 sps:$4 sm:$0xff]  }
0x14e8   :  { %13757 = vmatpush1.bf16.msra.mxu0 %v20155_v20  ;;  %13717 = vmatprep.subr.bf16.mxu1 %v20160_v1  ;;  %v23204_v20 = vpack.c.bf16 %v9706_v7, %v9706_v7  ;;  %v23206_v1 = vpack.c.bf16 %v9708_v4, %v9708_v4  ;;  %v20289_v7 = vld [vmem:[#allocation14 + $0xb44] ss:$16 sps:$4 sm:$0xff]  }
0x14e9   :  { %13758 = vmatprep.subr.bf16.mxu0 %v20163_v12  ;;  %v20218_v12 = vld [vmem:[#allocation14 + $0x8a0] ss:$16 sps:$4 sm:$0xff]   ;;  %v20292_v4 = vld [vmem:[#allocation14 + $0x924] ss:$16 sps:$4 sm:$0xff]  }
0x14eb   :  { %13718 = vmatpush2.bf16.msra.mxu1 %v20158_v52  ;;  %v20221_v52 = vld [vmem:[#allocation14 + $0xaa0] ss:$16 sps:$4 sm:$0xff]  }
0x14ec   :  { %13759 = vmatpush2.bf16.msra.mxu0 %v20161_v58  ;;  %13719 = vmatprep.subr.bf16.mxu1 %v20166_v59  ;;  %v20226_v58 = vld [vmem:[#allocation14 + $0x884] ss:$16 sps:$4 sm:$0xff]  }
0x14ed   :  { %13760 = vmatprep.subr.bf16.mxu0 %v20169_v11  ;;  %v20229_v59 = vld [vmem:[#allocation14 + $0xa84] ss:$16 sps:$4 sm:$0xff]   ;;  %v20224_v11 = vld [vmem:[#allocation14 + $0x880] ss:$16 sps:$4 sm:$0xff]  }
0x14ef   :  { %13720 = vmatpush2.bf16.msra.mxu1 %v20164_v8  ;;  %v20227_v8 = vld [vmem:[#allocation14 + $0xa80] ss:$16 sps:$4 sm:$0xff]  }
0x14f0   :  { %13761 = vmatpush2.bf16.msra.mxu0 %v20167_v39  ;;  %13721 = vmatprep.subr.bf16.mxu1 %v20172_v13  ;;  %v20232_v39 = vld [vmem:[#allocation14 + $0x864] ss:$16 sps:$4 sm:$0xff]  }
0x14f1   :  { %13762 = vmatprep.subr.bf16.mxu0 %v20175_v42  ;;  %v20235_v13 = vld [vmem:[#allocation14 + $0xa64] ss:$16 sps:$4 sm:$0xff]   ;;  %v20230_v42 = vld [vmem:[#allocation14 + $0x860] ss:$16 sps:$4 sm:$0xff]  }
0x14f3   :  { %13722 = vmatpush2.bf16.msra.mxu1 %v20170_v36  ;;  %v20233_v36 = vld [vmem:[#allocation14 + $0xa60] ss:$16 sps:$4 sm:$0xff]  }
0x14f4   :  { %13763 = vmatpush2.bf16.msra.mxu0 %v20173_v41  ;;  %13723 = vmatprep.subr.bf16.mxu1 %v20178_v43  ;;  %v20238_v41 = vld [vmem:[#allocation14 + $0x844] ss:$16 sps:$4 sm:$0xff]  }
0x14f5   :  { %13764 = vmatprep.subr.bf16.mxu0 %v20181_v29  ;;  %v20241_v43 = vld [vmem:[#allocation14 + $0xa44] ss:$16 sps:$4 sm:$0xff]   ;;  %v20236_v29 = vld [vmem:[#allocation14 + $0x840] ss:$16 sps:$4 sm:$0xff]  }
0x14f7   :  { %13724 = vmatpush2.bf16.msra.mxu1 %v20176_v38  ;;  %v20239_v38 = vld [vmem:[#allocation14 + $0xa40] ss:$16 sps:$4 sm:$0xff]  }
0x14f8   :  { %13765 = vmatpush2.bf16.msra.mxu0 %v20179_v32  ;;  %13725 = vmatprep.subr.bf16.mxu1 %v20184_v19  ;;  %v20244_v32 = vld [vmem:[#allocation14 + $0x824] ss:$16 sps:$4 sm:$0xff]  }
0x14f9   :  { %13766 = vmatprep.subr.bf16.mxu0 %v20187_v40  ;;  %v20247_v19 = vld [vmem:[#allocation14 + $0xa24] ss:$16 sps:$4 sm:$0xff]   ;;  %v20242_v40 = vld [vmem:[#allocation14 + $0x820] ss:$16 sps:$4 sm:$0xff]  }
0x14fb   :  { %13726 = vmatpush2.bf16.msra.mxu1 %v20182_v51  ;;  %v20245_v51 = vld [vmem:[#allocation14 + $0xa20] ss:$16 sps:$4 sm:$0xff]  }
0x14fc   :  { %13767 = vmatpush2.bf16.msra.mxu0 %v20185_v6  ;;  %13727 = vmatprep.subr.bf16.mxu1 %v20190_v49  ;;  %v20250_v6 = vld [vmem:[#allocation14 + $0x804] ss:$16 sps:$4 sm:$0xff]  }
0x14fd   :  { %13768 = vmatprep.subr.bf16.mxu0 %v20193_v45  ;;  %v20253_v49 = vld [vmem:[#allocation14 + $0xa04] ss:$16 sps:$4 sm:$0xff]   ;;  %v20248_v45 = vld [vmem:[#allocation14 + $0x800] ss:$16 sps:$4 sm:$0xff]  }
0x14ff   :  { %13728 = vmatpush2.bf16.msra.mxu1 %v20188_v60  ;;  %v20251_v60 = vld [vmem:[#allocation14 + $0xa00] ss:$16 sps:$4 sm:$0xff]  }
0x1500   :  { %13769 = vmatpush2.bf16.msra.mxu0 %v20191_v35  ;;  %13729 = vmatprep.subr.bf16.mxu1 %v20196_v44  ;;  %v20256_v35 = vld [vmem:[#allocation14 + $0x9e4] ss:$16 sps:$4 sm:$0xff]  }
0x1501   :  { %13770 = vmatprep.subr.bf16.mxu0 %v20199_v23  ;;  %v20259_v44 = vld [vmem:[#allocation14 + $0xbe4] ss:$16 sps:$4 sm:$0xff]   ;;  %v20254_v23 = vld [vmem:[#allocation14 + $0x9e0] ss:$16 sps:$4 sm:$0xff]  }
0x1503   :  { %13730 = vmatpush2.bf16.msra.mxu1 %v20194_v26  ;;  %v20257_v26 = vld [vmem:[#allocation14 + $0xbe0] ss:$16 sps:$4 sm:$0xff]  }
0x1504   :  { %13771 = vmatpush2.bf16.msra.mxu0 %v20197_v46  ;;  %13731 = vmatprep.subr.bf16.mxu1 %v20202_v55  ;;  %v20262_v46 = vld [vmem:[#allocation14 + $0x9c4] ss:$16 sps:$4 sm:$0xff]  }
0x1505   :  { %13772 = vmatprep.subr.bf16.mxu0 %v20205_v47  ;;  %v20265_v55 = vld [vmem:[#allocation14 + $0xbc4] ss:$16 sps:$4 sm:$0xff]  }
0x1506   :  { %v20268_v47 = vld [vmem:[#allocation14 + $0x9a4] ss:$16 sps:$4 sm:$0xff]  }
0x1507   :  { %13732 = vmatpush2.bf16.msra.mxu1 %v20200_v5  ;;  %v20271_v5 = vld [vmem:[#allocation14 + $0xba4] ss:$16 sps:$4 sm:$0xff]  }
0x1508   :  { %13773 = vmatpush2.bf16.msra.mxu0 %v20203_v27  ;;  %13783 = vmatprep.subr.bf16.mxu1 %v20208_v30  ;;  %v20266_v27 = vld [vmem:[#allocation14 + $0x9a0] ss:$16 sps:$4 sm:$0xff]   ;;  %v20277_v30 = vld [vmem:[#allocation14 + $0xb84] ss:$16 sps:$4 sm:$0xff]  }
0x1509   :  { %13824 = vmatprep.subr.bf16.mxu0 %v20211_v18  ;;  %v20272_v18 = vld [vmem:[#allocation14 + $0x980] ss:$16 sps:$4 sm:$0xff]  }
0x150a   :  { %13734 = vmatmul.mubr.bf16.vlgmr.msra.gmra.mxu1 %v23198_v10 }
0x150b   :  { %13775 = vmatmul.mubr.bf16.vlgmr.msra.gmra.mxu0 %v23200_v63  ;;  %13784 = vmatpush1.bf16.msra.mxu1 %v20206_v50  ;;  %v20275_v50 = vld [vmem:[#allocation14 + $0xb80] ss:$16 sps:$4 sm:$0xff]  }
0x150c   :  { %13825 = vmatpush1.bf16.msra.mxu0 %v20209_v33  ;;  %13785 = vmatprep.subr.bf16.mxu1 %v20214_v53  ;;  %v20280_v33 = vld [vmem:[#allocation14 + $0x964] ss:$16 sps:$4 sm:$0xff]  }
0x150d   :  { %13826 = vmatprep.subr.bf16.mxu0 %v20217_v24  ;;  %13815 = vmatprep.mubr.bf16.mxu1 %v23204_v20  ;;  %v20283_v53 = vld [vmem:[#allocation14 + $0xb64] ss:$16 sps:$4 sm:$0xff]   ;;  %v20278_v24 = vld [vmem:[#allocation14 + $0x960] ss:$16 sps:$4 sm:$0xff]  }
0x150e   :  { %13856 = vmatprep.mubr.bf16.mxu0 %v23206_v1 }
0x150f   :  { %13786 = vmatpush1.bf16.msra.mxu1 %v20212_v0  ;;  %v20286_v0 = vld [vmem:[#allocation14 + $0x944] ss:$16 sps:$4 sm:$0xff]  }
0x1510   :  { %13827 = vmatpush1.bf16.msra.mxu0 %v20215_v62  ;;  %13787 = vmatprep.subr.bf16.mxu1 %v20220_v54  ;;  %v20287_v62 = vld [vmem:[#allocation14 + $0xb40] ss:$16 sps:$4 sm:$0xff]   ;;  %v20295_v54 = vld [vmem:[#allocation14 + $0xb24] ss:$16 sps:$4 sm:$0xff]  }
0x1511   :  { %13828 = vmatprep.subr.bf16.mxu0 %v20223_v34  ;;  %v20290_v34 = vld [vmem:[#allocation14 + $0x920] ss:$16 sps:$4 sm:$0xff]  }
0x1513   :  { %13788 = vmatpush1.bf16.msra.mxu1 %v20218_v12  ;;  %v20293_v12 = vld [vmem:[#allocation14 + $0xb20] ss:$16 sps:$4 sm:$0xff]  }
0x1514   :  { %13829 = vmatpush1.bf16.msra.mxu0 %v20221_v52  ;;  %13789 = vmatprep.subr.bf16.mxu1 %v20226_v58  ;;  %v9677_v52 = vld [vmem:[#allocation11 + $0x8] sm:$0x3c]  ;;  %v9679_v58 = vld [vmem:[#allocation11 + $0x10] sm:$0x3c] }
0x1515   :  { %13830 = vmatprep.subr.bf16.mxu0 %v20229_v59  ;;  %v20298_v59 = vld [vmem:[#allocation14 + $0x904] ss:$16 sps:$4 sm:$0xff]  }
0x1517   :  { %13790 = vmatpush1.bf16.msra.mxu1 %v20224_v11  ;;  %v20301_v11 = vld [vmem:[#allocation14 + $0xb04] ss:$16 sps:$4 sm:$0xff]  }
0x1518   :  { %13831 = vmatpush1.bf16.msra.mxu0 %v20227_v8  ;;  %13791 = vmatprep.subr.bf16.mxu1 %v20232_v39  ;;  %v9682_v8 = vld [vmem:[#allocation11] sm:$0x78]  ;;  %v9705_v39 = vrot.slane %v9677_v52, 2 }
0x1519   :  { %13832 = vmatprep.subr.bf16.mxu0 %v20235_v13  ;;  %v9707_v13 = vrot.slane %v9679_v58, 2  ;;  %v20355_v52 = vld [vmem:[#allocation14 + $0xfe4] ss:$16 sps:$4 sm:$0xff]   ;;  %v20350_v58 = vld [vmem:[#allocation14 + $0xde0] ss:$16 sps:$4 sm:$0xff]  }
0x151b   :  { %13792 = vmatpush1.bf16.msra.mxu1 %v20230_v42  ;;  %v9684_v42 = vld [vmem:[#allocation11 + $0x18] sm:$0x78] }
0x151c   :  { %13833 = vmatpush1.bf16.msra.mxu0 %v20233_v36  ;;  %13793 = vmatprep.subr.bf16.mxu1 %v20238_v41  ;;  %v20296_v36 = vld [vmem:[#allocation14 + $0x900] ss:$16 sps:$4 sm:$0xff]  }
0x151d   :  { %13834 = vmatprep.subr.bf16.mxu0 %v20241_v43  ;;  %v20299_v41 = vld [vmem:[#allocation14 + $0xb00] ss:$16 sps:$4 sm:$0xff]   ;;  %v20304_v43 = vld [vmem:[#allocation14 + $0xce4] ss:$16 sps:$4 sm:$0xff]  }
0x151f   :  { %13794 = vmatpush1.bf16.msra.mxu1 %v20236_v29  ;;  %v20307_v29 = vld [vmem:[#allocation14 + $0xee4] ss:$16 sps:$4 sm:$0xff]  }
0x1520   :  { %13835 = vmatpush1.bf16.msra.mxu0 %v20239_v38  ;;  %13795 = vmatprep.subr.bf16.mxu1 %v20244_v32  ;;  %v9718_v38 = vrot.slane %v9682_v8, 3  ;;  %v9720_v32 = vrot.slane %v9684_v42, 3  ;;  %v20361_v8 = vld [vmem:[#allocation14 + $0xfc4] ss:$16 sps:$4 sm:$0xff]  }
0x1521   :  { %13836 = vmatprep.subr.bf16.mxu0 %v20247_v19  ;;  %v23210_v19 = vpack.c.bf16 %v9705_v39, %v9705_v39  ;;  %v20356_v39 = vld [vmem:[#allocation14 + $0xdc0] ss:$16 sps:$4 sm:$0xff]   ;;  %v20364_v42 = vld [vmem:[#allocation14 + $0xda4] ss:$16 sps:$4 sm:$0xff]  }
0x1523   :  { %13796 = vmatpush1.bf16.msra.mxu1 %v20242_v40  ;;  %v23212_v40 = vpack.c.bf16 %v9707_v13, %v9707_v13  ;;  %v20359_v13 = vld [vmem:[#allocation14 + $0xfc0] ss:$16 sps:$4 sm:$0xff]  }
0x1524   :  { %13837 = vmatpush1.bf16.msra.mxu0 %v20245_v51  ;;  %13797 = vmatprep.subr.bf16.mxu1 %v20250_v6  ;;  %v20302_v51 = vld [vmem:[#allocation14 + $0xce0] ss:$16 sps:$4 sm:$0xff]  }
0x1525   :  { %13838 = vmatprep.subr.bf16.mxu0 %v20253_v49  ;;  %v20305_v6 = vld [vmem:[#allocation14 + $0xee0] ss:$16 sps:$4 sm:$0xff]   ;;  %v20310_v49 = vld [vmem:[#allocation14 + $0xcc4] ss:$16 sps:$4 sm:$0xff]  }
0x1527   :  { %13798 = vmatpush1.bf16.msra.mxu1 %v20248_v45  ;;  %v20313_v45 = vld [vmem:[#allocation14 + $0xec4] ss:$16 sps:$4 sm:$0xff]  }
0x1528   :  { %13839 = vmatpush1.bf16.msra.mxu0 %v20251_v60  ;;  %13799 = vmatprep.subr.bf16.mxu1 %v20256_v35  ;;  %v23214_v60 = vpack.c.bf16 %v9718_v38, %v9718_v38  ;;  %v23216_v35 = vpack.c.bf16 %v9720_v32, %v9720_v32  ;;  %v20373_v38 = vld [vmem:[#allocation14 + $0xf84] ss:$16 sps:$4 sm:$0xff]   ;;  %v20368_v32 = vld [vmem:[#allocation14 + $0xd80] ss:$16 sps:$4 sm:$0xff]  }
0x1529   :  { %13840 = vmatprep.subr.bf16.mxu0 %v20259_v44  ;;  %v20308_v44 = vld [vmem:[#allocation14 + $0xcc0] ss:$16 sps:$4 sm:$0xff]  }
0x152b   :  { %13800 = vmatpush2.bf16.msra.mxu1 %v20254_v23  ;;  %v20311_v23 = vld [vmem:[#allocation14 + $0xec0] ss:$16 sps:$4 sm:$0xff]  }
0x152c   :  { %13841 = vmatpush2.bf16.msra.mxu0 %v20257_v26  ;;  %13801 = vmatprep.subr.bf16.mxu1 %v20262_v46  ;;  %v20316_v26 = vld [vmem:[#allocation14 + $0xca4] ss:$16 sps:$4 sm:$0xff]  }
0x152d   :  { %13842 = vmatprep.subr.bf16.mxu0 %v20265_v55  ;;  %v20319_v46 = vld [vmem:[#allocation14 + $0xea4] ss:$16 sps:$4 sm:$0xff]   ;;  %v20314_v55 = vld [vmem:[#allocation14 + $0xca0] ss:$16 sps:$4 sm:$0xff]  }
0x152f   :  { %13802 = vmatpush2.bf16.msra.mxu1 %v20260_v14  ;;  %v20317_v14 = vld [vmem:[#allocation14 + $0xea0] ss:$16 sps:$4 sm:$0xff]  }
0x1530   :  { %13843 = vmatpush2.bf16.msra.mxu0 %v20263_v48  ;;  %13803 = vmatprep.subr.bf16.mxu1 %v20268_v47  ;;  %v20322_v48 = vld [vmem:[#allocation14 + $0xc84] ss:$16 sps:$4 sm:$0xff]  }
0x1531   :  { %13844 = vmatprep.subr.bf16.mxu0 %v20271_v5  ;;  %v20325_v47 = vld [vmem:[#allocation14 + $0xe84] ss:$16 sps:$4 sm:$0xff]   ;;  %v20320_v5 = vld [vmem:[#allocation14 + $0xc80] ss:$16 sps:$4 sm:$0xff]  }
0x1533   :  { %13804 = vmatpush2.bf16.msra.mxu1 %v20266_v27  ;;  %v20323_v27 = vld [vmem:[#allocation14 + $0xe80] ss:$16 sps:$4 sm:$0xff]  }
0x1534   :  { %13845 = vmatpush2.bf16.msra.mxu0 %v20269_v9  ;;  %13805 = vmatprep.subr.bf16.mxu1 %v20274_v37  ;;  %v20328_v9 = vld [vmem:[#allocation14 + $0xc64] ss:$16 sps:$4 sm:$0xff]  }
0x1535   :  { %13846 = vmatprep.subr.bf16.mxu0 %v20277_v30  ;;  %v20331_v37 = vld [vmem:[#allocation14 + $0xe64] ss:$16 sps:$4 sm:$0xff]   ;;  %v20326_v30 = vld [vmem:[#allocation14 + $0xc60] ss:$16 sps:$4 sm:$0xff]  }
0x1537   :  { %13806 = vmatpush2.bf16.msra.mxu1 %v20272_v18  ;;  %v20329_v18 = vld [vmem:[#allocation14 + $0xe60] ss:$16 sps:$4 sm:$0xff]  }
0x1538   :  { %13847 = vmatpush2.bf16.msra.mxu0 %v20275_v50  ;;  %13807 = vmatprep.subr.bf16.mxu1 %v20280_v33  ;;  %v20334_v50 = vld [vmem:[#allocation14 + $0xc44] ss:$16 sps:$4 sm:$0xff]  }
0x1539   :  { %13848 = vmatprep.subr.bf16.mxu0 %v20283_v53  ;;  %v20337_v33 = vld [vmem:[#allocation14 + $0xe44] ss:$16 sps:$4 sm:$0xff]   ;;  %v20332_v53 = vld [vmem:[#allocation14 + $0xc40] ss:$16 sps:$4 sm:$0xff]  }
0x153b   :  { %13808 = vmatpush2.bf16.msra.mxu1 %v20278_v24  ;;  %v20335_v24 = vld [vmem:[#allocation14 + $0xe40] ss:$16 sps:$4 sm:$0xff]  }
0x153c   :  { %13849 = vmatpush2.bf16.msra.mxu0 %v20281_v17  ;;  %13809 = vmatprep.subr.bf16.mxu1 %v20286_v0  ;;  %v20340_v17 = vld [vmem:[#allocation14 + $0xc24] ss:$16 sps:$4 sm:$0xff]  }
0x153d   :  { %13850 = vmatprep.subr.bf16.mxu0 %v20289_v7  ;;  %v20343_v0 = vld [vmem:[#allocation14 + $0xe24] ss:$16 sps:$4 sm:$0xff]   ;;  %v20338_v7 = vld [vmem:[#allocation14 + $0xc20] ss:$16 sps:$4 sm:$0xff]  }
0x153f   :  { %13810 = vmatpush2.bf16.msra.mxu1 %v20284_v25  ;;  %v20341_v25 = vld [vmem:[#allocation14 + $0xe20] ss:$16 sps:$4 sm:$0xff]  }
0x1540   :  { %13851 = vmatpush2.bf16.msra.mxu0 %v20287_v62  ;;  %13811 = vmatprep.subr.bf16.mxu1 %v20292_v4  ;;  %v20346_v62 = vld [vmem:[#allocation14 + $0xc04] ss:$16 sps:$4 sm:$0xff]  }
0x1541   :  { %13852 = vmatprep.subr.bf16.mxu0 %v20295_v54  ;;  %v20349_v4 = vld [vmem:[#allocation14 + $0xe04] ss:$16 sps:$4 sm:$0xff]   ;;  %v20344_v54 = vld [vmem:[#allocation14 + $0xc00] ss:$16 sps:$4 sm:$0xff]  }
0x1543   :  { %13812 = vmatpush2.bf16.msra.mxu1 %v20290_v34  ;;  %v20347_v34 = vld [vmem:[#allocation14 + $0xe00] ss:$16 sps:$4 sm:$0xff]  }
0x1544   :  { %13853 = vmatpush2.bf16.msra.mxu0 %v20293_v12  ;;  %13813 = vmatprep.subr.bf16.mxu1 %v20298_v59  ;;  %v20352_v12 = vld [vmem:[#allocation14 + $0xde4] ss:$16 sps:$4 sm:$0xff]   ;;  %v20353_v59 = vld [vmem:[#allocation14 + $0xfe0] ss:$16 sps:$4 sm:$0xff]  }
0x1545   :  { %13854 = vmatprep.subr.bf16.mxu0 %v20301_v11  ;;  %v20358_v11 = vld [vmem:[#allocation14 + $0xdc4] ss:$16 sps:$4 sm:$0xff]  }
0x1547   :  { %13814 = vmatpush2.bf16.msra.mxu1 %v20296_v36  ;;  %v20367_v36 = vld [vmem:[#allocation14 + $0xfa4] ss:$16 sps:$4 sm:$0xff]  }
0x1548   :  { %13855 = vmatpush2.bf16.msra.mxu0 %v20299_v41  ;;  %13865 = vmatprep.subr.bf16.mxu1 %v20304_v43  ;;  %v20362_v41 = vld [vmem:[#allocation14 + $0xda0] ss:$16 sps:$4 sm:$0xff]  }
0x1549   :  { %13906 = vmatprep.subr.bf16.mxu0 %v20307_v29  ;;  %v20365_v43 = vld [vmem:[#allocation14 + $0xfa0] ss:$16 sps:$4 sm:$0xff]   ;;  %v20370_v29 = vld [vmem:[#allocation14 + $0xd84] ss:$16 sps:$4 sm:$0xff]  }
0x154a   :  { %13816 = vmatmul.mubr.bf16.vlgmr.msra.gmra.mxu1 %v23210_v19 }
0x154b   :  { %13857 = vmatmul.mubr.bf16.vlgmr.msra.gmra.mxu0 %v23212_v40  ;;  %13866 = vmatpush1.bf16.msra.mxu1 %v20302_v51  ;;  %v20371_v51 = vld [vmem:[#allocation14 + $0xf80] ss:$16 sps:$4 sm:$0xff]  }
0x154c   :  { %13907 = vmatpush1.bf16.msra.mxu0 %v20305_v6  ;;  %13867 = vmatprep.subr.bf16.mxu1 %v20310_v49  ;;  %v20376_v6 = vld [vmem:[#allocation14 + $0xd64] ss:$16 sps:$4 sm:$0xff]  }
0x154d   :  { %13908 = vmatprep.subr.bf16.mxu0 %v20313_v45  ;;  %13897 = vmatprep.mubr.bf16.mxu1 %v23214_v60  ;;  %v20379_v49 = vld [vmem:[#allocation14 + $0xf64] ss:$16 sps:$4 sm:$0xff]   ;;  %v20374_v45 = vld [vmem:[#allocation14 + $0xd60] ss:$16 sps:$4 sm:$0xff]  }
0x154e   :  { %13938 = vmatprep.mubr.bf16.mxu0 %v23216_v35 }
0x154f   :  { %13868 = vmatpush1.bf16.msra.mxu1 %v20308_v44  ;;  %v20377_v44 = vld [vmem:[#allocation14 + $0xf60] ss:$16 sps:$4 sm:$0xff]  }
0x1550   :  { %13909 = vmatpush1.bf16.msra.mxu0 %v20311_v23  ;;  %13869 = vmatprep.subr.bf16.mxu1 %v20316_v26  ;;  %v20382_v23 = vld [vmem:[#allocation14 + $0xd44] ss:$16 sps:$4 sm:$0xff]  }
0x1551   :  { %13910 = vmatprep.subr.bf16.mxu0 %v20319_v46  ;;  %v20385_v26 = vld [vmem:[#allocation14 + $0xf44] ss:$16 sps:$4 sm:$0xff]   ;;  %v20380_v46 = vld [vmem:[#allocation14 + $0xd40] ss:$16 sps:$4 sm:$0xff]  }
0x1553   :  { %13870 = vmatpush1.bf16.msra.mxu1 %v20314_v55  ;;  %v20383_v55 = vld [vmem:[#allocation14 + $0xf40] ss:$16 sps:$4 sm:$0xff]  }
0x1554   :  { %13911 = vmatpush1.bf16.msra.mxu0 %v20317_v14  ;;  %13871 = vmatprep.subr.bf16.mxu1 %v20322_v48  ;;  %v20388_v14 = vld [vmem:[#allocation14 + $0xd24] ss:$16 sps:$4 sm:$0xff]  }
0x1555   :  { %13912 = vmatprep.subr.bf16.mxu0 %v20325_v47  ;;  %v20391_v48 = vld [vmem:[#allocation14 + $0xf24] ss:$16 sps:$4 sm:$0xff]   ;;  %v20386_v47 = vld [vmem:[#allocation14 + $0xd20] ss:$16 sps:$4 sm:$0xff]  }
0x1557   :  { %13872 = vmatpush1.bf16.msra.mxu1 %v20320_v5  ;;  %v20389_v5 = vld [vmem:[#allocation14 + $0xf20] ss:$16 sps:$4 sm:$0xff]  }
0x1558   :  { %13913 = vmatpush1.bf16.msra.mxu0 %v20323_v27  ;;  %13873 = vmatprep.subr.bf16.mxu1 %v20328_v9  ;;  %v9681_v27 = vld [vmem:[#allocation11 + $0x8] sm:$0x78]  ;;  %v20394_v9 = vld [vmem:[#allocation14 + $0xd04] ss:$16 sps:$4 sm:$0xff]  }
0x1559   :  { %13914 = vmatprep.subr.bf16.mxu0 %v20331_v37  ;;  %v9683_v37 = vld [vmem:[#allocation11 + $0x10] sm:$0x78] }
0x155b   :  { %13874 = vmatpush1.bf16.msra.mxu1 %v20326_v30  ;;  %v20397_v30 = vld [vmem:[#allocation14 + $0xf04] ss:$16 sps:$4 sm:$0xff]  }
0x155c   :  { %13915 = vmatpush1.bf16.msra.mxu0 %v20329_v18  ;;  %13875 = vmatprep.subr.bf16.mxu1 %v20334_v50  ;;  %v20392_v18 = vld [vmem:[#allocation14 + $0xd00] ss:$16 sps:$4 sm:$0xff]  }
0x155d   :  { %13916 = vmatprep.subr.bf16.mxu0 %v20337_v33  ;;  %v20395_v50 = vld [vmem:[#allocation14 + $0xf00] ss:$16 sps:$4 sm:$0xff]   ;;  %v9717_v33 = vrot.slane %v9681_v27, 3  ;;  %v20424_v27 = vld [vmem:[#allocation14 + $0x1064] ss:$16 sps:$4 sm:$0xff]  }
0x155f   :  { %13876 = vmatpush1.bf16.msra.mxu1 %v20332_v53  ;;  %v9719_v53 = vrot.slane %v9683_v37, 3  ;;  %v20422_v37 = vld [vmem:[#allocation14 + $0x1060] ss:$16 sps:$4 sm:$0xff]  }
0x1560   :  { %13917 = vmatpush1.bf16.msra.mxu0 %v20335_v24  ;;  %13877 = vmatprep.subr.bf16.mxu1 %v20340_v17  ;;  %v9686_v24 = vld [vmem:[#allocation11] sm:$0xf0]  ;;  %v9688_v17 = vld [vmem:[#allocation11 + $0x18] sm:$0xf0] }
0x1561   :  { %13918 = vmatprep.subr.bf16.mxu0 %v20343_v0  ;;  %v10397_v0 = vld [vmem:[#allocation34] sm:$0xf] }
0x1563   :  { %13878 = vmatpush1.bf16.msra.mxu1 %v20338_v7  ;;  %v20400_v7 = vld [vmem:[#allocation14 + $0x10e4] ss:$16 sps:$4 sm:$0xff]  }
0x1564   :  { %13919 = vmatpush1.bf16.msra.mxu0 %v20341_v25  ;;  %13879 = vmatprep.subr.bf16.mxu1 %v20346_v62  ;;  %v20403_v25 = vld [vmem:[#allocation14 + $0x12e4] ss:$16 sps:$4 sm:$0xff]   ;;  %v9730_v62 = vrot.slane %v9686_v24, 4 }
0x1565   :  { %13920 = vmatprep.subr.bf16.mxu0 %v20349_v4  ;;  %v9732_v4 = vrot.slane %v9688_v17, 4  ;;  %v20436_v24 = vld [vmem:[#allocation14 + $0x1024] ss:$16 sps:$4 sm:$0xff]  }
0x1566   :  { %v20439_v17 = vld [vmem:[#allocation14 + $0x1224] ss:$16 sps:$4 sm:$0xff]  }
0x1567   :  { %13880 = vmatpush1.bf16.msra.mxu1 %v20344_v54  ;;  %v23222_v54 = vpack.c.bf16 %v9717_v33, %v9717_v33  ;;  %v20428_v33 = vld [vmem:[#allocation14 + $0x1040] ss:$16 sps:$4 sm:$0xff]  }
0x1568   :  { %13921 = vmatpush1.bf16.msra.mxu0 %v20347_v34  ;;  %13881 = vmatprep.subr.bf16.mxu1 %v20352_v12  ;;  %v23224_v34 = vpack.c.bf16 %v9719_v53, %v9719_v53  ;;  %v20398_v12 = vld [vmem:[#allocation14 + $0x10e0] ss:$16 sps:$4 sm:$0xff]  }
0x1569   :  { %13922 = vmatprep.subr.bf16.mxu0 %v20355_v52  ;;  %v10402_v52 = vrot.slane %v10397_v0, %v23081_v3  ;;  %v20407_v3 = vld [vmem:[#allocation14 + $0x12c0] ss:$16 sps:$4 sm:$0xff]  }
0x156a   :  { %v20431_v53 = vld [vmem:[#allocation14 + $0x1240] ss:$16 sps:$4 sm:$0xff]  }
0x156b   :  { %13882 = vmatpush2.bf16.msra.mxu1 %v20350_v58  ;;  %v20401_v58 = vld [vmem:[#allocation14 + $0x12e0] ss:$16 sps:$4 sm:$0xff]  }
0x156c   :  { %13923 = vmatpush2.bf16.msra.mxu0 %v20353_v59  ;;  %13883 = vmatprep.subr.bf16.mxu1 %v20358_v11  ;;  %v20406_v59 = vld [vmem:[#allocation14 + $0x10c4] ss:$16 sps:$4 sm:$0xff]  }
0x156d   :  { %13924 = vmatprep.subr.bf16.mxu0 %v20361_v8  ;;  %v20409_v11 = vld [vmem:[#allocation14 + $0x12c4] ss:$16 sps:$4 sm:$0xff]   ;;  %v10406_v8 = vrot.slane %v10397_v0, %v23084_v56  ;;  %v20434_v0 = vld [vmem:[#allocation14 + $0x1020] ss:$16 sps:$4 sm:$0xff]  }
0x156e   :  { %v20415_v56 = vld [vmem:[#allocation14 + $0x12a4] ss:$16 sps:$4 sm:$0xff]  }
0x156f   :  { %13884 = vmatpush2.bf16.msra.mxu1 %v20356_v39  ;;  %v23228_v39 = vpack.c.bf16 %v9730_v62, %v9730_v62  ;;  %v20445_v62 = vld [vmem:[#allocation14 + $0x1204] ss:$16 sps:$4 sm:$0xff]  }
0x1570   :  { %13925 = vmatpush2.bf16.msra.mxu0 %v20359_v13  ;;  %13885 = vmatprep.subr.bf16.mxu1 %v20364_v42  ;;  %v23230_v13 = vpack.c.bf16 %v9732_v4, %v9732_v4  ;;  %v20440_v4 = vld [vmem:[#allocation14 + $0x1000] ss:$16 sps:$4 sm:$0xff]  }
0x1571   :  { %13926 = vmatprep.subr.bf16.mxu0 %v20367_v36 }
0x1573   :  { %13886 = vmatpush2.bf16.msra.mxu1 %v20362_v41  ;;  %v20404_v41 = vld [vmem:[#allocation14 + $0x10c0] ss:$16 sps:$4 sm:$0xff]  }
0x1574   :  { %13927 = vmatpush2.bf16.msra.mxu0 %v20365_v43  ;;  %13887 = vmatprep.subr.bf16.mxu1 %v20370_v29  ;;  %v20412_v29 = vld [vmem:[#allocation14 + $0x10a4] ss:$16 sps:$4 sm:$0xff]  }
0x1575   :  { %13928 = vmatprep.subr.bf16.mxu0 %v20373_v38 }
0x1577   :  { %13888 = vmatpush2.bf16.msra.mxu1 %v20368_v32 }
0x1578   :  { %13929 = vmatpush2.bf16.msra.mxu0 %v20371_v51  ;;  %13889 = vmatprep.subr.bf16.mxu1 %v20376_v6 }
0x1579   :  { %13930 = vmatprep.subr.bf16.mxu0 %v20379_v49 }
0x157b   :  { %13890 = vmatpush2.bf16.msra.mxu1 %v20374_v45 }
0x157c   :  { %13931 = vmatpush2.bf16.msra.mxu0 %v20377_v44  ;;  %13891 = vmatprep.subr.bf16.mxu1 %v20382_v23  ;;  %v20410_v44 = vld [vmem:[#allocation14 + $0x10a0] ss:$16 sps:$4 sm:$0xff]  }
0x157d   :  { %13932 = vmatprep.subr.bf16.mxu0 %v20385_v26  ;;  %v20413_v26 = vld [vmem:[#allocation14 + $0x12a0] ss:$16 sps:$4 sm:$0xff]  }
0x157f   :  { %13892 = vmatpush2.bf16.msra.mxu1 %v20380_v46  ;;  %v20418_v46 = vld [vmem:[#allocation14 + $0x1084] ss:$16 sps:$4 sm:$0xff]  }
0x1580   :  { %13933 = vmatpush2.bf16.msra.mxu0 %v20383_v55  ;;  %13893 = vmatprep.subr.bf16.mxu1 %v20388_v14 }
0x1581   :  { %13934 = vmatprep.subr.bf16.mxu0 %v20391_v48  ;;  %v20421_v48 = vld [vmem:[#allocation14 + $0x1284] ss:$16 sps:$4 sm:$0xff]  }
0x1583   :  { %13894 = vmatpush2.bf16.msra.mxu1 %v20386_v47  ;;  %v20416_v47 = vld [vmem:[#allocation14 + $0x1080] ss:$16 sps:$4 sm:$0xff]  }
0x1584   :  { %13935 = vmatpush2.bf16.msra.mxu0 %v20389_v5  ;;  %13895 = vmatprep.subr.bf16.mxu1 %v20394_v9  ;;  %v20419_v5 = vld [vmem:[#allocation14 + $0x1280] ss:$16 sps:$4 sm:$0xff]   ;;  %v20427_v9 = vld [vmem:[#allocation14 + $0x1264] ss:$16 sps:$4 sm:$0xff]  }
0x1585   :  { %13936 = vmatprep.subr.bf16.mxu0 %v20397_v30  ;;  %v20425_v30 = vld [vmem:[#allocation14 + $0x1260] ss:$16 sps:$4 sm:$0xff]  }
0x1587   :  { %13896 = vmatpush2.bf16.msra.mxu1 %v20392_v18  ;;  %v20430_v18 = vld [vmem:[#allocation14 + $0x1044] ss:$16 sps:$4 sm:$0xff]  }
0x1588   :  { %13937 = vmatpush2.bf16.msra.mxu0 %v20395_v50  ;;  %13947 = vmatprep.subr.bf16.mxu1 %v20400_v7  ;;  %v20433_v50 = vld [vmem:[#allocation14 + $0x1244] ss:$16 sps:$4 sm:$0xff]   ;;  %v20437_v7 = vld [vmem:[#allocation14 + $0x1220] ss:$16 sps:$4 sm:$0xff]  }
0x1589   :  { %13988 = vmatprep.subr.bf16.mxu0 %v20403_v25  ;;  %v20442_v25 = vld [vmem:[#allocation14 + $0x1004] ss:$16 sps:$4 sm:$0xff]  }
0x158a   :  { %v13653_v42 = vpop.f32.mrf.mxu1  ;;  %13898 = vmatmul.mubr.bf16.vlgmr.msra.gmra.mxu1 %v23222_v54 }
0x158b   :  { %v13694_v36 = vpop.f32.mrf.mxu0  ;;  %13939 = vmatmul.mubr.bf16.vlgmr.msra.gmra.mxu0 %v23224_v34  ;;  %v13654_v43 = vadd.f32 %v13653_v42, %v10402_v52  ;;  %13948 = vmatpush1.bf16.msra.mxu1 %v20398_v12  ;;  %v20443_v12 = vld [vmem:[#allocation14 + $0x1200] ss:$16 sps:$4 sm:$0xff]   ;;  %v20448_v52 = vld [vmem:[#allocation14 + $0x11e4] ss:$16 sps:$4 sm:$0xff]  }
0x158c   :  { %13989 = vmatpush1.bf16.msra.mxu0 %v20401_v58  ;;  %v13655_v38 = vpop.f32.mrf.mxu1  ;;  %13949 = vmatprep.subr.bf16.mxu1 %v20406_v59  ;;  %v20451_v58 = vld [vmem:[#allocation14 + $0x13e4] ss:$16 sps:$4 sm:$0xff]   ;;  %v20446_v59 = vld [vmem:[#allocation14 + $0x11e0] ss:$16 sps:$4 sm:$0xff]  }
0x158d   :  { %v13696_v32 = vpop.f32.mrf.mxu0  ;;  %13990 = vmatprep.subr.bf16.mxu0 %v20409_v11  ;;  %v23234_v51 = vadd.f32 %v13694_v36, %v13654_v43  ;;  %v13656_v6 = vadd.f32 %v13655_v38, %v10406_v8  ;;  %13979 = vmatprep.mubr.bf16.mxu1 %v23228_v39  ;;  %v20449_v11 = vld [vmem:[#allocation14 + $0x13e0] ss:$16 sps:$4 sm:$0xff]   ;;  %v20454_v8 = vld [vmem:[#allocation14 + $0x11c4] ss:$16 sps:$4 sm:$0xff]  }
0x158e   :  { %14020 = vmatprep.mubr.bf16.mxu0 %v23230_v13  ;;  %v13657_v49 = vpop.f32.mrf.mxu1  ;;  %v20457_v42 = vld [vmem:[#allocation14 + $0x13c4] ss:$16 sps:$4 sm:$0xff]   ;;  %v20452_v36 = vld [vmem:[#allocation14 + $0x11c0] ss:$16 sps:$4 sm:$0xff]  }
0x158f   :  { %v13698_v45 = vpop.f32.mrf.mxu0  ;;  %v23238_v23 = vadd.f32 %v13696_v32, %v13656_v6  ;;  %13950 = vmatpush1.bf16.msra.mxu1 %v20404_v41  ;;  %v20455_v41 = vld [vmem:[#allocation14 + $0x13c0] ss:$16 sps:$4 sm:$0xff]   ;;  %v20460_v43 = vld [vmem:[#allocation14 + $0x11a4] ss:$16 sps:$4 sm:$0xff]  }
0x1590   :  { %13991 = vmatpush1.bf16.msra.mxu0 %v20407_v3  ;;  %v13658_v55 = vpop.f32.mrf.mxu1  ;;  %13951 = vmatprep.subr.bf16.mxu1 %v20412_v29  ;;  %v20463_v3 = vld [vmem:[#allocation14 + $0x13a4] ss:$16 sps:$4 sm:$0xff]   ;;  %v20458_v29 = vld [vmem:[#allocation14 + $0x11a0] ss:$16 sps:$4 sm:$0xff]  }
0x1591   :  { %v13699_v14 = vpop.f32.mrf.mxu0  ;;  %13992 = vmatprep.subr.bf16.mxu0 %v20415_v56  ;;  %v20461_v38 = vld [vmem:[#allocation14 + $0x13a0] ss:$16 sps:$4 sm:$0xff]   ;;  %v20466_v32 = vld [vmem:[#allocation14 + $0x1184] ss:$16 sps:$4 sm:$0xff]  }
0x1592   :  { %v20469_v56 = vld [vmem:[#allocation14 + $0x1384] ss:$16 sps:$4 sm:$0xff]   ;;  %v20464_v6 = vld [vmem:[#allocation14 + $0x1180] ss:$16 sps:$4 sm:$0xff]  }
0x1593   :  { %13952 = vmatpush1.bf16.msra.mxu1 %v20410_v44  ;;  %v20467_v49 = vld [vmem:[#allocation14 + $0x1380] ss:$16 sps:$4 sm:$0xff]   ;;  %v20472_v45 = vld [vmem:[#allocation14 + $0x1164] ss:$16 sps:$4 sm:$0xff]  }
0x1594   :  { %13993 = vmatpush1.bf16.msra.mxu0 %v20413_v26  ;;  %13953 = vmatprep.subr.bf16.mxu1 %v20418_v46  ;;  %v20475_v44 = vld [vmem:[#allocation14 + $0x1364] ss:$16 sps:$4 sm:$0xff]   ;;  %v20470_v26 = vld [vmem:[#allocation14 + $0x1160] ss:$16 sps:$4 sm:$0xff]  }
0x1595   :  { %13994 = vmatprep.subr.bf16.mxu0 %v20421_v48  ;;  %v20473_v46 = vld [vmem:[#allocation14 + $0x1360] ss:$16 sps:$4 sm:$0xff]   ;;  %v20478_v55 = vld [vmem:[#allocation14 + $0x1144] ss:$16 sps:$4 sm:$0xff]  }
0x1596   :  { %v20481_v14 = vld [vmem:[#allocation14 + $0x1344] ss:$16 sps:$4 sm:$0xff]   ;;  %v20476_v48 = vld [vmem:[#allocation14 + $0x1140] ss:$16 sps:$4 sm:$0xff]  }
0x1597   :  { %13954 = vmatpush1.bf16.msra.mxu1 %v20416_v47  ;;  %v20479_v47 = vld [vmem:[#allocation14 + $0x1340] ss:$16 sps:$4 sm:$0xff]  }
0x1598   :  { %13995 = vmatpush1.bf16.msra.mxu0 %v20419_v5  ;;  %13955 = vmatprep.subr.bf16.mxu1 %v20424_v27  ;;  %v20484_v5 = vld [vmem:[#allocation14 + $0x1124] ss:$16 sps:$4 sm:$0xff]  }
0x1599   :  { %13996 = vmatprep.subr.bf16.mxu0 %v20427_v9  ;;  %v20487_v27 = vld [vmem:[#allocation14 + $0x1324] ss:$16 sps:$4 sm:$0xff]   ;;  %v20482_v9 = vld [vmem:[#allocation14 + $0x1120] ss:$16 sps:$4 sm:$0xff]  }
0x159b   :  { %13956 = vmatpush1.bf16.msra.mxu1 %v20422_v37  ;;  %v20485_v37 = vld [vmem:[#allocation14 + $0x1320] ss:$16 sps:$4 sm:$0xff]  }
0x159c   :  { %13997 = vmatpush1.bf16.msra.mxu0 %v20425_v30  ;;  %13957 = vmatprep.subr.bf16.mxu1 %v20430_v18  ;;  %v9685_v30 = vld [vmem:[#allocation11 + $0x8] sm:$0xf0]  ;;  %v9687_v18 = vld [vmem:[#allocation11 + $0x10] sm:$0xf0] }
0x159d   :  { %13998 = vmatprep.subr.bf16.mxu0 %v20433_v50  ;;  %v20490_v50 = vld [vmem:[#allocation14 + $0x1104] ss:$16 sps:$4 sm:$0xff]  }
0x159f   :  { %13958 = vmatpush1.bf16.msra.mxu1 %v20428_v33  ;;  %v20493_v33 = vld [vmem:[#allocation14 + $0x1304] ss:$16 sps:$4 sm:$0xff]  }
0x15a0   :  { %13999 = vmatpush1.bf16.msra.mxu0 %v20431_v53  ;;  %13959 = vmatprep.subr.bf16.mxu1 %v20436_v24  ;;  %v9729_v53 = vrot.slane %v9685_v30, 4  ;;  %v9731_v24 = vrot.slane %v9687_v18, 4  ;;  %v20527_v30 = vld [vmem:[#allocation14 + $0x248] ss:$16 sps:$4 sm:$0xff]   ;;  %v20532_v18 = vld [vmem:[#allocation14 + $0x2c] ss:$16 sps:$4 sm:$0xff]  }
0x15a1   :  { %14000 = vmatprep.subr.bf16.mxu0 %v20439_v17  ;;  %v20488_v17 = vld [vmem:[#allocation14 + $0x1100] ss:$16 sps:$4 sm:$0xff]  }
0x15a3   :  { %13960 = vmatpush1.bf16.msra.mxu1 %v20434_v0  ;;  %v20491_v0 = vld [vmem:[#allocation14 + $0x1300] ss:$16 sps:$4 sm:$0xff]  }
0x15a4   :  { %14001 = vmatpush1.bf16.msra.mxu0 %v20437_v7  ;;  %13961 = vmatprep.subr.bf16.mxu1 %v20442_v25  ;;  %v20496_v7 = vld [vmem:[#allocation14 + $0xec] ss:$16 sps:$4 sm:$0xff]  }
0x15a5   :  { %14002 = vmatprep.subr.bf16.mxu0 %v20445_v62  ;;  %v20499_v25 = vld [vmem:[#allocation14 + $0x2ec] ss:$16 sps:$4 sm:$0xff]   ;;  %v20494_v62 = vld [vmem:[#allocation14 + $0xe8] ss:$16 sps:$4 sm:$0xff]  }
0x15a7   :  { %13962 = vmatpush1.bf16.msra.mxu1 %v20440_v4  ;;  %v20497_v4 = vld [vmem:[#allocation14 + $0x2e8] ss:$16 sps:$4 sm:$0xff]  }
0x15a8   :  { %14003 = vmatpush1.bf16.msra.mxu0 %v20443_v12  ;;  %13963 = vmatprep.subr.bf16.mxu1 %v20448_v52  ;;  %v23240_v12 = vpack.c.bf16 %v9729_v53, %v9729_v53  ;;  %v23242_v52 = vpack.c.bf16 %v9731_v24, %v9731_v24  ;;  %v20533_v53 = vld [vmem:[#allocation14 + $0x228] ss:$16 sps:$4 sm:$0xff]   ;;  %v20538_v24 = vld [vmem:[#allocation14 + $0xc] ss:$16 sps:$4 sm:$0xff]  }
0x15a9   :  { %14004 = vmatprep.subr.bf16.mxu0 %v20451_v58  ;;  %v20502_v58 = vld [vmem:[#allocation14 + $0xcc] ss:$16 sps:$4 sm:$0xff]  }
0x15ab   :  { %13964 = vmatpush2.bf16.msra.mxu1 %v20446_v59  ;;  %v20505_v59 = vld [vmem:[#allocation14 + $0x2cc] ss:$16 sps:$4 sm:$0xff]  }
0x15ac   :  { %14005 = vmatpush2.bf16.msra.mxu0 %v20449_v11  ;;  %13965 = vmatprep.subr.bf16.mxu1 %v20454_v8  ;;  %v20500_v11 = vld [vmem:[#allocation14 + $0xc8] ss:$16 sps:$4 sm:$0xff]  }
0x15ad   :  { %14006 = vmatprep.subr.bf16.mxu0 %v20457_v42  ;;  %v20503_v8 = vld [vmem:[#allocation14 + $0x2c8] ss:$16 sps:$4 sm:$0xff]  }
0x15af   :  { %13966 = vmatpush2.bf16.msra.mxu1 %v20452_v36 }
0x15b0   :  { %14007 = vmatpush2.bf16.msra.mxu0 %v20455_v41  ;;  %13967 = vmatprep.subr.bf16.mxu1 %v20460_v43 }
0x15b1   :  { %14008 = vmatprep.subr.bf16.mxu0 %v20463_v3 }
0x15b3   :  { %13968 = vmatpush2.bf16.msra.mxu1 %v20458_v29  ;;  %v20508_v29 = vld [vmem:[#allocation14 + $0xac] ss:$16 sps:$4 sm:$0xff]  }
0x15b4   :  { %14009 = vmatpush2.bf16.msra.mxu0 %v20461_v38  ;;  %13969 = vmatprep.subr.bf16.mxu1 %v20466_v32  ;;  %v20511_v38 = vld [vmem:[#allocation14 + $0x2ac] ss:$16 sps:$4 sm:$0xff]  }
0x15b5   :  { %14010 = vmatprep.subr.bf16.mxu0 %v20469_v56 }
0x15b7   :  { %13970 = vmatpush2.bf16.msra.mxu1 %v20464_v6  ;;  %v20506_v6 = vld [vmem:[#allocation14 + $0xa8] ss:$16 sps:$4 sm:$0xff]  }
0x15b8   :  { %14011 = vmatpush2.bf16.msra.mxu0 %v20467_v49  ;;  %13971 = vmatprep.subr.bf16.mxu1 %v20472_v45  ;;  %v20509_v49 = vld [vmem:[#allocation14 + $0x2a8] ss:$16 sps:$4 sm:$0xff]  }
0x15b9   :  { %14012 = vmatprep.subr.bf16.mxu0 %v20475_v44 }
0x15bb   :  { %13972 = vmatpush2.bf16.msra.mxu1 %v20470_v26 }
0x15bc   :  { %14013 = vmatpush2.bf16.msra.mxu0 %v20473_v46  ;;  %13973 = vmatprep.subr.bf16.mxu1 %v20478_v55  ;;  %v20514_v55 = vld [vmem:[#allocation14 + $0x8c] ss:$16 sps:$4 sm:$0xff]  }
0x15bd   :  { %14014 = vmatprep.subr.bf16.mxu0 %v20481_v14  ;;  %v20517_v14 = vld [vmem:[#allocation14 + $0x28c] ss:$16 sps:$4 sm:$0xff]  }
0x15bf   :  { %13974 = vmatpush2.bf16.msra.mxu1 %v20476_v48  ;;  %v20515_v48 = vld [vmem:[#allocation14 + $0x288] ss:$16 sps:$4 sm:$0xff]  }
0x15c0   :  { %14015 = vmatpush2.bf16.msra.mxu0 %v20479_v47  ;;  %13975 = vmatprep.subr.bf16.mxu1 %v20484_v5  ;;  %v20518_v47 = vld [vmem:[#allocation14 + $0x68] ss:$16 sps:$4 sm:$0xff]  }
0x15c1   :  { %14016 = vmatprep.subr.bf16.mxu0 %v20487_v27  ;;  %v20521_v5 = vld [vmem:[#allocation14 + $0x268] ss:$16 sps:$4 sm:$0xff]   ;;  %v20526_v27 = vld [vmem:[#allocation14 + $0x4c] ss:$16 sps:$4 sm:$0xff]  }
0x15c3   :  { %13976 = vmatpush2.bf16.msra.mxu1 %v20482_v9  ;;  %v20529_v9 = vld [vmem:[#allocation14 + $0x24c] ss:$16 sps:$4 sm:$0xff]  }
0x15c4   :  { %14017 = vmatpush2.bf16.msra.mxu0 %v20485_v37  ;;  %13977 = vmatprep.subr.bf16.mxu1 %v20490_v50  ;;  %v20524_v37 = vld [vmem:[#allocation14 + $0x48] ss:$16 sps:$4 sm:$0xff]   ;;  %v20535_v50 = vld [vmem:[#allocation14 + $0x22c] ss:$16 sps:$4 sm:$0xff]  }
0x15c5   :  { %14018 = vmatprep.subr.bf16.mxu0 %v20493_v33  ;;  %v20530_v33 = vld [vmem:[#allocation14 + $0x28] ss:$16 sps:$4 sm:$0xff]  }
0x15c7   :  { %13978 = vmatpush2.bf16.msra.mxu1 %v20488_v17  ;;  %v20541_v17 = vld [vmem:[#allocation14 + $0x20c] ss:$16 sps:$4 sm:$0xff]  }
0x15c8   :  { %14019 = vmatpush2.bf16.msra.mxu0 %v20491_v0  ;;  %14029 = vmatprep.subr.bf16.mxu1 %v20496_v7  ;;  %v20536_v0 = vld [vmem:[#allocation14 + $0x8] ss:$16 sps:$4 sm:$0xff]  }
0x15c9   :  { %14070 = vmatprep.subr.bf16.mxu0 %v20499_v25  ;;  %v20539_v7 = vld [vmem:[#allocation14 + $0x208] ss:$16 sps:$4 sm:$0xff]   ;;  %v20544_v25 = vld [vmem:[#allocation14 + $0x1ec] ss:$16 sps:$4 sm:$0xff]  }
0x15ca   :  { %v13735_v42 = vpop.f32.mrf.mxu1  ;;  %13980 = vmatmul.mubr.bf16.vlgmr.msra.gmra.mxu1 %v23240_v12 }
0x15cb   :  { %v13776_v36 = vpop.f32.mrf.mxu0  ;;  %14021 = vmatmul.mubr.bf16.vlgmr.msra.gmra.mxu0 %v23242_v52  ;;  %v13736_v41 = vadd.f32 %v13735_v42, %v23234_v51  ;;  %14030 = vmatpush1.bf16.msra.mxu1 %v20494_v62  ;;  %v20547_v62 = vld [vmem:[#allocation14 + $0x3ec] ss:$16 sps:$4 sm:$0xff]   ;;  %v20551_v42 = vld [vmem:[#allocation14 + $0x3c8] ss:$16 sps:$4 sm:$0xff]  }
0x15cc   :  { %14071 = vmatpush1.bf16.msra.mxu0 %v20497_v4  ;;  %v13737_v43 = vpop.f32.mrf.mxu1  ;;  %14031 = vmatprep.subr.bf16.mxu1 %v20502_v58  ;;  %v20542_v4 = vld [vmem:[#allocation14 + $0x1e8] ss:$16 sps:$4 sm:$0xff]  }
0x15cd   :  { %v13778_v3 = vpop.f32.mrf.mxu0  ;;  %14072 = vmatprep.subr.bf16.mxu0 %v20505_v59  ;;  %v23247_v32 = vadd.f32 %v13776_v36, %v13736_v41  ;;  %v13738_v56 = vadd.f32 %v13737_v43, %v23238_v23  ;;  %14061 = vmatprep.mubr.bf16.mxu1 %v23180_v57  ;;  %v20512_v23 = vld [vmem:[#allocation14 + $0x88] ss:$16 sps:$4 sm:$0xff]   ;;  %v20520_v57 = vld [vmem:[#allocation14 + $0x6c] ss:$16 sps:$4 sm:$0xff]  }
0x15ce   :  { %14102 = vmatprep.mubr.bf16.mxu0 %v23182_v21  ;;  %v13739_v45 = vpop.f32.mrf.mxu1  ;;  %v20523_v21 = vld [vmem:[#allocation14 + $0x26c] ss:$16 sps:$4 sm:$0xff]   ;;  %v20545_v58 = vld [vmem:[#allocation14 + $0x3e8] ss:$16 sps:$4 sm:$0xff]  }
0x15cf   :  { %v13780_v51 = vpop.f32.mrf.mxu0  ;;  %v23252_v44 = vadd.f32 %v13778_v3, %v13738_v56  ;;  %14032 = vmatpush1.bf16.msra.mxu1 %v20500_v11  ;;  %v20550_v59 = vld [vmem:[#allocation14 + $0x1cc] ss:$16 sps:$4 sm:$0xff]   ;;  %v20554_v43 = vld [vmem:[#allocation14 + $0x1a8] ss:$16 sps:$4 sm:$0xff]  }
0x15d0   :  { %14073 = vmatpush1.bf16.msra.mxu0 %v20503_v8  ;;  %v13740_v26 = vpop.f32.mrf.mxu1  ;;  %14033 = vmatprep.subr.bf16.mxu1 %v20508_v29  ;;  %v20553_v11 = vld [vmem:[#allocation14 + $0x3cc] ss:$16 sps:$4 sm:$0xff]   ;;  %v20548_v8 = vld [vmem:[#allocation14 + $0x1c8] ss:$16 sps:$4 sm:$0xff]  }
0x15d1   :  { %v13781_v46 = vpop.f32.mrf.mxu0  ;;  %14074 = vmatprep.subr.bf16.mxu0 %v20511_v38  ;;  %v20556_v36 = vld [vmem:[#allocation14 + $0x1ac] ss:$16 sps:$4 sm:$0xff]   ;;  %v20557_v3 = vld [vmem:[#allocation14 + $0x3a8] ss:$16 sps:$4 sm:$0xff]  }
0x15d2   :  { %v20559_v41 = vld [vmem:[#allocation14 + $0x3ac] ss:$16 sps:$4 sm:$0xff]   ;;  %v20560_v56 = vld [vmem:[#allocation14 + $0x188] ss:$16 sps:$4 sm:$0xff]  }
0x15d3   :  { %14034 = vmatpush1.bf16.msra.mxu1 %v20506_v6  ;;  %v20562_v29 = vld [vmem:[#allocation14 + $0x18c] ss:$16 sps:$4 sm:$0xff]   ;;  %v20563_v6 = vld [vmem:[#allocation14 + $0x388] ss:$16 sps:$4 sm:$0xff]  }
0x15d4   :  { %14075 = vmatpush1.bf16.msra.mxu0 %v20509_v49  ;;  %14035 = vmatprep.subr.bf16.mxu1 %v20514_v55  ;;  %v20565_v38 = vld [vmem:[#allocation14 + $0x38c] ss:$16 sps:$4 sm:$0xff]   ;;  %v20566_v51 = vld [vmem:[#allocation14 + $0x168] ss:$16 sps:$4 sm:$0xff]  }
0x15d5   :  { %14076 = vmatprep.subr.bf16.mxu0 %v20517_v14  ;;  %v20568_v49 = vld [vmem:[#allocation14 + $0x16c] ss:$16 sps:$4 sm:$0xff]   ;;  %v20569_v26 = vld [vmem:[#allocation14 + $0x368] ss:$16 sps:$4 sm:$0xff]  }
0x15d6   :  { %v20571_v45 = vld [vmem:[#allocation14 + $0x36c] ss:$16 sps:$4 sm:$0xff]   ;;  %v20572_v14 = vld [vmem:[#allocation14 + $0x148] ss:$16 sps:$4 sm:$0xff]  }
0x15d7   :  { %14036 = vmatpush1.bf16.msra.mxu1 %v20512_v23  ;;  %v20574_v46 = vld [vmem:[#allocation14 + $0x14c] ss:$16 sps:$4 sm:$0xff]   ;;  %v20575_v23 = vld [vmem:[#allocation14 + $0x348] ss:$16 sps:$4 sm:$0xff]  }
0x15d8   :  { %14077 = vmatpush1.bf16.msra.mxu0 %v20515_v48  ;;  %14037 = vmatprep.subr.bf16.mxu1 %v20520_v57  ;;  %v20577_v55 = vld [vmem:[#allocation14 + $0x34c] ss:$16 sps:$4 sm:$0xff]  }
0x15d9   :  { %14078 = vmatprep.subr.bf16.mxu0 %v20523_v21  ;;  %v20580_v48 = vld [vmem:[#allocation14 + $0x12c] ss:$16 sps:$4 sm:$0xff]   ;;  %v20578_v21 = vld [vmem:[#allocation14 + $0x128] ss:$16 sps:$4 sm:$0xff]  }
0x15da   :  { %v20583_v57 = vld [vmem:[#allocation14 + $0x32c] ss:$16 sps:$4 sm:$0xff]  }
0x15db   :  { %14038 = vmatpush1.bf16.msra.mxu1 %v20518_v47  ;;  %v20581_v47 = vld [vmem:[#allocation14 + $0x328] ss:$16 sps:$4 sm:$0xff]  }
0x15dc   :  { %14079 = vmatpush1.bf16.msra.mxu0 %v20521_v5  ;;  %14039 = vmatprep.subr.bf16.mxu1 %v20526_v27  ;;  %v20586_v5 = vld [vmem:[#allocation14 + $0x10c] ss:$16 sps:$4 sm:$0xff]  }
0x15dd   :  { %14080 = vmatprep.subr.bf16.mxu0 %v20529_v9  ;;  %v20589_v27 = vld [vmem:[#allocation14 + $0x30c] ss:$16 sps:$4 sm:$0xff]   ;;  %v20584_v9 = vld [vmem:[#allocation14 + $0x108] ss:$16 sps:$4 sm:$0xff]  }
0x15df   :  { %14040 = vmatpush1.bf16.msra.mxu1 %v20524_v37  ;;  %v20587_v37 = vld [vmem:[#allocation14 + $0x308] ss:$16 sps:$4 sm:$0xff]  }
0x15e0   :  { %14081 = vmatpush1.bf16.msra.mxu0 %v20527_v30  ;;  %14041 = vmatprep.subr.bf16.mxu1 %v20532_v18  ;;  %v20592_v30 = vld [vmem:[#allocation14 + $0x4ec] ss:$16 sps:$4 sm:$0xff]  }
0x15e1   :  { %14082 = vmatprep.subr.bf16.mxu0 %v20535_v50  ;;  %v20595_v18 = vld [vmem:[#allocation14 + $0x6ec] ss:$16 sps:$4 sm:$0xff]   ;;  %v20590_v50 = vld [vmem:[#allocation14 + $0x4e8] ss:$16 sps:$4 sm:$0xff]  }
0x15e3   :  { %14042 = vmatpush1.bf16.msra.mxu1 %v20530_v33  ;;  %v20593_v33 = vld [vmem:[#allocation14 + $0x6e8] ss:$16 sps:$4 sm:$0xff]  }
0x15e4   :  { %14083 = vmatpush1.bf16.msra.mxu0 %v20533_v53  ;;  %14043 = vmatprep.subr.bf16.mxu1 %v20538_v24  ;;  %v20598_v53 = vld [vmem:[#allocation14 + $0x4cc] ss:$16 sps:$4 sm:$0xff]  }
0x15e5   :  { %14084 = vmatprep.subr.bf16.mxu0 %v20541_v17  ;;  %v20601_v24 = vld [vmem:[#allocation14 + $0x6cc] ss:$16 sps:$4 sm:$0xff]   ;;  %v20596_v17 = vld [vmem:[#allocation14 + $0x4c8] ss:$16 sps:$4 sm:$0xff]  }
0x15e7   :  { %14044 = vmatpush1.bf16.msra.mxu1 %v20536_v0  ;;  %v20599_v0 = vld [vmem:[#allocation14 + $0x6c8] ss:$16 sps:$4 sm:$0xff]  }
0x15e8   :  { %14085 = vmatpush1.bf16.msra.mxu0 %v20539_v7  ;;  %14045 = vmatprep.subr.bf16.mxu1 %v20544_v25 }
0x15e9   :  { %14086 = vmatprep.subr.bf16.mxu0 %v20547_v62  ;;  %v20604_v62 = vld [vmem:[#allocation14 + $0x4ac] ss:$16 sps:$4 sm:$0xff]  }
0x15eb   :  { %14046 = vmatpush2.bf16.msra.mxu1 %v20542_v4  ;;  %v20607_v4 = vld [vmem:[#allocation14 + $0x6ac] ss:$16 sps:$4 sm:$0xff]  }
0x15ec   :  { %14087 = vmatpush2.bf16.msra.mxu0 %v20545_v58  ;;  %14047 = vmatprep.subr.bf16.mxu1 %v20550_v59 }
0x15ed   :  { %14088 = vmatprep.subr.bf16.mxu0 %v20553_v11 }
0x15ef   :  { %14048 = vmatpush2.bf16.msra.mxu1 %v20548_v8 }
0x15f0   :  { %14089 = vmatpush2.bf16.msra.mxu0 %v20551_v42  ;;  %14049 = vmatprep.subr.bf16.mxu1 %v20556_v36  ;;  %v20602_v36 = vld [vmem:[#allocation14 + $0x4a8] ss:$16 sps:$4 sm:$0xff]  }
0x15f1   :  { %14090 = vmatprep.subr.bf16.mxu0 %v20559_v41  ;;  %v20605_v41 = vld [vmem:[#allocation14 + $0x6a8] ss:$16 sps:$4 sm:$0xff]  }
0x15f3   :  { %14050 = vmatpush2.bf16.msra.mxu1 %v20554_v43  ;;  %v20610_v43 = vld [vmem:[#allocation14 + $0x48c] ss:$16 sps:$4 sm:$0xff]  }
0x15f4   :  { %14091 = vmatpush2.bf16.msra.mxu0 %v20557_v3  ;;  %14051 = vmatprep.subr.bf16.mxu1 %v20562_v29 }
0x15f5   :  { %14092 = vmatprep.subr.bf16.mxu0 %v20565_v38 }
0x15f7   :  { %14052 = vmatpush2.bf16.msra.mxu1 %v20560_v56  ;;  %v20611_v56 = vld [vmem:[#allocation14 + $0x688] ss:$16 sps:$4 sm:$0xff]  }
0x15f8   :  { %14093 = vmatpush2.bf16.msra.mxu0 %v20563_v6  ;;  %14053 = vmatprep.subr.bf16.mxu1 %v20568_v49  ;;  %v20614_v6 = vld [vmem:[#allocation14 + $0x468] ss:$16 sps:$4 sm:$0xff]  }
0x15f9   :  { %14094 = vmatprep.subr.bf16.mxu0 %v20571_v45  ;;  %v20617_v49 = vld [vmem:[#allocation14 + $0x668] ss:$16 sps:$4 sm:$0xff]   ;;  %v20622_v45 = vld [vmem:[#allocation14 + $0x44c] ss:$16 sps:$4 sm:$0xff]  }
0x15fb   :  { %14054 = vmatpush2.bf16.msra.mxu1 %v20566_v51  ;;  %v20625_v51 = vld [vmem:[#allocation14 + $0x64c] ss:$16 sps:$4 sm:$0xff]  }
0x15fc   :  { %14095 = vmatpush2.bf16.msra.mxu0 %v20569_v26  ;;  %14055 = vmatprep.subr.bf16.mxu1 %v20574_v46  ;;  %v20620_v26 = vld [vmem:[#allocation14 + $0x448] ss:$16 sps:$4 sm:$0xff]  }
0x15fd   :  { %14096 = vmatprep.subr.bf16.mxu0 %v20577_v55  ;;  %v20623_v46 = vld [vmem:[#allocation14 + $0x648] ss:$16 sps:$4 sm:$0xff]   ;;  %v20628_v55 = vld [vmem:[#allocation14 + $0x42c] ss:$16 sps:$4 sm:$0xff]  }
0x15ff   :  { %14056 = vmatpush2.bf16.msra.mxu1 %v20572_v14  ;;  %v20631_v14 = vld [vmem:[#allocation14 + $0x62c] ss:$16 sps:$4 sm:$0xff]  }
0x1600   :  { %14097 = vmatpush2.bf16.msra.mxu0 %v20575_v23  ;;  %14057 = vmatprep.subr.bf16.mxu1 %v20580_v48  ;;  %v20626_v23 = vld [vmem:[#allocation14 + $0x428] ss:$16 sps:$4 sm:$0xff]  }
0x1601   :  { %14098 = vmatprep.subr.bf16.mxu0 %v20583_v57  ;;  %v20629_v48 = vld [vmem:[#allocation14 + $0x628] ss:$16 sps:$4 sm:$0xff]   ;;  %v20634_v57 = vld [vmem:[#allocation14 + $0x40c] ss:$16 sps:$4 sm:$0xff]  }
0x1603   :  { %14058 = vmatpush2.bf16.msra.mxu1 %v20578_v21  ;;  %v20637_v21 = vld [vmem:[#allocation14 + $0x60c] ss:$16 sps:$4 sm:$0xff]  }
0x1604   :  { %14099 = vmatpush2.bf16.msra.mxu0 %v20581_v47  ;;  %14059 = vmatprep.subr.bf16.mxu1 %v20586_v5  ;;  %v20632_v47 = vld [vmem:[#allocation14 + $0x408] ss:$16 sps:$4 sm:$0xff]  }
0x1605   :  { %14100 = vmatprep.subr.bf16.mxu0 %v20589_v27  ;;  %v20635_v5 = vld [vmem:[#allocation14 + $0x608] ss:$16 sps:$4 sm:$0xff]   ;;  %v20640_v27 = vld [vmem:[#allocation14 + $0x5ec] ss:$16 sps:$4 sm:$0xff]  }
0x1607   :  { %14060 = vmatpush2.bf16.msra.mxu1 %v20584_v9  ;;  %v20643_v9 = vld [vmem:[#allocation14 + $0x7ec] ss:$16 sps:$4 sm:$0xff]  }
0x1608   :  { %14101 = vmatpush2.bf16.msra.mxu0 %v20587_v37  ;;  %14111 = vmatprep.subr.bf16.mxu1 %v20592_v30  ;;  %v20638_v37 = vld [vmem:[#allocation14 + $0x5e8] ss:$16 sps:$4 sm:$0xff]  }
0x1609   :  { %14152 = vmatprep.subr.bf16.mxu0 %v20595_v18  ;;  %v20641_v30 = vld [vmem:[#allocation14 + $0x7e8] ss:$16 sps:$4 sm:$0xff]   ;;  %v20646_v18 = vld [vmem:[#allocation14 + $0x5cc] ss:$16 sps:$4 sm:$0xff]  }
0x160a   :  { %v13817_v7 = vpop.f32.mrf.mxu1  ;;  %14062 = vmatmul.mubr.bf16.vlgmr.msra.gmra.mxu1 %v23186_v16 }
0x160b   :  { %v13858_v25 = vpop.f32.mrf.mxu0  ;;  %14103 = vmatmul.mubr.bf16.vlgmr.msra.gmra.mxu0 %v23188_v61  ;;  %v13818_v58 = vadd.f32 %v13817_v7, %v23247_v32  ;;  %14112 = vmatpush1.bf16.msra.mxu1 %v20590_v50  ;;  %v20613_v32 = vld [vmem:[#allocation14 + $0x68c] ss:$16 sps:$4 sm:$0xff]   ;;  %v20653_v7 = vld [vmem:[#allocation14 + $0x7a8] ss:$16 sps:$4 sm:$0xff]  }
0x160c   :  { %14153 = vmatpush1.bf16.msra.mxu0 %v20593_v33  ;;  %v13819_v59 = vpop.f32.mrf.mxu1  ;;  %14113 = vmatprep.subr.bf16.mxu1 %v20598_v53  ;;  %v20649_v50 = vld [vmem:[#allocation14 + $0x7cc] ss:$16 sps:$4 sm:$0xff]   ;;  %v20644_v33 = vld [vmem:[#allocation14 + $0x5c8] ss:$16 sps:$4 sm:$0xff]  }
0x160d   :  { %v13860_v11 = vpop.f32.mrf.mxu0  ;;  %14154 = vmatprep.subr.bf16.mxu0 %v20601_v24  ;;  %v23257_v8 = vadd.f32 %v13858_v25, %v13818_v58  ;;  %v13820_v42 = vadd.f32 %v13819_v59, %v23252_v44  ;;  %14143 = vmatprep.mubr.bf16.mxu1 %v23192_v28  ;;  %v20608_v44 = vld [vmem:[#allocation14 + $0x488] ss:$16 sps:$4 sm:$0xff]   ;;  %v20616_v28 = vld [vmem:[#allocation14 + $0x46c] ss:$16 sps:$4 sm:$0xff]  }
0x160e   :  { %14184 = vmatprep.mubr.bf16.mxu0 %v23194_v22  ;;  %v13821_v16 = vpop.f32.mrf.mxu1  ;;  %v20619_v22 = vld [vmem:[#allocation14 + $0x66c] ss:$16 sps:$4 sm:$0xff]   ;;  %v20647_v53 = vld [vmem:[#allocation14 + $0x7c8] ss:$16 sps:$4 sm:$0xff]  }
0x160f   :  { %v13862_v61 = vpop.f32.mrf.mxu0  ;;  %v23262_v3 = vadd.f32 %v13860_v11, %v13820_v42  ;;  %14114 = vmatpush1.bf16.msra.mxu1 %v20596_v17  ;;  %v20652_v24 = vld [vmem:[#allocation14 + $0x5ac] ss:$16 sps:$4 sm:$0xff]   ;;  %v20659_v58 = vld [vmem:[#allocation14 + $0x788] ss:$16 sps:$4 sm:$0xff]  }
0x1610   :  { %14155 = vmatpush1.bf16.msra.mxu0 %v20599_v0  ;;  %v13822_v29 = vpop.f32.mrf.mxu1  ;;  %14115 = vmatprep.subr.bf16.mxu1 %v20604_v62  ;;  %v20655_v17 = vld [vmem:[#allocation14 + $0x7ac] ss:$16 sps:$4 sm:$0xff]   ;;  %v20650_v0 = vld [vmem:[#allocation14 + $0x5a8] ss:$16 sps:$4 sm:$0xff]  }
0x1611   :  { %v13863_v38 = vpop.f32.mrf.mxu0  ;;  %14156 = vmatprep.subr.bf16.mxu0 %v20607_v4  ;;  %v20658_v25 = vld [vmem:[#allocation14 + $0x58c] ss:$16 sps:$4 sm:$0xff]   ;;  %v20656_v4 = vld [vmem:[#allocation14 + $0x588] ss:$16 sps:$4 sm:$0xff]  }
0x1612   :  { %v20661_v62 = vld [vmem:[#allocation14 + $0x78c] ss:$16 sps:$4 sm:$0xff]   ;;  %v20662_v42 = vld [vmem:[#allocation14 + $0x568] ss:$16 sps:$4 sm:$0xff]  }
0x1613   :  { %14116 = vmatpush1.bf16.msra.mxu1 %v20602_v36  ;;  %v20664_v59 = vld [vmem:[#allocation14 + $0x56c] ss:$16 sps:$4 sm:$0xff]   ;;  %v20665_v36 = vld [vmem:[#allocation14 + $0x768] ss:$16 sps:$4 sm:$0xff]  }
0x1614   :  { %14157 = vmatpush1.bf16.msra.mxu0 %v20605_v41  ;;  %14117 = vmatprep.subr.bf16.mxu1 %v20610_v43  ;;  %v20667_v11 = vld [vmem:[#allocation14 + $0x76c] ss:$16 sps:$4 sm:$0xff]   ;;  %v20668_v61 = vld [vmem:[#allocation14 + $0x548] ss:$16 sps:$4 sm:$0xff]  }
0x1615   :  { %14158 = vmatprep.subr.bf16.mxu0 %v20613_v32  ;;  %v20670_v41 = vld [vmem:[#allocation14 + $0x54c] ss:$16 sps:$4 sm:$0xff]   ;;  %v20671_v43 = vld [vmem:[#allocation14 + $0x748] ss:$16 sps:$4 sm:$0xff]  }
0x1616   :  { %v20673_v16 = vld [vmem:[#allocation14 + $0x74c] ss:$16 sps:$4 sm:$0xff]   ;;  %v20674_v38 = vld [vmem:[#allocation14 + $0x528] ss:$16 sps:$4 sm:$0xff]  }
0x1617   :  { %14118 = vmatpush1.bf16.msra.mxu1 %v20608_v44  ;;  %v20676_v32 = vld [vmem:[#allocation14 + $0x52c] ss:$16 sps:$4 sm:$0xff]   ;;  %v20677_v44 = vld [vmem:[#allocation14 + $0x728] ss:$16 sps:$4 sm:$0xff]  }
0x1618   :  { %14159 = vmatpush1.bf16.msra.mxu0 %v20611_v56  ;;  %14119 = vmatprep.subr.bf16.mxu1 %v20616_v28  ;;  %v20679_v29 = vld [vmem:[#allocation14 + $0x72c] ss:$16 sps:$4 sm:$0xff]  }
0x1619   :  { %14160 = vmatprep.subr.bf16.mxu0 %v20619_v22  ;;  %v20682_v56 = vld [vmem:[#allocation14 + $0x50c] ss:$16 sps:$4 sm:$0xff]   ;;  %v20680_v22 = vld [vmem:[#allocation14 + $0x508] ss:$16 sps:$4 sm:$0xff]  }
0x161a   :  { %v20685_v28 = vld [vmem:[#allocation14 + $0x70c] ss:$16 sps:$4 sm:$0xff]  }
0x161b   :  { %14120 = vmatpush1.bf16.msra.mxu1 %v20614_v6  ;;  %v20683_v6 = vld [vmem:[#allocation14 + $0x708] ss:$16 sps:$4 sm:$0xff]  }
0x161c   :  { %14161 = vmatpush1.bf16.msra.mxu0 %v20617_v49  ;;  %14121 = vmatprep.subr.bf16.mxu1 %v20622_v45  ;;  %v20688_v49 = vld [vmem:[#allocation14 + $0x8ec] ss:$16 sps:$4 sm:$0xff]  }
0x161d   :  { %14162 = vmatprep.subr.bf16.mxu0 %v20625_v51  ;;  %v20691_v45 = vld [vmem:[#allocation14 + $0xaec] ss:$16 sps:$4 sm:$0xff]   ;;  %v20686_v51 = vld [vmem:[#allocation14 + $0x8e8] ss:$16 sps:$4 sm:$0xff]  }
0x161f   :  { %14122 = vmatpush1.bf16.msra.mxu1 %v20620_v26  ;;  %v20689_v26 = vld [vmem:[#allocation14 + $0xae8] ss:$16 sps:$4 sm:$0xff]  }
0x1620   :  { %14163 = vmatpush1.bf16.msra.mxu0 %v20623_v46  ;;  %14123 = vmatprep.subr.bf16.mxu1 %v20628_v55  ;;  %v20694_v46 = vld [vmem:[#allocation14 + $0x8cc] ss:$16 sps:$4 sm:$0xff]  }
0x1621   :  { %14164 = vmatprep.subr.bf16.mxu0 %v20631_v14  ;;  %v20697_v55 = vld [vmem:[#allocation14 + $0xacc] ss:$16 sps:$4 sm:$0xff]  }
0x1623   :  { %14124 = vmatpush1.bf16.msra.mxu1 %v20626_v23 }
0x1624   :  { %14165 = vmatpush1.bf16.msra.mxu0 %v20629_v48  ;;  %14125 = vmatprep.subr.bf16.mxu1 %v20634_v57  ;;  %v20692_v57 = vld [vmem:[#allocation14 + $0x8c8] ss:$16 sps:$4 sm:$0xff]  }
0x1625   :  { %14166 = vmatprep.subr.bf16.mxu0 %v20637_v21  ;;  %v20695_v21 = vld [vmem:[#allocation14 + $0xac8] ss:$16 sps:$4 sm:$0xff]  }
0x1627   :  { %14126 = vmatpush1.bf16.msra.mxu1 %v20632_v47 }
0x1628   :  { %14167 = vmatpush1.bf16.msra.mxu0 %v20635_v5  ;;  %14127 = vmatprep.subr.bf16.mxu1 %v20640_v27  ;;  %v20700_v27 = vld [vmem:[#allocation14 + $0x8ac] ss:$16 sps:$4 sm:$0xff]  }
0x1629   :  { %14168 = vmatprep.subr.bf16.mxu0 %v20643_v9  ;;  %v20703_v9 = vld [vmem:[#allocation14 + $0xaac] ss:$16 sps:$4 sm:$0xff]  }
0x162b   :  { %14128 = vmatpush2.bf16.msra.mxu1 %v20638_v37 }
0x162c   :  { %14169 = vmatpush2.bf16.msra.mxu0 %v20641_v30  ;;  %14129 = vmatprep.subr.bf16.mxu1 %v20646_v18  ;;  %v20698_v18 = vld [vmem:[#allocation14 + $0x8a8] ss:$16 sps:$4 sm:$0xff]  }
0x162d   :  { %14170 = vmatprep.subr.bf16.mxu0 %v20649_v50  ;;  %v20701_v50 = vld [vmem:[#allocation14 + $0xaa8] ss:$16 sps:$4 sm:$0xff]  }
0x162f   :  { %14130 = vmatpush2.bf16.msra.mxu1 %v20644_v33 }
0x1630   :  { %14171 = vmatpush2.bf16.msra.mxu0 %v20647_v53  ;;  %14131 = vmatprep.subr.bf16.mxu1 %v20652_v24  ;;  %v20706_v24 = vld [vmem:[#allocation14 + $0x88c] ss:$16 sps:$4 sm:$0xff]  }
0x1631   :  { %14172 = vmatprep.subr.bf16.mxu0 %v20655_v17  ;;  %v20709_v17 = vld [vmem:[#allocation14 + $0xa8c] ss:$16 sps:$4 sm:$0xff]  }
0x1633   :  { %14132 = vmatpush2.bf16.msra.mxu1 %v20650_v0  ;;  %v20715_v0 = vld [vmem:[#allocation14 + $0xa6c] ss:$16 sps:$4 sm:$0xff]  }
0x1634   :  { %14173 = vmatpush2.bf16.msra.mxu0 %v20653_v7  ;;  %14133 = vmatprep.subr.bf16.mxu1 %v20658_v25  ;;  %v20710_v7 = vld [vmem:[#allocation14 + $0x868] ss:$16 sps:$4 sm:$0xff]  }
0x1635   :  { %14174 = vmatprep.subr.bf16.mxu0 %v20661_v62  ;;  %v20713_v25 = vld [vmem:[#allocation14 + $0xa68] ss:$16 sps:$4 sm:$0xff]   ;;  %v20718_v62 = vld [vmem:[#allocation14 + $0x84c] ss:$16 sps:$4 sm:$0xff]  }
0x1637   :  { %14134 = vmatpush2.bf16.msra.mxu1 %v20656_v4  ;;  %v20721_v4 = vld [vmem:[#allocation14 + $0xa4c] ss:$16 sps:$4 sm:$0xff]  }
0x1638   :  { %14175 = vmatpush2.bf16.msra.mxu0 %v20659_v58  ;;  %14135 = vmatprep.subr.bf16.mxu1 %v20664_v59  ;;  %v20716_v58 = vld [vmem:[#allocation14 + $0x848] ss:$16 sps:$4 sm:$0xff]  }
0x1639   :  { %14176 = vmatprep.subr.bf16.mxu0 %v20667_v11  ;;  %v20719_v59 = vld [vmem:[#allocation14 + $0xa48] ss:$16 sps:$4 sm:$0xff]   ;;  %v20724_v11 = vld [vmem:[#allocation14 + $0x82c] ss:$16 sps:$4 sm:$0xff]  }
0x163b   :  { %14136 = vmatpush2.bf16.msra.mxu1 %v20662_v42  ;;  %v20727_v42 = vld [vmem:[#allocation14 + $0xa2c] ss:$16 sps:$4 sm:$0xff]  }
0x163c   :  { %14177 = vmatpush2.bf16.msra.mxu0 %v20665_v36  ;;  %14137 = vmatprep.subr.bf16.mxu1 %v20670_v41  ;;  %v20722_v36 = vld [vmem:[#allocation14 + $0x828] ss:$16 sps:$4 sm:$0xff]  }
0x163d   :  { %14178 = vmatprep.subr.bf16.mxu0 %v20673_v16  ;;  %v20725_v41 = vld [vmem:[#allocation14 + $0xa28] ss:$16 sps:$4 sm:$0xff]   ;;  %v20730_v16 = vld [vmem:[#allocation14 + $0x80c] ss:$16 sps:$4 sm:$0xff]  }
0x163f   :  { %14138 = vmatpush2.bf16.msra.mxu1 %v20668_v61  ;;  %v20733_v61 = vld [vmem:[#allocation14 + $0xa0c] ss:$16 sps:$4 sm:$0xff]  }
0x1640   :  { %14179 = vmatpush2.bf16.msra.mxu0 %v20671_v43  ;;  %14139 = vmatprep.subr.bf16.mxu1 %v20676_v32  ;;  %v20728_v43 = vld [vmem:[#allocation14 + $0x808] ss:$16 sps:$4 sm:$0xff]  }
0x1641   :  { %14180 = vmatprep.subr.bf16.mxu0 %v20679_v29  ;;  %v20731_v32 = vld [vmem:[#allocation14 + $0xa08] ss:$16 sps:$4 sm:$0xff]   ;;  %v20736_v29 = vld [vmem:[#allocation14 + $0x9ec] ss:$16 sps:$4 sm:$0xff]  }
0x1643   :  { %14140 = vmatpush2.bf16.msra.mxu1 %v20674_v38  ;;  %v20739_v38 = vld [vmem:[#allocation14 + $0xbec] ss:$16 sps:$4 sm:$0xff]  }
0x1644   :  { %14181 = vmatpush2.bf16.msra.mxu0 %v20677_v44  ;;  %14141 = vmatprep.subr.bf16.mxu1 %v20682_v56  ;;  %v20734_v44 = vld [vmem:[#allocation14 + $0x9e8] ss:$16 sps:$4 sm:$0xff]  }
0x1645   :  { %14182 = vmatprep.subr.bf16.mxu0 %v20685_v28  ;;  %v20737_v56 = vld [vmem:[#allocation14 + $0xbe8] ss:$16 sps:$4 sm:$0xff]   ;;  %v20742_v28 = vld [vmem:[#allocation14 + $0x9cc] ss:$16 sps:$4 sm:$0xff]  }
0x1647   :  { %14142 = vmatpush2.bf16.msra.mxu1 %v20680_v22  ;;  %v20745_v22 = vld [vmem:[#allocation14 + $0xbcc] ss:$16 sps:$4 sm:$0xff]  }
0x1648   :  { %14183 = vmatpush2.bf16.msra.mxu0 %v20683_v6  ;;  %14193 = vmatprep.subr.bf16.mxu1 %v20688_v49  ;;  %v20740_v6 = vld [vmem:[#allocation14 + $0x9c8] ss:$16 sps:$4 sm:$0xff]  }
0x1649   :  { %14234 = vmatprep.subr.bf16.mxu0 %v20691_v45  ;;  %v20743_v49 = vld [vmem:[#allocation14 + $0xbc8] ss:$16 sps:$4 sm:$0xff]   ;;  %v20748_v45 = vld [vmem:[#allocation14 + $0x9ac] ss:$16 sps:$4 sm:$0xff]  }
0x164a   :  { %v13899_v14 = vpop.f32.mrf.mxu1  ;;  %14144 = vmatmul.mubr.bf16.vlgmr.msra.gmra.mxu1 %v23198_v10 }
0x164b   :  { %v13940_v23 = vpop.f32.mrf.mxu0  ;;  %14185 = vmatmul.mubr.bf16.vlgmr.msra.gmra.mxu0 %v23200_v63  ;;  %v13900_v48 = vadd.f32 %v13899_v14, %v23257_v8  ;;  %14194 = vmatpush1.bf16.msra.mxu1 %v20686_v51  ;;  %v20751_v51 = vld [vmem:[#allocation14 + $0xbac] ss:$16 sps:$4 sm:$0xff]  }
0x164c   :  { %14235 = vmatpush1.bf16.msra.mxu0 %v20689_v26  ;;  %v13901_v47 = vpop.f32.mrf.mxu1  ;;  %14195 = vmatprep.subr.bf16.mxu1 %v20694_v46  ;;  %v20746_v26 = vld [vmem:[#allocation14 + $0x9a8] ss:$16 sps:$4 sm:$0xff]   ;;  %v20757_v14 = vld [vmem:[#allocation14 + $0xb8c] ss:$16 sps:$4 sm:$0xff]  }
0x164d   :  { %v13942_v5 = vpop.f32.mrf.mxu0  ;;  %14236 = vmatprep.subr.bf16.mxu0 %v20697_v55  ;;  %v23267_v37 = vadd.f32 %v13940_v23, %v13900_v48  ;;  %v13902_v30 = vadd.f32 %v13901_v47, %v23262_v3  ;;  %14225 = vmatprep.mubr.bf16.mxu1 %v23204_v20  ;;  %v20704_v3 = vld [vmem:[#allocation14 + $0x888] ss:$16 sps:$4 sm:$0xff]   ;;  %v20754_v55 = vld [vmem:[#allocation14 + $0x98c] ss:$16 sps:$4 sm:$0xff]  }
0x164e   :  { %14266 = vmatprep.mubr.bf16.mxu0 %v23206_v1  ;;  %v13903_v10 = vpop.f32.mrf.mxu1  ;;  %v20707_v20 = vld [vmem:[#allocation14 + $0xa88] ss:$16 sps:$4 sm:$0xff]   ;;  %v20712_v1 = vld [vmem:[#allocation14 + $0x86c] ss:$16 sps:$4 sm:$0xff]  }
0x164f   :  { %v13944_v63 = vpop.f32.mrf.mxu0  ;;  %v23272_v8 = vadd.f32 %v13942_v5, %v13902_v30  ;;  %14196 = vmatpush1.bf16.msra.mxu1 %v20692_v57  ;;  %v20749_v46 = vld [vmem:[#allocation14 + $0xba8] ss:$16 sps:$4 sm:$0xff]   ;;  %v20760_v57 = vld [vmem:[#allocation14 + $0x96c] ss:$16 sps:$4 sm:$0xff]  }
0x1650   :  { %14237 = vmatpush1.bf16.msra.mxu0 %v20695_v21  ;;  %v13904_v33 = vpop.f32.mrf.mxu1  ;;  %14197 = vmatprep.subr.bf16.mxu1 %v20700_v27  ;;  %v20752_v23 = vld [vmem:[#allocation14 + $0x988] ss:$16 sps:$4 sm:$0xff]   ;;  %v20763_v21 = vld [vmem:[#allocation14 + $0xb6c] ss:$16 sps:$4 sm:$0xff]  }
0x1651   :  { %v13945_v53 = vpop.f32.mrf.mxu0  ;;  %14238 = vmatprep.subr.bf16.mxu0 %v20703_v9  ;;  %v20755_v48 = vld [vmem:[#allocation14 + $0xb88] ss:$16 sps:$4 sm:$0xff]   ;;  %v20766_v27 = vld [vmem:[#allocation14 + $0x94c] ss:$16 sps:$4 sm:$0xff]  }
0x1652   :  { %v20758_v47 = vld [vmem:[#allocation14 + $0x968] ss:$16 sps:$4 sm:$0xff]   ;;  %v20769_v9 = vld [vmem:[#allocation14 + $0xb4c] ss:$16 sps:$4 sm:$0xff]  }
0x1653   :  { %14198 = vmatpush1.bf16.msra.mxu1 %v20698_v18  ;;  %v20761_v5 = vld [vmem:[#allocation14 + $0xb68] ss:$16 sps:$4 sm:$0xff]   ;;  %v20772_v63 = vld [vmem:[#allocation14 + $0x92c] ss:$16 sps:$4 sm:$0xff]  }
0x1654   :  { %14239 = vmatpush1.bf16.msra.mxu0 %v20701_v50  ;;  %14199 = vmatprep.subr.bf16.mxu1 %v20706_v24  ;;  %v20764_v30 = vld [vmem:[#allocation14 + $0x948] ss:$16 sps:$4 sm:$0xff]   ;;  %v20775_v18 = vld [vmem:[#allocation14 + $0xb2c] ss:$16 sps:$4 sm:$0xff]  }
0x1655   :  { %14240 = vmatprep.subr.bf16.mxu0 %v20709_v17  ;;  %v20767_v10 = vld [vmem:[#allocation14 + $0xb48] ss:$16 sps:$4 sm:$0xff]   ;;  %v20778_v53 = vld [vmem:[#allocation14 + $0x90c] ss:$16 sps:$4 sm:$0xff]  }
0x1656   :  { %v20770_v50 = vld [vmem:[#allocation14 + $0x928] ss:$16 sps:$4 sm:$0xff]   ;;  %v20781_v24 = vld [vmem:[#allocation14 + $0xb0c] ss:$16 sps:$4 sm:$0xff]  }
0x1657   :  { %14200 = vmatpush1.bf16.msra.mxu1 %v20704_v3  ;;  %v20773_v33 = vld [vmem:[#allocation14 + $0xb28] ss:$16 sps:$4 sm:$0xff]  }
0x1658   :  { %14241 = vmatpush1.bf16.msra.mxu0 %v20707_v20  ;;  %14201 = vmatprep.subr.bf16.mxu1 %v20712_v1  ;;  %v20776_v17 = vld [vmem:[#allocation14 + $0x908] ss:$16 sps:$4 sm:$0xff]   ;;  %v20784_v20 = vld [vmem:[#allocation14 + $0xcec] ss:$16 sps:$4 sm:$0xff]  }
0x1659   :  { %14242 = vmatprep.subr.bf16.mxu0 %v20715_v0  ;;  %v20779_v3 = vld [vmem:[#allocation14 + $0xb08] ss:$16 sps:$4 sm:$0xff]   ;;  %v20787_v1 = vld [vmem:[#allocation14 + $0xeec] ss:$16 sps:$4 sm:$0xff]  }
0x165a   :  { %v20782_v0 = vld [vmem:[#allocation14 + $0xce8] ss:$16 sps:$4 sm:$0xff]  }
0x165b   :  { %14202 = vmatpush1.bf16.msra.mxu1 %v20710_v7  ;;  %v20785_v7 = vld [vmem:[#allocation14 + $0xee8] ss:$16 sps:$4 sm:$0xff]  }
0x165c   :  { %14243 = vmatpush1.bf16.msra.mxu0 %v20713_v25  ;;  %14203 = vmatprep.subr.bf16.mxu1 %v20718_v62  ;;  %v20790_v25 = vld [vmem:[#allocation14 + $0xccc] ss:$16 sps:$4 sm:$0xff]  }
0x165d   :  { %14244 = vmatprep.subr.bf16.mxu0 %v20721_v4  ;;  %v20793_v62 = vld [vmem:[#allocation14 + $0xecc] ss:$16 sps:$4 sm:$0xff]  }
0x165f   :  { %14204 = vmatpush1.bf16.msra.mxu1 %v20716_v58 }
0x1660   :  { %14245 = vmatpush1.bf16.msra.mxu0 %v20719_v59  ;;  %14205 = vmatprep.subr.bf16.mxu1 %v20724_v11  ;;  %v20788_v11 = vld [vmem:[#allocation14 + $0xcc8] ss:$16 sps:$4 sm:$0xff]  }
0x1661   :  { %14246 = vmatprep.subr.bf16.mxu0 %v20727_v42  ;;  %v20791_v42 = vld [vmem:[#allocation14 + $0xec8] ss:$16 sps:$4 sm:$0xff]  }
0x1663   :  { %14206 = vmatpush1.bf16.msra.mxu1 %v20722_v36 }
0x1664   :  { %14247 = vmatpush1.bf16.msra.mxu0 %v20725_v41  ;;  %14207 = vmatprep.subr.bf16.mxu1 %v20730_v16  ;;  %v20796_v16 = vld [vmem:[#allocation14 + $0xcac] ss:$16 sps:$4 sm:$0xff]  }
0x1665   :  { %14248 = vmatprep.subr.bf16.mxu0 %v20733_v61  ;;  %v20799_v61 = vld [vmem:[#allocation14 + $0xeac] ss:$16 sps:$4 sm:$0xff]  }
0x1667   :  { %14208 = vmatpush1.bf16.msra.mxu1 %v20728_v43 }
0x1668   :  { %14249 = vmatpush1.bf16.msra.mxu0 %v20731_v32  ;;  %14209 = vmatprep.subr.bf16.mxu1 %v20736_v29 }
0x1669   :  { %14250 = vmatprep.subr.bf16.mxu0 %v20739_v38  ;;  %v20794_v38 = vld [vmem:[#allocation14 + $0xca8] ss:$16 sps:$4 sm:$0xff]  }
0x166b   :  { %14210 = vmatpush2.bf16.msra.mxu1 %v20734_v44  ;;  %v20797_v44 = vld [vmem:[#allocation14 + $0xea8] ss:$16 sps:$4 sm:$0xff]  }
0x166c   :  { %14251 = vmatpush2.bf16.msra.mxu0 %v20737_v56  ;;  %14211 = vmatprep.subr.bf16.mxu1 %v20742_v28 }
0x166d   :  { %14252 = vmatprep.subr.bf16.mxu0 %v20745_v22  ;;  %v20802_v22 = vld [vmem:[#allocation14 + $0xc8c] ss:$16 sps:$4 sm:$0xff]  }
0x166f   :  { %14212 = vmatpush2.bf16.msra.mxu1 %v20740_v6  ;;  %v20805_v6 = vld [vmem:[#allocation14 + $0xe8c] ss:$16 sps:$4 sm:$0xff]  }
0x1670   :  { %14253 = vmatpush2.bf16.msra.mxu0 %v20743_v49  ;;  %14213 = vmatprep.subr.bf16.mxu1 %v20748_v45 }
0x1671   :  { %14254 = vmatprep.subr.bf16.mxu0 %v20751_v51 }
0x1673   :  { %14214 = vmatpush2.bf16.msra.mxu1 %v20746_v26 }
0x1674   :  { %14255 = vmatpush2.bf16.msra.mxu0 %v20749_v46  ;;  %14215 = vmatprep.subr.bf16.mxu1 %v20754_v55  ;;  %v20800_v55 = vld [vmem:[#allocation14 + $0xc88] ss:$16 sps:$4 sm:$0xff]  }
0x1675   :  { %14256 = vmatprep.subr.bf16.mxu0 %v20757_v14  ;;  %v20803_v14 = vld [vmem:[#allocation14 + $0xe88] ss:$16 sps:$4 sm:$0xff]  }
0x1677   :  { %14216 = vmatpush2.bf16.msra.mxu1 %v20752_v23  ;;  %v20808_v23 = vld [vmem:[#allocation14 + $0xc6c] ss:$16 sps:$4 sm:$0xff]  }
0x1678   :  { %14257 = vmatpush2.bf16.msra.mxu0 %v20755_v48  ;;  %14217 = vmatprep.subr.bf16.mxu1 %v20760_v57 }
0x1679   :  { %14258 = vmatprep.subr.bf16.mxu0 %v20763_v21 }
0x167b   :  { %14218 = vmatpush2.bf16.msra.mxu1 %v20758_v47 }
0x167c   :  { %14259 = vmatpush2.bf16.msra.mxu0 %v20761_v5  ;;  %14219 = vmatprep.subr.bf16.mxu1 %v20766_v27  ;;  %v20811_v5 = vld [vmem:[#allocation14 + $0xe6c] ss:$16 sps:$4 sm:$0xff]  }
0x167d   :  { %14260 = vmatprep.subr.bf16.mxu0 %v20769_v9 }
0x167f   :  { %14220 = vmatpush2.bf16.msra.mxu1 %v20764_v30 }
0x1680   :  { %14261 = vmatpush2.bf16.msra.mxu0 %v20767_v10  ;;  %14221 = vmatprep.subr.bf16.mxu1 %v20772_v63  ;;  %v20806_v10 = vld [vmem:[#allocation14 + $0xc68] ss:$16 sps:$4 sm:$0xff]  }
0x1681   :  { %14262 = vmatprep.subr.bf16.mxu0 %v20775_v18  ;;  %v20809_v63 = vld [vmem:[#allocation14 + $0xe68] ss:$16 sps:$4 sm:$0xff]   ;;  %v20814_v18 = vld [vmem:[#allocation14 + $0xc4c] ss:$16 sps:$4 sm:$0xff]  }
0x1683   :  { %14222 = vmatpush2.bf16.msra.mxu1 %v20770_v50  ;;  %v20817_v50 = vld [vmem:[#allocation14 + $0xe4c] ss:$16 sps:$4 sm:$0xff]  }
0x1684   :  { %14263 = vmatpush2.bf16.msra.mxu0 %v20773_v33  ;;  %14223 = vmatprep.subr.bf16.mxu1 %v20778_v53  ;;  %v20812_v33 = vld [vmem:[#allocation14 + $0xc48] ss:$16 sps:$4 sm:$0xff]  }
0x1685   :  { %14264 = vmatprep.subr.bf16.mxu0 %v20781_v24  ;;  %v20815_v53 = vld [vmem:[#allocation14 + $0xe48] ss:$16 sps:$4 sm:$0xff]   ;;  %v20820_v24 = vld [vmem:[#allocation14 + $0xc2c] ss:$16 sps:$4 sm:$0xff]  }
0x1687   :  { %14224 = vmatpush2.bf16.msra.mxu1 %v20776_v17  ;;  %v20823_v17 = vld [vmem:[#allocation14 + $0xe2c] ss:$16 sps:$4 sm:$0xff]  }
0x1688   :  { %14265 = vmatpush2.bf16.msra.mxu0 %v20779_v3  ;;  %14275 = vmatprep.subr.bf16.mxu1 %v20784_v20  ;;  %v20818_v3 = vld [vmem:[#allocation14 + $0xc28] ss:$16 sps:$4 sm:$0xff]  }
0x1689   :  { %14316 = vmatprep.subr.bf16.mxu0 %v20787_v1  ;;  %v20821_v20 = vld [vmem:[#allocation14 + $0xe28] ss:$16 sps:$4 sm:$0xff]   ;;  %v20826_v1 = vld [vmem:[#allocation14 + $0xc0c] ss:$16 sps:$4 sm:$0xff]  }
0x168a   :  { %v13981_v4 = vpop.f32.mrf.mxu1  ;;  %14226 = vmatmul.mubr.bf16.vlgmr.msra.gmra.mxu1 %v23210_v19 }
0x168b   :  { %v14022_v58 = vpop.f32.mrf.mxu0  ;;  %14267 = vmatmul.mubr.bf16.vlgmr.msra.gmra.mxu0 %v23212_v40  ;;  %v13982_v59 = vadd.f32 %v13981_v4, %v23267_v37  ;;  %14276 = vmatpush1.bf16.msra.mxu1 %v20782_v0  ;;  %v20829_v0 = vld [vmem:[#allocation14 + $0xe0c] ss:$16 sps:$4 sm:$0xff]  }
0x168c   :  { %14317 = vmatpush1.bf16.msra.mxu0 %v20785_v7  ;;  %v13983_v36 = vpop.f32.mrf.mxu1  ;;  %14277 = vmatprep.subr.bf16.mxu1 %v20790_v25  ;;  %v20824_v7 = vld [vmem:[#allocation14 + $0xc08] ss:$16 sps:$4 sm:$0xff]   ;;  %v20835_v4 = vld [vmem:[#allocation14 + $0xfec] ss:$16 sps:$4 sm:$0xff]  }
0x168d   :  { %v14024_v41 = vpop.f32.mrf.mxu0  ;;  %14318 = vmatprep.subr.bf16.mxu0 %v20793_v62  ;;  %v14023_v43 = vadd.f32 %v14022_v58, %v13982_v59  ;;  %v13984_v32 = vadd.f32 %v13983_v36, %v23272_v8  ;;  %14307 = vmatprep.mubr.bf16.mxu1 %v23214_v60  ;;  %v20827_v25 = vld [vmem:[#allocation14 + $0xe08] ss:$16 sps:$4 sm:$0xff]   ;;  %v20832_v62 = vld [vmem:[#allocation14 + $0xdec] ss:$16 sps:$4 sm:$0xff]  }
0x168e   :  { %14348 = vmatprep.mubr.bf16.mxu0 %v23216_v35  ;;  %v13985_v19 = vpop.f32.mrf.mxu1  ;;  %v20830_v58 = vld [vmem:[#allocation14 + $0xde8] ss:$16 sps:$4 sm:$0xff]  }
0x168f   :  { %v14026_v40 = vpop.f32.mrf.mxu0  ;;  %v23280_v37 = vmax.f32 %v14023_v43, 0.0  ;;  %v14025_v29 = vadd.f32 %v14024_v41, %v13984_v32  ;;  %14278 = vmatpush1.bf16.msra.mxu1 %v20788_v11  ;;  %v20833_v59 = vld [vmem:[#allocation14 + $0xfe8] ss:$16 sps:$4 sm:$0xff]   ;;  %v20838_v11 = vld [vmem:[#allocation14 + $0xdcc] ss:$16 sps:$4 sm:$0xff]  }
0x1690   :  { %14319 = vmatpush1.bf16.msra.mxu0 %v20791_v42  ;;  %v13986_v56 = vpop.f32.mrf.mxu1  ;;  %14279 = vmatprep.subr.bf16.mxu1 %v20796_v16  ;;  %v20841_v42 = vld [vmem:[#allocation14 + $0xfcc] ss:$16 sps:$4 sm:$0xff]   ;;  %v20836_v36 = vld [vmem:[#allocation14 + $0xdc8] ss:$16 sps:$4 sm:$0xff]  }
0x1691   :  { %v14027_v28 = vpop.f32.mrf.mxu0  ;;  %14320 = vmatprep.subr.bf16.mxu0 %v20799_v61  ;;  %v14447_v8 = vrot.slane %v23280_v37, 1  ;;  %v14455_v60 = vrot.slane %v23280_v37, 2  ;;  %v14463_v35 = vrot.slane %v23280_v37, 3  ;;  %v14471_v49 = vpack.c.bf16 %v23280_v37, %v23280_v37  ;;  %v20839_v41 = vld [vmem:[#allocation14 + $0xfc8] ss:$16 sps:$4 sm:$0xff]  }
0x1692   :  { %v23287_v45 = vmax.f32 %v14025_v29, 0.0  ;;  %v20844_v16 = vld [vmem:[#allocation14 + $0xdac] ss:$16 sps:$4 sm:$0xff]   ;;  %v20842_v43 = vld [vmem:[#allocation14 + $0xda8] ss:$16 sps:$4 sm:$0xff]  }
0x1693   :  { %v23289_v51 = vpack.c.bf16 %v14447_v8, %v14447_v8  ;;  %v23291_v26 = vpack.c.bf16 %v14455_v60, %v14455_v60  ;;  %v23293_v46 = vpack.c.bf16 %v14463_v35, %v14463_v35  ;;  %14280 = vmatpush1.bf16.msra.mxu1 %v20794_v38  ;;  %v20847_v61 = vld [vmem:[#allocation14 + $0xfac] ss:$16 sps:$4 sm:$0xff]   ;;  %v20845_v32 = vld [vmem:[#allocation14 + $0xfa8] ss:$16 sps:$4 sm:$0xff]  }
0x1694   :  { %14321 = vmatpush1.bf16.msra.mxu0 %v20797_v44  ;;  %v14448_v48 = vrot.slane %v23287_v45, 1  ;;  %v14456_v57 = vrot.slane %v23287_v45, 2  ;;  %v14464_v21 = vrot.slane %v23287_v45, 3  ;;  %v14472_v47 = vpack.c.bf16 %v23287_v45, %v23287_v45  ;;  %14281 = vmatprep.subr.bf16.mxu1 %v20802_v22  ;;  %v20850_v19 = vld [vmem:[#allocation14 + $0xd8c] ss:$16 sps:$4 sm:$0xff]  }
0x1695   :  { %14322 = vmatprep.subr.bf16.mxu0 %v20805_v6  ;;  %v20853_v40 = vld [vmem:[#allocation14 + $0xf8c] ss:$16 sps:$4 sm:$0xff]   ;;  %v20848_v29 = vld [vmem:[#allocation14 + $0xd88] ss:$16 sps:$4 sm:$0xff]  }
0x1696   :  { %v23300_v27 = vpack.c.bf16 %v14448_v48, %v14448_v48  ;;  %v23302_v9 = vpack.c.bf16 %v14456_v57, %v14456_v57  ;;  %v23304_v30 = vpack.c.bf16 %v14464_v21, %v14464_v21  ;;  %v20851_v38 = vld [vmem:[#allocation14 + $0xf88] ss:$16 sps:$4 sm:$0xff]   ;;  %v20856_v44 = vld [vmem:[#allocation14 + $0xd6c] ss:$16 sps:$4 sm:$0xff]  }
0x1697   :  { %14282 = vmatpush1.bf16.msra.mxu1 %v20800_v55  ;;  %v20859_v56 = vld [vmem:[#allocation14 + $0xf6c] ss:$16 sps:$4 sm:$0xff]   ;;  %v20854_v28 = vld [vmem:[#allocation14 + $0xd68] ss:$16 sps:$4 sm:$0xff]  }
0x1698   :  { %14323 = vmatpush1.bf16.msra.mxu0 %v20803_v14  ;;  %14283 = vmatprep.subr.bf16.mxu1 %v20808_v23  ;;  %v20857_v22 = vld [vmem:[#allocation14 + $0xf68] ss:$16 sps:$4 sm:$0xff]   ;;  %v20862_v6 = vld [vmem:[#allocation14 + $0xd4c] ss:$16 sps:$4 sm:$0xff]  }
0x1699   :  { %14324 = vmatprep.subr.bf16.mxu0 %v20811_v5  ;;  %v20865_v8 = vld [vmem:[#allocation14 + $0xf4c] ss:$16 sps:$4 sm:$0xff]   ;;  %v20860_v60 = vld [vmem:[#allocation14 + $0xd48] ss:$16 sps:$4 sm:$0xff]  }
0x169a   :  { %v20863_v35 = vld [vmem:[#allocation14 + $0xf48] ss:$16 sps:$4 sm:$0xff]   ;;  %v20868_v55 = vld [vmem:[#allocation14 + $0xd2c] ss:$16 sps:$4 sm:$0xff]  }
0x169b   :  { %14284 = vmatpush1.bf16.msra.mxu1 %v20806_v10  ;;  %v20871_v14 = vld [vmem:[#allocation14 + $0xf2c] ss:$16 sps:$4 sm:$0xff]   ;;  %v20866_v23 = vld [vmem:[#allocation14 + $0xd28] ss:$16 sps:$4 sm:$0xff]  }
0x169c   :  { %14325 = vmatpush1.bf16.msra.mxu0 %v20809_v63  ;;  %14285 = vmatprep.subr.bf16.mxu1 %v20814_v18  ;;  %v20869_v48 = vld [vmem:[#allocation14 + $0xf28] ss:$16 sps:$4 sm:$0xff]   ;;  %v20874_v57 = vld [vmem:[#allocation14 + $0xd0c] ss:$16 sps:$4 sm:$0xff]  }
0x169d   :  { %14326 = vmatprep.subr.bf16.mxu0 %v20817_v50  ;;  %v20877_v21 = vld [vmem:[#allocation14 + $0xf0c] ss:$16 sps:$4 sm:$0xff]   ;;  %v20872_v5 = vld [vmem:[#allocation14 + $0xd08] ss:$16 sps:$4 sm:$0xff]  }
0x169e   :  { %v20875_v10 = vld [vmem:[#allocation14 + $0xf08] ss:$16 sps:$4 sm:$0xff]   ;;  %v20880_v63 = vld [vmem:[#allocation14 + $0x10ec] ss:$16 sps:$4 sm:$0xff]  }
0x169f   :  { %14286 = vmatpush1.bf16.msra.mxu1 %v20812_v33  ;;  %v20883_v18 = vld [vmem:[#allocation14 + $0x12ec] ss:$16 sps:$4 sm:$0xff]   ;;  %v20974_v50 = vld [vmem:[#allocation34] sm:$0xf] }
0x16a0   :  { %14327 = vmatpush1.bf16.msra.mxu0 %v20815_v53  ;;  %14287 = vmatprep.subr.bf16.mxu1 %v20820_v24  ;;  %v10410_v33 = vrot.slane %v20974_v50, %v7433_v2  ;;  %v20878_v53 = vld [vmem:[#allocation14 + $0x10e8] ss:$16 sps:$4 sm:$0xff]  }
0x16a1   :  { %14328 = vmatprep.subr.bf16.mxu0 %v20823_v17  ;;  %v20881_v24 = vld [vmem:[#allocation14 + $0x12e8] ss:$16 sps:$4 sm:$0xff]   ;;  %v20886_v17 = vld [vmem:[#allocation14 + $0x10cc] ss:$16 sps:$4 sm:$0xff]  }
0x16a2   :  { %v20887_v2 = vld [vmem:[#allocation14 + $0x12c8] ss:$16 sps:$4 sm:$0xff]  }
0x16a3   :  { %14288 = vmatpush1.bf16.msra.mxu1 %v20818_v3  ;;  %v20889_v3 = vld [vmem:[#allocation14 + $0x12cc] ss:$16 sps:$4 sm:$0xff]  }
0x16a4   :  { %14329 = vmatpush1.bf16.msra.mxu0 %v20821_v20  ;;  %14289 = vmatprep.subr.bf16.mxu1 %v20826_v1  ;;  %v10414_v20 = vrot.slane %v20974_v50, %v7437_v15  ;;  %v20935_v50 = vld [vmem:[#allocation14 + $0x13c8] ss:$16 sps:$4 sm:$0xff]  }
0x16a5   :  { %14330 = vmatprep.subr.bf16.mxu0 %v20829_v0 }
0x16a7   :  { %14290 = vmatpush1.bf16.msra.mxu1 %v20824_v7 }
0x16a8   :  { %14331 = vmatpush1.bf16.msra.mxu0 %v20827_v25  ;;  %14291 = vmatprep.subr.bf16.mxu1 %v20832_v62  ;;  %v20884_v25 = vld [vmem:[#allocation14 + $0x10c8] ss:$16 sps:$4 sm:$0xff]  }
0x16a9   :  { %14332 = vmatprep.subr.bf16.mxu0 %v20835_v4 }
0x16ab   :  { %14292 = vmatpush2.bf16.msra.mxu1 %v20830_v58  ;;  %v20892_v58 = vld [vmem:[#allocation14 + $0x10ac] ss:$16 sps:$4 sm:$0xff]  }
0x16ac   :  { %14333 = vmatpush2.bf16.msra.mxu0 %v20833_v59  ;;  %14293 = vmatprep.subr.bf16.mxu1 %v20838_v11  ;;  %v20895_v59 = vld [vmem:[#allocation14 + $0x12ac] ss:$16 sps:$4 sm:$0xff]  }
0x16ad   :  { %14334 = vmatprep.subr.bf16.mxu0 %v20841_v42  ;;  %v20890_v42 = vld [vmem:[#allocation14 + $0x10a8] ss:$16 sps:$4 sm:$0xff]  }
0x16af   :  { %14294 = vmatpush2.bf16.msra.mxu1 %v20836_v36  ;;  %v20893_v36 = vld [vmem:[#allocation14 + $0x12a8] ss:$16 sps:$4 sm:$0xff]  }
0x16b0   :  { %14335 = vmatpush2.bf16.msra.mxu0 %v20839_v41  ;;  %14295 = vmatprep.subr.bf16.mxu1 %v20844_v16 }
0x16b1   :  { %14336 = vmatprep.subr.bf16.mxu0 %v20847_v61  ;;  %v20898_v61 = vld [vmem:[#allocation14 + $0x108c] ss:$16 sps:$4 sm:$0xff]  }
0x16b3   :  { %14296 = vmatpush2.bf16.msra.mxu1 %v20842_v43  ;;  %v20901_v43 = vld [vmem:[#allocation14 + $0x128c] ss:$16 sps:$4 sm:$0xff]  }
0x16b4   :  { %14337 = vmatpush2.bf16.msra.mxu0 %v20845_v32  ;;  %14297 = vmatprep.subr.bf16.mxu1 %v20850_v19  ;;  %v20896_v32 = vld [vmem:[#allocation14 + $0x1088] ss:$16 sps:$4 sm:$0xff]   ;;  %v20907_v19 = vld [vmem:[#allocation14 + $0x126c] ss:$16 sps:$4 sm:$0xff]  }
0x16b5   :  { %14338 = vmatprep.subr.bf16.mxu0 %v20853_v40  ;;  %v20902_v40 = vld [vmem:[#allocation14 + $0x1068] ss:$16 sps:$4 sm:$0xff]  }
0x16b7   :  { %14298 = vmatpush2.bf16.msra.mxu1 %v20848_v29  ;;  %v20905_v29 = vld [vmem:[#allocation14 + $0x1268] ss:$16 sps:$4 sm:$0xff]  }
0x16b8   :  { %14339 = vmatpush2.bf16.msra.mxu0 %v20851_v38  ;;  %14299 = vmatprep.subr.bf16.mxu1 %v20856_v44  ;;  %v20910_v38 = vld [vmem:[#allocation14 + $0x104c] ss:$16 sps:$4 sm:$0xff]  }
0x16b9   :  { %14340 = vmatprep.subr.bf16.mxu0 %v20859_v56  ;;  %v20913_v44 = vld [vmem:[#allocation14 + $0x124c] ss:$16 sps:$4 sm:$0xff]   ;;  %v20908_v56 = vld [vmem:[#allocation14 + $0x1048] ss:$16 sps:$4 sm:$0xff]  }
0x16bb   :  { %14300 = vmatpush2.bf16.msra.mxu1 %v20854_v28  ;;  %v20911_v28 = vld [vmem:[#allocation14 + $0x1248] ss:$16 sps:$4 sm:$0xff]  }
0x16bc   :  { %14341 = vmatpush2.bf16.msra.mxu0 %v20857_v22  ;;  %14301 = vmatprep.subr.bf16.mxu1 %v20862_v6  ;;  %v20916_v22 = vld [vmem:[#allocation14 + $0x102c] ss:$16 sps:$4 sm:$0xff]  }
0x16bd   :  { %14342 = vmatprep.subr.bf16.mxu0 %v20865_v8  ;;  %v20919_v6 = vld [vmem:[#allocation14 + $0x122c] ss:$16 sps:$4 sm:$0xff]   ;;  %v20914_v8 = vld [vmem:[#allocation14 + $0x1028] ss:$16 sps:$4 sm:$0xff]  }
0x16bf   :  { %14302 = vmatpush2.bf16.msra.mxu1 %v20860_v60  ;;  %v20917_v60 = vld [vmem:[#allocation14 + $0x1228] ss:$16 sps:$4 sm:$0xff]  }
0x16c0   :  { %14343 = vmatpush2.bf16.msra.mxu0 %v20863_v35  ;;  %14303 = vmatprep.subr.bf16.mxu1 %v20868_v55  ;;  %v20922_v35 = vld [vmem:[#allocation14 + $0x100c] ss:$16 sps:$4 sm:$0xff]  }
0x16c1   :  { %14344 = vmatprep.subr.bf16.mxu0 %v20871_v14  ;;  %v20925_v55 = vld [vmem:[#allocation14 + $0x120c] ss:$16 sps:$4 sm:$0xff]   ;;  %v20920_v14 = vld [vmem:[#allocation14 + $0x1008] ss:$16 sps:$4 sm:$0xff]  }
0x16c3   :  { %14304 = vmatpush2.bf16.msra.mxu1 %v20866_v23  ;;  %v20923_v23 = vld [vmem:[#allocation14 + $0x1208] ss:$16 sps:$4 sm:$0xff]  }
0x16c4   :  { %14345 = vmatpush2.bf16.msra.mxu0 %v20869_v48  ;;  %14305 = vmatprep.subr.bf16.mxu1 %v20874_v57  ;;  %v20928_v48 = vld [vmem:[#allocation14 + $0x11ec] ss:$16 sps:$4 sm:$0xff]  }
0x16c5   :  { %14346 = vmatprep.subr.bf16.mxu0 %v20877_v21  ;;  %v20931_v57 = vld [vmem:[#allocation14 + $0x13ec] ss:$16 sps:$4 sm:$0xff]   ;;  %v20926_v21 = vld [vmem:[#allocation14 + $0x11e8] ss:$16 sps:$4 sm:$0xff]  }
0x16c7   :  { %14306 = vmatpush2.bf16.msra.mxu1 %v20872_v5  ;;  %v20929_v5 = vld [vmem:[#allocation14 + $0x13e8] ss:$16 sps:$4 sm:$0xff]  }
0x16c8   :  { %14347 = vmatpush2.bf16.msra.mxu0 %v20875_v10  ;;  %14357 = vmatprep.subr.bf16.mxu1 %v20880_v63  ;;  %v20934_v10 = vld [vmem:[#allocation14 + $0x11cc] ss:$16 sps:$4 sm:$0xff]  }
0x16c9   :  { %14398 = vmatprep.subr.bf16.mxu0 %v20883_v18  ;;  %v20937_v63 = vld [vmem:[#allocation14 + $0x13cc] ss:$16 sps:$4 sm:$0xff]   ;;  %v20932_v18 = vld [vmem:[#allocation14 + $0x11c8] ss:$16 sps:$4 sm:$0xff]  }
0x16ca   :  { %v14063_v1 = vpop.f32.mrf.mxu1  ;;  %14308 = vmatmul.mubr.bf16.vlgmr.msra.gmra.mxu1 %v23222_v54 }
0x16cb   :  { %v14104_v0 = vpop.f32.mrf.mxu0  ;;  %14349 = vmatmul.mubr.bf16.vlgmr.msra.gmra.mxu0 %v23224_v34  ;;  %v14064_v7 = vadd.f32 %v14063_v1, %v10410_v33  ;;  %14358 = vmatpush1.bf16.msra.mxu1 %v20878_v53  ;;  %v20940_v33 = vld [vmem:[#allocation14 + $0x11ac] ss:$16 sps:$4 sm:$0xff]   ;;  %v20944_v1 = vld [vmem:[#allocation14 + $0x1188] ss:$16 sps:$4 sm:$0xff]  }
0x16cc   :  { %14399 = vmatpush1.bf16.msra.mxu0 %v20881_v24  ;;  %v14065_v62 = vpop.f32.mrf.mxu1  ;;  %14359 = vmatprep.subr.bf16.mxu1 %v20886_v17  ;;  %v20943_v53 = vld [vmem:[#allocation14 + $0x13ac] ss:$16 sps:$4 sm:$0xff]   ;;  %v20938_v24 = vld [vmem:[#allocation14 + $0x11a8] ss:$16 sps:$4 sm:$0xff]  }
0x16cd   :  { %v14106_v4 = vpop.f32.mrf.mxu0  ;;  %14400 = vmatprep.subr.bf16.mxu0 %v20889_v3  ;;  %v23312_v11 = vadd.f32 %v14104_v0, %v14064_v7  ;;  %v14066_v31 = vadd.f32 %v14065_v62, %v10414_v20  ;;  %14389 = vmatprep.mubr.bf16.mxu1 %v23228_v39  ;;  %v20899_v39 = vld [vmem:[#allocation14 + $0x1288] ss:$16 sps:$4 sm:$0xff]   ;;  %v20946_v3 = vld [vmem:[#allocation14 + $0x118c] ss:$16 sps:$4 sm:$0xff]  }
0x16ce   :  { %14430 = vmatprep.mubr.bf16.mxu0 %v23230_v13  ;;  %v14067_v15 = vpop.f32.mrf.mxu1  ;;  %v20904_v13 = vld [vmem:[#allocation14 + $0x106c] ss:$16 sps:$4 sm:$0xff]   ;;  %v20941_v17 = vld [vmem:[#allocation14 + $0x13a8] ss:$16 sps:$4 sm:$0xff]  }
0x16cf   :  { %v14108_v54 = vpop.f32.mrf.mxu0  ;;  %v23316_v34 = vadd.f32 %v14106_v4, %v14066_v31  ;;  %14360 = vmatpush1.bf16.msra.mxu1 %v20884_v25  ;;  %v20949_v20 = vld [vmem:[#allocation14 + $0x138c] ss:$16 sps:$4 sm:$0xff]   ;;  %v20947_v0 = vld [vmem:[#allocation14 + $0x1388] ss:$16 sps:$4 sm:$0xff]  }
0x16d0   :  { %14401 = vmatpush1.bf16.msra.mxu0 %v20887_v2  ;;  %v14068_v41 = vpop.f32.mrf.mxu1  ;;  %14361 = vmatprep.subr.bf16.mxu1 %v20892_v58  ;;  %v20952_v7 = vld [vmem:[#allocation14 + $0x116c] ss:$16 sps:$4 sm:$0xff]   ;;  %v20950_v2 = vld [vmem:[#allocation14 + $0x1168] ss:$16 sps:$4 sm:$0xff]  }
0x16d1   :  { %v14109_v16 = vpop.f32.mrf.mxu0  ;;  %14402 = vmatprep.subr.bf16.mxu0 %v20895_v59  ;;  %v20955_v25 = vld [vmem:[#allocation14 + $0x136c] ss:$16 sps:$4 sm:$0xff]   ;;  %v20953_v62 = vld [vmem:[#allocation14 + $0x1368] ss:$16 sps:$4 sm:$0xff]  }
0x16d2   :  { %v20958_v4 = vld [vmem:[#allocation14 + $0x114c] ss:$16 sps:$4 sm:$0xff]   ;;  %v20956_v59 = vld [vmem:[#allocation14 + $0x1148] ss:$16 sps:$4 sm:$0xff]  }
0x16d3   :  { %14362 = vmatpush1.bf16.msra.mxu1 %v20890_v42  ;;  %v20961_v58 = vld [vmem:[#allocation14 + $0x134c] ss:$16 sps:$4 sm:$0xff]   ;;  %v20959_v31 = vld [vmem:[#allocation14 + $0x1348] ss:$16 sps:$4 sm:$0xff]  }
0x16d4   :  { %14403 = vmatpush1.bf16.msra.mxu0 %v20893_v36  ;;  %14363 = vmatprep.subr.bf16.mxu1 %v20898_v61  ;;  %v20964_v15 = vld [vmem:[#allocation14 + $0x112c] ss:$16 sps:$4 sm:$0xff]   ;;  %v20962_v42 = vld [vmem:[#allocation14 + $0x1128] ss:$16 sps:$4 sm:$0xff]  }
0x16d5   :  { %14404 = vmatprep.subr.bf16.mxu0 %v20901_v43  ;;  %v20967_v54 = vld [vmem:[#allocation14 + $0x132c] ss:$16 sps:$4 sm:$0xff]   ;;  %v20965_v36 = vld [vmem:[#allocation14 + $0x1328] ss:$16 sps:$4 sm:$0xff]  }
0x16d6   :  { %v20970_v41 = vld [vmem:[#allocation14 + $0x110c] ss:$16 sps:$4 sm:$0xff]   ;;  %v20968_v61 = vld [vmem:[#allocation14 + $0x1108] ss:$16 sps:$4 sm:$0xff]  }
0x16d7   :  { %14364 = vmatpush1.bf16.msra.mxu1 %v20896_v32  ;;  %v20973_v16 = vld [vmem:[#allocation14 + $0x130c] ss:$16 sps:$4 sm:$0xff]   ;;  %v20971_v43 = vld [vmem:[#allocation14 + $0x1308] ss:$16 sps:$4 sm:$0xff]  }
0x16d8   :  { %14405 = vmatpush1.bf16.msra.mxu0 %v20899_v39  ;;  %14365 = vmatprep.subr.bf16.mxu1 %v20904_v13 }
0x16d9   :  { %14406 = vmatprep.subr.bf16.mxu0 %v20907_v19 }
0x16db   :  { %14366 = vmatpush1.bf16.msra.mxu1 %v20902_v40 }
0x16dc   :  { %14407 = vmatpush1.bf16.msra.mxu0 %v20905_v29  ;;  %14367 = vmatprep.subr.bf16.mxu1 %v20910_v38 }
0x16dd   :  { %14408 = vmatprep.subr.bf16.mxu0 %v20913_v44 }
0x16df   :  { %14368 = vmatpush1.bf16.msra.mxu1 %v20908_v56 }
0x16e0   :  { %14409 = vmatpush1.bf16.msra.mxu0 %v20911_v28  ;;  %14369 = vmatprep.subr.bf16.mxu1 %v20916_v22 }
0x16e1   :  { %14410 = vmatprep.subr.bf16.mxu0 %v20919_v6 }
0x16e3   :  { %14370 = vmatpush1.bf16.msra.mxu1 %v20914_v8 }
0x16e4   :  { %14411 = vmatpush1.bf16.msra.mxu0 %v20917_v60  ;;  %14371 = vmatprep.subr.bf16.mxu1 %v20922_v35 }
0x16e5   :  { %14412 = vmatprep.subr.bf16.mxu0 %v20925_v55 }
0x16e7   :  { %14372 = vmatpush1.bf16.msra.mxu1 %v20920_v14 }
0x16e8   :  { %14413 = vmatpush1.bf16.msra.mxu0 %v20923_v23  ;;  %14373 = vmatprep.subr.bf16.mxu1 %v20928_v48 }
0x16e9   :  { %14414 = vmatprep.subr.bf16.mxu0 %v20931_v57 }
0x16eb   :  { %14374 = vmatpush2.bf16.msra.mxu1 %v20926_v21 }
0x16ec   :  { %14415 = vmatpush2.bf16.msra.mxu0 %v20929_v5  ;;  %14375 = vmatprep.subr.bf16.mxu1 %v20934_v10 }
0x16ed   :  { %14416 = vmatprep.subr.bf16.mxu0 %v20937_v63 }
0x16ef   :  { %14376 = vmatpush2.bf16.msra.mxu1 %v20932_v18 }
0x16f0   :  { %14417 = vmatpush2.bf16.msra.mxu0 %v20935_v50  ;;  %14377 = vmatprep.subr.bf16.mxu1 %v20940_v33 }
0x16f1   :  { %14418 = vmatprep.subr.bf16.mxu0 %v20943_v53 }
0x16f3   :  { %14378 = vmatpush2.bf16.msra.mxu1 %v20938_v24 }
0x16f4   :  { %14419 = vmatpush2.bf16.msra.mxu0 %v20941_v17  ;;  %14379 = vmatprep.subr.bf16.mxu1 %v20946_v3 }
0x16f5   :  { %14420 = vmatprep.subr.bf16.mxu0 %v20949_v20 }
0x16f7   :  { %14380 = vmatpush2.bf16.msra.mxu1 %v20944_v1 }
0x16f8   :  { %14421 = vmatpush2.bf16.msra.mxu0 %v20947_v0  ;;  %14381 = vmatprep.subr.bf16.mxu1 %v20952_v7 }
0x16f9   :  { %14422 = vmatprep.subr.bf16.mxu0 %v20955_v25 }
0x16fb   :  { %14382 = vmatpush2.bf16.msra.mxu1 %v20950_v2 }
0x16fc   :  { %14423 = vmatpush2.bf16.msra.mxu0 %v20953_v62  ;;  %14383 = vmatprep.subr.bf16.mxu1 %v20958_v4 }
0x16fd   :  { %14424 = vmatprep.subr.bf16.mxu0 %v20961_v58 }
0x16ff   :  { %14384 = vmatpush2.bf16.msra.mxu1 %v20956_v59 }
0x1700   :  { %14425 = vmatpush2.bf16.msra.mxu0 %v20959_v31  ;;  %14385 = vmatprep.subr.bf16.mxu1 %v20964_v15 }
0x1701   :  { %14426 = vmatprep.subr.bf16.mxu0 %v20967_v54 }
0x1703   :  { %14386 = vmatpush2.bf16.msra.mxu1 %v20962_v42 }
0x1704   :  { %14427 = vmatpush2.bf16.msra.mxu0 %v20965_v36  ;;  %14387 = vmatprep.subr.bf16.mxu1 %v20970_v41 }
0x1705   :  { %14428 = vmatprep.subr.bf16.mxu0 %v20973_v16 }
0x1707   :  { %14388 = vmatpush2.bf16.msra.mxu1 %v20968_v61 }
0x1708   :  { %14429 = vmatpush2.bf16.msra.mxu0 %v20971_v43 }
0x170a   :  { %v14145_v32 = vpop.f32.mrf.mxu1  ;;  %14390 = vmatmul.mubr.bf16.vlgmr.msra.gmra.mxu1 %v23240_v12 }
0x170b   :  { %v14186_v39 = vpop.f32.mrf.mxu0  ;;  %14431 = vmatmul.mubr.bf16.vlgmr.msra.gmra.mxu0 %v23242_v52  ;;  %v14146_v13 = vadd.f32 %v14145_v32, %v23312_v11 }
0x170c   :  { %v14147_v19 = vpop.f32.mrf.mxu1 }
0x170d   :  { %v14188_v40 = vpop.f32.mrf.mxu0  ;;  %v14187_v29 = vadd.f32 %v14186_v39, %v14146_v13  ;;  %v14148_v38 = vadd.f32 %v14147_v19, %v23316_v34 }
0x170e   :  { %v14149_v44 = vpop.f32.mrf.mxu1 }
0x170f   :  { %v14190_v56 = vpop.f32.mrf.mxu0  ;;  %v14189_v28 = vadd.f32 %v14188_v40, %v14148_v38 }
0x1710   :  { %v14150_v22 = vpop.f32.mrf.mxu1 }
0x1711   :  { %v14191_v6 = vpop.f32.mrf.mxu0 }
0x174a   :  { %v14227_v8 = vpop.f32.mrf.mxu1 }
0x174b   :  { %v14268_v60 = vpop.f32.mrf.mxu0  ;;  %v14228_v35 = vadd.f32 %v14227_v8, %v14187_v29 }
0x174c   :  { %v14229_v55 = vpop.f32.mrf.mxu1 }
0x174d   :  { %v14270_v14 = vpop.f32.mrf.mxu0  ;;  %v14269_v12 = vadd.f32 %v14268_v60, %v14228_v35  ;;  %v14230_v23 = vadd.f32 %v14229_v55, %v14189_v28 }
0x174e   :  { %v14231_v52 = vpop.f32.mrf.mxu1 }
0x174f   :  { %v14272_v48 = vpop.f32.mrf.mxu0  ;;  %v14271_v11 = vadd.f32 %v14270_v14, %v14230_v23 }
0x1750   :  { %v14232_v57 = vpop.f32.mrf.mxu1 }
0x1751   :  { %v14273_v21 = vpop.f32.mrf.mxu0 }
0x178a   :  { %v14309_v5 = vpop.f32.mrf.mxu1 }
0x178b   :  { %v14350_v10 = vpop.f32.mrf.mxu0  ;;  %v14310_v34 = vadd.f32 %v14309_v5, %v14269_v12 }
0x178c   :  { %v14311_v63 = vpop.f32.mrf.mxu1 }
0x178d   :  { %v14352_v18 = vpop.f32.mrf.mxu0  ;;  %v14351_v50 = vadd.f32 %v14350_v10, %v14310_v34  ;;  %v14312_v3 = vadd.f32 %v14311_v63, %v14271_v11 }
0x178e   :  { %v14313_v33 = vpop.f32.mrf.mxu1 }
0x178f   :  { %v14354_v53 = vpop.f32.mrf.mxu0  ;;  %v14353_v0 = vadd.f32 %v14352_v18, %v14312_v3 }
0x1790   :  { %v14314_v24 = vpop.f32.mrf.mxu1 }
0x1791   :  { %v14355_v17 = vpop.f32.mrf.mxu0 }
0x17ca   :  { %v14391_v20 = vpop.f32.mrf.mxu1 }
0x17cb   :  { %v14432_v1 = vpop.f32.mrf.mxu0  ;;  %v14392_v7 = vadd.f32 %v14391_v20, %v14351_v50 }
0x17cc   :  { %v14393_v25 = vpop.f32.mrf.mxu1 }
0x17cd   :  { %v14434_v2 = vpop.f32.mrf.mxu0  ;;  %v14433_v62 = vadd.f32 %v14432_v1, %v14392_v7  ;;  %v14394_v4 = vadd.f32 %v14393_v25, %v14353_v0 }
0x17ce   :  { %v14395_v58 = vpop.f32.mrf.mxu1 }
0x17cf   :  { %v14436_v59 = vpop.f32.mrf.mxu0  ;;  %v23322_v31 = vmax.f32 %v14433_v62, 0.0  ;;  %v14435_v15 = vadd.f32 %v14434_v2, %v14394_v4 }
0x17d0   :  { %v14396_v54 = vpop.f32.mrf.mxu1 }
0x17d1   :  { %v14437_v42 = vpop.f32.mrf.mxu0  ;;  %v14449_v36 = vrot.slane %v23322_v31, 1  ;;  %v14457_v41 = vrot.slane %v23322_v31, 2  ;;  %v14465_v16 = vrot.slane %v23322_v31, 3  ;;  %v14473_v61 = vpack.c.bf16 %v23322_v31, %v23322_v31 }
0x17d2   :  { %v14442_v43 = vmax.f32 %v14435_v15, 0.0 }
0x17d3   :  { %v23329_v32 = vpack.c.bf16 %v14449_v36, %v14449_v36  ;;  %v23331_v39 = vpack.c.bf16 %v14457_v41, %v14457_v41  ;;  %v23333_v13 = vpack.c.bf16 %v14465_v16, %v14465_v16 }
0x17d4   :  { %v14450_v19 = vrot.slane %v14442_v43, 1  ;;  %v14458_v40 = vrot.slane %v14442_v43, 2  ;;  %v14466_v29 = vrot.slane %v14442_v43, 3  ;;  %v14474_v38 = vpack.c.bf16 %v14442_v43, %v14442_v43 }
0x17d6   :  { %v23335_v44 = vpack.c.bf16 %v14450_v19, %v14450_v19  ;;  %v23337_v56 = vpack.c.bf16 %v14458_v40, %v14458_v40  ;;  %v23339_v28 = vpack.c.bf16 %v14466_v29, %v14466_v29 }
0x17d7   :  { %21599 = dma.done.wait [#allocation16 + $0x3], 16384 }
0x17d8   :  { %21600 = vsyncadd [#allocation16 + $0x3], 4294950912  ;;  %15548 = vmatprep.mubr.bf16.mxu1 %v14472_v47  ;;  %15588 = vmatprep.mubr.bf16.mxu0 %v14474_v38  ;;  %v20975_v22 = vld [vmem:[#allocation15 + $0x78] sm:$0xff]   ;;  %v20979_v35 = vld [vmem:[#allocation15 + $0x70] sm:$0xff]   ;;  %s23486_s6 = sld [smem:[#allocation95_spill]]  ;;  %vm21680_vm0 = vmmov 0  }
0x17d9   :  { %v20976_v6 = vld [vmem:[#allocation15 + $0xf8] sm:$0xff]   ;;  %18449 = vmatprep.subr.bf16.mxu1 %v20975_v22  ;;  %v20980_v55 = vld [vmem:[#allocation15 + $0xf0] sm:$0xff]   ;;  %v20983_v23 = vld [vmem:[#allocation15 + $0x68] sm:$0xff]   ;;  %s23488_s22 = sld [smem:[#allocation74_spill]]  ;;  %s21681_s23 = smov [#allocation48]   ;;  %vm16006_vm2 = vcmask 0  }
0x17da   :  { %v20977_v8 = vld [vmem:[#allocation15 + $0x38] sm:$0xff]   ;;  %18471 = vmatprep.subr.bf16.mxu0 %v20976_v6  ;;  %v20981_v14 = vld [vmem:[#allocation15 + $0x30] sm:$0xff]   ;;  %v20984_v45 = vld [vmem:[#allocation15 + $0xe8] sm:$0xff]   ;;  %s16014_s26 = sshll.u32 %s21681_s23, 4  ;;  %s16015_s26 = int_to_ptr.vmem [resolvable:$true] %s16014_s26 }
0x17db   :  { %v20978_v60 = vld [vmem:[#allocation15 + $0xb8] sm:$0xff]   ;;  %18450 = vmatpush3.bf16.msra.mxu1 %v20977_v8  ;;  %v20982_v12 = vld [vmem:[#allocation15 + $0xb0] sm:$0xff]   ;;  %v20985_v47 = vld [vmem:[#allocation15 + $0x28] sm:$0xff]   ;;  %s21557_s3 = scalar_lea.vmem %s16015_s26, 32  ;;  %p21558_p13 = scmp.lt.s32.totalorder %s16015_s26, %s16015_s26 }
0x17dc   :  { %18472 = vmatpush3.bf16.msra.mxu0 %v20978_v60  ;;  %18451 = vmatprep.subr.bf16.mxu1 %v20979_v35  ;;  %v20986_v52 = vld [vmem:[#allocation15 + $0xa8] sm:$0xff]   ;;  %v20987_v48 = vld [vmem:[#allocation15 + $0x60] sm:$0xff]   ;;  %v20991_v5 = vld [vmem:[#allocation15 + $0x58] sm:$0xff]  }
0x17dd   :  { %18473 = vmatprep.subr.bf16.mxu0 %v20980_v55  ;;  %v20988_v11 = vld [vmem:[#allocation15 + $0xe0] sm:$0xff]   ;;  %v20992_v10 = vld [vmem:[#allocation15 + $0xd8] sm:$0xff]   ;;  %v20995_v18 = vld [vmem:[#allocation15 + $0x50] sm:$0xff]  }
0x17de   :  { %v20989_v57 = vld [vmem:[#allocation15 + $0x20] sm:$0xff]   ;;  %v20993_v34 = vld [vmem:[#allocation15 + $0x18] sm:$0xff]   ;;  %v20996_v50 = vld [vmem:[#allocation15 + $0xd0] sm:$0xff]  }
0x17df   :  { %18452 = vmatpush3.bf16.msra.mxu1 %v20981_v14  ;;  %v20990_v21 = vld [vmem:[#allocation15 + $0xa0] sm:$0xff]   ;;  %v20994_v63 = vld [vmem:[#allocation15 + $0x98] sm:$0xff]   ;;  %v20997_v33 = vld [vmem:[#allocation15 + $0x10] sm:$0xff]  }
0x17e0   :  { %18474 = vmatpush3.bf16.msra.mxu0 %v20982_v12  ;;  %18453 = vmatprep.subr.bf16.mxu1 %v20983_v23  ;;  %v20998_v53 = vld [vmem:[#allocation15 + $0x90] sm:$0xff]   ;;  %v20999_v24 = vld [vmem:[#allocation15 + $0x48] sm:$0xff]   ;;  %v21003_v1 = vld [vmem:[#allocation15 + $0x40] sm:$0xff]  }
0x17e1   :  { %18475 = vmatprep.subr.bf16.mxu0 %v20984_v45  ;;  %v21000_v17 = vld [vmem:[#allocation15 + $0xc8] sm:$0xff]   ;;  %v21004_v0 = vld [vmem:[#allocation15 + $0xc0] sm:$0xff]   ;;  %v21007_v2 = vld [vmem:[#allocation15 + $0x178] sm:$0xff]  }
0x17e2   :  { %v21001_v3 = vld [vmem:[#allocation15 + $0x8] sm:$0xff]   ;;  %v21005_v7 = vld [vmem:[#allocation15] sm:$0xff]   ;;  %v21008_v62 = vld [vmem:[#allocation15 + $0x1f8] sm:$0xff]  }
0x17e3   :  { %18454 = vmatpush3.bf16.msra.mxu1 %v20985_v47  ;;  %v21002_v20 = vld [vmem:[#allocation15 + $0x88] sm:$0xff]   ;;  %v21006_v25 = vld [vmem:[#allocation15 + $0x80] sm:$0xff]   ;;  %v21009_v4 = vld [vmem:[#allocation15 + $0x138] sm:$0xff]  }
0x17e4   :  { %18476 = vmatpush3.bf16.msra.mxu0 %v20986_v52  ;;  %18455 = vmatprep.subr.bf16.mxu1 %v20987_v48  ;;  %v21010_v58 = vld [vmem:[#allocation15 + $0x1b8] sm:$0xff]   ;;  %v21011_v59 = vld [vmem:[#allocation15 + $0x170] sm:$0xff]   ;;  %v21015_v37 = vld [vmem:[#allocation15 + $0x168] sm:$0xff]  }
0x17e5   :  { %18477 = vmatprep.subr.bf16.mxu0 %v20988_v11  ;;  %v21012_v15 = vld [vmem:[#allocation15 + $0x1f0] sm:$0xff]   ;;  %v21017_v36 = vld [vmem:[#allocation15 + $0x128] sm:$0xff]   ;;  %v21019_v41 = vld [vmem:[#allocation15 + $0x160] sm:$0xff]  }
0x17e6   :  { %v21013_v54 = vld [vmem:[#allocation15 + $0x130] sm:$0xff]   ;;  %v21018_v31 = vld [vmem:[#allocation15 + $0x1a8] sm:$0xff]   ;;  %v21020_v16 = vld [vmem:[#allocation15 + $0x1e0] sm:$0xff]  }
0x17e7   :  { %18456 = vmatpush3.bf16.msra.mxu1 %v20989_v57  ;;  %v21014_v42 = vld [vmem:[#allocation15 + $0x1b0] sm:$0xff]   ;;  %v21023_v43 = vld [vmem:[#allocation15 + $0x158] sm:$0xff]   ;;  %v21031_v8 = vld [vmem:[#allocation15 + $0x148] sm:$0xff]  }
0x17e8   :  { %18478 = vmatpush3.bf16.msra.mxu0 %v20990_v21  ;;  %18457 = vmatprep.subr.bf16.mxu1 %v20991_v5  ;;  %v21024_v19 = vld [vmem:[#allocation15 + $0x1d8] sm:$0xff]   ;;  %v21027_v38 = vld [vmem:[#allocation15 + $0x150] sm:$0xff]   ;;  %v21032_v60 = vld [vmem:[#allocation15 + $0x1c8] sm:$0xff]  }
0x17e9   :  { %18479 = vmatprep.subr.bf16.mxu0 %v20992_v10  ;;  %v21025_v40 = vld [vmem:[#allocation15 + $0x118] sm:$0xff]   ;;  %v21029_v22 = vld [vmem:[#allocation15 + $0x110] sm:$0xff]   ;;  %v21033_v35 = vld [vmem:[#allocation15 + $0x108] sm:$0xff]  }
0x17ea   :  { %v21026_v29 = vld [vmem:[#allocation15 + $0x198] sm:$0xff]   ;;  %v21030_v6 = vld [vmem:[#allocation15 + $0x190] sm:$0xff]   ;;  %v21034_v55 = vld [vmem:[#allocation15 + $0x188] sm:$0xff]  }
0x17eb   :  { %18458 = vmatpush3.bf16.msra.mxu1 %v20993_v34  ;;  %v21035_v14 = vld [vmem:[#allocation15 + $0x140] sm:$0xff]   ;;  %v21039_v47 = vld [vmem:[#allocation15 + $0x278] sm:$0xff]   ;;  %v21043_v57 = vld [vmem:[#allocation15 + $0x270] sm:$0xff]  }
0x17ec   :  { %18480 = vmatpush3.bf16.msra.mxu0 %v20994_v63  ;;  %18459 = vmatprep.subr.bf16.mxu1 %v20995_v18  ;;  %v21036_v12 = vld [vmem:[#allocation15 + $0x1c0] sm:$0xff]   ;;  %v21040_v52 = vld [vmem:[#allocation15 + $0x2f8] sm:$0xff]   ;;  %v21044_v21 = vld [vmem:[#allocation15 + $0x2f0] sm:$0xff]  }
0x17ed   :  { %18481 = vmatprep.subr.bf16.mxu0 %v20996_v50  ;;  %v21037_v23 = vld [vmem:[#allocation15 + $0x100] sm:$0xff]   ;;  %v21041_v48 = vld [vmem:[#allocation15 + $0x238] sm:$0xff]   ;;  %v21045_v5 = vld [vmem:[#allocation15 + $0x230] sm:$0xff]  }
0x17ee   :  { %v21038_v45 = vld [vmem:[#allocation15 + $0x180] sm:$0xff]   ;;  %v21042_v11 = vld [vmem:[#allocation15 + $0x2b8] sm:$0xff]   ;;  %v21046_v10 = vld [vmem:[#allocation15 + $0x2b0] sm:$0xff]  }
0x17ef   :  { %18460 = vmatpush3.bf16.msra.mxu1 %v20997_v33  ;;  %v21047_v34 = vld [vmem:[#allocation15 + $0x268] sm:$0xff]   ;;  %v21051_v18 = vld [vmem:[#allocation15 + $0x260] sm:$0xff]  }
0x17f0   :  { %18482 = vmatpush3.bf16.msra.mxu0 %v20998_v53  ;;  %18461 = vmatprep.subr.bf16.mxu1 %v20999_v24  ;;  %v21049_v63 = vld [vmem:[#allocation15 + $0x228] sm:$0xff]   ;;  %v21052_v50 = vld [vmem:[#allocation15 + $0x2e0] sm:$0xff]   ;;  %v21056_v53 = vld [vmem:[#allocation15 + $0x2d8] sm:$0xff]  }
0x17f1   :  { %18483 = vmatprep.subr.bf16.mxu0 %v21000_v17  ;;  %v21054_v33 = vld [vmem:[#allocation15 + $0x2a0] sm:$0xff]   ;;  %v21057_v24 = vld [vmem:[#allocation15 + $0x218] sm:$0xff]  }
0x17f2   :  { %v21058_v17 = vld [vmem:[#allocation15 + $0x298] sm:$0xff]  }
0x17f3   :  { %18462 = vmatpush3.bf16.msra.mxu1 %v21001_v3  ;;  %v21059_v3 = vld [vmem:[#allocation15 + $0x250] sm:$0xff]  }
0x17f4   :  { %18484 = vmatpush3.bf16.msra.mxu0 %v21002_v20  ;;  %18463 = vmatprep.subr.bf16.mxu1 %v21003_v1  ;;  %v21060_v20 = vld [vmem:[#allocation15 + $0x2d0] sm:$0xff]  }
0x17f5   :  { %18485 = vmatprep.subr.bf16.mxu0 %v21004_v0  ;;  %v21061_v1 = vld [vmem:[#allocation15 + $0x210] sm:$0xff]  }
0x17f6   :  { %v21062_v0 = vld [vmem:[#allocation15 + $0x290] sm:$0xff]  }
0x17f7   :  { %18464 = vmatpush3.bf16.msra.mxu1 %v21005_v7  ;;  %v21063_v7 = vld [vmem:[#allocation15 + $0x248] sm:$0xff]  }
0x17f8   :  { %18486 = vmatpush3.bf16.msra.mxu0 %v21006_v25  ;;  %18493 = vmatprep.subr.bf16.mxu1 %v21007_v2  ;;  %v21064_v25 = vld [vmem:[#allocation15 + $0x2c8] sm:$0xff]  }
0x17f9   :  { %18515 = vmatprep.subr.bf16.mxu0 %v21008_v62  ;;  %v21065_v2 = vld [vmem:[#allocation15 + $0x208] sm:$0xff]  }
0x17fa   :  { %15549 = vmatmul.mubr.bf16.vlgmr.msra.gmra.mxu1 %v14471_v49  ;;  %v21016_v49 = vld [vmem:[#allocation15 + $0x1e8] sm:$0xff]  }
0x17fb   :  { %15589 = vmatmul.mubr.bf16.vlgmr.msra.gmra.mxu0 %v14473_v61  ;;  %18494 = vmatpush3.bf16.msra.mxu1 %v21009_v4  ;;  %v21022_v61 = vld [vmem:[#allocation15 + $0x1a0] sm:$0xff]   ;;  %v21066_v62 = vld [vmem:[#allocation15 + $0x288] sm:$0xff]  }
0x17fc   :  { %18516 = vmatpush3.bf16.msra.mxu0 %v21010_v58  ;;  %15628 = vmatprep.mubr.bf16.mxu1 %v23300_v27  ;;  %v21021_v27 = vld [vmem:[#allocation15 + $0x120] sm:$0xff]  }
0x17fd   :  { %18495 = vmatprep.subr.bf16.mxu1 %v21011_v59  ;;  %15668 = vmatprep.mubr.bf16.mxu0 %v23335_v44  ;;  %v21028_v44 = vld [vmem:[#allocation15 + $0x1d0] sm:$0xff]   ;;  %v21067_v4 = vld [vmem:[#allocation15 + $0x240] sm:$0xff]  }
0x17fe   :  { %18517 = vmatprep.subr.bf16.mxu0 %v21012_v15  ;;  %v21068_v58 = vld [vmem:[#allocation15 + $0x2c0] sm:$0xff]  }
0x17ff   :  { %18496 = vmatpush3.bf16.msra.mxu1 %v21013_v54  ;;  %v21069_v59 = vld [vmem:[#allocation15 + $0x200] sm:$0xff]   ;;  %v21071_v54 = vld [vmem:[#allocation15 + $0x378] sm:$0xff]  }
0x1800   :  { %18518 = vmatpush3.bf16.msra.mxu0 %v21014_v42  ;;  %18497 = vmatprep.subr.bf16.mxu1 %v21015_v37  ;;  %v21070_v15 = vld [vmem:[#allocation15 + $0x280] sm:$0xff]   ;;  %v21072_v42 = vld [vmem:[#allocation15 + $0x3f8] sm:$0xff]  }
0x1801   :  { %18519 = vmatprep.subr.bf16.mxu0 %v21016_v49  ;;  %v21073_v37 = vld [vmem:[#allocation15 + $0x338] sm:$0xff]  }
0x1802   :  { %v21074_v49 = vld [vmem:[#allocation15 + $0x3b8] sm:$0xff]  }
0x1803   :  { %18498 = vmatpush3.bf16.msra.mxu1 %v21017_v36  ;;  %v21075_v36 = vld [vmem:[#allocation15 + $0x370] sm:$0xff]  }
0x1804   :  { %18520 = vmatpush3.bf16.msra.mxu0 %v21018_v31  ;;  %18499 = vmatprep.subr.bf16.mxu1 %v21019_v41  ;;  %v21076_v31 = vld [vmem:[#allocation15 + $0x3f0] sm:$0xff]  }
0x1805   :  { %18521 = vmatprep.subr.bf16.mxu0 %v21020_v16  ;;  %v21077_v41 = vld [vmem:[#allocation15 + $0x330] sm:$0xff]  }
0x1806   :  { %v21078_v16 = vld [vmem:[#allocation15 + $0x3b0] sm:$0xff]  }
0x1807   :  { %18500 = vmatpush3.bf16.msra.mxu1 %v21021_v27  ;;  %v21079_v27 = vld [vmem:[#allocation15 + $0x368] sm:$0xff]  }
0x1808   :  { %18522 = vmatpush3.bf16.msra.mxu0 %v21022_v61  ;;  %18501 = vmatprep.subr.bf16.mxu1 %v21023_v43  ;;  %v21081_v61 = vld [vmem:[#allocation15 + $0x328] sm:$0xff]   ;;  %v21083_v43 = vld [vmem:[#allocation15 + $0x360] sm:$0xff]  }
0x1809   :  { %18523 = vmatprep.subr.bf16.mxu0 %v21024_v19  ;;  %v21084_v19 = vld [vmem:[#allocation15 + $0x3e0] sm:$0xff]  }
0x180b   :  { %18502 = vmatpush3.bf16.msra.mxu1 %v21025_v40  ;;  %v21086_v40 = vld [vmem:[#allocation15 + $0x3a0] sm:$0xff]  }
0x180c   :  { %18524 = vmatpush3.bf16.msra.mxu0 %v21026_v29  ;;  %18503 = vmatprep.subr.bf16.mxu1 %v21027_v38  ;;  %v21088_v29 = vld [vmem:[#allocation15 + $0x3d8] sm:$0xff]  }
0x180d   :  { %18525 = vmatprep.subr.bf16.mxu0 %v21028_v44  ;;  %v21089_v38 = vld [vmem:[#allocation15 + $0x318] sm:$0xff]  }
0x180e   :  { %v21090_v44 = vld [vmem:[#allocation15 + $0x398] sm:$0xff]  }
0x180f   :  { %18504 = vmatpush3.bf16.msra.mxu1 %v21029_v22  ;;  %v21091_v22 = vld [vmem:[#allocation15 + $0x350] sm:$0xff]  }
0x1810   :  { %18526 = vmatpush3.bf16.msra.mxu0 %v21030_v6  ;;  %18505 = vmatprep.subr.bf16.mxu1 %v21031_v8  ;;  %v21092_v6 = vld [vmem:[#allocation15 + $0x3d0] sm:$0xff]  }
0x1811   :  { %18527 = vmatprep.subr.bf16.mxu0 %v21032_v60  ;;  %v21093_v8 = vld [vmem:[#allocation15 + $0x310] sm:$0xff]  }
0x1812   :  { %v21094_v60 = vld [vmem:[#allocation15 + $0x390] sm:$0xff]  }
0x1813   :  { %18506 = vmatpush3.bf16.msra.mxu1 %v21033_v35  ;;  %v21095_v35 = vld [vmem:[#allocation15 + $0x348] sm:$0xff]  }
0x1814   :  { %18528 = vmatpush3.bf16.msra.mxu0 %v21034_v55  ;;  %18507 = vmatprep.subr.bf16.mxu1 %v21035_v14  ;;  %v21096_v55 = vld [vmem:[#allocation15 + $0x3c8] sm:$0xff]  }
0x1815   :  { %18529 = vmatprep.subr.bf16.mxu0 %v21036_v12  ;;  %v21097_v14 = vld [vmem:[#allocation15 + $0x308] sm:$0xff]  }
0x1816   :  { %v21098_v12 = vld [vmem:[#allocation15 + $0x388] sm:$0xff]  }
0x1817   :  { %18508 = vmatpush3.bf16.msra.mxu1 %v21037_v23  ;;  %v21099_v23 = vld [vmem:[#allocation15 + $0x340] sm:$0xff]  }
0x1818   :  { %18530 = vmatpush3.bf16.msra.mxu0 %v21038_v45  ;;  %18537 = vmatprep.subr.bf16.mxu1 %v21039_v47  ;;  %v21100_v45 = vld [vmem:[#allocation15 + $0x3c0] sm:$0xff]  }
0x1819   :  { %18559 = vmatprep.subr.bf16.mxu0 %v21040_v52  ;;  %v21101_v47 = vld [vmem:[#allocation15 + $0x300] sm:$0xff]  }
0x181a   :  { %15629 = vmatmul.mubr.bf16.vlgmr.msra.gmra.mxu1 %v23289_v51  ;;  %v21048_v51 = vld [vmem:[#allocation15 + $0x2e8] sm:$0xff]   ;;  %v21102_v52 = vld [vmem:[#allocation15 + $0x380] sm:$0xff]  }
0x181b   :  { %15669 = vmatmul.mubr.bf16.vlgmr.msra.gmra.mxu0 %v23329_v32  ;;  %18538 = vmatpush3.bf16.msra.mxu1 %v21041_v48  ;;  %v21050_v32 = vld [vmem:[#allocation15 + $0x2a8] sm:$0xff]   ;;  %v23487_v48 = vmov 0.0  }
0x181c   :  { %18560 = vmatpush3.bf16.msra.mxu0 %v21042_v11  ;;  %15708 = vmatprep.mubr.bf16.mxu1 %v23302_v9  ;;  %v21053_v9 = vld [vmem:[#allocation15 + $0x220] sm:$0xff]   ;;  %v21103_v11 = vld [vmem:[%s23486_s6 + $0x38] sm:$0xff]  }
0x181d   :  { %18539 = vmatprep.subr.bf16.mxu1 %v21043_v57  ;;  %15748 = vmatprep.mubr.bf16.mxu0 %v23337_v56  ;;  %v21055_v56 = vld [vmem:[#allocation15 + $0x258] sm:$0xff]   ;;  %v21104_v57 = vld [vmem:[%s23486_s6 + $0x30] sm:$0xff]  }
0x181e   :  { %18561 = vmatprep.subr.bf16.mxu0 %v21044_v21  ;;  %v21105_v21 = vld [vmem:[%s23486_s6 + $0x28] sm:$0xff]  }
0x181f   :  { %18540 = vmatpush3.bf16.msra.mxu1 %v21045_v5  ;;  %v21106_v5 = vld [vmem:[%s23486_s6 + $0x20] sm:$0xff]  }
0x1820   :  { %18562 = vmatpush3.bf16.msra.mxu0 %v21046_v10  ;;  %18541 = vmatprep.subr.bf16.mxu1 %v21047_v34  ;;  %v21109_v10 = vld [vmem:[%s23486_s6 + $0x8] sm:$0xff]   ;;  %v21110_v34 = vld [vmem:[%s23486_s6] sm:$0xff]  }
0x1821   :  { %18563 = vmatprep.subr.bf16.mxu0 %v21048_v51  ;;  %v21111_v51 = vld [vmem:[%s21875_s21 + $0x8] sm:$0xff]  }
0x1823   :  { %18542 = vmatpush3.bf16.msra.mxu1 %v21049_v63 }
0x1824   :  { %18564 = vmatpush3.bf16.msra.mxu0 %v21050_v32  ;;  %18543 = vmatprep.subr.bf16.mxu1 %v21051_v18  ;;  %v14747_v18 = vld [vmem:[#allocation45] sm:$0x1] }
0x1825   :  { %18565 = vmatprep.subr.bf16.mxu0 %v21052_v50 }
0x1827   :  { %18544 = vmatpush3.bf16.msra.mxu1 %v21053_v9 }
0x1828   :  { %18566 = vmatpush3.bf16.msra.mxu0 %v21054_v33  ;;  %18545 = vmatprep.subr.bf16.mxu1 %v21055_v56 }
0x1829   :  { %18567 = vmatprep.subr.bf16.mxu0 %v21056_v53 }
0x182b   :  { %18546 = vmatpush3.bf16.msra.mxu1 %v21057_v24 }
0x182c   :  { %18568 = vmatpush3.bf16.msra.mxu0 %v21058_v17  ;;  %18547 = vmatprep.subr.bf16.mxu1 %v21059_v3 }
0x182d   :  { %18569 = vmatprep.subr.bf16.mxu0 %v21060_v20 }
0x182f   :  { %18548 = vmatpush3.bf16.msra.mxu1 %v21061_v1 }
0x1830   :  { %18570 = vmatpush3.bf16.msra.mxu0 %v21062_v0  ;;  %18549 = vmatprep.subr.bf16.mxu1 %v21063_v7 }
0x1831   :  { %18571 = vmatprep.subr.bf16.mxu0 %v21064_v25 }
0x1833   :  { %18550 = vmatpush3.bf16.msra.mxu1 %v21065_v2 }
0x1834   :  { %18572 = vmatpush3.bf16.msra.mxu0 %v21066_v62  ;;  %18551 = vmatprep.subr.bf16.mxu1 %v21067_v4 }
0x1835   :  { %18573 = vmatprep.subr.bf16.mxu0 %v21068_v58 }
0x1837   :  { %18552 = vmatpush3.bf16.msra.mxu1 %v21069_v59 }
0x1838   :  { %18574 = vmatpush3.bf16.msra.mxu0 %v21070_v15  ;;  %18581 = vmatprep.subr.bf16.mxu1 %v21071_v54 }
0x1839   :  { %18603 = vmatprep.subr.bf16.mxu0 %v21072_v42 }
0x183a   :  { %15709 = vmatmul.mubr.bf16.vlgmr.msra.gmra.mxu1 %v23291_v26  ;;  %v21080_v26 = vld [vmem:[#allocation15 + $0x3e8] sm:$0xff]  }
0x183b   :  { %15749 = vmatmul.mubr.bf16.vlgmr.msra.gmra.mxu0 %v23331_v39  ;;  %18582 = vmatpush3.bf16.msra.mxu1 %v21073_v37  ;;  %v21082_v39 = vld [vmem:[#allocation15 + $0x3a8] sm:$0xff]  }
0x183c   :  { %18604 = vmatpush3.bf16.msra.mxu0 %v21074_v49  ;;  %15788 = vmatprep.mubr.bf16.mxu1 %v23304_v30  ;;  %v21085_v30 = vld [vmem:[#allocation15 + $0x320] sm:$0xff]  }
0x183d   :  { %18583 = vmatprep.subr.bf16.mxu1 %v21075_v36  ;;  %15828 = vmatprep.mubr.bf16.mxu0 %v23339_v28  ;;  %v21087_v28 = vld [vmem:[#allocation15 + $0x358] sm:$0xff]  }
0x183e   :  { %18605 = vmatprep.subr.bf16.mxu0 %v21076_v31 }
0x183f   :  { %18584 = vmatpush3.bf16.msra.mxu1 %v21077_v41 }
0x1840   :  { %18606 = vmatpush3.bf16.msra.mxu0 %v21078_v16  ;;  %18585 = vmatprep.subr.bf16.mxu1 %v21079_v27 }
0x1841   :  { %18607 = vmatprep.subr.bf16.mxu0 %v21080_v26 }
0x1843   :  { %18586 = vmatpush3.bf16.msra.mxu1 %v21081_v61 }
0x1844   :  { %18608 = vmatpush3.bf16.msra.mxu0 %v21082_v39  ;;  %18587 = vmatprep.subr.bf16.mxu1 %v21083_v43 }
0x1845   :  { %18609 = vmatprep.subr.bf16.mxu0 %v21084_v19 }
0x1847   :  { %18588 = vmatpush3.bf16.msra.mxu1 %v21085_v30 }
0x1848   :  { %18610 = vmatpush3.bf16.msra.mxu0 %v21086_v40  ;;  %18589 = vmatprep.subr.bf16.mxu1 %v21087_v28 }
0x1849   :  { %18611 = vmatprep.subr.bf16.mxu0 %v21088_v29 }
0x184b   :  { %18590 = vmatpush3.bf16.msra.mxu1 %v21089_v38 }
0x184c   :  { %18612 = vmatpush3.bf16.msra.mxu0 %v21090_v44  ;;  %18591 = vmatprep.subr.bf16.mxu1 %v21091_v22 }
0x184d   :  { %18613 = vmatprep.subr.bf16.mxu0 %v21092_v6 }
0x184f   :  { %18592 = vmatpush3.bf16.msra.mxu1 %v21093_v8 }
0x1850   :  { %18614 = vmatpush3.bf16.msra.mxu0 %v21094_v60  ;;  %18593 = vmatprep.subr.bf16.mxu1 %v21095_v35 }
0x1851   :  { %18615 = vmatprep.subr.bf16.mxu0 %v21096_v55 }
0x1853   :  { %18594 = vmatpush3.bf16.msra.mxu1 %v21097_v14 }
0x1854   :  { %18616 = vmatpush3.bf16.msra.mxu0 %v21098_v12  ;;  %18595 = vmatprep.subr.bf16.mxu1 %v21099_v23  ;;  %v21112_v23 = vld [vmem:[%s21875_s21] sm:$0xff]   ;;  %s21553_s21 = scalar_lea.vmem %s16015_s26, 16 }
0x1855   :  { %18617 = vmatprep.subr.bf16.mxu0 %v21100_v45  ;;  %v15853_v45 = vld [vmem:[#allocation46] sm:$0x1]  ;;  %p21554_p12 = scmp.ne.s32.totalorder %s16015_s26, %s21553_s21  ;;  %p21559_p0 = scmp.lt.s32.totalorder %s21557_s3, %s21553_s21 }
0x1857   :  { %18596 = vmatpush3.bf16.msra.mxu1 %v21101_v47  ;;  %p21560_p1 = por %p21559_p0, %p21558_p13 }
0x1858   :  { %18618 = vmatpush3.bf16.msra.mxu0 %v21102_v52  ;;  %18821 = vmatprep.subr.bf16.mxu1 %v23487_v48 }
0x1859   :  { %18841 = vmatprep.subr.bf16.mxu0 %v23487_v48  ;;  %p21561_p2 = pnand %p21560_p1, %p21554_p12 }
0x185a   :  { %15789 = vmatmul.mubr.bf16.vlgmr.msra.gmra.mxu1 %v23293_v46  ;;  %v21107_v46 = vld [vmem:[%s23486_s6 + $0x18] sm:$0xff]  }
0x185b   :  { %15829 = vmatmul.mubr.bf16.vlgmr.msra.gmra.mxu0 %v23333_v13  ;;  %18822 = vmatpush3.bf16.msra.mxu1 %v21103_v11  ;;  %v21108_v13 = vld [vmem:[%s23486_s6 + $0x10] sm:$0xff]  }
0x185c   :  { %18823 = vmatprep.subr.bf16.mxu1 %v23487_v48  ;;  %18837 = vmatprep.mubr.msk.bf16.mxu1 %vm21680_vm0, %v23487_v48 }
0x185d   :  { %18845 = vmatprep.mubr.msk.bf16.mxu0 %vm21680_vm0, %v23487_v48  ;;  %18842 = vmatpush3.bf16.msra.mxu0 %v21111_v51 }
0x185e   :  { %18843 = vmatprep.subr.bf16.mxu0 %v23487_v48 }
0x185f   :  { %18824 = vmatpush3.bf16.msra.mxu1 %v21104_v57 }
0x1860   :  { %18825 = vmatprep.subr.bf16.mxu1 %v23487_v48 }
0x1861   :  { %18844 = vmatpush3.bf16.msra.mxu0 %v21112_v23 }
0x1863   :  { %18826 = vmatpush3.bf16.msra.mxu1 %v21105_v21 }
0x1864   :  { %18827 = vmatprep.subr.bf16.mxu1 %v23487_v48 }
0x1867   :  { %18828 = vmatpush3.bf16.msra.mxu1 %v21106_v5  ;;  %v15947_v5 = vld [vmem:[#allocation18] sm:$0x1] }
0x1868   :  { %18829 = vmatprep.subr.bf16.mxu1 %v23487_v48 }
0x186b   :  { %18830 = vmatpush3.bf16.msra.mxu1 %v21107_v46 }
0x186c   :  { %18831 = vmatprep.subr.bf16.mxu1 %v23487_v48 }
0x186f   :  { %18832 = vmatpush3.bf16.msra.mxu1 %v21108_v13  ;;  %v16004_v13 = vstv %s23488_s22 }
0x1870   :  { %18833 = vmatprep.subr.bf16.mxu1 %v23487_v48 }
0x1873   :  { %18834 = vmatpush3.bf16.msra.mxu1 %v21109_v10 }
0x1874   :  { %18835 = vmatprep.subr.bf16.mxu1 %v23487_v48 }
0x1877   :  { %18836 = vmatpush3.bf16.msra.mxu1 %v21110_v34 }
0x18ba   :  { %v18465_v63 = vpop.f32.mrf.mxu1 }
0x18bb   :  { %v18487_v32 = vpop.f32.mrf.mxu0 }
0x18bc   :  { %v18466_v50 = vpop.f32.mrf.mxu1 }
0x18bd   :  { %v18467_v9 = vadd.f32 %v18466_v50, %v18465_v63  ;;  %v18488_v33 = vpop.f32.mrf.mxu0 }
0x18be   :  { %v18489_v56 = vadd.f32 %v18488_v33, %v18487_v32  ;;  %v18468_v53 = vpop.f32.mrf.mxu1 }
0x18bf   :  { %v15551_v24 = vadd.f32 %v18467_v9, %v14747_v18  ;;  %v18490_v17 = vpop.f32.mrf.mxu0 }
0x18c0   :  { %v18469_v3 = vpop.f32.mrf.mxu1 }
0x18c1   :  { %v15591_v20 = vadd.f32 %v18489_v56, %v15551_v24  ;;  %v18491_v1 = vpop.f32.mrf.mxu0 }
0x18da   :  { %v18509_v0 = vpop.f32.mrf.mxu1 }
0x18db   :  { %v18531_v7 = vpop.f32.mrf.mxu0 }
0x18dc   :  { %v18510_v25 = vpop.f32.mrf.mxu1 }
0x18dd   :  { %v18532_v2 = vpop.f32.mrf.mxu0  ;;  %v18511_v16 = vadd.f32 %v18510_v25, %v18509_v0 }
0x18de   :  { %v18512_v62 = vpop.f32.mrf.mxu1  ;;  %v18533_v26 = vadd.f32 %v18532_v2, %v18531_v7 }
0x18df   :  { %v18534_v4 = vpop.f32.mrf.mxu0  ;;  %v15631_v27 = vadd.f32 %v18511_v16, %v15591_v20 }
0x18e0   :  { %v18513_v58 = vpop.f32.mrf.mxu1 }
0x18e1   :  { %v18535_v59 = vpop.f32.mrf.mxu0  ;;  %v15671_v39 = vadd.f32 %v18533_v26, %v15631_v27 }
0x18fa   :  { %v18553_v15 = vpop.f32.mrf.mxu1 }
0x18fb   :  { %v18575_v54 = vpop.f32.mrf.mxu0 }
0x18fc   :  { %v18554_v42 = vpop.f32.mrf.mxu1 }
0x18fd   :  { %v18576_v37 = vpop.f32.mrf.mxu0  ;;  %v18555_v61 = vadd.f32 %v18554_v42, %v18553_v15 }
0x18fe   :  { %v18556_v49 = vpop.f32.mrf.mxu1  ;;  %v18577_v19 = vadd.f32 %v18576_v37, %v18575_v54 }
0x18ff   :  { %v18578_v36 = vpop.f32.mrf.mxu0  ;;  %v15711_v43 = vadd.f32 %v18555_v61, %v15671_v39 }
0x1900   :  { %v18557_v31 = vpop.f32.mrf.mxu1 }
0x1901   :  { %v18579_v41 = vpop.f32.mrf.mxu0  ;;  %v15751_v29 = vadd.f32 %v18577_v19, %v15711_v43 }
0x191a   :  { %v18597_v30 = vpop.f32.mrf.mxu1 }
0x191b   :  { %v18619_v40 = vpop.f32.mrf.mxu0 }
0x191c   :  { %v18598_v28 = vpop.f32.mrf.mxu1 }
0x191d   :  { %v18599_v38 = vadd.f32 %v18598_v28, %v18597_v30  ;;  %v18620_v44 = vpop.f32.mrf.mxu0 }
0x191e   :  { %v18600_v22 = vpop.f32.mrf.mxu1  ;;  %v18621_v8 = vadd.f32 %v18620_v44, %v18619_v40 }
0x191f   :  { %v15791_v6 = vadd.f32 %v18599_v38, %v15751_v29  ;;  %v18622_v60 = vpop.f32.mrf.mxu0 }
0x1920   :  { %v18601_v35 = vpop.f32.mrf.mxu1 }
0x1921   :  { %v15831_v55 = vadd.f32 %v18621_v8, %v15791_v6  ;;  %v18623_v14 = vpop.f32.mrf.mxu0 }
0x1923   :  { %v15836_v12 = vpack.c.bf16 %v15831_v55, %v15831_v55 }
0x1925   :  { %18838 = vmatmul.mubr.bf16.vlgmr.msra.gmra.mxu1 %v15836_v12 }
0x19e5   :  { %v15936_v47 = vpop.f32.mrf.mxu1 }
0x19e6   :  { %v15937_v52 = vadd.f32 %v15936_v47, %v15853_v45 }
0x19e7   :  { %v18839_v48 = vpop.f32.mrf.mxu1 }
0x19e8   :  { %v15942_v11 = vpack.c.bf16 %v15937_v52, %v15937_v52 }
0x19e9   :  { %v15939_v57 = vpop.f32.mrf.mxu1 }
0x19ea   :  { %18846 = vmatmul.mubr.msk.bf16.vlgmr.msra.gmra.mxu0 %vm897_vm9, %v15942_v11 }
0x19eb   :  { %v18840_v21 = vpop.f32.mrf.mxu1 }
0x1aaa   :  { %v15997_v46 = vpop.f32.mrf.mxu0 }
0x1aab   :  { %v15998_v10 = vadd.f32 %v15997_v46, %v15947_v5 }
0x1aac   :  { %v18847_v34 = vpop.f32.mrf.mxu0 }
0x1aad   :  { %v16005_v51 = vmul.f32 %v16004_v13, %v15998_v10 }
0x1aae   :  { %v16000_v63 = vpop.f32.mrf.mxu0 }
0x1aaf   :  { %16007 = vst.msk [vmem:[#allocation48] sm:$0x1] %vm16006_vm2, %v16005_v51 }
0x1ab0   :  { %v18848_v32 = vpop.f32.mrf.mxu0 }
0x1ab1   :  { %21564 = shalt.err (!%p21561_p2)
}
0x1ab2   :  { %16017 = dma.vmem_to_hbm [thread:$0]  %s16015_s26, 16, %s21883_s9, [#allocation21]  }
0x1ab3   :  { %21601 = dma.done.wait [#allocation21], 16  }
0x1ab4   :  { %21602 = vsyncadd [#allocation21], 4294967280 }
0x1ab5   :  { %16021 = vsyncpa [#allocation20], 1 }
0x1ab6   :  { %16022 = vsyncpa [#allocation23], 1 }
0x1ab7   :  { %16023 = vsyncpa [#allocation26], 1 }
0x1ab8   :  { %16024 = vsyncpa [#allocation29], 1 }
0x1ab9   :  { %16025 = vsyncpa [#allocation32], 1 }
0x1aba   :  { %16026 = vsyncpa [#allocation35], 1 }
0x1abb   :  { %16027 = vsyncpa [#allocation38], 1 }
0x1abc   :  { %16028 = vsyncpa [#allocation41], 1 }
0x1abd   :  { %16029 = vsyncpa [#allocation44], 1 }
0x1abe   :  { %16030 = vsyncpa [#allocation47], 1 }
0x1abf   :  { %16031 = vsyncpa [#allocation21], 1 }
0x1ac0   :  { %16032 = vsyncmov [#allocation16] }
0x1ac3   :  { %s16033_s24 = vpop.sfrf %16032 }
0x1ac4   :  { %p17721_p3 = scmp.ne.s32.totalorder %s16033_s24, 0 }
0x1ac6   :  { %16037 = shalt.err (%p17721_p3)  }
0x1ac7   :  { %16039 = vsyncmov [#allocation16 + $0x1] }
0x1aca   :  { %s16040_s11 = vpop.sfrf %16039 }
0x1acb   :  { %p17722_p4 = scmp.ne.s32.totalorder %s16040_s11, 0 }
0x1acd   :  { %16044 = shalt.err (%p17722_p4)  }
0x1ace   :  { %16046 = vsyncmov [#allocation16 + $0x2] }
0x1ad1   :  { %s16047_s9 = vpop.sfrf %16046 }
0x1ad2   :  { %p17723_p5 = scmp.ne.s32.totalorder %s16047_s9, 0 }
0x1ad4   :  { %16051 = shalt.err (%p17723_p5)  }
0x1ad5   :  { %16053 = vsyncmov [#allocation16 + $0x3] }
0x1ad8   :  { %s16054_s16 = vpop.sfrf %16053 }
0x1ad9   :  { %p17724_p6 = scmp.ne.s32.totalorder %s16054_s16, 0 }
0x1adb   :  { %16058 = shalt.err (%p17724_p6)  }

</bundles_post_ra>
